<compile_context>
chip_gen: v5e
topology: v5e:2x2
jax: 0.10.0
libtpu: 0.0.40
codegen_flags: <defaults>
</compile_context>

<pallas_src>
from functools import partial

import jax
import jax.numpy as jnp
from jax.experimental import pallas as pl
from jax.experimental.pallas import tpu as pltpu


def _pde_field_kernel(comb_ref, x_ref, o_ref, xpad_ref, col_ref, *, ksize):
    """Single invocation over the whole batch.

    comb_ref : SMEM (K*K,)             f32  folded (expert-mean + 0.01*mask) kernel
    x_ref    : VMEM (B, H, W)          f32  raw field (unpadded)
    o_ref    : VMEM (B, H, W)          f32  output
    xpad_ref : VMEM (B, H+K-1, W+K-1)  f32  scratch: zero-padded field
    col_ref  : VMEM (B, H+K-1, W)      f32  scratch: per-kx column-shifted slab
    """
    B, H, W = o_ref.shape
    K = ksize
    pad = (K - 1) // 2

    # Build the zero halo in VMEM (padding never touches HBM).
    xpad_ref[...] = jnp.zeros_like(xpad_ref)
    xpad_ref[:, pad:pad + H, pad:pad + W] = x_ref[...]

    acc = jnp.zeros((B, H, W), jnp.float32)
    for kx in range(K):
        # One lane (column) shift per kx, staged through VMEM so the inner ky
        # loop only needs sublane-offset loads (no cross-lane XLU work there).
        col_ref[...] = xpad_ref[:, :, kx:kx + W]
        for ky in range(K):
            acc = acc + comb_ref[ky * K + kx] * col_ref[:, ky:ky + H, :]

    o_ref[...] = acc.astype(o_ref.dtype)


@jax.jit
def pde_field_forward(field_state, expert_weights, ephaptic_mask):
    """field_state: (B,1,H,W) f32; expert_weights: (E,3,3); ephaptic_mask: (K,K)."""
    B, C, H, W = field_state.shape
    assert C == 1, "PDEField operates on a single-channel field"
    K = ephaptic_mask.shape[0]
    assert K % 2 == 1 and K >= 3
    c = K // 2

    # Fold both linear ops into a single KxK kernel:
    #   mean_e conv3x3(w_e) + 0.01 * convKxK(mask)  ==  convKxK(combined)
    w_mean = expert_weights.astype(jnp.float32).mean(axis=0)              # (3,3)
    combined = 0.01 * ephaptic_mask.astype(jnp.float32)                   # (K,K)
    combined = combined.at[c - 1:c + 2, c - 1:c + 2].add(w_mean)
    comb_flat = combined.reshape(-1)                                      # (K*K,)

    x = field_state[:, 0].astype(jnp.float32)                             # (B,H,W)

    out = pl.pallas_call(
        partial(_pde_field_kernel, ksize=K),
        out_shape=jax.ShapeDtypeStruct((B, H, W), jnp.float32),
        in_specs=[
            pl.BlockSpec(memory_space=pltpu.MemorySpace.SMEM),   # folded kernel taps
            pl.BlockSpec(memory_space=pltpu.MemorySpace.VMEM),   # raw field
        ],
        out_specs=pl.BlockSpec(memory_space=pltpu.MemorySpace.VMEM),
        scratch_shapes=[
            pltpu.VMEM((B, H + K - 1, W + K - 1), jnp.float32),  # padded field
            pltpu.VMEM((B, H + K - 1, W), jnp.float32),          # per-kx column slab
        ],
    )(comb_flat, x)

    return out[:, None, :, :]                                             # (B,1,H,W)


# ----------------------------------------------------------------------------- #
# Deterministic parameter construction (mirrors PDEField.__init__)
# ----------------------------------------------------------------------------- #
def make_pde_field_params(field_size=16, num_experts=4, ephaptic_range=5, seed=0):
    key = jax.random.PRNGKey(seed)
    # nn.Conv2d(1,1,3) weights, init normal(mean=0, std=0.1)
    expert_weights = 0.1 * jax.random.normal(key, (num_experts, 3, 3), jnp.float32)

    ksize = field_size if field_size % 2 == 1 else field_size - 1
    yy, xx = jnp.meshgrid(jnp.arange(ksize), jnp.arange(ksize), indexing="ij")
    center = ksize // 2
    dist = jnp.sqrt(((xx - center) ** 2 + (yy - center) ** 2).astype(jnp.float32))
    ephaptic_mask = jnp.exp(-dist / ephaptic_range)
    return expert_weights, ephaptic_mask


# Pure-JAX reference (XLA conv, highest precision) for a silent sanity check.
def _reference(field_state, expert_weights, ephaptic_mask):
    dn = ("NCHW", "OIHW", "NCHW")
    prec = jax.lax.Precision.HIGHEST
    outs = []
    for e in range(expert_weights.shape[0]):
        w = expert_weights[e][None, None]  # (1,1,3,3)
        outs.append(jax.lax.conv_general_dilated(
            field_state, w, (1, 1), ((1, 1), (1, 1)),
            dimension_numbers=dn, precision=prec))
    expert_mean = jnp.mean(jnp.stack(outs), axis=0)
    K = ephaptic_mask.shape[0]
    p = (K - 1) // 2
    eph = jax.lax.conv_general_dilated(
        field_state, ephaptic_mask[None, None], (1, 1), ((p, p), (p, p)),
        dimension_numbers=dn, precision=prec)
    return expert_mean + 0.01 * eph


if __name__ == "__main__":
    # Small shapes consistent with the module: batch=2, single-channel 16x16 field.
    B, field_size, num_experts, ephaptic_range = 2, 16, 4, 5

    key = jax.random.PRNGKey(0)
    k_field, _ = jax.random.split(key)
    field_state = jax.random.normal(k_field, (B, 1, field_size, field_size), jnp.float32)

    expert_weights, ephaptic_mask = make_pde_field_params(
        field_size=field_size, num_experts=num_experts,
        ephaptic_range=ephaptic_range, seed=0)

    out = pde_field_forward(field_state, expert_weights, ephaptic_mask)
    out = jax.block_until_ready(out)

    ref = jax.block_until_ready(_reference(field_state, expert_weights, ephaptic_mask))
    assert out.shape == (B, 1, field_size, field_size)
    assert jnp.allclose(out, ref, atol=1e-3, rtol=1e-3), "Pallas output mismatch vs reference"

    print("KERNEL_OK")
</pallas_src>

<mosaic_0001>
module attributes {stable_mosaic.version = 11 : i64} {
  func.func @_pde_field_kernel(%arg0: memref<225xf32, #tpu.memory_space<smem>>, %arg1: memref<2x16x16xf32, #tpu.memory_space<vmem>>, %arg2: memref<2x16x16xf32, #tpu.memory_space<vmem>>, %arg3: memref<2x30x30xf32, #tpu.memory_space<vmem>>, %arg4: memref<2x30x16xf32, #tpu.memory_space<vmem>>) attributes {dimension_semantics = [], scalar_prefetch = 0 : i64, scratch_operands = 2 : i64, tpu.core_type = #tpu.core_type<tc>} {
    %cst = arith.constant 0.000000e+00 : f32
    %0 = vector.broadcast %cst : f32 to vector<2x30x30xf32>
    %c0 = arith.constant 0 : index
    %c0_0 = arith.constant 0 : index
    %c0_1 = arith.constant 0 : index
    %1 = vector.load %arg3[%c0, %c0_0, %c0_1] : memref<2x30x30xf32, #tpu.memory_space<vmem>>, vector<2x30x30xf32>
    tpu.vector_store %arg3[%c0, %c0_0, %c0_1], %0 {strides = array<i32>} : memref<2x30x30xf32, #tpu.memory_space<vmem>>, vector<2x30x30xf32>,
    %c0_2 = arith.constant 0 : index
    %c0_3 = arith.constant 0 : index
    %c0_4 = arith.constant 0 : index
    %2 = vector.load %arg1[%c0_2, %c0_3, %c0_4] : memref<2x16x16xf32, #tpu.memory_space<vmem>>, vector<2x16x16xf32>
    %c0_5 = arith.constant 0 : index
    %c7 = arith.constant 7 : index
    %c7_6 = arith.constant 7 : index
    %3 = vector.load %arg3[%c0_5, %c7, %c7_6] : memref<2x30x30xf32, #tpu.memory_space<vmem>>, vector<2x16x16xf32>
    tpu.vector_store %arg3[%c0_5, %c7, %c7_6], %2 {strides = array<i32>} : memref<2x30x30xf32, #tpu.memory_space<vmem>>, vector<2x16x16xf32>,
    %cst_7 = arith.constant 0.000000e+00 : f32
    %4 = vector.broadcast %cst_7 : f32 to vector<2x16x16xf32>
    %c0_8 = arith.constant 0 : index
    %c0_9 = arith.constant 0 : index
    %c0_10 = arith.constant 0 : index
    %5 = vector.load %arg3[%c0_8, %c0_9, %c0_10] : memref<2x30x30xf32, #tpu.memory_space<vmem>>, vector<2x30x16xf32>
    %c0_11 = arith.constant 0 : index
    %c0_12 = arith.constant 0 : index
    %c0_13 = arith.constant 0 : index
    %6 = vector.load %arg4[%c0_11, %c0_12, %c0_13] : memref<2x30x16xf32, #tpu.memory_space<vmem>>, vector<2x30x16xf32>
    tpu.vector_store %arg4[%c0_11, %c0_12, %c0_13], %5 {strides = array<i32>} : memref<2x30x16xf32, #tpu.memory_space<vmem>>, vector<2x30x16xf32>,
    %c0_14 = arith.constant 0 : index
    %7 = memref.load %arg0[%c0_14] : memref<225xf32, #tpu.memory_space<smem>>
    %c0_15 = arith.constant 0 : index
    %c0_16 = arith.constant 0 : index
    %c0_17 = arith.constant 0 : index
    %8 = vector.load %arg4[%c0_15, %c0_16, %c0_17] : memref<2x30x16xf32, #tpu.memory_space<vmem>>, vector<2x16x16xf32>
    %9 = vector.broadcast %7 : f32 to vector<2x16x16xf32>
    %10 = arith.mulf %9, %8 : vector<2x16x16xf32>
    %11 = arith.addf %4, %10 : vector<2x16x16xf32>
    %c15 = arith.constant 15 : index
    %12 = memref.load %arg0[%c15] : memref<225xf32, #tpu.memory_space<smem>>
    %c0_18 = arith.constant 0 : index
    %c1 = arith.constant 1 : index
    %c0_19 = arith.constant 0 : index
    %13 = vector.load %arg4[%c0_18, %c1, %c0_19] : memref<2x30x16xf32, #tpu.memory_space<vmem>>, vector<2x16x16xf32>
    %14 = vector.broadcast %12 : f32 to vector<2x16x16xf32>
    %15 = arith.mulf %14, %13 : vector<2x16x16xf32>
    %16 = arith.addf %11, %15 : vector<2x16x16xf32>
    %c30 = arith.constant 30 : index
    %17 = memref.load %arg0[%c30] : memref<225xf32, #tpu.memory_space<smem>>
    %c0_20 = arith.constant 0 : index
    %c2 = arith.constant 2 : index
    %c0_21 = arith.constant 0 : index
    %18 = vector.load %arg4[%c0_20, %c2, %c0_21] : memref<2x30x16xf32, #tpu.memory_space<vmem>>, vector<2x16x16xf32>
    %19 = vector.broadcast %17 : f32 to vector<2x16x16xf32>
    %20 = arith.mulf %19, %18 : vector<2x16x16xf32>
    %21 = arith.addf %16, %20 : vector<2x16x16xf32>
    %c45 = arith.constant 45 : index
    %22 = memref.load %arg0[%c45] : memref<225xf32, #tpu.memory_space<smem>>
    %c0_22 = arith.constant 0 : index
    %c3 = arith.constant 3 : index
    %c0_23 = arith.constant 0 : index
    %23 = vector.load %arg4[%c0_22, %c3, %c0_23] : memref<2x30x16xf32, #tpu.memory_space<vmem>>, vector<2x16x16xf32>
    %24 = vector.broadcast %22 : f32 to vector<2x16x16xf32>
    %25 = arith.mulf %24, %23 : vector<2x16x16xf32>
    %26 = arith.addf %21, %25 : vector<2x16x16xf32>
    %c60 = arith.constant 60 : index
    %27 = memref.load %arg0[%c60] : memref<225xf32, #tpu.memory_space<smem>>
    %c0_24 = arith.constant 0 : index
    %c4 = arith.constant 4 : index
    %c0_25 = arith.constant 0 : index
    %28 = vector.load %arg4[%c0_24, %c4, %c0_25] : memref<2x30x16xf32, #tpu.memory_space<vmem>>, vector<2x16x16xf32>
    %29 = vector.broadcast %27 : f32 to vector<2x16x16xf32>
    %30 = arith.mulf %29, %28 : vector<2x16x16xf32>
    %31 = arith.addf %26, %30 : vector<2x16x16xf32>
    %c75 = arith.constant 75 : index
    %32 = memref.load %arg0[%c75] : memref<225xf32, #tpu.memory_space<smem>>
    %c0_26 = arith.constant 0 : index
    %c5 = arith.constant 5 : index
    %c0_27 = arith.constant 0 : index
    %33 = vector.load %arg4[%c0_26, %c5, %c0_27] : memref<2x30x16xf32, #tpu.memory_space<vmem>>, vector<2x16x16xf32>
    %34 = vector.broadcast %32 : f32 to vector<2x16x16xf32>
    %35 = arith.mulf %34, %33 : vector<2x16x16xf32>
    %36 = arith.addf %31, %35 : vector<2x16x16xf32>
    %c90 = arith.constant 90 : index
    %37 = memref.load %arg0[%c90] : memref<225xf32, #tpu.memory_space<smem>>
    %c0_28 = arith.constant 0 : index
    %c6 = arith.constant 6 : index
    %c0_29 = arith.constant 0 : index
    %38 = vector.load %arg4[%c0_28, %c6, %c0_29] : memref<2x30x16xf32, #tpu.memory_space<vmem>>, vector<2x16x16xf32>
    %39 = vector.broadcast %37 : f32 to vector<2x16x16xf32>
    %40 = arith.mulf %39, %38 : vector<2x16x16xf32>
    %41 = arith.addf %36, %40 : vector<2x16x16xf32>
    %c105 = arith.constant 105 : index
    %42 = memref.load %arg0[%c105] : memref<225xf32, #tpu.memory_space<smem>>
    %c0_30 = arith.constant 0 : index
    %c7_31 = arith.constant 7 : index
    %c0_32 = arith.constant 0 : index
    %43 = vector.load %arg4[%c0_30, %c7_31, %c0_32] : memref<2x30x16xf32, #tpu.memory_space<vmem>>, vector<2x16x16xf32>
    %44 = vector.broadcast %42 : f32 to vector<2x16x16xf32>
    %45 = arith.mulf %44, %43 : vector<2x16x16xf32>
    %46 = arith.addf %41, %45 : vector<2x16x16xf32>
    %c120 = arith.constant 120 : index
    %47 = memref.load %arg0[%c120] : memref<225xf32, #tpu.memory_space<smem>>
    %c0_33 = arith.constant 0 : index
    %c8 = arith.constant 8 : index
    %c0_34 = arith.constant 0 : index
    %48 = vector.load %arg4[%c0_33, %c8, %c0_34] : memref<2x30x16xf32, #tpu.memory_space<vmem>>, vector<2x16x16xf32>
    %49 = vector.broadcast %47 : f32 to vector<2x16x16xf32>
    %50 = arith.mulf %49, %48 : vector<2x16x16xf32>
    %51 = arith.addf %46, %50 : vector<2x16x16xf32>
    %c135 = arith.constant 135 : index
    %52 = memref.load %arg0[%c135] : memref<225xf32, #tpu.memory_space<smem>>
    %c0_35 = arith.constant 0 : index
    %c9 = arith.constant 9 : index
    %c0_36 = arith.constant 0 : index
    %53 = vector.load %arg4[%c0_35, %c9, %c0_36] : memref<2x30x16xf32, #tpu.memory_space<vmem>>, vector<2x16x16xf32>
    %54 = vector.broadcast %52 : f32 to vector<2x16x16xf32>
    %55 = arith.mulf %54, %53 : vector<2x16x16xf32>
    %56 = arith.addf %51, %55 : vector<2x16x16xf32>
    %c150 = arith.constant 150 : index
    %57 = memref.load %arg0[%c150] : memref<225xf32, #tpu.memory_space<smem>>
    %c0_37 = arith.constant 0 : index
    %c10 = arith.constant 10 : index
    %c0_38 = arith.constant 0 : index
    %58 = vector.load %arg4[%c0_37, %c10, %c0_38] : memref<2x30x16xf32, #tpu.memory_space<vmem>>, vector<2x16x16xf32>
    %59 = vector.broadcast %57 : f32 to vector<2x16x16xf32>
    %60 = arith.mulf %59, %58 : vector<2x16x16xf32>
    %61 = arith.addf %56, %60 : vector<2x16x16xf32>
    %c165 = arith.constant 165 : index
    %62 = memref.load %arg0[%c165] : memref<225xf32, #tpu.memory_space<smem>>
    %c0_39 = arith.constant 0 : index
    %c11 = arith.constant 11 : index
    %c0_40 = arith.constant 0 : index
    %63 = vector.load %arg4[%c0_39, %c11, %c0_40] : memref<2x30x16xf32, #tpu.memory_space<vmem>>, vector<2x16x16xf32>
    %64 = vector.broadcast %62 : f32 to vector<2x16x16xf32>
    %65 = arith.mulf %64, %63 : vector<2x16x16xf32>
    %66 = arith.addf %61, %65 : vector<2x16x16xf32>
    %c180 = arith.constant 180 : index
    %67 = memref.load %arg0[%c180] : memref<225xf32, #tpu.memory_space<smem>>
    %c0_41 = arith.constant 0 : index
    %c12 = arith.constant 12 : index
    %c0_42 = arith.constant 0 : index
    %68 = vector.load %arg4[%c0_41, %c12, %c0_42] : memref<2x30x16xf32, #tpu.memory_space<vmem>>, vector<2x16x16xf32>
    %69 = vector.broadcast %67 : f32 to vector<2x16x16xf32>
    %70 = arith.mulf %69, %68 : vector<2x16x16xf32>
    %71 = arith.addf %66, %70 : vector<2x16x16xf32>
    %c195 = arith.constant 195 : index
    %72 = memref.load %arg0[%c195] : memref<225xf32, #tpu.memory_space<smem>>
    %c0_43 = arith.constant 0 : index
    %c13 = arith.constant 13 : index
    %c0_44 = arith.constant 0 : index
    %73 = vector.load %arg4[%c0_43, %c13, %c0_44] : memref<2x30x16xf32, #tpu.memory_space<vmem>>, vector<2x16x16xf32>
    %74 = vector.broadcast %72 : f32 to vector<2x16x16xf32>
    %75 = arith.mulf %74, %73 : vector<2x16x16xf32>
    %76 = arith.addf %71, %75 : vector<2x16x16xf32>
    %c210 = arith.constant 210 : index
    %77 = memref.load %arg0[%c210] : memref<225xf32, #tpu.memory_space<smem>>
    %c0_45 = arith.constant 0 : index
    %c14 = arith.constant 14 : index
    %c0_46 = arith.constant 0 : index
    %78 = vector.load %arg4[%c0_45, %c14, %c0_46] : memref<2x30x16xf32, #tpu.memory_space<vmem>>, vector<2x16x16xf32>
    %79 = vector.broadcast %77 : f32 to vector<2x16x16xf32>
    %80 = arith.mulf %79, %78 : vector<2x16x16xf32>
    %81 = arith.addf %76, %80 : vector<2x16x16xf32>
    %c0_47 = arith.constant 0 : index
    %c0_48 = arith.constant 0 : index
    %c1_49 = arith.constant 1 : index
    %82 = vector.load %arg3[%c0_47, %c0_48, %c1_49] : memref<2x30x30xf32, #tpu.memory_space<vmem>>, vector<2x30x16xf32>
    %c0_50 = arith.constant 0 : index
    %c0_51 = arith.constant 0 : index
    %c0_52 = arith.constant 0 : index
    %83 = vector.load %arg4[%c0_50, %c0_51, %c0_52] : memref<2x30x16xf32, #tpu.memory_space<vmem>>, vector<2x30x16xf32>
    tpu.vector_store %arg4[%c0_50, %c0_51, %c0_52], %82 {strides = array<i32>} : memref<2x30x16xf32, #tpu.memory_space<vmem>>, vector<2x30x16xf32>,
    %c1_53 = arith.constant 1 : index
    %84 = memref.load %arg0[%c1_53] : memref<225xf32, #tpu.memory_space<smem>>
    %c0_54 = arith.constant 0 : index
    %c0_55 = arith.constant 0 : index
    %c0_56 = arith.constant 0 : index
    %85 = vector.load %arg4[%c0_54, %c0_55, %c0_56] : memref<2x30x16xf32, #tpu.memory_space<vmem>>, vector<2x16x16xf32>
    %86 = vector.broadcast %84 : f32 to vector<2x16x16xf32>
    %87 = arith.mulf %86, %85 : vector<2x16x16xf32>
    %88 = arith.addf %81, %87 : vector<2x16x16xf32>
    %c16 = arith.constant 16 : index
    %89 = memref.load %arg0[%c16] : memref<225xf32, #tpu.memory_space<smem>>
    %c0_57 = arith.constant 0 : index
    %c1_58 = arith.constant 1 : index
    %c0_59 = arith.constant 0 : index
    %90 = vector.load %arg4[%c0_57, %c1_58, %c0_59] : memref<2x30x16xf32, #tpu.memory_space<vmem>>, vector<2x16x16xf32>
    %91 = vector.broadcast %89 : f32 to vector<2x16x16xf32>
    %92 = arith.mulf %91, %90 : vector<2x16x16xf32>
    %93 = arith.addf %88, %92 : vector<2x16x16xf32>
    %c31 = arith.constant 31 : index
    %94 = memref.load %arg0[%c31] : memref<225xf32, #tpu.memory_space<smem>>
    %c0_60 = arith.constant 0 : index
    %c2_61 = arith.constant 2 : index
    %c0_62 = arith.constant 0 : index
    %95 = vector.load %arg4[%c0_60, %c2_61, %c0_62] : memref<2x30x16xf32, #tpu.memory_space<vmem>>, vector<2x16x16xf32>
    %96 = vector.broadcast %94 : f32 to vector<2x16x16xf32>
    %97 = arith.mulf %96, %95 : vector<2x16x16xf32>
    %98 = arith.addf %93, %97 : vector<2x16x16xf32>
    %c46 = arith.constant 46 : index
    %99 = memref.load %arg0[%c46] : memref<225xf32, #tpu.memory_space<smem>>
    %c0_63 = arith.constant 0 : index
    %c3_64 = arith.constant 3 : index
    %c0_65 = arith.constant 0 : index
    %100 = vector.load %arg4[%c0_63, %c3_64, %c0_65] : memref<2x30x16xf32, #tpu.memory_space<vmem>>, vector<2x16x16xf32>
    %101 = vector.broadcast %99 : f32 to vector<2x16x16xf32>
    %102 = arith.mulf %101, %100 : vector<2x16x16xf32>
    %103 = arith.addf %98, %102 : vector<2x16x16xf32>
    %c61 = arith.constant 61 : index
    %104 = memref.load %arg0[%c61] : memref<225xf32, #tpu.memory_space<smem>>
    %c0_66 = arith.constant 0 : index
    %c4_67 = arith.constant 4 : index
    %c0_68 = arith.constant 0 : index
    %105 = vector.load %arg4[%c0_66, %c4_67, %c0_68] : memref<2x30x16xf32, #tpu.memory_space<vmem>>, vector<2x16x16xf32>
    %106 = vector.broadcast %104 : f32 to vector<2x16x16xf32>
    %107 = arith.mulf %106, %105 : vector<2x16x16xf32>
    %108 = arith.addf %103, %107 : vector<2x16x16xf32>
    %c76 = arith.constant 76 : index
    %109 = memref.load %arg0[%c76] : memref<225xf32, #tpu.memory_space<smem>>
    %c0_69 = arith.constant 0 : index
    %c5_70 = arith.constant 5 : index
    %c0_71 = arith.constant 0 : index
    %110 = vector.load %arg4[%c0_69, %c5_70, %c0_71] : memref<2x30x16xf32, #tpu.memory_space<vmem>>, vector<2x16x16xf32>
    %111 = vector.broadcast %109 : f32 to vector<2x16x16xf32>
    %112 = arith.mulf %111, %110 : vector<2x16x16xf32>
    %113 = arith.addf %108, %112 : vector<2x16x16xf32>
    %c91 = arith.constant 91 : index
    %114 = memref.load %arg0[%c91] : memref<225xf32, #tpu.memory_space<smem>>
    %c0_72 = arith.constant 0 : index
    %c6_73 = arith.constant 6 : index
    %c0_74 = arith.constant 0 : index
    %115 = vector.load %arg4[%c0_72, %c6_73, %c0_74] : memref<2x30x16xf32, #tpu.memory_space<vmem>>, vector<2x16x16xf32>
    %116 = vector.broadcast %114 : f32 to vector<2x16x16xf32>
    %117 = arith.mulf %116, %115 : vector<2x16x16xf32>
    %118 = arith.addf %113, %117 : vector<2x16x16xf32>
    %c106 = arith.constant 106 : index
    %119 = memref.load %arg0[%c106] : memref<225xf32, #tpu.memory_space<smem>>
    %c0_75 = arith.constant 0 : index
    %c7_76 = arith.constant 7 : index
    %c0_77 = arith.constant 0 : index
    %120 = vector.load %arg4[%c0_75, %c7_76, %c0_77] : memref<2x30x16xf32, #tpu.memory_space<vmem>>, vector<2x16x16xf32>
    %121 = vector.broadcast %119 : f32 to vector<2x16x16xf32>
    %122 = arith.mulf %121, %120 : vector<2x16x16xf32>
    %123 = arith.addf %118, %122 : vector<2x16x16xf32>
    %c121 = arith.constant 121 : index
    %124 = memref.load %arg0[%c121] : memref<225xf32, #tpu.memory_space<smem>>
    %c0_78 = arith.constant 0 : index
    %c8_79 = arith.constant 8 : index
    %c0_80 = arith.constant 0 : index
    %125 = vector.load %arg4[%c0_78, %c8_79, %c0_80] : memref<2x30x16xf32, #tpu.memory_space<vmem>>, vector<2x16x16xf32>
    %126 = vector.broadcast %124 : f32 to vector<2x16x16xf32>
    %127 = arith.mulf %126, %125 : vector<2x16x16xf32>
    %128 = arith.addf %123, %127 : vector<2x16x16xf32>
    %c136 = arith.constant 136 : index
    %129 = memref.load %arg0[%c136] : memref<225xf32, #tpu.memory_space<smem>>
    %c0_81 = arith.constant 0 : index
    %c9_82 = arith.constant 9 : index
    %c0_83 = arith.constant 0 : index
    %130 = vector.load %arg4[%c0_81, %c9_82, %c0_83] : memref<2x30x16xf32, #tpu.memory_space<vmem>>, vector<2x16x16xf32>
    %131 = vector.broadcast %129 : f32 to vector<2x16x16xf32>
    %132 = arith.mulf %131, %130 : vector<2x16x16xf32>
    %133 = arith.addf %128, %132 : vector<2x16x16xf32>
    %c151 = arith.constant 151 : index
    %134 = memref.load %arg0[%c151] : memref<225xf32, #tpu.memory_space<smem>>
    %c0_84 = arith.constant 0 : index
    %c10_85 = arith.constant 10 : index
    %c0_86 = arith.constant 0 : index
    %135 = vector.load %arg4[%c0_84, %c10_85, %c0_86] : memref<2x30x16xf32, #tpu.memory_space<vmem>>, vector<2x16x16xf32>
    %136 = vector.broadcast %134 : f32 to vector<2x16x16xf32>
    %137 = arith.mulf %136, %135 : vector<2x16x16xf32>
    %138 = arith.addf %133, %137 : vector<2x16x16xf32>
    %c166 = arith.constant 166 : index
    %139 = memref.load %arg0[%c166] : memref<225xf32, #tpu.memory_space<smem>>
    %c0_87 = arith.constant 0 : index
    %c11_88 = arith.constant 11 : index
    %c0_89 = arith.constant 0 : index
    %140 = vector.load %arg4[%c0_87, %c11_88, %c0_89] : memref<2x30x16xf32, #tpu.memory_space<vmem>>, vector<2x16x16xf32>
    %141 = vector.broadcast %139 : f32 to vector<2x16x16xf32>
    %142 = arith.mulf %141, %140 : vector<2x16x16xf32>
    %143 = arith.addf %138, %142 : vector<2x16x16xf32>
    %c181 = arith.constant 181 : index
    %144 = memref.load %arg0[%c181] : memref<225xf32, #tpu.memory_space<smem>>
    %c0_90 = arith.constant 0 : index
    %c12_91 = arith.constant 12 : index
    %c0_92 = arith.constant 0 : index
    %145 = vector.load %arg4[%c0_90, %c12_91, %c0_92] : memref<2x30x16xf32, #tpu.memory_space<vmem>>, vector<2x16x16xf32>
    %146 = vector.broadcast %144 : f32 to vector<2x16x16xf32>
    %147 = arith.mulf %146, %145 : vector<2x16x16xf32>
    %148 = arith.addf %143, %147 : vector<2x16x16xf32>
    %c196 = arith.constant 196 : index
    %149 = memref.load %arg0[%c196] : memref<225xf32, #tpu.memory_space<smem>>
    %c0_93 = arith.constant 0 : index
    %c13_94 = arith.constant 13 : index
    %c0_95 = arith.constant 0 : index
    %150 = vector.load %arg4[%c0_93, %c13_94, %c0_95] : memref<2x30x16xf32, #tpu.memory_space<vmem>>, vector<2x16x16xf32>
    %151 = vector.broadcast %149 : f32 to vector<2x16x16xf32>
    %152 = arith.mulf %151, %150 : vector<2x16x16xf32>
    %153 = arith.addf %148, %152 : vector<2x16x16xf32>
    %c211 = arith.constant 211 : index
    %154 = memref.load %arg0[%c211] : memref<225xf32, #tpu.memory_space<smem>>
    %c0_96 = arith.constant 0 : index
    %c14_97 = arith.constant 14 : index
    %c0_98 = arith.constant 0 : index
    %155 = vector.load %arg4[%c0_96, %c14_97, %c0_98] : memref<2x30x16xf32, #tpu.memory_space<vmem>>, vector<2x16x16xf32>
    %156 = vector.broadcast %154 : f32 to vector<2x16x16xf32>
    %157 = arith.mulf %156, %155 : vector<2x16x16xf32>
    %158 = arith.addf %153, %157 : vector<2x16x16xf32>
    %c0_99 = arith.constant 0 : index
    %c0_100 = arith.constant 0 : index
    %c2_101 = arith.constant 2 : index
    %159 = vector.load %arg3[%c0_99, %c0_100, %c2_101] : memref<2x30x30xf32, #tpu.memory_space<vmem>>, vector<2x30x16xf32>
    %c0_102 = arith.constant 0 : index
    %c0_103 = arith.constant 0 : index
    %c0_104 = arith.constant 0 : index
    %160 = vector.load %arg4[%c0_102, %c0_103, %c0_104] : memref<2x30x16xf32, #tpu.memory_space<vmem>>, vector<2x30x16xf32>
    tpu.vector_store %arg4[%c0_102, %c0_103, %c0_104], %159 {strides = array<i32>} : memref<2x30x16xf32, #tpu.memory_space<vmem>>, vector<2x30x16xf32>,
    %c2_105 = arith.constant 2 : index
    %161 = memref.load %arg0[%c2_105] : memref<225xf32, #tpu.memory_space<smem>>
    %c0_106 = arith.constant 0 : index
    %c0_107 = arith.constant 0 : index
    %c0_108 = arith.constant 0 : index
    %162 = vector.load %arg4[%c0_106, %c0_107, %c0_108] : memref<2x30x16xf32, #tpu.memory_space<vmem>>, vector<2x16x16xf32>
    %163 = vector.broadcast %161 : f32 to vector<2x16x16xf32>
    %164 = arith.mulf %163, %162 : vector<2x16x16xf32>
    %165 = arith.addf %158, %164 : vector<2x16x16xf32>
    %c17 = arith.constant 17 : index
    %166 = memref.load %arg0[%c17] : memref<225xf32, #tpu.memory_space<smem>>
    %c0_109 = arith.constant 0 : index
    %c1_110 = arith.constant 1 : index
    %c0_111 = arith.constant 0 : index
    %167 = vector.load %arg4[%c0_109, %c1_110, %c0_111] : memref<2x30x16xf32, #tpu.memory_space<vmem>>, vector<2x16x16xf32>
    %168 = vector.broadcast %166 : f32 to vector<2x16x16xf32>
    %169 = arith.mulf %168, %167 : vector<2x16x16xf32>
    %170 = arith.addf %165, %169 : vector<2x16x16xf32>
    %c32 = arith.constant 32 : index
    %171 = memref.load %arg0[%c32] : memref<225xf32, #tpu.memory_space<smem>>
    %c0_112 = arith.constant 0 : index
    %c2_113 = arith.constant 2 : index
    %c0_114 = arith.constant 0 : index
    %172 = vector.load %arg4[%c0_112, %c2_113, %c0_114] : memref<2x30x16xf32, #tpu.memory_space<vmem>>, vector<2x16x16xf32>
    %173 = vector.broadcast %171 : f32 to vector<2x16x16xf32>
    %174 = arith.mulf %173, %172 : vector<2x16x16xf32>
    %175 = arith.addf %170, %174 : vector<2x16x16xf32>
    %c47 = arith.constant 47 : index
    %176 = memref.load %arg0[%c47] : memref<225xf32, #tpu.memory_space<smem>>
    %c0_115 = arith.constant 0 : index
    %c3_116 = arith.constant 3 : index
    %c0_117 = arith.constant 0 : index
    %177 = vector.load %arg4[%c0_115, %c3_116, %c0_117] : memref<2x30x16xf32, #tpu.memory_space<vmem>>, vector<2x16x16xf32>
    %178 = vector.broadcast %176 : f32 to vector<2x16x16xf32>
    %179 = arith.mulf %178, %177 : vector<2x16x16xf32>
    %180 = arith.addf %175, %179 : vector<2x16x16xf32>
    %c62 = arith.constant 62 : index
    %181 = memref.load %arg0[%c62] : memref<225xf32, #tpu.memory_space<smem>>
    %c0_118 = arith.constant 0 : index
    %c4_119 = arith.constant 4 : index
    %c0_120 = arith.constant 0 : index
    %182 = vector.load %arg4[%c0_118, %c4_119, %c0_120] : memref<2x30x16xf32, #tpu.memory_space<vmem>>, vector<2x16x16xf32>
    %183 = vector.broadcast %181 : f32 to vector<2x16x16xf32>
    %184 = arith.mulf %183, %182 : vector<2x16x16xf32>
    %185 = arith.addf %180, %184 : vector<2x16x16xf32>
    %c77 = arith.constant 77 : index
    %186 = memref.load %arg0[%c77] : memref<225xf32, #tpu.memory_space<smem>>
    %c0_121 = arith.constant 0 : index
    %c5_122 = arith.constant 5 : index
    %c0_123 = arith.constant 0 : index
    %187 = vector.load %arg4[%c0_121, %c5_122, %c0_123] : memref<2x30x16xf32, #tpu.memory_space<vmem>>, vector<2x16x16xf32>
    %188 = vector.broadcast %186 : f32 to vector<2x16x16xf32>
    %189 = arith.mulf %188, %187 : vector<2x16x16xf32>
    %190 = arith.addf %185, %189 : vector<2x16x16xf32>
    %c92 = arith.constant 92 : index
    %191 = memref.load %arg0[%c92] : memref<225xf32, #tpu.memory_space<smem>>
    %c0_124 = arith.constant 0 : index
    %c6_125 = arith.constant 6 : index
    %c0_126 = arith.constant 0 : index
    %192 = vector.load %arg4[%c0_124, %c6_125, %c0_126] : memref<2x30x16xf32, #tpu.memory_space<vmem>>, vector<2x16x16xf32>
    %193 = vector.broadcast %191 : f32 to vector<2x16x16xf32>
    %194 = arith.mulf %193, %192 : vector<2x16x16xf32>
    %195 = arith.addf %190, %194 : vector<2x16x16xf32>
    %c107 = arith.constant 107 : index
    %196 = memref.load %arg0[%c107] : memref<225xf32, #tpu.memory_space<smem>>
    %c0_127 = arith.constant 0 : index
    %c7_128 = arith.constant 7 : index
    %c0_129 = arith.constant 0 : index
    %197 = vector.load %arg4[%c0_127, %c7_128, %c0_129] : memref<2x30x16xf32, #tpu.memory_space<vmem>>, vector<2x16x16xf32>
    %198 = vector.broadcast %196 : f32 to vector<2x16x16xf32>
    %199 = arith.mulf %198, %197 : vector<2x16x16xf32>
    %200 = arith.addf %195, %199 : vector<2x16x16xf32>
    %c122 = arith.constant 122 : index
    %201 = memref.load %arg0[%c122] : memref<225xf32, #tpu.memory_space<smem>>
    %c0_130 = arith.constant 0 : index
    %c8_131 = arith.constant 8 : index
    %c0_132 = arith.constant 0 : index
    %202 = vector.load %arg4[%c0_130, %c8_131, %c0_132] : memref<2x30x16xf32, #tpu.memory_space<vmem>>, vector<2x16x16xf32>
    %203 = vector.broadcast %201 : f32 to vector<2x16x16xf32>
    %204 = arith.mulf %203, %202 : vector<2x16x16xf32>
    %205 = arith.addf %200, %204 : vector<2x16x16xf32>
    %c137 = arith.constant 137 : index
    %206 = memref.load %arg0[%c137] : memref<225xf32, #tpu.memory_space<smem>>
    %c0_133 = arith.constant 0 : index
    %c9_134 = arith.constant 9 : index
    %c0_135 = arith.constant 0 : index
    %207 = vector.load %arg4[%c0_133, %c9_134, %c0_135] : memref<2x30x16xf32, #tpu.memory_space<vmem>>, vector<2x16x16xf32>
    %208 = vector.broadcast %206 : f32 to vector<2x16x16xf32>
    %209 = arith.mulf %208, %207 : vector<2x16x16xf32>
    %210 = arith.addf %205, %209 : vector<2x16x16xf32>
    %c152 = arith.constant 152 : index
    %211 = memref.load %arg0[%c152] : memref<225xf32, #tpu.memory_space<smem>>
    %c0_136 = arith.constant 0 : index
    %c10_137 = arith.constant 10 : index
    %c0_138 = arith.constant 0 : index
    %212 = vector.load %arg4[%c0_136, %c10_137, %c0_138] : memref<2x30x16xf32, #tpu.memory_space<vmem>>, vector<2x16x16xf32>
    %213 = vector.broadcast %211 : f32 to vector<2x16x16xf32>
    %214 = arith.mulf %213, %212 : vector<2x16x16xf32>
    %215 = arith.addf %210, %214 : vector<2x16x16xf32>
    %c167 = arith.constant 167 : index
    %216 = memref.load %arg0[%c167] : memref<225xf32, #tpu.memory_space<smem>>
    %c0_139 = arith.constant 0 : index
    %c11_140 = arith.constant 11 : index
    %c0_141 = arith.constant 0 : index
    %217 = vector.load %arg4[%c0_139, %c11_140, %c0_141] : memref<2x30x16xf32, #tpu.memory_space<vmem>>, vector<2x16x16xf32>
    %218 = vector.broadcast %216 : f32 to vector<2x16x16xf32>
    %219 = arith.mulf %218, %217 : vector<2x16x16xf32>
    %220 = arith.addf %215, %219 : vector<2x16x16xf32>
    %c182 = arith.constant 182 : index
    %221 = memref.load %arg0[%c182] : memref<225xf32, #tpu.memory_space<smem>>
    %c0_142 = arith.constant 0 : index
    %c12_143 = arith.constant 12 : index
    %c0_144 = arith.constant 0 : index
    %222 = vector.load %arg4[%c0_142, %c12_143, %c0_144] : memref<2x30x16xf32, #tpu.memory_space<vmem>>, vector<2x16x16xf32>
    %223 = vector.broadcast %221 : f32 to vector<2x16x16xf32>
    %224 = arith.mulf %223, %222 : vector<2x16x16xf32>
    %225 = arith.addf %220, %224 : vector<2x16x16xf32>
    %c197 = arith.constant 197 : index
    %226 = memref.load %arg0[%c197] : memref<225xf32, #tpu.memory_space<smem>>
    %c0_145 = arith.constant 0 : index
    %c13_146 = arith.constant 13 : index
    %c0_147 = arith.constant 0 : index
    %227 = vector.load %arg4[%c0_145, %c13_146, %c0_147] : memref<2x30x16xf32, #tpu.memory_space<vmem>>, vector<2x16x16xf32>
    %228 = vector.broadcast %226 : f32 to vector<2x16x16xf32>
    %229 = arith.mulf %228, %227 : vector<2x16x16xf32>
    %230 = arith.addf %225, %229 : vector<2x16x16xf32>
    %c212 = arith.constant 212 : index
    %231 = memref.load %arg0[%c212] : memref<225xf32, #tpu.memory_space<smem>>
    %c0_148 = arith.constant 0 : index
    %c14_149 = arith.constant 14 : index
    %c0_150 = arith.constant 0 : index
    %232 = vector.load %arg4[%c0_148, %c14_149, %c0_150] : memref<2x30x16xf32, #tpu.memory_space<vmem>>, vector<2x16x16xf32>
    %233 = vector.broadcast %231 : f32 to vector<2x16x16xf32>
    %234 = arith.mulf %233, %232 : vector<2x16x16xf32>
    %235 = arith.addf %230, %234 : vector<2x16x16xf32>
    %c0_151 = arith.constant 0 : index
    %c0_152 = arith.constant 0 : index
    %c3_153 = arith.constant 3 : index
    %236 = vector.load %arg3[%c0_151, %c0_152, %c3_153] : memref<2x30x30xf32, #tpu.memory_space<vmem>>, vector<2x30x16xf32>
    %c0_154 = arith.constant 0 : index
    %c0_155 = arith.constant 0 : index
    %c0_156 = arith.constant 0 : index
    %237 = vector.load %arg4[%c0_154, %c0_155, %c0_156] : memref<2x30x16xf32, #tpu.memory_space<vmem>>, vector<2x30x16xf32>
    tpu.vector_store %arg4[%c0_154, %c0_155, %c0_156], %236 {strides = array<i32>} : memref<2x30x16xf32, #tpu.memory_space<vmem>>, vector<2x30x16xf32>,
    %c3_157 = arith.constant 3 : index
    %238 = memref.load %arg0[%c3_157] : memref<225xf32, #tpu.memory_space<smem>>
    %c0_158 = arith.constant 0 : index
    %c0_159 = arith.constant 0 : index
    %c0_160 = arith.constant 0 : index
    %239 = vector.load %arg4[%c0_158, %c0_159, %c0_160] : memref<2x30x16xf32, #tpu.memory_space<vmem>>, vector<2x16x16xf32>
    %240 = vector.broadcast %238 : f32 to vector<2x16x16xf32>
    %241 = arith.mulf %240, %239 : vector<2x16x16xf32>
    %242 = arith.addf %235, %241 : vector<2x16x16xf32>
    %c18 = arith.constant 18 : index
    %243 = memref.load %arg0[%c18] : memref<225xf32, #tpu.memory_space<smem>>
    %c0_161 = arith.constant 0 : index
    %c1_162 = arith.constant 1 : index
    %c0_163 = arith.constant 0 : index
    %244 = vector.load %arg4[%c0_161, %c1_162, %c0_163] : memref<2x30x16xf32, #tpu.memory_space<vmem>>, vector<2x16x16xf32>
    %245 = vector.broadcast %243 : f32 to vector<2x16x16xf32>
    %246 = arith.mulf %245, %244 : vector<2x16x16xf32>
    %247 = arith.addf %242, %246 : vector<2x16x16xf32>
    %c33 = arith.constant 33 : index
    %248 = memref.load %arg0[%c33] : memref<225xf32, #tpu.memory_space<smem>>
    %c0_164 = arith.constant 0 : index
    %c2_165 = arith.constant 2 : index
    %c0_166 = arith.constant 0 : index
    %249 = vector.load %arg4[%c0_164, %c2_165, %c0_166] : memref<2x30x16xf32, #tpu.memory_space<vmem>>, vector<2x16x16xf32>
    %250 = vector.broadcast %248 : f32 to vector<2x16x16xf32>
    %251 = arith.mulf %250, %249 : vector<2x16x16xf32>
    %252 = arith.addf %247, %251 : vector<2x16x16xf32>
    %c48 = arith.constant 48 : index
    %253 = memref.load %arg0[%c48] : memref<225xf32, #tpu.memory_space<smem>>
    %c0_167 = arith.constant 0 : index
    %c3_168 = arith.constant 3 : index
    %c0_169 = arith.constant 0 : index
    %254 = vector.load %arg4[%c0_167, %c3_168, %c0_169] : memref<2x30x16xf32, #tpu.memory_space<vmem>>, vector<2x16x16xf32>
    %255 = vector.broadcast %253 : f32 to vector<2x16x16xf32>
    %256 = arith.mulf %255, %254 : vector<2x16x16xf32>
    %257 = arith.addf %252, %256 : vector<2x16x16xf32>
    %c63 = arith.constant 63 : index
    %258 = memref.load %arg0[%c63] : memref<225xf32, #tpu.memory_space<smem>>
    %c0_170 = arith.constant 0 : index
    %c4_171 = arith.constant 4 : index
    %c0_172 = arith.constant 0 : index
    %259 = vector.load %arg4[%c0_170, %c4_171, %c0_172] : memref<2x30x16xf32, #tpu.memory_space<vmem>>, vector<2x16x16xf32>
    %260 = vector.broadcast %258 : f32 to vector<2x16x16xf32>
    %261 = arith.mulf %260, %259 : vector<2x16x16xf32>
    %262 = arith.addf %257, %261 : vector<2x16x16xf32>
    %c78 = arith.constant 78 : index
    %263 = memref.load %arg0[%c78] : memref<225xf32, #tpu.memory_space<smem>>
    %c0_173 = arith.constant 0 : index
    %c5_174 = arith.constant 5 : index
    %c0_175 = arith.constant 0 : index
    %264 = vector.load %arg4[%c0_173, %c5_174, %c0_175] : memref<2x30x16xf32, #tpu.memory_space<vmem>>, vector<2x16x16xf32>
    %265 = vector.broadcast %263 : f32 to vector<2x16x16xf32>
    %266 = arith.mulf %265, %264 : vector<2x16x16xf32>
    %267 = arith.addf %262, %266 : vector<2x16x16xf32>
    %c93 = arith.constant 93 : index
    %268 = memref.load %arg0[%c93] : memref<225xf32, #tpu.memory_space<smem>>
    %c0_176 = arith.constant 0 : index
    %c6_177 = arith.constant 6 : index
    %c0_178 = arith.constant 0 : index
    %269 = vector.load %arg4[%c0_176, %c6_177, %c0_178] : memref<2x30x16xf32, #tpu.memory_space<vmem>>, vector<2x16x16xf32>
    %270 = vector.broadcast %268 : f32 to vector<2x16x16xf32>
    %271 = arith.mulf %270, %269 : vector<2x16x16xf32>
    %272 = arith.addf %267, %271 : vector<2x16x16xf32>
    %c108 = arith.constant 108 : index
    %273 = memref.load %arg0[%c108] : memref<225xf32, #tpu.memory_space<smem>>
    %c0_179 = arith.constant 0 : index
    %c7_180 = arith.constant 7 : index
    %c0_181 = arith.constant 0 : index
    %274 = vector.load %arg4[%c0_179, %c7_180, %c0_181] : memref<2x30x16xf32, #tpu.memory_space<vmem>>, vector<2x16x16xf32>
    %275 = vector.broadcast %273 : f32 to vector<2x16x16xf32>
    %276 = arith.mulf %275, %274 : vector<2x16x16xf32>
    %277 = arith.addf %272, %276 : vector<2x16x16xf32>
    %c123 = arith.constant 123 : index
    %278 = memref.load %arg0[%c123] : memref<225xf32, #tpu.memory_space<smem>>
    %c0_182 = arith.constant 0 : index
    %c8_183 = arith.constant 8 : index
    %c0_184 = arith.constant 0 : index
    %279 = vector.load %arg4[%c0_182, %c8_183, %c0_184] : memref<2x30x16xf32, #tpu.memory_space<vmem>>, vector<2x16x16xf32>
    %280 = vector.broadcast %278 : f32 to vector<2x16x16xf32>
    %281 = arith.mulf %280, %279 : vector<2x16x16xf32>
    %282 = arith.addf %277, %281 : vector<2x16x16xf32>
    %c138 = arith.constant 138 : index
    %283 = memref.load %arg0[%c138] : memref<225xf32, #tpu.memory_space<smem>>
    %c0_185 = arith.constant 0 : index
    %c9_186 = arith.constant 9 : index
    %c0_187 = arith.constant 0 : index
    %284 = vector.load %arg4[%c0_185, %c9_186, %c0_187] : memref<2x30x16xf32, #tpu.memory_space<vmem>>, vector<2x16x16xf32>
    %285 = vector.broadcast %283 : f32 to vector<2x16x16xf32>
    %286 = arith.mulf %285, %284 : vector<2x16x16xf32>
    %287 = arith.addf %282, %286 : vector<2x16x16xf32>
    %c153 = arith.constant 153 : index
    %288 = memref.load %arg0[%c153] : memref<225xf32, #tpu.memory_space<smem>>
    %c0_188 = arith.constant 0 : index
    %c10_189 = arith.constant 10 : index
    %c0_190 = arith.constant 0 : index
    %289 = vector.load %arg4[%c0_188, %c10_189, %c0_190] : memref<2x30x16xf32, #tpu.memory_space<vmem>>, vector<2x16x16xf32>
    %290 = vector.broadcast %288 : f32 to vector<2x16x16xf32>
    %291 = arith.mulf %290, %289 : vector<2x16x16xf32>
    %292 = arith.addf %287, %291 : vector<2x16x16xf32>
    %c168 = arith.constant 168 : index
    %293 = memref.load %arg0[%c168] : memref<225xf32, #tpu.memory_space<smem>>
    %c0_191 = arith.constant 0 : index
    %c11_192 = arith.constant 11 : index
    %c0_193 = arith.constant 0 : index
    %294 = vector.load %arg4[%c0_191, %c11_192, %c0_193] : memref<2x30x16xf32, #tpu.memory_space<vmem>>, vector<2x16x16xf32>
    %295 = vector.broadcast %293 : f32 to vector<2x16x16xf32>
    %296 = arith.mulf %295, %294 : vector<2x16x16xf32>
    %297 = arith.addf %292, %296 : vector<2x16x16xf32>
    %c183 = arith.constant 183 : index
    %298 = memref.load %arg0[%c183] : memref<225xf32, #tpu.memory_space<smem>>
    %c0_194 = arith.constant 0 : index
    %c12_195 = arith.constant 12 : index
    %c0_196 = arith.constant 0 : index
    %299 = vector.load %arg4[%c0_194, %c12_195, %c0_196] : memref<2x30x16xf32, #tpu.memory_space<vmem>>, vector<2x16x16xf32>
    %300 = vector.broadcast %298 : f32 to vector<2x16x16xf32>
    %301 = arith.mulf %300, %299 : vector<2x16x16xf32>
    %302 = arith.addf %297, %301 : vector<2x16x16xf32>
    %c198 = arith.constant 198 : index
    %303 = memref.load %arg0[%c198] : memref<225xf32, #tpu.memory_space<smem>>
    %c0_197 = arith.constant 0 : index
    %c13_198 = arith.constant 13 : index
    %c0_199 = arith.constant 0 : index
    %304 = vector.load %arg4[%c0_197, %c13_198, %c0_199] : memref<2x30x16xf32, #tpu.memory_space<vmem>>, vector<2x16x16xf32>
    %305 = vector.broadcast %303 : f32 to vector<2x16x16xf32>
    %306 = arith.mulf %305, %304 : vector<2x16x16xf32>
    %307 = arith.addf %302, %306 : vector<2x16x16xf32>
    %c213 = arith.constant 213 : index
    %308 = memref.load %arg0[%c213] : memref<225xf32, #tpu.memory_space<smem>>
    %c0_200 = arith.constant 0 : index
    %c14_201 = arith.constant 14 : index
    %c0_202 = arith.constant 0 : index
    %309 = vector.load %arg4[%c0_200, %c14_201, %c0_202] : memref<2x30x16xf32, #tpu.memory_space<vmem>>, vector<2x16x16xf32>
    %310 = vector.broadcast %308 : f32 to vector<2x16x16xf32>
    %311 = arith.mulf %310, %309 : vector<2x16x16xf32>
    %312 = arith.addf %307, %311 : vector<2x16x16xf32>
    %c0_203 = arith.constant 0 : index
    %c0_204 = arith.constant 0 : index
    %c4_205 = arith.constant 4 : index
    %313 = vector.load %arg3[%c0_203, %c0_204, %c4_205] : memref<2x30x30xf32, #tpu.memory_space<vmem>>, vector<2x30x16xf32>
    %c0_206 = arith.constant 0 : index
    %c0_207 = arith.constant 0 : index
    %c0_208 = arith.constant 0 : index
    %314 = vector.load %arg4[%c0_206, %c0_207, %c0_208] : memref<2x30x16xf32, #tpu.memory_space<vmem>>, vector<2x30x16xf32>
    tpu.vector_store %arg4[%c0_206, %c0_207, %c0_208], %313 {strides = array<i32>} : memref<2x30x16xf32, #tpu.memory_space<vmem>>, vector<2x30x16xf32>,
    %c4_209 = arith.constant 4 : index
    %315 = memref.load %arg0[%c4_209] : memref<225xf32, #tpu.memory_space<smem>>
    %c0_210 = arith.constant 0 : index
    %c0_211 = arith.constant 0 : index
    %c0_212 = arith.constant 0 : index
    %316 = vector.load %arg4[%c0_210, %c0_211, %c0_212] : memref<2x30x16xf32, #tpu.memory_space<vmem>>, vector<2x16x16xf32>
    %317 = vector.broadcast %315 : f32 to vector<2x16x16xf32>
    %318 = arith.mulf %317, %316 : vector<2x16x16xf32>
    %319 = arith.addf %312, %318 : vector<2x16x16xf32>
    %c19 = arith.constant 19 : index
    %320 = memref.load %arg0[%c19] : memref<225xf32, #tpu.memory_space<smem>>
    %c0_213 = arith.constant 0 : index
    %c1_214 = arith.constant 1 : index
    %c0_215 = arith.constant 0 : index
    %321 = vector.load %arg4[%c0_213, %c1_214, %c0_215] : memref<2x30x16xf32, #tpu.memory_space<vmem>>, vector<2x16x16xf32>
    %322 = vector.broadcast %320 : f32 to vector<2x16x16xf32>
    %323 = arith.mulf %322, %321 : vector<2x16x16xf32>
    %324 = arith.addf %319, %323 : vector<2x16x16xf32>
    %c34 = arith.constant 34 : index
    %325 = memref.load %arg0[%c34] : memref<225xf32, #tpu.memory_space<smem>>
    %c0_216 = arith.constant 0 : index
    %c2_217 = arith.constant 2 : index
    %c0_218 = arith.constant 0 : index
    %326 = vector.load %arg4[%c0_216, %c2_217, %c0_218] : memref<2x30x16xf32, #tpu.memory_space<vmem>>, vector<2x16x16xf32>
    %327 = vector.broadcast %325 : f32 to vector<2x16x16xf32>
    %328 = arith.mulf %327, %326 : vector<2x16x16xf32>
    %329 = arith.addf %324, %328 : vector<2x16x16xf32>
    %c49 = arith.constant 49 : index
    %330 = memref.load %arg0[%c49] : memref<225xf32, #tpu.memory_space<smem>>
    %c0_219 = arith.constant 0 : index
    %c3_220 = arith.constant 3 : index
    %c0_221 = arith.constant 0 : index
    %331 = vector.load %arg4[%c0_219, %c3_220, %c0_221] : memref<2x30x16xf32, #tpu.memory_space<vmem>>, vector<2x16x16xf32>
    %332 = vector.broadcast %330 : f32 to vector<2x16x16xf32>
    %333 = arith.mulf %332, %331 : vector<2x16x16xf32>
    %334 = arith.addf %329, %333 : vector<2x16x16xf32>
    %c64 = arith.constant 64 : index
    %335 = memref.load %arg0[%c64] : memref<225xf32, #tpu.memory_space<smem>>
    %c0_222 = arith.constant 0 : index
    %c4_223 = arith.constant 4 : index
    %c0_224 = arith.constant 0 : index
    %336 = vector.load %arg4[%c0_222, %c4_223, %c0_224] : memref<2x30x16xf32, #tpu.memory_space<vmem>>, vector<2x16x16xf32>
    %337 = vector.broadcast %335 : f32 to vector<2x16x16xf32>
    %338 = arith.mulf %337, %336 : vector<2x16x16xf32>
    %339 = arith.addf %334, %338 : vector<2x16x16xf32>
    %c79 = arith.constant 79 : index
    %340 = memref.load %arg0[%c79] : memref<225xf32, #tpu.memory_space<smem>>
    %c0_225 = arith.constant 0 : index
    %c5_226 = arith.constant 5 : index
    %c0_227 = arith.constant 0 : index
    %341 = vector.load %arg4[%c0_225, %c5_226, %c0_227] : memref<2x30x16xf32, #tpu.memory_space<vmem>>, vector<2x16x16xf32>
    %342 = vector.broadcast %340 : f32 to vector<2x16x16xf32>
    %343 = arith.mulf %342, %341 : vector<2x16x16xf32>
    %344 = arith.addf %339, %343 : vector<2x16x16xf32>
    %c94 = arith.constant 94 : index
    %345 = memref.load %arg0[%c94] : memref<225xf32, #tpu.memory_space<smem>>
    %c0_228 = arith.constant 0 : index
    %c6_229 = arith.constant 6 : index
    %c0_230 = arith.constant 0 : index
    %346 = vector.load %arg4[%c0_228, %c6_229, %c0_230] : memref<2x30x16xf32, #tpu.memory_space<vmem>>, vector<2x16x16xf32>
    %347 = vector.broadcast %345 : f32 to vector<2x16x16xf32>
    %348 = arith.mulf %347, %346 : vector<2x16x16xf32>
    %349 = arith.addf %344, %348 : vector<2x16x16xf32>
    %c109 = arith.constant 109 : index
    %350 = memref.load %arg0[%c109] : memref<225xf32, #tpu.memory_space<smem>>
    %c0_231 = arith.constant 0 : index
    %c7_232 = arith.constant 7 : index
    %c0_233 = arith.constant 0 : index
    %351 = vector.load %arg4[%c0_231, %c7_232, %c0_233] : memref<2x30x16xf32, #tpu.memory_space<vmem>>, vector<2x16x16xf32>
    %352 = vector.broadcast %350 : f32 to vector<2x16x16xf32>
    %353 = arith.mulf %352, %351 : vector<2x16x16xf32>
    %354 = arith.addf %349, %353 : vector<2x16x16xf32>
    %c124 = arith.constant 124 : index
    %355 = memref.load %arg0[%c124] : memref<225xf32, #tpu.memory_space<smem>>
    %c0_234 = arith.constant 0 : index
    %c8_235 = arith.constant 8 : index
    %c0_236 = arith.constant 0 : index
    %356 = vector.load %arg4[%c0_234, %c8_235, %c0_236] : memref<2x30x16xf32, #tpu.memory_space<vmem>>, vector<2x16x16xf32>
    %357 = vector.broadcast %355 : f32 to vector<2x16x16xf32>
    %358 = arith.mulf %357, %356 : vector<2x16x16xf32>
    %359 = arith.addf %354, %358 : vector<2x16x16xf32>
    %c139 = arith.constant 139 : index
    %360 = memref.load %arg0[%c139] : memref<225xf32, #tpu.memory_space<smem>>
    %c0_237 = arith.constant 0 : index
    %c9_238 = arith.constant 9 : index
    %c0_239 = arith.constant 0 : index
    %361 = vector.load %arg4[%c0_237, %c9_238, %c0_239] : memref<2x30x16xf32, #tpu.memory_space<vmem>>, vector<2x16x16xf32>
    %362 = vector.broadcast %360 : f32 to vector<2x16x16xf32>
    %363 = arith.mulf %362, %361 : vector<2x16x16xf32>
    %364 = arith.addf %359, %363 : vector<2x16x16xf32>
    %c154 = arith.constant 154 : index
    %365 = memref.load %arg0[%c154] : memref<225xf32, #tpu.memory_space<smem>>
    %c0_240 = arith.constant 0 : index
    %c10_241 = arith.constant 10 : index
    %c0_242 = arith.constant 0 : index
    %366 = vector.load %arg4[%c0_240, %c10_241, %c0_242] : memref<2x30x16xf32, #tpu.memory_space<vmem>>, vector<2x16x16xf32>
    %367 = vector.broadcast %365 : f32 to vector<2x16x16xf32>
    %368 = arith.mulf %367, %366 : vector<2x16x16xf32>
    %369 = arith.addf %364, %368 : vector<2x16x16xf32>
    %c169 = arith.constant 169 : index
    %370 = memref.load %arg0[%c169] : memref<225xf32, #tpu.memory_space<smem>>
    %c0_243 = arith.constant 0 : index
    %c11_244 = arith.constant 11 : index
    %c0_245 = arith.constant 0 : index
    %371 = vector.load %arg4[%c0_243, %c11_244, %c0_245] : memref<2x30x16xf32, #tpu.memory_space<vmem>>, vector<2x16x16xf32>
    %372 = vector.broadcast %370 : f32 to vector<2x16x16xf32>
    %373 = arith.mulf %372, %371 : vector<2x16x16xf32>
    %374 = arith.addf %369, %373 : vector<2x16x16xf32>
    %c184 = arith.constant 184 : index
    %375 = memref.load %arg0[%c184] : memref<225xf32, #tpu.memory_space<smem>>
    %c0_246 = arith.constant 0 : index
    %c12_247 = arith.constant 12 : index
    %c0_248 = arith.constant 0 : index
    %376 = vector.load %arg4[%c0_246, %c12_247, %c0_248] : memref<2x30x16xf32, #tpu.memory_space<vmem>>, vector<2x16x16xf32>
    %377 = vector.broadcast %375 : f32 to vector<2x16x16xf32>
    %378 = arith.mulf %377, %376 : vector<2x16x16xf32>
    %379 = arith.addf %374, %378 : vector<2x16x16xf32>
    %c199 = arith.constant 199 : index
    %380 = memref.load %arg0[%c199] : memref<225xf32, #tpu.memory_space<smem>>
    %c0_249 = arith.constant 0 : index
    %c13_250 = arith.constant 13 : index
    %c0_251 = arith.constant 0 : index
    %381 = vector.load %arg4[%c0_249, %c13_250, %c0_251] : memref<2x30x16xf32, #tpu.memory_space<vmem>>, vector<2x16x16xf32>
    %382 = vector.broadcast %380 : f32 to vector<2x16x16xf32>
    %383 = arith.mulf %382, %381 : vector<2x16x16xf32>
    %384 = arith.addf %379, %383 : vector<2x16x16xf32>
    %c214 = arith.constant 214 : index
    %385 = memref.load %arg0[%c214] : memref<225xf32, #tpu.memory_space<smem>>
    %c0_252 = arith.constant 0 : index
    %c14_253 = arith.constant 14 : index
    %c0_254 = arith.constant 0 : index
    %386 = vector.load %arg4[%c0_252, %c14_253, %c0_254] : memref<2x30x16xf32, #tpu.memory_space<vmem>>, vector<2x16x16xf32>
    %387 = vector.broadcast %385 : f32 to vector<2x16x16xf32>
    %388 = arith.mulf %387, %386 : vector<2x16x16xf32>
    %389 = arith.addf %384, %388 : vector<2x16x16xf32>
    %c0_255 = arith.constant 0 : index
    %c0_256 = arith.constant 0 : index
    %c5_257 = arith.constant 5 : index
    %390 = vector.load %arg3[%c0_255, %c0_256, %c5_257] : memref<2x30x30xf32, #tpu.memory_space<vmem>>, vector<2x30x16xf32>
    %c0_258 = arith.constant 0 : index
    %c0_259 = arith.constant 0 : index
    %c0_260 = arith.constant 0 : index
    %391 = vector.load %arg4[%c0_258, %c0_259, %c0_260] : memref<2x30x16xf32, #tpu.memory_space<vmem>>, vector<2x30x16xf32>
    tpu.vector_store %arg4[%c0_258, %c0_259, %c0_260], %390 {strides = array<i32>} : memref<2x30x16xf32, #tpu.memory_space<vmem>>, vector<2x30x16xf32>,
    %c5_261 = arith.constant 5 : index
    %392 = memref.load %arg0[%c5_261] : memref<225xf32, #tpu.memory_space<smem>>
    %c0_262 = arith.constant 0 : index
    %c0_263 = arith.constant 0 : index
    %c0_264 = arith.constant 0 : index
    %393 = vector.load %arg4[%c0_262, %c0_263, %c0_264] : memref<2x30x16xf32, #tpu.memory_space<vmem>>, vector<2x16x16xf32>
    %394 = vector.broadcast %392 : f32 to vector<2x16x16xf32>
    %395 = arith.mulf %394, %393 : vector<2x16x16xf32>
    %396 = arith.addf %389, %395 : vector<2x16x16xf32>
    %c20 = arith.constant 20 : index
    %397 = memref.load %arg0[%c20] : memref<225xf32, #tpu.memory_space<smem>>
    %c0_265 = arith.constant 0 : index
    %c1_266 = arith.constant 1 : index
    %c0_267 = arith.constant 0 : index
    %398 = vector.load %arg4[%c0_265, %c1_266, %c0_267] : memref<2x30x16xf32, #tpu.memory_space<vmem>>, vector<2x16x16xf32>
    %399 = vector.broadcast %397 : f32 to vector<2x16x16xf32>
    %400 = arith.mulf %399, %398 : vector<2x16x16xf32>
    %401 = arith.addf %396, %400 : vector<2x16x16xf32>
    %c35 = arith.constant 35 : index
    %402 = memref.load %arg0[%c35] : memref<225xf32, #tpu.memory_space<smem>>
    %c0_268 = arith.constant 0 : index
    %c2_269 = arith.constant 2 : index
    %c0_270 = arith.constant 0 : index
    %403 = vector.load %arg4[%c0_268, %c2_269, %c0_270] : memref<2x30x16xf32, #tpu.memory_space<vmem>>, vector<2x16x16xf32>
    %404 = vector.broadcast %402 : f32 to vector<2x16x16xf32>
    %405 = arith.mulf %404, %403 : vector<2x16x16xf32>
    %406 = arith.addf %401, %405 : vector<2x16x16xf32>
    %c50 = arith.constant 50 : index
    %407 = memref.load %arg0[%c50] : memref<225xf32, #tpu.memory_space<smem>>
    %c0_271 = arith.constant 0 : index
    %c3_272 = arith.constant 3 : index
    %c0_273 = arith.constant 0 : index
    %408 = vector.load %arg4[%c0_271, %c3_272, %c0_273] : memref<2x30x16xf32, #tpu.memory_space<vmem>>, vector<2x16x16xf32>
    %409 = vector.broadcast %407 : f32 to vector<2x16x16xf32>
    %410 = arith.mulf %409, %408 : vector<2x16x16xf32>
    %411 = arith.addf %406, %410 : vector<2x16x16xf32>
    %c65 = arith.constant 65 : index
    %412 = memref.load %arg0[%c65] : memref<225xf32, #tpu.memory_space<smem>>
    %c0_274 = arith.constant 0 : index
    %c4_275 = arith.constant 4 : index
    %c0_276 = arith.constant 0 : index
    %413 = vector.load %arg4[%c0_274, %c4_275, %c0_276] : memref<2x30x16xf32, #tpu.memory_space<vmem>>, vector<2x16x16xf32>
    %414 = vector.broadcast %412 : f32 to vector<2x16x16xf32>
    %415 = arith.mulf %414, %413 : vector<2x16x16xf32>
    %416 = arith.addf %411, %415 : vector<2x16x16xf32>
    %c80 = arith.constant 80 : index
    %417 = memref.load %arg0[%c80] : memref<225xf32, #tpu.memory_space<smem>>
    %c0_277 = arith.constant 0 : index
    %c5_278 = arith.constant 5 : index
    %c0_279 = arith.constant 0 : index
    %418 = vector.load %arg4[%c0_277, %c5_278, %c0_279] : memref<2x30x16xf32, #tpu.memory_space<vmem>>, vector<2x16x16xf32>
    %419 = vector.broadcast %417 : f32 to vector<2x16x16xf32>
    %420 = arith.mulf %419, %418 : vector<2x16x16xf32>
    %421 = arith.addf %416, %420 : vector<2x16x16xf32>
    %c95 = arith.constant 95 : index
    %422 = memref.load %arg0[%c95] : memref<225xf32, #tpu.memory_space<smem>>
    %c0_280 = arith.constant 0 : index
    %c6_281 = arith.constant 6 : index
    %c0_282 = arith.constant 0 : index
    %423 = vector.load %arg4[%c0_280, %c6_281, %c0_282] : memref<2x30x16xf32, #tpu.memory_space<vmem>>, vector<2x16x16xf32>
    %424 = vector.broadcast %422 : f32 to vector<2x16x16xf32>
    %425 = arith.mulf %424, %423 : vector<2x16x16xf32>
    %426 = arith.addf %421, %425 : vector<2x16x16xf32>
    %c110 = arith.constant 110 : index
    %427 = memref.load %arg0[%c110] : memref<225xf32, #tpu.memory_space<smem>>
    %c0_283 = arith.constant 0 : index
    %c7_284 = arith.constant 7 : index
    %c0_285 = arith.constant 0 : index
    %428 = vector.load %arg4[%c0_283, %c7_284, %c0_285] : memref<2x30x16xf32, #tpu.memory_space<vmem>>, vector<2x16x16xf32>
    %429 = vector.broadcast %427 : f32 to vector<2x16x16xf32>
    %430 = arith.mulf %429, %428 : vector<2x16x16xf32>
    %431 = arith.addf %426, %430 : vector<2x16x16xf32>
    %c125 = arith.constant 125 : index
    %432 = memref.load %arg0[%c125] : memref<225xf32, #tpu.memory_space<smem>>
    %c0_286 = arith.constant 0 : index
    %c8_287 = arith.constant 8 : index
    %c0_288 = arith.constant 0 : index
    %433 = vector.load %arg4[%c0_286, %c8_287, %c0_288] : memref<2x30x16xf32, #tpu.memory_space<vmem>>, vector<2x16x16xf32>
    %434 = vector.broadcast %432 : f32 to vector<2x16x16xf32>
    %435 = arith.mulf %434, %433 : vector<2x16x16xf32>
    %436 = arith.addf %431, %435 : vector<2x16x16xf32>
    %c140 = arith.constant 140 : index
    %437 = memref.load %arg0[%c140] : memref<225xf32, #tpu.memory_space<smem>>
    %c0_289 = arith.constant 0 : index
    %c9_290 = arith.constant 9 : index
    %c0_291 = arith.constant 0 : index
    %438 = vector.load %arg4[%c0_289, %c9_290, %c0_291] : memref<2x30x16xf32, #tpu.memory_space<vmem>>, vector<2x16x16xf32>
    %439 = vector.broadcast %437 : f32 to vector<2x16x16xf32>
    %440 = arith.mulf %439, %438 : vector<2x16x16xf32>
    %441 = arith.addf %436, %440 : vector<2x16x16xf32>
    %c155 = arith.constant 155 : index
    %442 = memref.load %arg0[%c155] : memref<225xf32, #tpu.memory_space<smem>>
    %c0_292 = arith.constant 0 : index
    %c10_293 = arith.constant 10 : index
    %c0_294 = arith.constant 0 : index
    %443 = vector.load %arg4[%c0_292, %c10_293, %c0_294] : memref<2x30x16xf32, #tpu.memory_space<vmem>>, vector<2x16x16xf32>
    %444 = vector.broadcast %442 : f32 to vector<2x16x16xf32>
    %445 = arith.mulf %444, %443 : vector<2x16x16xf32>
    %446 = arith.addf %441, %445 : vector<2x16x16xf32>
    %c170 = arith.constant 170 : index
    %447 = memref.load %arg0[%c170] : memref<225xf32, #tpu.memory_space<smem>>
    %c0_295 = arith.constant 0 : index
    %c11_296 = arith.constant 11 : index
    %c0_297 = arith.constant 0 : index
    %448 = vector.load %arg4[%c0_295, %c11_296, %c0_297] : memref<2x30x16xf32, #tpu.memory_space<vmem>>, vector<2x16x16xf32>
    %449 = vector.broadcast %447 : f32 to vector<2x16x16xf32>
    %450 = arith.mulf %449, %448 : vector<2x16x16xf32>
    %451 = arith.addf %446, %450 : vector<2x16x16xf32>
    %c185 = arith.constant 185 : index
    %452 = memref.load %arg0[%c185] : memref<225xf32, #tpu.memory_space<smem>>
    %c0_298 = arith.constant 0 : index
    %c12_299 = arith.constant 12 : index
    %c0_300 = arith.constant 0 : index
    %453 = vector.load %arg4[%c0_298, %c12_299, %c0_300] : memref<2x30x16xf32, #tpu.memory_space<vmem>>, vector<2x16x16xf32>
    %454 = vector.broadcast %452 : f32 to vector<2x16x16xf32>
    %455 = arith.mulf %454, %453 : vector<2x16x16xf32>
    %456 = arith.addf %451, %455 : vector<2x16x16xf32>
    %c200 = arith.constant 200 : index
    %457 = memref.load %arg0[%c200] : memref<225xf32, #tpu.memory_space<smem>>
    %c0_301 = arith.constant 0 : index
    %c13_302 = arith.constant 13 : index
    %c0_303 = arith.constant 0 : index
    %458 = vector.load %arg4[%c0_301, %c13_302, %c0_303] : memref<2x30x16xf32, #tpu.memory_space<vmem>>, vector<2x16x16xf32>
    %459 = vector.broadcast %457 : f32 to vector<2x16x16xf32>
    %460 = arith.mulf %459, %458 : vector<2x16x16xf32>
    %461 = arith.addf %456, %460 : vector<2x16x16xf32>
    %c215 = arith.constant 215 : index
    %462 = memref.load %arg0[%c215] : memref<225xf32, #tpu.memory_space<smem>>
    %c0_304 = arith.constant 0 : index
    %c14_305 = arith.constant 14 : index
    %c0_306 = arith.constant 0 : index
    %463 = vector.load %arg4[%c0_304, %c14_305, %c0_306] : memref<2x30x16xf32, #tpu.memory_space<vmem>>, vector<2x16x16xf32>
    %464 = vector.broadcast %462 : f32 to vector<2x16x16xf32>
    %465 = arith.mulf %464, %463 : vector<2x16x16xf32>
    %466 = arith.addf %461, %465 : vector<2x16x16xf32>
    %c0_307 = arith.constant 0 : index
    %c0_308 = arith.constant 0 : index
    %c6_309 = arith.constant 6 : index
    %467 = vector.load %arg3[%c0_307, %c0_308, %c6_309] : memref<2x30x30xf32, #tpu.memory_space<vmem>>, vector<2x30x16xf32>
    %c0_310 = arith.constant 0 : index
    %c0_311 = arith.constant 0 : index
    %c0_312 = arith.constant 0 : index
    %468 = vector.load %arg4[%c0_310, %c0_311, %c0_312] : memref<2x30x16xf32, #tpu.memory_space<vmem>>, vector<2x30x16xf32>
    tpu.vector_store %arg4[%c0_310, %c0_311, %c0_312], %467 {strides = array<i32>} : memref<2x30x16xf32, #tpu.memory_space<vmem>>, vector<2x30x16xf32>,
    %c6_313 = arith.constant 6 : index
    %469 = memref.load %arg0[%c6_313] : memref<225xf32, #tpu.memory_space<smem>>
    %c0_314 = arith.constant 0 : index
    %c0_315 = arith.constant 0 : index
    %c0_316 = arith.constant 0 : index
    %470 = vector.load %arg4[%c0_314, %c0_315, %c0_316] : memref<2x30x16xf32, #tpu.memory_space<vmem>>, vector<2x16x16xf32>
    %471 = vector.broadcast %469 : f32 to vector<2x16x16xf32>
    %472 = arith.mulf %471, %470 : vector<2x16x16xf32>
    %473 = arith.addf %466, %472 : vector<2x16x16xf32>
    %c21 = arith.constant 21 : index
    %474 = memref.load %arg0[%c21] : memref<225xf32, #tpu.memory_space<smem>>
    %c0_317 = arith.constant 0 : index
    %c1_318 = arith.constant 1 : index
    %c0_319 = arith.constant 0 : index
    %475 = vector.load %arg4[%c0_317, %c1_318, %c0_319] : memref<2x30x16xf32, #tpu.memory_space<vmem>>, vector<2x16x16xf32>
    %476 = vector.broadcast %474 : f32 to vector<2x16x16xf32>
    %477 = arith.mulf %476, %475 : vector<2x16x16xf32>
    %478 = arith.addf %473, %477 : vector<2x16x16xf32>
    %c36 = arith.constant 36 : index
    %479 = memref.load %arg0[%c36] : memref<225xf32, #tpu.memory_space<smem>>
    %c0_320 = arith.constant 0 : index
    %c2_321 = arith.constant 2 : index
    %c0_322 = arith.constant 0 : index
    %480 = vector.load %arg4[%c0_320, %c2_321, %c0_322] : memref<2x30x16xf32, #tpu.memory_space<vmem>>, vector<2x16x16xf32>
    %481 = vector.broadcast %479 : f32 to vector<2x16x16xf32>
    %482 = arith.mulf %481, %480 : vector<2x16x16xf32>
    %483 = arith.addf %478, %482 : vector<2x16x16xf32>
    %c51 = arith.constant 51 : index
    %484 = memref.load %arg0[%c51] : memref<225xf32, #tpu.memory_space<smem>>
    %c0_323 = arith.constant 0 : index
    %c3_324 = arith.constant 3 : index
    %c0_325 = arith.constant 0 : index
    %485 = vector.load %arg4[%c0_323, %c3_324, %c0_325] : memref<2x30x16xf32, #tpu.memory_space<vmem>>, vector<2x16x16xf32>
    %486 = vector.broadcast %484 : f32 to vector<2x16x16xf32>
    %487 = arith.mulf %486, %485 : vector<2x16x16xf32>
    %488 = arith.addf %483, %487 : vector<2x16x16xf32>
    %c66 = arith.constant 66 : index
    %489 = memref.load %arg0[%c66] : memref<225xf32, #tpu.memory_space<smem>>
    %c0_326 = arith.constant 0 : index
    %c4_327 = arith.constant 4 : index
    %c0_328 = arith.constant 0 : index
    %490 = vector.load %arg4[%c0_326, %c4_327, %c0_328] : memref<2x30x16xf32, #tpu.memory_space<vmem>>, vector<2x16x16xf32>
    %491 = vector.broadcast %489 : f32 to vector<2x16x16xf32>
    %492 = arith.mulf %491, %490 : vector<2x16x16xf32>
    %493 = arith.addf %488, %492 : vector<2x16x16xf32>
    %c81 = arith.constant 81 : index
    %494 = memref.load %arg0[%c81] : memref<225xf32, #tpu.memory_space<smem>>
    %c0_329 = arith.constant 0 : index
    %c5_330 = arith.constant 5 : index
    %c0_331 = arith.constant 0 : index
    %495 = vector.load %arg4[%c0_329, %c5_330, %c0_331] : memref<2x30x16xf32, #tpu.memory_space<vmem>>, vector<2x16x16xf32>
    %496 = vector.broadcast %494 : f32 to vector<2x16x16xf32>
    %497 = arith.mulf %496, %495 : vector<2x16x16xf32>
    %498 = arith.addf %493, %497 : vector<2x16x16xf32>
    %c96 = arith.constant 96 : index
    %499 = memref.load %arg0[%c96] : memref<225xf32, #tpu.memory_space<smem>>
    %c0_332 = arith.constant 0 : index
    %c6_333 = arith.constant 6 : index
    %c0_334 = arith.constant 0 : index
    %500 = vector.load %arg4[%c0_332, %c6_333, %c0_334] : memref<2x30x16xf32, #tpu.memory_space<vmem>>, vector<2x16x16xf32>
    %501 = vector.broadcast %499 : f32 to vector<2x16x16xf32>
    %502 = arith.mulf %501, %500 : vector<2x16x16xf32>
    %503 = arith.addf %498, %502 : vector<2x16x16xf32>
    %c111 = arith.constant 111 : index
    %504 = memref.load %arg0[%c111] : memref<225xf32, #tpu.memory_space<smem>>
    %c0_335 = arith.constant 0 : index
    %c7_336 = arith.constant 7 : index
    %c0_337 = arith.constant 0 : index
    %505 = vector.load %arg4[%c0_335, %c7_336, %c0_337] : memref<2x30x16xf32, #tpu.memory_space<vmem>>, vector<2x16x16xf32>
    %506 = vector.broadcast %504 : f32 to vector<2x16x16xf32>
    %507 = arith.mulf %506, %505 : vector<2x16x16xf32>
    %508 = arith.addf %503, %507 : vector<2x16x16xf32>
    %c126 = arith.constant 126 : index
    %509 = memref.load %arg0[%c126] : memref<225xf32, #tpu.memory_space<smem>>
    %c0_338 = arith.constant 0 : index
    %c8_339 = arith.constant 8 : index
    %c0_340 = arith.constant 0 : index
    %510 = vector.load %arg4[%c0_338, %c8_339, %c0_340] : memref<2x30x16xf32, #tpu.memory_space<vmem>>, vector<2x16x16xf32>
    %511 = vector.broadcast %509 : f32 to vector<2x16x16xf32>
    %512 = arith.mulf %511, %510 : vector<2x16x16xf32>
    %513 = arith.addf %508, %512 : vector<2x16x16xf32>
    %c141 = arith.constant 141 : index
    %514 = memref.load %arg0[%c141] : memref<225xf32, #tpu.memory_space<smem>>
    %c0_341 = arith.constant 0 : index
    %c9_342 = arith.constant 9 : index
    %c0_343 = arith.constant 0 : index
    %515 = vector.load %arg4[%c0_341, %c9_342, %c0_343] : memref<2x30x16xf32, #tpu.memory_space<vmem>>, vector<2x16x16xf32>
    %516 = vector.broadcast %514 : f32 to vector<2x16x16xf32>
    %517 = arith.mulf %516, %515 : vector<2x16x16xf32>
    %518 = arith.addf %513, %517 : vector<2x16x16xf32>
    %c156 = arith.constant 156 : index
    %519 = memref.load %arg0[%c156] : memref<225xf32, #tpu.memory_space<smem>>
    %c0_344 = arith.constant 0 : index
    %c10_345 = arith.constant 10 : index
    %c0_346 = arith.constant 0 : index
    %520 = vector.load %arg4[%c0_344, %c10_345, %c0_346] : memref<2x30x16xf32, #tpu.memory_space<vmem>>, vector<2x16x16xf32>
    %521 = vector.broadcast %519 : f32 to vector<2x16x16xf32>
    %522 = arith.mulf %521, %520 : vector<2x16x16xf32>
    %523 = arith.addf %518, %522 : vector<2x16x16xf32>
    %c171 = arith.constant 171 : index
    %524 = memref.load %arg0[%c171] : memref<225xf32, #tpu.memory_space<smem>>
    %c0_347 = arith.constant 0 : index
    %c11_348 = arith.constant 11 : index
    %c0_349 = arith.constant 0 : index
    %525 = vector.load %arg4[%c0_347, %c11_348, %c0_349] : memref<2x30x16xf32, #tpu.memory_space<vmem>>, vector<2x16x16xf32>
    %526 = vector.broadcast %524 : f32 to vector<2x16x16xf32>
    %527 = arith.mulf %526, %525 : vector<2x16x16xf32>
    %528 = arith.addf %523, %527 : vector<2x16x16xf32>
    %c186 = arith.constant 186 : index
    %529 = memref.load %arg0[%c186] : memref<225xf32, #tpu.memory_space<smem>>
    %c0_350 = arith.constant 0 : index
    %c12_351 = arith.constant 12 : index
    %c0_352 = arith.constant 0 : index
    %530 = vector.load %arg4[%c0_350, %c12_351, %c0_352] : memref<2x30x16xf32, #tpu.memory_space<vmem>>, vector<2x16x16xf32>
    %531 = vector.broadcast %529 : f32 to vector<2x16x16xf32>
    %532 = arith.mulf %531, %530 : vector<2x16x16xf32>
    %533 = arith.addf %528, %532 : vector<2x16x16xf32>
    %c201 = arith.constant 201 : index
    %534 = memref.load %arg0[%c201] : memref<225xf32, #tpu.memory_space<smem>>
    %c0_353 = arith.constant 0 : index
    %c13_354 = arith.constant 13 : index
    %c0_355 = arith.constant 0 : index
    %535 = vector.load %arg4[%c0_353, %c13_354, %c0_355] : memref<2x30x16xf32, #tpu.memory_space<vmem>>, vector<2x16x16xf32>
    %536 = vector.broadcast %534 : f32 to vector<2x16x16xf32>
    %537 = arith.mulf %536, %535 : vector<2x16x16xf32>
    %538 = arith.addf %533, %537 : vector<2x16x16xf32>
    %c216 = arith.constant 216 : index
    %539 = memref.load %arg0[%c216] : memref<225xf32, #tpu.memory_space<smem>>
    %c0_356 = arith.constant 0 : index
    %c14_357 = arith.constant 14 : index
    %c0_358 = arith.constant 0 : index
    %540 = vector.load %arg4[%c0_356, %c14_357, %c0_358] : memref<2x30x16xf32, #tpu.memory_space<vmem>>, vector<2x16x16xf32>
    %541 = vector.broadcast %539 : f32 to vector<2x16x16xf32>
    %542 = arith.mulf %541, %540 : vector<2x16x16xf32>
    %543 = arith.addf %538, %542 : vector<2x16x16xf32>
    %c0_359 = arith.constant 0 : index
    %c0_360 = arith.constant 0 : index
    %c7_361 = arith.constant 7 : index
    %544 = vector.load %arg3[%c0_359, %c0_360, %c7_361] : memref<2x30x30xf32, #tpu.memory_space<vmem>>, vector<2x30x16xf32>
    %c0_362 = arith.constant 0 : index
    %c0_363 = arith.constant 0 : index
    %c0_364 = arith.constant 0 : index
    %545 = vector.load %arg4[%c0_362, %c0_363, %c0_364] : memref<2x30x16xf32, #tpu.memory_space<vmem>>, vector<2x30x16xf32>
    tpu.vector_store %arg4[%c0_362, %c0_363, %c0_364], %544 {strides = array<i32>} : memref<2x30x16xf32, #tpu.memory_space<vmem>>, vector<2x30x16xf32>,
    %c7_365 = arith.constant 7 : index
    %546 = memref.load %arg0[%c7_365] : memref<225xf32, #tpu.memory_space<smem>>
    %c0_366 = arith.constant 0 : index
    %c0_367 = arith.constant 0 : index
    %c0_368 = arith.constant 0 : index
    %547 = vector.load %arg4[%c0_366, %c0_367, %c0_368] : memref<2x30x16xf32, #tpu.memory_space<vmem>>, vector<2x16x16xf32>
    %548 = vector.broadcast %546 : f32 to vector<2x16x16xf32>
    %549 = arith.mulf %548, %547 : vector<2x16x16xf32>
    %550 = arith.addf %543, %549 : vector<2x16x16xf32>
    %c22 = arith.constant 22 : index
    %551 = memref.load %arg0[%c22] : memref<225xf32, #tpu.memory_space<smem>>
    %c0_369 = arith.constant 0 : index
    %c1_370 = arith.constant 1 : index
    %c0_371 = arith.constant 0 : index
    %552 = vector.load %arg4[%c0_369, %c1_370, %c0_371] : memref<2x30x16xf32, #tpu.memory_space<vmem>>, vector<2x16x16xf32>
    %553 = vector.broadcast %551 : f32 to vector<2x16x16xf32>
    %554 = arith.mulf %553, %552 : vector<2x16x16xf32>
    %555 = arith.addf %550, %554 : vector<2x16x16xf32>
    %c37 = arith.constant 37 : index
    %556 = memref.load %arg0[%c37] : memref<225xf32, #tpu.memory_space<smem>>
    %c0_372 = arith.constant 0 : index
    %c2_373 = arith.constant 2 : index
    %c0_374 = arith.constant 0 : index
    %557 = vector.load %arg4[%c0_372, %c2_373, %c0_374] : memref<2x30x16xf32, #tpu.memory_space<vmem>>, vector<2x16x16xf32>
    %558 = vector.broadcast %556 : f32 to vector<2x16x16xf32>
    %559 = arith.mulf %558, %557 : vector<2x16x16xf32>
    %560 = arith.addf %555, %559 : vector<2x16x16xf32>
    %c52 = arith.constant 52 : index
    %561 = memref.load %arg0[%c52] : memref<225xf32, #tpu.memory_space<smem>>
    %c0_375 = arith.constant 0 : index
    %c3_376 = arith.constant 3 : index
    %c0_377 = arith.constant 0 : index
    %562 = vector.load %arg4[%c0_375, %c3_376, %c0_377] : memref<2x30x16xf32, #tpu.memory_space<vmem>>, vector<2x16x16xf32>
    %563 = vector.broadcast %561 : f32 to vector<2x16x16xf32>
    %564 = arith.mulf %563, %562 : vector<2x16x16xf32>
    %565 = arith.addf %560, %564 : vector<2x16x16xf32>
    %c67 = arith.constant 67 : index
    %566 = memref.load %arg0[%c67] : memref<225xf32, #tpu.memory_space<smem>>
    %c0_378 = arith.constant 0 : index
    %c4_379 = arith.constant 4 : index
    %c0_380 = arith.constant 0 : index
    %567 = vector.load %arg4[%c0_378, %c4_379, %c0_380] : memref<2x30x16xf32, #tpu.memory_space<vmem>>, vector<2x16x16xf32>
    %568 = vector.broadcast %566 : f32 to vector<2x16x16xf32>
    %569 = arith.mulf %568, %567 : vector<2x16x16xf32>
    %570 = arith.addf %565, %569 : vector<2x16x16xf32>
    %c82 = arith.constant 82 : index
    %571 = memref.load %arg0[%c82] : memref<225xf32, #tpu.memory_space<smem>>
    %c0_381 = arith.constant 0 : index
    %c5_382 = arith.constant 5 : index
    %c0_383 = arith.constant 0 : index
    %572 = vector.load %arg4[%c0_381, %c5_382, %c0_383] : memref<2x30x16xf32, #tpu.memory_space<vmem>>, vector<2x16x16xf32>
    %573 = vector.broadcast %571 : f32 to vector<2x16x16xf32>
    %574 = arith.mulf %573, %572 : vector<2x16x16xf32>
    %575 = arith.addf %570, %574 : vector<2x16x16xf32>
    %c97 = arith.constant 97 : index
    %576 = memref.load %arg0[%c97] : memref<225xf32, #tpu.memory_space<smem>>
    %c0_384 = arith.constant 0 : index
    %c6_385 = arith.constant 6 : index
    %c0_386 = arith.constant 0 : index
    %577 = vector.load %arg4[%c0_384, %c6_385, %c0_386] : memref<2x30x16xf32, #tpu.memory_space<vmem>>, vector<2x16x16xf32>
    %578 = vector.broadcast %576 : f32 to vector<2x16x16xf32>
    %579 = arith.mulf %578, %577 : vector<2x16x16xf32>
    %580 = arith.addf %575, %579 : vector<2x16x16xf32>
    %c112 = arith.constant 112 : index
    %581 = memref.load %arg0[%c112] : memref<225xf32, #tpu.memory_space<smem>>
    %c0_387 = arith.constant 0 : index
    %c7_388 = arith.constant 7 : index
    %c0_389 = arith.constant 0 : index
    %582 = vector.load %arg4[%c0_387, %c7_388, %c0_389] : memref<2x30x16xf32, #tpu.memory_space<vmem>>, vector<2x16x16xf32>
    %583 = vector.broadcast %581 : f32 to vector<2x16x16xf32>
    %584 = arith.mulf %583, %582 : vector<2x16x16xf32>
    %585 = arith.addf %580, %584 : vector<2x16x16xf32>
    %c127 = arith.constant 127 : index
    %586 = memref.load %arg0[%c127] : memref<225xf32, #tpu.memory_space<smem>>
    %c0_390 = arith.constant 0 : index
    %c8_391 = arith.constant 8 : index
    %c0_392 = arith.constant 0 : index
    %587 = vector.load %arg4[%c0_390, %c8_391, %c0_392] : memref<2x30x16xf32, #tpu.memory_space<vmem>>, vector<2x16x16xf32>
    %588 = vector.broadcast %586 : f32 to vector<2x16x16xf32>
    %589 = arith.mulf %588, %587 : vector<2x16x16xf32>
    %590 = arith.addf %585, %589 : vector<2x16x16xf32>
    %c142 = arith.constant 142 : index
    %591 = memref.load %arg0[%c142] : memref<225xf32, #tpu.memory_space<smem>>
    %c0_393 = arith.constant 0 : index
    %c9_394 = arith.constant 9 : index
    %c0_395 = arith.constant 0 : index
    %592 = vector.load %arg4[%c0_393, %c9_394, %c0_395] : memref<2x30x16xf32, #tpu.memory_space<vmem>>, vector<2x16x16xf32>
    %593 = vector.broadcast %591 : f32 to vector<2x16x16xf32>
    %594 = arith.mulf %593, %592 : vector<2x16x16xf32>
    %595 = arith.addf %590, %594 : vector<2x16x16xf32>
    %c157 = arith.constant 157 : index
    %596 = memref.load %arg0[%c157] : memref<225xf32, #tpu.memory_space<smem>>
    %c0_396 = arith.constant 0 : index
    %c10_397 = arith.constant 10 : index
    %c0_398 = arith.constant 0 : index
    %597 = vector.load %arg4[%c0_396, %c10_397, %c0_398] : memref<2x30x16xf32, #tpu.memory_space<vmem>>, vector<2x16x16xf32>
    %598 = vector.broadcast %596 : f32 to vector<2x16x16xf32>
    %599 = arith.mulf %598, %597 : vector<2x16x16xf32>
    %600 = arith.addf %595, %599 : vector<2x16x16xf32>
    %c172 = arith.constant 172 : index
    %601 = memref.load %arg0[%c172] : memref<225xf32, #tpu.memory_space<smem>>
    %c0_399 = arith.constant 0 : index
    %c11_400 = arith.constant 11 : index
    %c0_401 = arith.constant 0 : index
    %602 = vector.load %arg4[%c0_399, %c11_400, %c0_401] : memref<2x30x16xf32, #tpu.memory_space<vmem>>, vector<2x16x16xf32>
    %603 = vector.broadcast %601 : f32 to vector<2x16x16xf32>
    %604 = arith.mulf %603, %602 : vector<2x16x16xf32>
    %605 = arith.addf %600, %604 : vector<2x16x16xf32>
    %c187 = arith.constant 187 : index
    %606 = memref.load %arg0[%c187] : memref<225xf32, #tpu.memory_space<smem>>
    %c0_402 = arith.constant 0 : index
    %c12_403 = arith.constant 12 : index
    %c0_404 = arith.constant 0 : index
    %607 = vector.load %arg4[%c0_402, %c12_403, %c0_404] : memref<2x30x16xf32, #tpu.memory_space<vmem>>, vector<2x16x16xf32>
    %608 = vector.broadcast %606 : f32 to vector<2x16x16xf32>
    %609 = arith.mulf %608, %607 : vector<2x16x16xf32>
    %610 = arith.addf %605, %609 : vector<2x16x16xf32>
    %c202 = arith.constant 202 : index
    %611 = memref.load %arg0[%c202] : memref<225xf32, #tpu.memory_space<smem>>
    %c0_405 = arith.constant 0 : index
    %c13_406 = arith.constant 13 : index
    %c0_407 = arith.constant 0 : index
    %612 = vector.load %arg4[%c0_405, %c13_406, %c0_407] : memref<2x30x16xf32, #tpu.memory_space<vmem>>, vector<2x16x16xf32>
    %613 = vector.broadcast %611 : f32 to vector<2x16x16xf32>
    %614 = arith.mulf %613, %612 : vector<2x16x16xf32>
    %615 = arith.addf %610, %614 : vector<2x16x16xf32>
    %c217 = arith.constant 217 : index
    %616 = memref.load %arg0[%c217] : memref<225xf32, #tpu.memory_space<smem>>
    %c0_408 = arith.constant 0 : index
    %c14_409 = arith.constant 14 : index
    %c0_410 = arith.constant 0 : index
    %617 = vector.load %arg4[%c0_408, %c14_409, %c0_410] : memref<2x30x16xf32, #tpu.memory_space<vmem>>, vector<2x16x16xf32>
    %618 = vector.broadcast %616 : f32 to vector<2x16x16xf32>
    %619 = arith.mulf %618, %617 : vector<2x16x16xf32>
    %620 = arith.addf %615, %619 : vector<2x16x16xf32>
    %c0_411 = arith.constant 0 : index
    %c0_412 = arith.constant 0 : index
    %c8_413 = arith.constant 8 : index
    %621 = vector.load %arg3[%c0_411, %c0_412, %c8_413] : memref<2x30x30xf32, #tpu.memory_space<vmem>>, vector<2x30x16xf32>
    %c0_414 = arith.constant 0 : index
    %c0_415 = arith.constant 0 : index
    %c0_416 = arith.constant 0 : index
    %622 = vector.load %arg4[%c0_414, %c0_415, %c0_416] : memref<2x30x16xf32, #tpu.memory_space<vmem>>, vector<2x30x16xf32>
    tpu.vector_store %arg4[%c0_414, %c0_415, %c0_416], %621 {strides = array<i32>} : memref<2x30x16xf32, #tpu.memory_space<vmem>>, vector<2x30x16xf32>,
    %c8_417 = arith.constant 8 : index
    %623 = memref.load %arg0[%c8_417] : memref<225xf32, #tpu.memory_space<smem>>
    %c0_418 = arith.constant 0 : index
    %c0_419 = arith.constant 0 : index
    %c0_420 = arith.constant 0 : index
    %624 = vector.load %arg4[%c0_418, %c0_419, %c0_420] : memref<2x30x16xf32, #tpu.memory_space<vmem>>, vector<2x16x16xf32>
    %625 = vector.broadcast %623 : f32 to vector<2x16x16xf32>
    %626 = arith.mulf %625, %624 : vector<2x16x16xf32>
    %627 = arith.addf %620, %626 : vector<2x16x16xf32>
    %c23 = arith.constant 23 : index
    %628 = memref.load %arg0[%c23] : memref<225xf32, #tpu.memory_space<smem>>
    %c0_421 = arith.constant 0 : index
    %c1_422 = arith.constant 1 : index
    %c0_423 = arith.constant 0 : index
    %629 = vector.load %arg4[%c0_421, %c1_422, %c0_423] : memref<2x30x16xf32, #tpu.memory_space<vmem>>, vector<2x16x16xf32>
    %630 = vector.broadcast %628 : f32 to vector<2x16x16xf32>
    %631 = arith.mulf %630, %629 : vector<2x16x16xf32>
    %632 = arith.addf %627, %631 : vector<2x16x16xf32>
    %c38 = arith.constant 38 : index
    %633 = memref.load %arg0[%c38] : memref<225xf32, #tpu.memory_space<smem>>
    %c0_424 = arith.constant 0 : index
    %c2_425 = arith.constant 2 : index
    %c0_426 = arith.constant 0 : index
    %634 = vector.load %arg4[%c0_424, %c2_425, %c0_426] : memref<2x30x16xf32, #tpu.memory_space<vmem>>, vector<2x16x16xf32>
    %635 = vector.broadcast %633 : f32 to vector<2x16x16xf32>
    %636 = arith.mulf %635, %634 : vector<2x16x16xf32>
    %637 = arith.addf %632, %636 : vector<2x16x16xf32>
    %c53 = arith.constant 53 : index
    %638 = memref.load %arg0[%c53] : memref<225xf32, #tpu.memory_space<smem>>
    %c0_427 = arith.constant 0 : index
    %c3_428 = arith.constant 3 : index
    %c0_429 = arith.constant 0 : index
    %639 = vector.load %arg4[%c0_427, %c3_428, %c0_429] : memref<2x30x16xf32, #tpu.memory_space<vmem>>, vector<2x16x16xf32>
    %640 = vector.broadcast %638 : f32 to vector<2x16x16xf32>
    %641 = arith.mulf %640, %639 : vector<2x16x16xf32>
    %642 = arith.addf %637, %641 : vector<2x16x16xf32>
    %c68 = arith.constant 68 : index
    %643 = memref.load %arg0[%c68] : memref<225xf32, #tpu.memory_space<smem>>
    %c0_430 = arith.constant 0 : index
    %c4_431 = arith.constant 4 : index
    %c0_432 = arith.constant 0 : index
    %644 = vector.load %arg4[%c0_430, %c4_431, %c0_432] : memref<2x30x16xf32, #tpu.memory_space<vmem>>, vector<2x16x16xf32>
    %645 = vector.broadcast %643 : f32 to vector<2x16x16xf32>
    %646 = arith.mulf %645, %644 : vector<2x16x16xf32>
    %647 = arith.addf %642, %646 : vector<2x16x16xf32>
    %c83 = arith.constant 83 : index
    %648 = memref.load %arg0[%c83] : memref<225xf32, #tpu.memory_space<smem>>
    %c0_433 = arith.constant 0 : index
    %c5_434 = arith.constant 5 : index
    %c0_435 = arith.constant 0 : index
    %649 = vector.load %arg4[%c0_433, %c5_434, %c0_435] : memref<2x30x16xf32, #tpu.memory_space<vmem>>, vector<2x16x16xf32>
    %650 = vector.broadcast %648 : f32 to vector<2x16x16xf32>
    %651 = arith.mulf %650, %649 : vector<2x16x16xf32>
    %652 = arith.addf %647, %651 : vector<2x16x16xf32>
    %c98 = arith.constant 98 : index
    %653 = memref.load %arg0[%c98] : memref<225xf32, #tpu.memory_space<smem>>
    %c0_436 = arith.constant 0 : index
    %c6_437 = arith.constant 6 : index
    %c0_438 = arith.constant 0 : index
    %654 = vector.load %arg4[%c0_436, %c6_437, %c0_438] : memref<2x30x16xf32, #tpu.memory_space<vmem>>, vector<2x16x16xf32>
    %655 = vector.broadcast %653 : f32 to vector<2x16x16xf32>
    %656 = arith.mulf %655, %654 : vector<2x16x16xf32>
    %657 = arith.addf %652, %656 : vector<2x16x16xf32>
    %c113 = arith.constant 113 : index
    %658 = memref.load %arg0[%c113] : memref<225xf32, #tpu.memory_space<smem>>
    %c0_439 = arith.constant 0 : index
    %c7_440 = arith.constant 7 : index
    %c0_441 = arith.constant 0 : index
    %659 = vector.load %arg4[%c0_439, %c7_440, %c0_441] : memref<2x30x16xf32, #tpu.memory_space<vmem>>, vector<2x16x16xf32>
    %660 = vector.broadcast %658 : f32 to vector<2x16x16xf32>
    %661 = arith.mulf %660, %659 : vector<2x16x16xf32>
    %662 = arith.addf %657, %661 : vector<2x16x16xf32>
    %c128 = arith.constant 128 : index
    %663 = memref.load %arg0[%c128] : memref<225xf32, #tpu.memory_space<smem>>
    %c0_442 = arith.constant 0 : index
    %c8_443 = arith.constant 8 : index
    %c0_444 = arith.constant 0 : index
    %664 = vector.load %arg4[%c0_442, %c8_443, %c0_444] : memref<2x30x16xf32, #tpu.memory_space<vmem>>, vector<2x16x16xf32>
    %665 = vector.broadcast %663 : f32 to vector<2x16x16xf32>
    %666 = arith.mulf %665, %664 : vector<2x16x16xf32>
    %667 = arith.addf %662, %666 : vector<2x16x16xf32>
    %c143 = arith.constant 143 : index
    %668 = memref.load %arg0[%c143] : memref<225xf32, #tpu.memory_space<smem>>
    %c0_445 = arith.constant 0 : index
    %c9_446 = arith.constant 9 : index
    %c0_447 = arith.constant 0 : index
    %669 = vector.load %arg4[%c0_445, %c9_446, %c0_447] : memref<2x30x16xf32, #tpu.memory_space<vmem>>, vector<2x16x16xf32>
    %670 = vector.broadcast %668 : f32 to vector<2x16x16xf32>
    %671 = arith.mulf %670, %669 : vector<2x16x16xf32>
    %672 = arith.addf %667, %671 : vector<2x16x16xf32>
    %c158 = arith.constant 158 : index
    %673 = memref.load %arg0[%c158] : memref<225xf32, #tpu.memory_space<smem>>
    %c0_448 = arith.constant 0 : index
    %c10_449 = arith.constant 10 : index
    %c0_450 = arith.constant 0 : index
    %674 = vector.load %arg4[%c0_448, %c10_449, %c0_450] : memref<2x30x16xf32, #tpu.memory_space<vmem>>, vector<2x16x16xf32>
    %675 = vector.broadcast %673 : f32 to vector<2x16x16xf32>
    %676 = arith.mulf %675, %674 : vector<2x16x16xf32>
    %677 = arith.addf %672, %676 : vector<2x16x16xf32>
    %c173 = arith.constant 173 : index
    %678 = memref.load %arg0[%c173] : memref<225xf32, #tpu.memory_space<smem>>
    %c0_451 = arith.constant 0 : index
    %c11_452 = arith.constant 11 : index
    %c0_453 = arith.constant 0 : index
    %679 = vector.load %arg4[%c0_451, %c11_452, %c0_453] : memref<2x30x16xf32, #tpu.memory_space<vmem>>, vector<2x16x16xf32>
    %680 = vector.broadcast %678 : f32 to vector<2x16x16xf32>
    %681 = arith.mulf %680, %679 : vector<2x16x16xf32>
    %682 = arith.addf %677, %681 : vector<2x16x16xf32>
    %c188 = arith.constant 188 : index
    %683 = memref.load %arg0[%c188] : memref<225xf32, #tpu.memory_space<smem>>
    %c0_454 = arith.constant 0 : index
    %c12_455 = arith.constant 12 : index
    %c0_456 = arith.constant 0 : index
    %684 = vector.load %arg4[%c0_454, %c12_455, %c0_456] : memref<2x30x16xf32, #tpu.memory_space<vmem>>, vector<2x16x16xf32>
    %685 = vector.broadcast %683 : f32 to vector<2x16x16xf32>
    %686 = arith.mulf %685, %684 : vector<2x16x16xf32>
    %687 = arith.addf %682, %686 : vector<2x16x16xf32>
    %c203 = arith.constant 203 : index
    %688 = memref.load %arg0[%c203] : memref<225xf32, #tpu.memory_space<smem>>
    %c0_457 = arith.constant 0 : index
    %c13_458 = arith.constant 13 : index
    %c0_459 = arith.constant 0 : index
    %689 = vector.load %arg4[%c0_457, %c13_458, %c0_459] : memref<2x30x16xf32, #tpu.memory_space<vmem>>, vector<2x16x16xf32>
    %690 = vector.broadcast %688 : f32 to vector<2x16x16xf32>
    %691 = arith.mulf %690, %689 : vector<2x16x16xf32>
    %692 = arith.addf %687, %691 : vector<2x16x16xf32>
    %c218 = arith.constant 218 : index
    %693 = memref.load %arg0[%c218] : memref<225xf32, #tpu.memory_space<smem>>
    %c0_460 = arith.constant 0 : index
    %c14_461 = arith.constant 14 : index
    %c0_462 = arith.constant 0 : index
    %694 = vector.load %arg4[%c0_460, %c14_461, %c0_462] : memref<2x30x16xf32, #tpu.memory_space<vmem>>, vector<2x16x16xf32>
    %695 = vector.broadcast %693 : f32 to vector<2x16x16xf32>
    %696 = arith.mulf %695, %694 : vector<2x16x16xf32>
    %697 = arith.addf %692, %696 : vector<2x16x16xf32>
    %c0_463 = arith.constant 0 : index
    %c0_464 = arith.constant 0 : index
    %c9_465 = arith.constant 9 : index
    %698 = vector.load %arg3[%c0_463, %c0_464, %c9_465] : memref<2x30x30xf32, #tpu.memory_space<vmem>>, vector<2x30x16xf32>
    %c0_466 = arith.constant 0 : index
    %c0_467 = arith.constant 0 : index
    %c0_468 = arith.constant 0 : index
    %699 = vector.load %arg4[%c0_466, %c0_467, %c0_468] : memref<2x30x16xf32, #tpu.memory_space<vmem>>, vector<2x30x16xf32>
    tpu.vector_store %arg4[%c0_466, %c0_467, %c0_468], %698 {strides = array<i32>} : memref<2x30x16xf32, #tpu.memory_space<vmem>>, vector<2x30x16xf32>,
    %c9_469 = arith.constant 9 : index
    %700 = memref.load %arg0[%c9_469] : memref<225xf32, #tpu.memory_space<smem>>
    %c0_470 = arith.constant 0 : index
    %c0_471 = arith.constant 0 : index
    %c0_472 = arith.constant 0 : index
    %701 = vector.load %arg4[%c0_470, %c0_471, %c0_472] : memref<2x30x16xf32, #tpu.memory_space<vmem>>, vector<2x16x16xf32>
    %702 = vector.broadcast %700 : f32 to vector<2x16x16xf32>
    %703 = arith.mulf %702, %701 : vector<2x16x16xf32>
    %704 = arith.addf %697, %703 : vector<2x16x16xf32>
    %c24 = arith.constant 24 : index
    %705 = memref.load %arg0[%c24] : memref<225xf32, #tpu.memory_space<smem>>
    %c0_473 = arith.constant 0 : index
    %c1_474 = arith.constant 1 : index
    %c0_475 = arith.constant 0 : index
    %706 = vector.load %arg4[%c0_473, %c1_474, %c0_475] : memref<2x30x16xf32, #tpu.memory_space<vmem>>, vector<2x16x16xf32>
    %707 = vector.broadcast %705 : f32 to vector<2x16x16xf32>
    %708 = arith.mulf %707, %706 : vector<2x16x16xf32>
    %709 = arith.addf %704, %708 : vector<2x16x16xf32>
    %c39 = arith.constant 39 : index
    %710 = memref.load %arg0[%c39] : memref<225xf32, #tpu.memory_space<smem>>
    %c0_476 = arith.constant 0 : index
    %c2_477 = arith.constant 2 : index
    %c0_478 = arith.constant 0 : index
    %711 = vector.load %arg4[%c0_476, %c2_477, %c0_478] : memref<2x30x16xf32, #tpu.memory_space<vmem>>, vector<2x16x16xf32>
    %712 = vector.broadcast %710 : f32 to vector<2x16x16xf32>
    %713 = arith.mulf %712, %711 : vector<2x16x16xf32>
    %714 = arith.addf %709, %713 : vector<2x16x16xf32>
    %c54 = arith.constant 54 : index
    %715 = memref.load %arg0[%c54] : memref<225xf32, #tpu.memory_space<smem>>
    %c0_479 = arith.constant 0 : index
    %c3_480 = arith.constant 3 : index
    %c0_481 = arith.constant 0 : index
    %716 = vector.load %arg4[%c0_479, %c3_480, %c0_481] : memref<2x30x16xf32, #tpu.memory_space<vmem>>, vector<2x16x16xf32>
    %717 = vector.broadcast %715 : f32 to vector<2x16x16xf32>
    %718 = arith.mulf %717, %716 : vector<2x16x16xf32>
    %719 = arith.addf %714, %718 : vector<2x16x16xf32>
    %c69 = arith.constant 69 : index
    %720 = memref.load %arg0[%c69] : memref<225xf32, #tpu.memory_space<smem>>
    %c0_482 = arith.constant 0 : index
    %c4_483 = arith.constant 4 : index
    %c0_484 = arith.constant 0 : index
    %721 = vector.load %arg4[%c0_482, %c4_483, %c0_484] : memref<2x30x16xf32, #tpu.memory_space<vmem>>, vector<2x16x16xf32>
    %722 = vector.broadcast %720 : f32 to vector<2x16x16xf32>
    %723 = arith.mulf %722, %721 : vector<2x16x16xf32>
    %724 = arith.addf %719, %723 : vector<2x16x16xf32>
    %c84 = arith.constant 84 : index
    %725 = memref.load %arg0[%c84] : memref<225xf32, #tpu.memory_space<smem>>
    %c0_485 = arith.constant 0 : index
    %c5_486 = arith.constant 5 : index
    %c0_487 = arith.constant 0 : index
    %726 = vector.load %arg4[%c0_485, %c5_486, %c0_487] : memref<2x30x16xf32, #tpu.memory_space<vmem>>, vector<2x16x16xf32>
    %727 = vector.broadcast %725 : f32 to vector<2x16x16xf32>
    %728 = arith.mulf %727, %726 : vector<2x16x16xf32>
    %729 = arith.addf %724, %728 : vector<2x16x16xf32>
    %c99 = arith.constant 99 : index
    %730 = memref.load %arg0[%c99] : memref<225xf32, #tpu.memory_space<smem>>
    %c0_488 = arith.constant 0 : index
    %c6_489 = arith.constant 6 : index
    %c0_490 = arith.constant 0 : index
    %731 = vector.load %arg4[%c0_488, %c6_489, %c0_490] : memref<2x30x16xf32, #tpu.memory_space<vmem>>, vector<2x16x16xf32>
    %732 = vector.broadcast %730 : f32 to vector<2x16x16xf32>
    %733 = arith.mulf %732, %731 : vector<2x16x16xf32>
    %734 = arith.addf %729, %733 : vector<2x16x16xf32>
    %c114 = arith.constant 114 : index
    %735 = memref.load %arg0[%c114] : memref<225xf32, #tpu.memory_space<smem>>
    %c0_491 = arith.constant 0 : index
    %c7_492 = arith.constant 7 : index
    %c0_493 = arith.constant 0 : index
    %736 = vector.load %arg4[%c0_491, %c7_492, %c0_493] : memref<2x30x16xf32, #tpu.memory_space<vmem>>, vector<2x16x16xf32>
    %737 = vector.broadcast %735 : f32 to vector<2x16x16xf32>
    %738 = arith.mulf %737, %736 : vector<2x16x16xf32>
    %739 = arith.addf %734, %738 : vector<2x16x16xf32>
    %c129 = arith.constant 129 : index
    %740 = memref.load %arg0[%c129] : memref<225xf32, #tpu.memory_space<smem>>
    %c0_494 = arith.constant 0 : index
    %c8_495 = arith.constant 8 : index
    %c0_496 = arith.constant 0 : index
    %741 = vector.load %arg4[%c0_494, %c8_495, %c0_496] : memref<2x30x16xf32, #tpu.memory_space<vmem>>, vector<2x16x16xf32>
    %742 = vector.broadcast %740 : f32 to vector<2x16x16xf32>
    %743 = arith.mulf %742, %741 : vector<2x16x16xf32>
    %744 = arith.addf %739, %743 : vector<2x16x16xf32>
    %c144 = arith.constant 144 : index
    %745 = memref.load %arg0[%c144] : memref<225xf32, #tpu.memory_space<smem>>
    %c0_497 = arith.constant 0 : index
    %c9_498 = arith.constant 9 : index
    %c0_499 = arith.constant 0 : index
    %746 = vector.load %arg4[%c0_497, %c9_498, %c0_499] : memref<2x30x16xf32, #tpu.memory_space<vmem>>, vector<2x16x16xf32>
    %747 = vector.broadcast %745 : f32 to vector<2x16x16xf32>
    %748 = arith.mulf %747, %746 : vector<2x16x16xf32>
    %749 = arith.addf %744, %748 : vector<2x16x16xf32>
    %c159 = arith.constant 159 : index
    %750 = memref.load %arg0[%c159] : memref<225xf32, #tpu.memory_space<smem>>
    %c0_500 = arith.constant 0 : index
    %c10_501 = arith.constant 10 : index
    %c0_502 = arith.constant 0 : index
    %751 = vector.load %arg4[%c0_500, %c10_501, %c0_502] : memref<2x30x16xf32, #tpu.memory_space<vmem>>, vector<2x16x16xf32>
    %752 = vector.broadcast %750 : f32 to vector<2x16x16xf32>
    %753 = arith.mulf %752, %751 : vector<2x16x16xf32>
    %754 = arith.addf %749, %753 : vector<2x16x16xf32>
    %c174 = arith.constant 174 : index
    %755 = memref.load %arg0[%c174] : memref<225xf32, #tpu.memory_space<smem>>
    %c0_503 = arith.constant 0 : index
    %c11_504 = arith.constant 11 : index
    %c0_505 = arith.constant 0 : index
    %756 = vector.load %arg4[%c0_503, %c11_504, %c0_505] : memref<2x30x16xf32, #tpu.memory_space<vmem>>, vector<2x16x16xf32>
    %757 = vector.broadcast %755 : f32 to vector<2x16x16xf32>
    %758 = arith.mulf %757, %756 : vector<2x16x16xf32>
    %759 = arith.addf %754, %758 : vector<2x16x16xf32>
    %c189 = arith.constant 189 : index
    %760 = memref.load %arg0[%c189] : memref<225xf32, #tpu.memory_space<smem>>
    %c0_506 = arith.constant 0 : index
    %c12_507 = arith.constant 12 : index
    %c0_508 = arith.constant 0 : index
    %761 = vector.load %arg4[%c0_506, %c12_507, %c0_508] : memref<2x30x16xf32, #tpu.memory_space<vmem>>, vector<2x16x16xf32>
    %762 = vector.broadcast %760 : f32 to vector<2x16x16xf32>
    %763 = arith.mulf %762, %761 : vector<2x16x16xf32>
    %764 = arith.addf %759, %763 : vector<2x16x16xf32>
    %c204 = arith.constant 204 : index
    %765 = memref.load %arg0[%c204] : memref<225xf32, #tpu.memory_space<smem>>
    %c0_509 = arith.constant 0 : index
    %c13_510 = arith.constant 13 : index
    %c0_511 = arith.constant 0 : index
    %766 = vector.load %arg4[%c0_509, %c13_510, %c0_511] : memref<2x30x16xf32, #tpu.memory_space<vmem>>, vector<2x16x16xf32>
    %767 = vector.broadcast %765 : f32 to vector<2x16x16xf32>
    %768 = arith.mulf %767, %766 : vector<2x16x16xf32>
    %769 = arith.addf %764, %768 : vector<2x16x16xf32>
    %c219 = arith.constant 219 : index
    %770 = memref.load %arg0[%c219] : memref<225xf32, #tpu.memory_space<smem>>
    %c0_512 = arith.constant 0 : index
    %c14_513 = arith.constant 14 : index
    %c0_514 = arith.constant 0 : index
    %771 = vector.load %arg4[%c0_512, %c14_513, %c0_514] : memref<2x30x16xf32, #tpu.memory_space<vmem>>, vector<2x16x16xf32>
    %772 = vector.broadcast %770 : f32 to vector<2x16x16xf32>
    %773 = arith.mulf %772, %771 : vector<2x16x16xf32>
    %774 = arith.addf %769, %773 : vector<2x16x16xf32>
    %c0_515 = arith.constant 0 : index
    %c0_516 = arith.constant 0 : index
    %c10_517 = arith.constant 10 : index
    %775 = vector.load %arg3[%c0_515, %c0_516, %c10_517] : memref<2x30x30xf32, #tpu.memory_space<vmem>>, vector<2x30x16xf32>
    %c0_518 = arith.constant 0 : index
    %c0_519 = arith.constant 0 : index
    %c0_520 = arith.constant 0 : index
    %776 = vector.load %arg4[%c0_518, %c0_519, %c0_520] : memref<2x30x16xf32, #tpu.memory_space<vmem>>, vector<2x30x16xf32>
    tpu.vector_store %arg4[%c0_518, %c0_519, %c0_520], %775 {strides = array<i32>} : memref<2x30x16xf32, #tpu.memory_space<vmem>>, vector<2x30x16xf32>,
    %c10_521 = arith.constant 10 : index
    %777 = memref.load %arg0[%c10_521] : memref<225xf32, #tpu.memory_space<smem>>
    %c0_522 = arith.constant 0 : index
    %c0_523 = arith.constant 0 : index
    %c0_524 = arith.constant 0 : index
    %778 = vector.load %arg4[%c0_522, %c0_523, %c0_524] : memref<2x30x16xf32, #tpu.memory_space<vmem>>, vector<2x16x16xf32>
    %779 = vector.broadcast %777 : f32 to vector<2x16x16xf32>
    %780 = arith.mulf %779, %778 : vector<2x16x16xf32>
    %781 = arith.addf %774, %780 : vector<2x16x16xf32>
    %c25 = arith.constant 25 : index
    %782 = memref.load %arg0[%c25] : memref<225xf32, #tpu.memory_space<smem>>
    %c0_525 = arith.constant 0 : index
    %c1_526 = arith.constant 1 : index
    %c0_527 = arith.constant 0 : index
    %783 = vector.load %arg4[%c0_525, %c1_526, %c0_527] : memref<2x30x16xf32, #tpu.memory_space<vmem>>, vector<2x16x16xf32>
    %784 = vector.broadcast %782 : f32 to vector<2x16x16xf32>
    %785 = arith.mulf %784, %783 : vector<2x16x16xf32>
    %786 = arith.addf %781, %785 : vector<2x16x16xf32>
    %c40 = arith.constant 40 : index
    %787 = memref.load %arg0[%c40] : memref<225xf32, #tpu.memory_space<smem>>
    %c0_528 = arith.constant 0 : index
    %c2_529 = arith.constant 2 : index
    %c0_530 = arith.constant 0 : index
    %788 = vector.load %arg4[%c0_528, %c2_529, %c0_530] : memref<2x30x16xf32, #tpu.memory_space<vmem>>, vector<2x16x16xf32>
    %789 = vector.broadcast %787 : f32 to vector<2x16x16xf32>
    %790 = arith.mulf %789, %788 : vector<2x16x16xf32>
    %791 = arith.addf %786, %790 : vector<2x16x16xf32>
    %c55 = arith.constant 55 : index
    %792 = memref.load %arg0[%c55] : memref<225xf32, #tpu.memory_space<smem>>
    %c0_531 = arith.constant 0 : index
    %c3_532 = arith.constant 3 : index
    %c0_533 = arith.constant 0 : index
    %793 = vector.load %arg4[%c0_531, %c3_532, %c0_533] : memref<2x30x16xf32, #tpu.memory_space<vmem>>, vector<2x16x16xf32>
    %794 = vector.broadcast %792 : f32 to vector<2x16x16xf32>
    %795 = arith.mulf %794, %793 : vector<2x16x16xf32>
    %796 = arith.addf %791, %795 : vector<2x16x16xf32>
    %c70 = arith.constant 70 : index
    %797 = memref.load %arg0[%c70] : memref<225xf32, #tpu.memory_space<smem>>
    %c0_534 = arith.constant 0 : index
    %c4_535 = arith.constant 4 : index
    %c0_536 = arith.constant 0 : index
    %798 = vector.load %arg4[%c0_534, %c4_535, %c0_536] : memref<2x30x16xf32, #tpu.memory_space<vmem>>, vector<2x16x16xf32>
    %799 = vector.broadcast %797 : f32 to vector<2x16x16xf32>
    %800 = arith.mulf %799, %798 : vector<2x16x16xf32>
    %801 = arith.addf %796, %800 : vector<2x16x16xf32>
    %c85 = arith.constant 85 : index
    %802 = memref.load %arg0[%c85] : memref<225xf32, #tpu.memory_space<smem>>
    %c0_537 = arith.constant 0 : index
    %c5_538 = arith.constant 5 : index
    %c0_539 = arith.constant 0 : index
    %803 = vector.load %arg4[%c0_537, %c5_538, %c0_539] : memref<2x30x16xf32, #tpu.memory_space<vmem>>, vector<2x16x16xf32>
    %804 = vector.broadcast %802 : f32 to vector<2x16x16xf32>
    %805 = arith.mulf %804, %803 : vector<2x16x16xf32>
    %806 = arith.addf %801, %805 : vector<2x16x16xf32>
    %c100 = arith.constant 100 : index
    %807 = memref.load %arg0[%c100] : memref<225xf32, #tpu.memory_space<smem>>
    %c0_540 = arith.constant 0 : index
    %c6_541 = arith.constant 6 : index
    %c0_542 = arith.constant 0 : index
    %808 = vector.load %arg4[%c0_540, %c6_541, %c0_542] : memref<2x30x16xf32, #tpu.memory_space<vmem>>, vector<2x16x16xf32>
    %809 = vector.broadcast %807 : f32 to vector<2x16x16xf32>
    %810 = arith.mulf %809, %808 : vector<2x16x16xf32>
    %811 = arith.addf %806, %810 : vector<2x16x16xf32>
    %c115 = arith.constant 115 : index
    %812 = memref.load %arg0[%c115] : memref<225xf32, #tpu.memory_space<smem>>
    %c0_543 = arith.constant 0 : index
    %c7_544 = arith.constant 7 : index
    %c0_545 = arith.constant 0 : index
    %813 = vector.load %arg4[%c0_543, %c7_544, %c0_545] : memref<2x30x16xf32, #tpu.memory_space<vmem>>, vector<2x16x16xf32>
    %814 = vector.broadcast %812 : f32 to vector<2x16x16xf32>
    %815 = arith.mulf %814, %813 : vector<2x16x16xf32>
    %816 = arith.addf %811, %815 : vector<2x16x16xf32>
    %c130 = arith.constant 130 : index
    %817 = memref.load %arg0[%c130] : memref<225xf32, #tpu.memory_space<smem>>
    %c0_546 = arith.constant 0 : index
    %c8_547 = arith.constant 8 : index
    %c0_548 = arith.constant 0 : index
    %818 = vector.load %arg4[%c0_546, %c8_547, %c0_548] : memref<2x30x16xf32, #tpu.memory_space<vmem>>, vector<2x16x16xf32>
    %819 = vector.broadcast %817 : f32 to vector<2x16x16xf32>
    %820 = arith.mulf %819, %818 : vector<2x16x16xf32>
    %821 = arith.addf %816, %820 : vector<2x16x16xf32>
    %c145 = arith.constant 145 : index
    %822 = memref.load %arg0[%c145] : memref<225xf32, #tpu.memory_space<smem>>
    %c0_549 = arith.constant 0 : index
    %c9_550 = arith.constant 9 : index
    %c0_551 = arith.constant 0 : index
    %823 = vector.load %arg4[%c0_549, %c9_550, %c0_551] : memref<2x30x16xf32, #tpu.memory_space<vmem>>, vector<2x16x16xf32>
    %824 = vector.broadcast %822 : f32 to vector<2x16x16xf32>
    %825 = arith.mulf %824, %823 : vector<2x16x16xf32>
    %826 = arith.addf %821, %825 : vector<2x16x16xf32>
    %c160 = arith.constant 160 : index
    %827 = memref.load %arg0[%c160] : memref<225xf32, #tpu.memory_space<smem>>
    %c0_552 = arith.constant 0 : index
    %c10_553 = arith.constant 10 : index
    %c0_554 = arith.constant 0 : index
    %828 = vector.load %arg4[%c0_552, %c10_553, %c0_554] : memref<2x30x16xf32, #tpu.memory_space<vmem>>, vector<2x16x16xf32>
    %829 = vector.broadcast %827 : f32 to vector<2x16x16xf32>
    %830 = arith.mulf %829, %828 : vector<2x16x16xf32>
    %831 = arith.addf %826, %830 : vector<2x16x16xf32>
    %c175 = arith.constant 175 : index
    %832 = memref.load %arg0[%c175] : memref<225xf32, #tpu.memory_space<smem>>
    %c0_555 = arith.constant 0 : index
    %c11_556 = arith.constant 11 : index
    %c0_557 = arith.constant 0 : index
    %833 = vector.load %arg4[%c0_555, %c11_556, %c0_557] : memref<2x30x16xf32, #tpu.memory_space<vmem>>, vector<2x16x16xf32>
    %834 = vector.broadcast %832 : f32 to vector<2x16x16xf32>
    %835 = arith.mulf %834, %833 : vector<2x16x16xf32>
    %836 = arith.addf %831, %835 : vector<2x16x16xf32>
    %c190 = arith.constant 190 : index
    %837 = memref.load %arg0[%c190] : memref<225xf32, #tpu.memory_space<smem>>
    %c0_558 = arith.constant 0 : index
    %c12_559 = arith.constant 12 : index
    %c0_560 = arith.constant 0 : index
    %838 = vector.load %arg4[%c0_558, %c12_559, %c0_560] : memref<2x30x16xf32, #tpu.memory_space<vmem>>, vector<2x16x16xf32>
    %839 = vector.broadcast %837 : f32 to vector<2x16x16xf32>
    %840 = arith.mulf %839, %838 : vector<2x16x16xf32>
    %841 = arith.addf %836, %840 : vector<2x16x16xf32>
    %c205 = arith.constant 205 : index
    %842 = memref.load %arg0[%c205] : memref<225xf32, #tpu.memory_space<smem>>
    %c0_561 = arith.constant 0 : index
    %c13_562 = arith.constant 13 : index
    %c0_563 = arith.constant 0 : index
    %843 = vector.load %arg4[%c0_561, %c13_562, %c0_563] : memref<2x30x16xf32, #tpu.memory_space<vmem>>, vector<2x16x16xf32>
    %844 = vector.broadcast %842 : f32 to vector<2x16x16xf32>
    %845 = arith.mulf %844, %843 : vector<2x16x16xf32>
    %846 = arith.addf %841, %845 : vector<2x16x16xf32>
    %c220 = arith.constant 220 : index
    %847 = memref.load %arg0[%c220] : memref<225xf32, #tpu.memory_space<smem>>
    %c0_564 = arith.constant 0 : index
    %c14_565 = arith.constant 14 : index
    %c0_566 = arith.constant 0 : index
    %848 = vector.load %arg4[%c0_564, %c14_565, %c0_566] : memref<2x30x16xf32, #tpu.memory_space<vmem>>, vector<2x16x16xf32>
    %849 = vector.broadcast %847 : f32 to vector<2x16x16xf32>
    %850 = arith.mulf %849, %848 : vector<2x16x16xf32>
    %851 = arith.addf %846, %850 : vector<2x16x16xf32>
    %c0_567 = arith.constant 0 : index
    %c0_568 = arith.constant 0 : index
    %c11_569 = arith.constant 11 : index
    %852 = vector.load %arg3[%c0_567, %c0_568, %c11_569] : memref<2x30x30xf32, #tpu.memory_space<vmem>>, vector<2x30x16xf32>
    %c0_570 = arith.constant 0 : index
    %c0_571 = arith.constant 0 : index
    %c0_572 = arith.constant 0 : index
    %853 = vector.load %arg4[%c0_570, %c0_571, %c0_572] : memref<2x30x16xf32, #tpu.memory_space<vmem>>, vector<2x30x16xf32>
    tpu.vector_store %arg4[%c0_570, %c0_571, %c0_572], %852 {strides = array<i32>} : memref<2x30x16xf32, #tpu.memory_space<vmem>>, vector<2x30x16xf32>,
    %c11_573 = arith.constant 11 : index
    %854 = memref.load %arg0[%c11_573] : memref<225xf32, #tpu.memory_space<smem>>
    %c0_574 = arith.constant 0 : index
    %c0_575 = arith.constant 0 : index
    %c0_576 = arith.constant 0 : index
    %855 = vector.load %arg4[%c0_574, %c0_575, %c0_576] : memref<2x30x16xf32, #tpu.memory_space<vmem>>, vector<2x16x16xf32>
    %856 = vector.broadcast %854 : f32 to vector<2x16x16xf32>
    %857 = arith.mulf %856, %855 : vector<2x16x16xf32>
    %858 = arith.addf %851, %857 : vector<2x16x16xf32>
    %c26 = arith.constant 26 : index
    %859 = memref.load %arg0[%c26] : memref<225xf32, #tpu.memory_space<smem>>
    %c0_577 = arith.constant 0 : index
    %c1_578 = arith.constant 1 : index
    %c0_579 = arith.constant 0 : index
    %860 = vector.load %arg4[%c0_577, %c1_578, %c0_579] : memref<2x30x16xf32, #tpu.memory_space<vmem>>, vector<2x16x16xf32>
    %861 = vector.broadcast %859 : f32 to vector<2x16x16xf32>
    %862 = arith.mulf %861, %860 : vector<2x16x16xf32>
    %863 = arith.addf %858, %862 : vector<2x16x16xf32>
    %c41 = arith.constant 41 : index
    %864 = memref.load %arg0[%c41] : memref<225xf32, #tpu.memory_space<smem>>
    %c0_580 = arith.constant 0 : index
    %c2_581 = arith.constant 2 : index
    %c0_582 = arith.constant 0 : index
    %865 = vector.load %arg4[%c0_580, %c2_581, %c0_582] : memref<2x30x16xf32, #tpu.memory_space<vmem>>, vector<2x16x16xf32>
    %866 = vector.broadcast %864 : f32 to vector<2x16x16xf32>
    %867 = arith.mulf %866, %865 : vector<2x16x16xf32>
    %868 = arith.addf %863, %867 : vector<2x16x16xf32>
    %c56 = arith.constant 56 : index
    %869 = memref.load %arg0[%c56] : memref<225xf32, #tpu.memory_space<smem>>
    %c0_583 = arith.constant 0 : index
    %c3_584 = arith.constant 3 : index
    %c0_585 = arith.constant 0 : index
    %870 = vector.load %arg4[%c0_583, %c3_584, %c0_585] : memref<2x30x16xf32, #tpu.memory_space<vmem>>, vector<2x16x16xf32>
    %871 = vector.broadcast %869 : f32 to vector<2x16x16xf32>
    %872 = arith.mulf %871, %870 : vector<2x16x16xf32>
    %873 = arith.addf %868, %872 : vector<2x16x16xf32>
    %c71 = arith.constant 71 : index
    %874 = memref.load %arg0[%c71] : memref<225xf32, #tpu.memory_space<smem>>
    %c0_586 = arith.constant 0 : index
    %c4_587 = arith.constant 4 : index
    %c0_588 = arith.constant 0 : index
    %875 = vector.load %arg4[%c0_586, %c4_587, %c0_588] : memref<2x30x16xf32, #tpu.memory_space<vmem>>, vector<2x16x16xf32>
    %876 = vector.broadcast %874 : f32 to vector<2x16x16xf32>
    %877 = arith.mulf %876, %875 : vector<2x16x16xf32>
    %878 = arith.addf %873, %877 : vector<2x16x16xf32>
    %c86 = arith.constant 86 : index
    %879 = memref.load %arg0[%c86] : memref<225xf32, #tpu.memory_space<smem>>
    %c0_589 = arith.constant 0 : index
    %c5_590 = arith.constant 5 : index
    %c0_591 = arith.constant 0 : index
    %880 = vector.load %arg4[%c0_589, %c5_590, %c0_591] : memref<2x30x16xf32, #tpu.memory_space<vmem>>, vector<2x16x16xf32>
    %881 = vector.broadcast %879 : f32 to vector<2x16x16xf32>
    %882 = arith.mulf %881, %880 : vector<2x16x16xf32>
    %883 = arith.addf %878, %882 : vector<2x16x16xf32>
    %c101 = arith.constant 101 : index
    %884 = memref.load %arg0[%c101] : memref<225xf32, #tpu.memory_space<smem>>
    %c0_592 = arith.constant 0 : index
    %c6_593 = arith.constant 6 : index
    %c0_594 = arith.constant 0 : index
    %885 = vector.load %arg4[%c0_592, %c6_593, %c0_594] : memref<2x30x16xf32, #tpu.memory_space<vmem>>, vector<2x16x16xf32>
    %886 = vector.broadcast %884 : f32 to vector<2x16x16xf32>
    %887 = arith.mulf %886, %885 : vector<2x16x16xf32>
    %888 = arith.addf %883, %887 : vector<2x16x16xf32>
    %c116 = arith.constant 116 : index
    %889 = memref.load %arg0[%c116] : memref<225xf32, #tpu.memory_space<smem>>
    %c0_595 = arith.constant 0 : index
    %c7_596 = arith.constant 7 : index
    %c0_597 = arith.constant 0 : index
    %890 = vector.load %arg4[%c0_595, %c7_596, %c0_597] : memref<2x30x16xf32, #tpu.memory_space<vmem>>, vector<2x16x16xf32>
    %891 = vector.broadcast %889 : f32 to vector<2x16x16xf32>
    %892 = arith.mulf %891, %890 : vector<2x16x16xf32>
    %893 = arith.addf %888, %892 : vector<2x16x16xf32>
    %c131 = arith.constant 131 : index
    %894 = memref.load %arg0[%c131] : memref<225xf32, #tpu.memory_space<smem>>
    %c0_598 = arith.constant 0 : index
    %c8_599 = arith.constant 8 : index
    %c0_600 = arith.constant 0 : index
    %895 = vector.load %arg4[%c0_598, %c8_599, %c0_600] : memref<2x30x16xf32, #tpu.memory_space<vmem>>, vector<2x16x16xf32>
    %896 = vector.broadcast %894 : f32 to vector<2x16x16xf32>
    %897 = arith.mulf %896, %895 : vector<2x16x16xf32>
    %898 = arith.addf %893, %897 : vector<2x16x16xf32>
    %c146 = arith.constant 146 : index
    %899 = memref.load %arg0[%c146] : memref<225xf32, #tpu.memory_space<smem>>
    %c0_601 = arith.constant 0 : index
    %c9_602 = arith.constant 9 : index
    %c0_603 = arith.constant 0 : index
    %900 = vector.load %arg4[%c0_601, %c9_602, %c0_603] : memref<2x30x16xf32, #tpu.memory_space<vmem>>, vector<2x16x16xf32>
    %901 = vector.broadcast %899 : f32 to vector<2x16x16xf32>
    %902 = arith.mulf %901, %900 : vector<2x16x16xf32>
    %903 = arith.addf %898, %902 : vector<2x16x16xf32>
    %c161 = arith.constant 161 : index
    %904 = memref.load %arg0[%c161] : memref<225xf32, #tpu.memory_space<smem>>
    %c0_604 = arith.constant 0 : index
    %c10_605 = arith.constant 10 : index
    %c0_606 = arith.constant 0 : index
    %905 = vector.load %arg4[%c0_604, %c10_605, %c0_606] : memref<2x30x16xf32, #tpu.memory_space<vmem>>, vector<2x16x16xf32>
    %906 = vector.broadcast %904 : f32 to vector<2x16x16xf32>
    %907 = arith.mulf %906, %905 : vector<2x16x16xf32>
    %908 = arith.addf %903, %907 : vector<2x16x16xf32>
    %c176 = arith.constant 176 : index
    %909 = memref.load %arg0[%c176] : memref<225xf32, #tpu.memory_space<smem>>
    %c0_607 = arith.constant 0 : index
    %c11_608 = arith.constant 11 : index
    %c0_609 = arith.constant 0 : index
    %910 = vector.load %arg4[%c0_607, %c11_608, %c0_609] : memref<2x30x16xf32, #tpu.memory_space<vmem>>, vector<2x16x16xf32>
    %911 = vector.broadcast %909 : f32 to vector<2x16x16xf32>
    %912 = arith.mulf %911, %910 : vector<2x16x16xf32>
    %913 = arith.addf %908, %912 : vector<2x16x16xf32>
    %c191 = arith.constant 191 : index
    %914 = memref.load %arg0[%c191] : memref<225xf32, #tpu.memory_space<smem>>
    %c0_610 = arith.constant 0 : index
    %c12_611 = arith.constant 12 : index
    %c0_612 = arith.constant 0 : index
    %915 = vector.load %arg4[%c0_610, %c12_611, %c0_612] : memref<2x30x16xf32, #tpu.memory_space<vmem>>, vector<2x16x16xf32>
    %916 = vector.broadcast %914 : f32 to vector<2x16x16xf32>
    %917 = arith.mulf %916, %915 : vector<2x16x16xf32>
    %918 = arith.addf %913, %917 : vector<2x16x16xf32>
    %c206 = arith.constant 206 : index
    %919 = memref.load %arg0[%c206] : memref<225xf32, #tpu.memory_space<smem>>
    %c0_613 = arith.constant 0 : index
    %c13_614 = arith.constant 13 : index
    %c0_615 = arith.constant 0 : index
    %920 = vector.load %arg4[%c0_613, %c13_614, %c0_615] : memref<2x30x16xf32, #tpu.memory_space<vmem>>, vector<2x16x16xf32>
    %921 = vector.broadcast %919 : f32 to vector<2x16x16xf32>
    %922 = arith.mulf %921, %920 : vector<2x16x16xf32>
    %923 = arith.addf %918, %922 : vector<2x16x16xf32>
    %c221 = arith.constant 221 : index
    %924 = memref.load %arg0[%c221] : memref<225xf32, #tpu.memory_space<smem>>
    %c0_616 = arith.constant 0 : index
    %c14_617 = arith.constant 14 : index
    %c0_618 = arith.constant 0 : index
    %925 = vector.load %arg4[%c0_616, %c14_617, %c0_618] : memref<2x30x16xf32, #tpu.memory_space<vmem>>, vector<2x16x16xf32>
    %926 = vector.broadcast %924 : f32 to vector<2x16x16xf32>
    %927 = arith.mulf %926, %925 : vector<2x16x16xf32>
    %928 = arith.addf %923, %927 : vector<2x16x16xf32>
    %c0_619 = arith.constant 0 : index
    %c0_620 = arith.constant 0 : index
    %c12_621 = arith.constant 12 : index
    %929 = vector.load %arg3[%c0_619, %c0_620, %c12_621] : memref<2x30x30xf32, #tpu.memory_space<vmem>>, vector<2x30x16xf32>
    %c0_622 = arith.constant 0 : index
    %c0_623 = arith.constant 0 : index
    %c0_624 = arith.constant 0 : index
    %930 = vector.load %arg4[%c0_622, %c0_623, %c0_624] : memref<2x30x16xf32, #tpu.memory_space<vmem>>, vector<2x30x16xf32>
    tpu.vector_store %arg4[%c0_622, %c0_623, %c0_624], %929 {strides = array<i32>} : memref<2x30x16xf32, #tpu.memory_space<vmem>>, vector<2x30x16xf32>,
    %c12_625 = arith.constant 12 : index
    %931 = memref.load %arg0[%c12_625] : memref<225xf32, #tpu.memory_space<smem>>
    %c0_626 = arith.constant 0 : index
    %c0_627 = arith.constant 0 : index
    %c0_628 = arith.constant 0 : index
    %932 = vector.load %arg4[%c0_626, %c0_627, %c0_628] : memref<2x30x16xf32, #tpu.memory_space<vmem>>, vector<2x16x16xf32>
    %933 = vector.broadcast %931 : f32 to vector<2x16x16xf32>
    %934 = arith.mulf %933, %932 : vector<2x16x16xf32>
    %935 = arith.addf %928, %934 : vector<2x16x16xf32>
    %c27 = arith.constant 27 : index
    %936 = memref.load %arg0[%c27] : memref<225xf32, #tpu.memory_space<smem>>
    %c0_629 = arith.constant 0 : index
    %c1_630 = arith.constant 1 : index
    %c0_631 = arith.constant 0 : index
    %937 = vector.load %arg4[%c0_629, %c1_630, %c0_631] : memref<2x30x16xf32, #tpu.memory_space<vmem>>, vector<2x16x16xf32>
    %938 = vector.broadcast %936 : f32 to vector<2x16x16xf32>
    %939 = arith.mulf %938, %937 : vector<2x16x16xf32>
    %940 = arith.addf %935, %939 : vector<2x16x16xf32>
    %c42 = arith.constant 42 : index
    %941 = memref.load %arg0[%c42] : memref<225xf32, #tpu.memory_space<smem>>
    %c0_632 = arith.constant 0 : index
    %c2_633 = arith.constant 2 : index
    %c0_634 = arith.constant 0 : index
    %942 = vector.load %arg4[%c0_632, %c2_633, %c0_634] : memref<2x30x16xf32, #tpu.memory_space<vmem>>, vector<2x16x16xf32>
    %943 = vector.broadcast %941 : f32 to vector<2x16x16xf32>
    %944 = arith.mulf %943, %942 : vector<2x16x16xf32>
    %945 = arith.addf %940, %944 : vector<2x16x16xf32>
    %c57 = arith.constant 57 : index
    %946 = memref.load %arg0[%c57] : memref<225xf32, #tpu.memory_space<smem>>
    %c0_635 = arith.constant 0 : index
    %c3_636 = arith.constant 3 : index
    %c0_637 = arith.constant 0 : index
    %947 = vector.load %arg4[%c0_635, %c3_636, %c0_637] : memref<2x30x16xf32, #tpu.memory_space<vmem>>, vector<2x16x16xf32>
    %948 = vector.broadcast %946 : f32 to vector<2x16x16xf32>
    %949 = arith.mulf %948, %947 : vector<2x16x16xf32>
    %950 = arith.addf %945, %949 : vector<2x16x16xf32>
    %c72 = arith.constant 72 : index
    %951 = memref.load %arg0[%c72] : memref<225xf32, #tpu.memory_space<smem>>
    %c0_638 = arith.constant 0 : index
    %c4_639 = arith.constant 4 : index
    %c0_640 = arith.constant 0 : index
    %952 = vector.load %arg4[%c0_638, %c4_639, %c0_640] : memref<2x30x16xf32, #tpu.memory_space<vmem>>, vector<2x16x16xf32>
    %953 = vector.broadcast %951 : f32 to vector<2x16x16xf32>
    %954 = arith.mulf %953, %952 : vector<2x16x16xf32>
    %955 = arith.addf %950, %954 : vector<2x16x16xf32>
    %c87 = arith.constant 87 : index
    %956 = memref.load %arg0[%c87] : memref<225xf32, #tpu.memory_space<smem>>
    %c0_641 = arith.constant 0 : index
    %c5_642 = arith.constant 5 : index
    %c0_643 = arith.constant 0 : index
    %957 = vector.load %arg4[%c0_641, %c5_642, %c0_643] : memref<2x30x16xf32, #tpu.memory_space<vmem>>, vector<2x16x16xf32>
    %958 = vector.broadcast %956 : f32 to vector<2x16x16xf32>
    %959 = arith.mulf %958, %957 : vector<2x16x16xf32>
    %960 = arith.addf %955, %959 : vector<2x16x16xf32>
    %c102 = arith.constant 102 : index
    %961 = memref.load %arg0[%c102] : memref<225xf32, #tpu.memory_space<smem>>
    %c0_644 = arith.constant 0 : index
    %c6_645 = arith.constant 6 : index
    %c0_646 = arith.constant 0 : index
    %962 = vector.load %arg4[%c0_644, %c6_645, %c0_646] : memref<2x30x16xf32, #tpu.memory_space<vmem>>, vector<2x16x16xf32>
    %963 = vector.broadcast %961 : f32 to vector<2x16x16xf32>
    %964 = arith.mulf %963, %962 : vector<2x16x16xf32>
    %965 = arith.addf %960, %964 : vector<2x16x16xf32>
    %c117 = arith.constant 117 : index
    %966 = memref.load %arg0[%c117] : memref<225xf32, #tpu.memory_space<smem>>
    %c0_647 = arith.constant 0 : index
    %c7_648 = arith.constant 7 : index
    %c0_649 = arith.constant 0 : index
    %967 = vector.load %arg4[%c0_647, %c7_648, %c0_649] : memref<2x30x16xf32, #tpu.memory_space<vmem>>, vector<2x16x16xf32>
    %968 = vector.broadcast %966 : f32 to vector<2x16x16xf32>
    %969 = arith.mulf %968, %967 : vector<2x16x16xf32>
    %970 = arith.addf %965, %969 : vector<2x16x16xf32>
    %c132 = arith.constant 132 : index
    %971 = memref.load %arg0[%c132] : memref<225xf32, #tpu.memory_space<smem>>
    %c0_650 = arith.constant 0 : index
    %c8_651 = arith.constant 8 : index
    %c0_652 = arith.constant 0 : index
    %972 = vector.load %arg4[%c0_650, %c8_651, %c0_652] : memref<2x30x16xf32, #tpu.memory_space<vmem>>, vector<2x16x16xf32>
    %973 = vector.broadcast %971 : f32 to vector<2x16x16xf32>
    %974 = arith.mulf %973, %972 : vector<2x16x16xf32>
    %975 = arith.addf %970, %974 : vector<2x16x16xf32>
    %c147 = arith.constant 147 : index
    %976 = memref.load %arg0[%c147] : memref<225xf32, #tpu.memory_space<smem>>
    %c0_653 = arith.constant 0 : index
    %c9_654 = arith.constant 9 : index
    %c0_655 = arith.constant 0 : index
    %977 = vector.load %arg4[%c0_653, %c9_654, %c0_655] : memref<2x30x16xf32, #tpu.memory_space<vmem>>, vector<2x16x16xf32>
    %978 = vector.broadcast %976 : f32 to vector<2x16x16xf32>
    %979 = arith.mulf %978, %977 : vector<2x16x16xf32>
    %980 = arith.addf %975, %979 : vector<2x16x16xf32>
    %c162 = arith.constant 162 : index
    %981 = memref.load %arg0[%c162] : memref<225xf32, #tpu.memory_space<smem>>
    %c0_656 = arith.constant 0 : index
    %c10_657 = arith.constant 10 : index
    %c0_658 = arith.constant 0 : index
    %982 = vector.load %arg4[%c0_656, %c10_657, %c0_658] : memref<2x30x16xf32, #tpu.memory_space<vmem>>, vector<2x16x16xf32>
    %983 = vector.broadcast %981 : f32 to vector<2x16x16xf32>
    %984 = arith.mulf %983, %982 : vector<2x16x16xf32>
    %985 = arith.addf %980, %984 : vector<2x16x16xf32>
    %c177 = arith.constant 177 : index
    %986 = memref.load %arg0[%c177] : memref<225xf32, #tpu.memory_space<smem>>
    %c0_659 = arith.constant 0 : index
    %c11_660 = arith.constant 11 : index
    %c0_661 = arith.constant 0 : index
    %987 = vector.load %arg4[%c0_659, %c11_660, %c0_661] : memref<2x30x16xf32, #tpu.memory_space<vmem>>, vector<2x16x16xf32>
    %988 = vector.broadcast %986 : f32 to vector<2x16x16xf32>
    %989 = arith.mulf %988, %987 : vector<2x16x16xf32>
    %990 = arith.addf %985, %989 : vector<2x16x16xf32>
    %c192 = arith.constant 192 : index
    %991 = memref.load %arg0[%c192] : memref<225xf32, #tpu.memory_space<smem>>
    %c0_662 = arith.constant 0 : index
    %c12_663 = arith.constant 12 : index
    %c0_664 = arith.constant 0 : index
    %992 = vector.load %arg4[%c0_662, %c12_663, %c0_664] : memref<2x30x16xf32, #tpu.memory_space<vmem>>, vector<2x16x16xf32>
    %993 = vector.broadcast %991 : f32 to vector<2x16x16xf32>
    %994 = arith.mulf %993, %992 : vector<2x16x16xf32>
    %995 = arith.addf %990, %994 : vector<2x16x16xf32>
    %c207 = arith.constant 207 : index
    %996 = memref.load %arg0[%c207] : memref<225xf32, #tpu.memory_space<smem>>
    %c0_665 = arith.constant 0 : index
    %c13_666 = arith.constant 13 : index
    %c0_667 = arith.constant 0 : index
    %997 = vector.load %arg4[%c0_665, %c13_666, %c0_667] : memref<2x30x16xf32, #tpu.memory_space<vmem>>, vector<2x16x16xf32>
    %998 = vector.broadcast %996 : f32 to vector<2x16x16xf32>
    %999 = arith.mulf %998, %997 : vector<2x16x16xf32>
    %1000 = arith.addf %995, %999 : vector<2x16x16xf32>
    %c222 = arith.constant 222 : index
    %1001 = memref.load %arg0[%c222] : memref<225xf32, #tpu.memory_space<smem>>
    %c0_668 = arith.constant 0 : index
    %c14_669 = arith.constant 14 : index
    %c0_670 = arith.constant 0 : index
    %1002 = vector.load %arg4[%c0_668, %c14_669, %c0_670] : memref<2x30x16xf32, #tpu.memory_space<vmem>>, vector<2x16x16xf32>
    %1003 = vector.broadcast %1001 : f32 to vector<2x16x16xf32>
    %1004 = arith.mulf %1003, %1002 : vector<2x16x16xf32>
    %1005 = arith.addf %1000, %1004 : vector<2x16x16xf32>
    %c0_671 = arith.constant 0 : index
    %c0_672 = arith.constant 0 : index
    %c13_673 = arith.constant 13 : index
    %1006 = vector.load %arg3[%c0_671, %c0_672, %c13_673] : memref<2x30x30xf32, #tpu.memory_space<vmem>>, vector<2x30x16xf32>
    %c0_674 = arith.constant 0 : index
    %c0_675 = arith.constant 0 : index
    %c0_676 = arith.constant 0 : index
    %1007 = vector.load %arg4[%c0_674, %c0_675, %c0_676] : memref<2x30x16xf32, #tpu.memory_space<vmem>>, vector<2x30x16xf32>
    tpu.vector_store %arg4[%c0_674, %c0_675, %c0_676], %1006 {strides = array<i32>} : memref<2x30x16xf32, #tpu.memory_space<vmem>>, vector<2x30x16xf32>,
    %c13_677 = arith.constant 13 : index
    %1008 = memref.load %arg0[%c13_677] : memref<225xf32, #tpu.memory_space<smem>>
    %c0_678 = arith.constant 0 : index
    %c0_679 = arith.constant 0 : index
    %c0_680 = arith.constant 0 : index
    %1009 = vector.load %arg4[%c0_678, %c0_679, %c0_680] : memref<2x30x16xf32, #tpu.memory_space<vmem>>, vector<2x16x16xf32>
    %1010 = vector.broadcast %1008 : f32 to vector<2x16x16xf32>
    %1011 = arith.mulf %1010, %1009 : vector<2x16x16xf32>
    %1012 = arith.addf %1005, %1011 : vector<2x16x16xf32>
    %c28 = arith.constant 28 : index
    %1013 = memref.load %arg0[%c28] : memref<225xf32, #tpu.memory_space<smem>>
    %c0_681 = arith.constant 0 : index
    %c1_682 = arith.constant 1 : index
    %c0_683 = arith.constant 0 : index
    %1014 = vector.load %arg4[%c0_681, %c1_682, %c0_683] : memref<2x30x16xf32, #tpu.memory_space<vmem>>, vector<2x16x16xf32>
    %1015 = vector.broadcast %1013 : f32 to vector<2x16x16xf32>
    %1016 = arith.mulf %1015, %1014 : vector<2x16x16xf32>
    %1017 = arith.addf %1012, %1016 : vector<2x16x16xf32>
    %c43 = arith.constant 43 : index
    %1018 = memref.load %arg0[%c43] : memref<225xf32, #tpu.memory_space<smem>>
    %c0_684 = arith.constant 0 : index
    %c2_685 = arith.constant 2 : index
    %c0_686 = arith.constant 0 : index
    %1019 = vector.load %arg4[%c0_684, %c2_685, %c0_686] : memref<2x30x16xf32, #tpu.memory_space<vmem>>, vector<2x16x16xf32>
    %1020 = vector.broadcast %1018 : f32 to vector<2x16x16xf32>
    %1021 = arith.mulf %1020, %1019 : vector<2x16x16xf32>
    %1022 = arith.addf %1017, %1021 : vector<2x16x16xf32>
    %c58 = arith.constant 58 : index
    %1023 = memref.load %arg0[%c58] : memref<225xf32, #tpu.memory_space<smem>>
    %c0_687 = arith.constant 0 : index
    %c3_688 = arith.constant 3 : index
    %c0_689 = arith.constant 0 : index
    %1024 = vector.load %arg4[%c0_687, %c3_688, %c0_689] : memref<2x30x16xf32, #tpu.memory_space<vmem>>, vector<2x16x16xf32>
    %1025 = vector.broadcast %1023 : f32 to vector<2x16x16xf32>
    %1026 = arith.mulf %1025, %1024 : vector<2x16x16xf32>
    %1027 = arith.addf %1022, %1026 : vector<2x16x16xf32>
    %c73 = arith.constant 73 : index
    %1028 = memref.load %arg0[%c73] : memref<225xf32, #tpu.memory_space<smem>>
    %c0_690 = arith.constant 0 : index
    %c4_691 = arith.constant 4 : index
    %c0_692 = arith.constant 0 : index
    %1029 = vector.load %arg4[%c0_690, %c4_691, %c0_692] : memref<2x30x16xf32, #tpu.memory_space<vmem>>, vector<2x16x16xf32>
    %1030 = vector.broadcast %1028 : f32 to vector<2x16x16xf32>
    %1031 = arith.mulf %1030, %1029 : vector<2x16x16xf32>
    %1032 = arith.addf %1027, %1031 : vector<2x16x16xf32>
    %c88 = arith.constant 88 : index
    %1033 = memref.load %arg0[%c88] : memref<225xf32, #tpu.memory_space<smem>>
    %c0_693 = arith.constant 0 : index
    %c5_694 = arith.constant 5 : index
    %c0_695 = arith.constant 0 : index
    %1034 = vector.load %arg4[%c0_693, %c5_694, %c0_695] : memref<2x30x16xf32, #tpu.memory_space<vmem>>, vector<2x16x16xf32>
    %1035 = vector.broadcast %1033 : f32 to vector<2x16x16xf32>
    %1036 = arith.mulf %1035, %1034 : vector<2x16x16xf32>
    %1037 = arith.addf %1032, %1036 : vector<2x16x16xf32>
    %c103 = arith.constant 103 : index
    %1038 = memref.load %arg0[%c103] : memref<225xf32, #tpu.memory_space<smem>>
    %c0_696 = arith.constant 0 : index
    %c6_697 = arith.constant 6 : index
    %c0_698 = arith.constant 0 : index
    %1039 = vector.load %arg4[%c0_696, %c6_697, %c0_698] : memref<2x30x16xf32, #tpu.memory_space<vmem>>, vector<2x16x16xf32>
    %1040 = vector.broadcast %1038 : f32 to vector<2x16x16xf32>
    %1041 = arith.mulf %1040, %1039 : vector<2x16x16xf32>
    %1042 = arith.addf %1037, %1041 : vector<2x16x16xf32>
    %c118 = arith.constant 118 : index
    %1043 = memref.load %arg0[%c118] : memref<225xf32, #tpu.memory_space<smem>>
    %c0_699 = arith.constant 0 : index
    %c7_700 = arith.constant 7 : index
    %c0_701 = arith.constant 0 : index
    %1044 = vector.load %arg4[%c0_699, %c7_700, %c0_701] : memref<2x30x16xf32, #tpu.memory_space<vmem>>, vector<2x16x16xf32>
    %1045 = vector.broadcast %1043 : f32 to vector<2x16x16xf32>
    %1046 = arith.mulf %1045, %1044 : vector<2x16x16xf32>
    %1047 = arith.addf %1042, %1046 : vector<2x16x16xf32>
    %c133 = arith.constant 133 : index
    %1048 = memref.load %arg0[%c133] : memref<225xf32, #tpu.memory_space<smem>>
    %c0_702 = arith.constant 0 : index
    %c8_703 = arith.constant 8 : index
    %c0_704 = arith.constant 0 : index
    %1049 = vector.load %arg4[%c0_702, %c8_703, %c0_704] : memref<2x30x16xf32, #tpu.memory_space<vmem>>, vector<2x16x16xf32>
    %1050 = vector.broadcast %1048 : f32 to vector<2x16x16xf32>
    %1051 = arith.mulf %1050, %1049 : vector<2x16x16xf32>
    %1052 = arith.addf %1047, %1051 : vector<2x16x16xf32>
    %c148 = arith.constant 148 : index
    %1053 = memref.load %arg0[%c148] : memref<225xf32, #tpu.memory_space<smem>>
    %c0_705 = arith.constant 0 : index
    %c9_706 = arith.constant 9 : index
    %c0_707 = arith.constant 0 : index
    %1054 = vector.load %arg4[%c0_705, %c9_706, %c0_707] : memref<2x30x16xf32, #tpu.memory_space<vmem>>, vector<2x16x16xf32>
    %1055 = vector.broadcast %1053 : f32 to vector<2x16x16xf32>
    %1056 = arith.mulf %1055, %1054 : vector<2x16x16xf32>
    %1057 = arith.addf %1052, %1056 : vector<2x16x16xf32>
    %c163 = arith.constant 163 : index
    %1058 = memref.load %arg0[%c163] : memref<225xf32, #tpu.memory_space<smem>>
    %c0_708 = arith.constant 0 : index
    %c10_709 = arith.constant 10 : index
    %c0_710 = arith.constant 0 : index
    %1059 = vector.load %arg4[%c0_708, %c10_709, %c0_710] : memref<2x30x16xf32, #tpu.memory_space<vmem>>, vector<2x16x16xf32>
    %1060 = vector.broadcast %1058 : f32 to vector<2x16x16xf32>
    %1061 = arith.mulf %1060, %1059 : vector<2x16x16xf32>
    %1062 = arith.addf %1057, %1061 : vector<2x16x16xf32>
    %c178 = arith.constant 178 : index
    %1063 = memref.load %arg0[%c178] : memref<225xf32, #tpu.memory_space<smem>>
    %c0_711 = arith.constant 0 : index
    %c11_712 = arith.constant 11 : index
    %c0_713 = arith.constant 0 : index
    %1064 = vector.load %arg4[%c0_711, %c11_712, %c0_713] : memref<2x30x16xf32, #tpu.memory_space<vmem>>, vector<2x16x16xf32>
    %1065 = vector.broadcast %1063 : f32 to vector<2x16x16xf32>
    %1066 = arith.mulf %1065, %1064 : vector<2x16x16xf32>
    %1067 = arith.addf %1062, %1066 : vector<2x16x16xf32>
    %c193 = arith.constant 193 : index
    %1068 = memref.load %arg0[%c193] : memref<225xf32, #tpu.memory_space<smem>>
    %c0_714 = arith.constant 0 : index
    %c12_715 = arith.constant 12 : index
    %c0_716 = arith.constant 0 : index
    %1069 = vector.load %arg4[%c0_714, %c12_715, %c0_716] : memref<2x30x16xf32, #tpu.memory_space<vmem>>, vector<2x16x16xf32>
    %1070 = vector.broadcast %1068 : f32 to vector<2x16x16xf32>
    %1071 = arith.mulf %1070, %1069 : vector<2x16x16xf32>
    %1072 = arith.addf %1067, %1071 : vector<2x16x16xf32>
    %c208 = arith.constant 208 : index
    %1073 = memref.load %arg0[%c208] : memref<225xf32, #tpu.memory_space<smem>>
    %c0_717 = arith.constant 0 : index
    %c13_718 = arith.constant 13 : index
    %c0_719 = arith.constant 0 : index
    %1074 = vector.load %arg4[%c0_717, %c13_718, %c0_719] : memref<2x30x16xf32, #tpu.memory_space<vmem>>, vector<2x16x16xf32>
    %1075 = vector.broadcast %1073 : f32 to vector<2x16x16xf32>
    %1076 = arith.mulf %1075, %1074 : vector<2x16x16xf32>
    %1077 = arith.addf %1072, %1076 : vector<2x16x16xf32>
    %c223 = arith.constant 223 : index
    %1078 = memref.load %arg0[%c223] : memref<225xf32, #tpu.memory_space<smem>>
    %c0_720 = arith.constant 0 : index
    %c14_721 = arith.constant 14 : index
    %c0_722 = arith.constant 0 : index
    %1079 = vector.load %arg4[%c0_720, %c14_721, %c0_722] : memref<2x30x16xf32, #tpu.memory_space<vmem>>, vector<2x16x16xf32>
    %1080 = vector.broadcast %1078 : f32 to vector<2x16x16xf32>
    %1081 = arith.mulf %1080, %1079 : vector<2x16x16xf32>
    %1082 = arith.addf %1077, %1081 : vector<2x16x16xf32>
    %c0_723 = arith.constant 0 : index
    %c0_724 = arith.constant 0 : index
    %c14_725 = arith.constant 14 : index
    %1083 = vector.load %arg3[%c0_723, %c0_724, %c14_725] : memref<2x30x30xf32, #tpu.memory_space<vmem>>, vector<2x30x16xf32>
    %c0_726 = arith.constant 0 : index
    %c0_727 = arith.constant 0 : index
    %c0_728 = arith.constant 0 : index
    %1084 = vector.load %arg4[%c0_726, %c0_727, %c0_728] : memref<2x30x16xf32, #tpu.memory_space<vmem>>, vector<2x30x16xf32>
    tpu.vector_store %arg4[%c0_726, %c0_727, %c0_728], %1083 {strides = array<i32>} : memref<2x30x16xf32, #tpu.memory_space<vmem>>, vector<2x30x16xf32>,
    %c14_729 = arith.constant 14 : index
    %1085 = memref.load %arg0[%c14_729] : memref<225xf32, #tpu.memory_space<smem>>
    %c0_730 = arith.constant 0 : index
    %c0_731 = arith.constant 0 : index
    %c0_732 = arith.constant 0 : index
    %1086 = vector.load %arg4[%c0_730, %c0_731, %c0_732] : memref<2x30x16xf32, #tpu.memory_space<vmem>>, vector<2x16x16xf32>
    %1087 = vector.broadcast %1085 : f32 to vector<2x16x16xf32>
    %1088 = arith.mulf %1087, %1086 : vector<2x16x16xf32>
    %1089 = arith.addf %1082, %1088 : vector<2x16x16xf32>
    %c29 = arith.constant 29 : index
    %1090 = memref.load %arg0[%c29] : memref<225xf32, #tpu.memory_space<smem>>
    %c0_733 = arith.constant 0 : index
    %c1_734 = arith.constant 1 : index
    %c0_735 = arith.constant 0 : index
    %1091 = vector.load %arg4[%c0_733, %c1_734, %c0_735] : memref<2x30x16xf32, #tpu.memory_space<vmem>>, vector<2x16x16xf32>
    %1092 = vector.broadcast %1090 : f32 to vector<2x16x16xf32>
    %1093 = arith.mulf %1092, %1091 : vector<2x16x16xf32>
    %1094 = arith.addf %1089, %1093 : vector<2x16x16xf32>
    %c44 = arith.constant 44 : index
    %1095 = memref.load %arg0[%c44] : memref<225xf32, #tpu.memory_space<smem>>
    %c0_736 = arith.constant 0 : index
    %c2_737 = arith.constant 2 : index
    %c0_738 = arith.constant 0 : index
    %1096 = vector.load %arg4[%c0_736, %c2_737, %c0_738] : memref<2x30x16xf32, #tpu.memory_space<vmem>>, vector<2x16x16xf32>
    %1097 = vector.broadcast %1095 : f32 to vector<2x16x16xf32>
    %1098 = arith.mulf %1097, %1096 : vector<2x16x16xf32>
    %1099 = arith.addf %1094, %1098 : vector<2x16x16xf32>
    %c59 = arith.constant 59 : index
    %1100 = memref.load %arg0[%c59] : memref<225xf32, #tpu.memory_space<smem>>
    %c0_739 = arith.constant 0 : index
    %c3_740 = arith.constant 3 : index
    %c0_741 = arith.constant 0 : index
    %1101 = vector.load %arg4[%c0_739, %c3_740, %c0_741] : memref<2x30x16xf32, #tpu.memory_space<vmem>>, vector<2x16x16xf32>
    %1102 = vector.broadcast %1100 : f32 to vector<2x16x16xf32>
    %1103 = arith.mulf %1102, %1101 : vector<2x16x16xf32>
    %1104 = arith.addf %1099, %1103 : vector<2x16x16xf32>
    %c74 = arith.constant 74 : index
    %1105 = memref.load %arg0[%c74] : memref<225xf32, #tpu.memory_space<smem>>
    %c0_742 = arith.constant 0 : index
    %c4_743 = arith.constant 4 : index
    %c0_744 = arith.constant 0 : index
    %1106 = vector.load %arg4[%c0_742, %c4_743, %c0_744] : memref<2x30x16xf32, #tpu.memory_space<vmem>>, vector<2x16x16xf32>
    %1107 = vector.broadcast %1105 : f32 to vector<2x16x16xf32>
    %1108 = arith.mulf %1107, %1106 : vector<2x16x16xf32>
    %1109 = arith.addf %1104, %1108 : vector<2x16x16xf32>
    %c89 = arith.constant 89 : index
    %1110 = memref.load %arg0[%c89] : memref<225xf32, #tpu.memory_space<smem>>
    %c0_745 = arith.constant 0 : index
    %c5_746 = arith.constant 5 : index
    %c0_747 = arith.constant 0 : index
    %1111 = vector.load %arg4[%c0_745, %c5_746, %c0_747] : memref<2x30x16xf32, #tpu.memory_space<vmem>>, vector<2x16x16xf32>
    %1112 = vector.broadcast %1110 : f32 to vector<2x16x16xf32>
    %1113 = arith.mulf %1112, %1111 : vector<2x16x16xf32>
    %1114 = arith.addf %1109, %1113 : vector<2x16x16xf32>
    %c104 = arith.constant 104 : index
    %1115 = memref.load %arg0[%c104] : memref<225xf32, #tpu.memory_space<smem>>
    %c0_748 = arith.constant 0 : index
    %c6_749 = arith.constant 6 : index
    %c0_750 = arith.constant 0 : index
    %1116 = vector.load %arg4[%c0_748, %c6_749, %c0_750] : memref<2x30x16xf32, #tpu.memory_space<vmem>>, vector<2x16x16xf32>
    %1117 = vector.broadcast %1115 : f32 to vector<2x16x16xf32>
    %1118 = arith.mulf %1117, %1116 : vector<2x16x16xf32>
    %1119 = arith.addf %1114, %1118 : vector<2x16x16xf32>
    %c119 = arith.constant 119 : index
    %1120 = memref.load %arg0[%c119] : memref<225xf32, #tpu.memory_space<smem>>
    %c0_751 = arith.constant 0 : index
    %c7_752 = arith.constant 7 : index
    %c0_753 = arith.constant 0 : index
    %1121 = vector.load %arg4[%c0_751, %c7_752, %c0_753] : memref<2x30x16xf32, #tpu.memory_space<vmem>>, vector<2x16x16xf32>
    %1122 = vector.broadcast %1120 : f32 to vector<2x16x16xf32>
    %1123 = arith.mulf %1122, %1121 : vector<2x16x16xf32>
    %1124 = arith.addf %1119, %1123 : vector<2x16x16xf32>
    %c134 = arith.constant 134 : index
    %1125 = memref.load %arg0[%c134] : memref<225xf32, #tpu.memory_space<smem>>
    %c0_754 = arith.constant 0 : index
    %c8_755 = arith.constant 8 : index
    %c0_756 = arith.constant 0 : index
    %1126 = vector.load %arg4[%c0_754, %c8_755, %c0_756] : memref<2x30x16xf32, #tpu.memory_space<vmem>>, vector<2x16x16xf32>
    %1127 = vector.broadcast %1125 : f32 to vector<2x16x16xf32>
    %1128 = arith.mulf %1127, %1126 : vector<2x16x16xf32>
    %1129 = arith.addf %1124, %1128 : vector<2x16x16xf32>
    %c149 = arith.constant 149 : index
    %1130 = memref.load %arg0[%c149] : memref<225xf32, #tpu.memory_space<smem>>
    %c0_757 = arith.constant 0 : index
    %c9_758 = arith.constant 9 : index
    %c0_759 = arith.constant 0 : index
    %1131 = vector.load %arg4[%c0_757, %c9_758, %c0_759] : memref<2x30x16xf32, #tpu.memory_space<vmem>>, vector<2x16x16xf32>
    %1132 = vector.broadcast %1130 : f32 to vector<2x16x16xf32>
    %1133 = arith.mulf %1132, %1131 : vector<2x16x16xf32>
    %1134 = arith.addf %1129, %1133 : vector<2x16x16xf32>
    %c164 = arith.constant 164 : index
    %1135 = memref.load %arg0[%c164] : memref<225xf32, #tpu.memory_space<smem>>
    %c0_760 = arith.constant 0 : index
    %c10_761 = arith.constant 10 : index
    %c0_762 = arith.constant 0 : index
    %1136 = vector.load %arg4[%c0_760, %c10_761, %c0_762] : memref<2x30x16xf32, #tpu.memory_space<vmem>>, vector<2x16x16xf32>
    %1137 = vector.broadcast %1135 : f32 to vector<2x16x16xf32>
    %1138 = arith.mulf %1137, %1136 : vector<2x16x16xf32>
    %1139 = arith.addf %1134, %1138 : vector<2x16x16xf32>
    %c179 = arith.constant 179 : index
    %1140 = memref.load %arg0[%c179] : memref<225xf32, #tpu.memory_space<smem>>
    %c0_763 = arith.constant 0 : index
    %c11_764 = arith.constant 11 : index
    %c0_765 = arith.constant 0 : index
    %1141 = vector.load %arg4[%c0_763, %c11_764, %c0_765] : memref<2x30x16xf32, #tpu.memory_space<vmem>>, vector<2x16x16xf32>
    %1142 = vector.broadcast %1140 : f32 to vector<2x16x16xf32>
    %1143 = arith.mulf %1142, %1141 : vector<2x16x16xf32>
    %1144 = arith.addf %1139, %1143 : vector<2x16x16xf32>
    %c194 = arith.constant 194 : index
    %1145 = memref.load %arg0[%c194] : memref<225xf32, #tpu.memory_space<smem>>
    %c0_766 = arith.constant 0 : index
    %c12_767 = arith.constant 12 : index
    %c0_768 = arith.constant 0 : index
    %1146 = vector.load %arg4[%c0_766, %c12_767, %c0_768] : memref<2x30x16xf32, #tpu.memory_space<vmem>>, vector<2x16x16xf32>
    %1147 = vector.broadcast %1145 : f32 to vector<2x16x16xf32>
    %1148 = arith.mulf %1147, %1146 : vector<2x16x16xf32>
    %1149 = arith.addf %1144, %1148 : vector<2x16x16xf32>
    %c209 = arith.constant 209 : index
    %1150 = memref.load %arg0[%c209] : memref<225xf32, #tpu.memory_space<smem>>
    %c0_769 = arith.constant 0 : index
    %c13_770 = arith.constant 13 : index
    %c0_771 = arith.constant 0 : index
    %1151 = vector.load %arg4[%c0_769, %c13_770, %c0_771] : memref<2x30x16xf32, #tpu.memory_space<vmem>>, vector<2x16x16xf32>
    %1152 = vector.broadcast %1150 : f32 to vector<2x16x16xf32>
    %1153 = arith.mulf %1152, %1151 : vector<2x16x16xf32>
    %1154 = arith.addf %1149, %1153 : vector<2x16x16xf32>
    %c224 = arith.constant 224 : index
    %1155 = memref.load %arg0[%c224] : memref<225xf32, #tpu.memory_space<smem>>
    %c0_772 = arith.constant 0 : index
    %c14_773 = arith.constant 14 : index
    %c0_774 = arith.constant 0 : index
    %1156 = vector.load %arg4[%c0_772, %c14_773, %c0_774] : memref<2x30x16xf32, #tpu.memory_space<vmem>>, vector<2x16x16xf32>
    %1157 = vector.broadcast %1155 : f32 to vector<2x16x16xf32>
    %1158 = arith.mulf %1157, %1156 : vector<2x16x16xf32>
    %1159 = arith.addf %1154, %1158 : vector<2x16x16xf32>
    %c0_775 = arith.constant 0 : index
    %c0_776 = arith.constant 0 : index
    %c0_777 = arith.constant 0 : index
    %1160 = vector.load %arg2[%c0_775, %c0_776, %c0_777] : memref<2x16x16xf32, #tpu.memory_space<vmem>>, vector<2x16x16xf32>
    tpu.vector_store %arg2[%c0_775, %c0_776, %c0_777], %1159 {strides = array<i32>} : memref<2x16x16xf32, #tpu.memory_space<vmem>>, vector<2x16x16xf32>,
    return
  }
}

</mosaic_0001>

<bundles_post_ra>
// kernel: pde_field_forward.1
= control target key start
LH: loop header
LB: loop body
LE: loop exit
PB: predicated region body
PF: predicated region fallthrough
CT: control target
= control target key end

     0   :  { %7 = vsyncpa [#allocation6], 0  ;;  %s9287_s0 = inlined_call_operand.vmem [shape: f32[225], index: 0, kind: input, shape index: {}]   ;;  %s9288_s1 = inlined_call_operand.vmem [shape: f32[2,16,16], index: 1, kind: input, shape index: {}]   ;;  %s9289_s2 = inlined_call_operand.hbm [shape: f32[2,16,16], index: 2, kind: output, shape index: {}]  }
   0x1   :  { %8 = vsyncpa [#allocation5], 0  ;;  %s14_s11 = sshll.u32 %s9287_s0, 4  ;;  %s4211_s12 = smov [#allocation4]   ;;  %s15_s11 = int_to_ptr.vmem [resolvable:$true] %s14_s11 }
   0x2   :  { %17 = dma.vmem_to_smem %s15_s11, 32, %s4211_s12, [#allocation6]  }
   0x3   :  { %4207 = dma.done.wait [#allocation6], 32  }
   0x4   :  { %4208 = vsyncadd [#allocation6], 4294967264 }
   0x5   :  { %24 = sfence }
   0x6   :  { %v37_v0 = vld [vmem:[%s9288_s1 + $0x10] sm:$0xff]  ;;  %v35_v1 = vld [vmem:[%s9288_s1] sm:$0xff]  ;;  %s4212_s17 = smov 7   ;;  %v38_v2 = vld [vmem:[%s9288_s1 + $0x18] sm:$0xff]  ;;  %vm25_vm0 = vcmask 244736   ;;  %v4213_v4 = vmov 0.0  }
   0x7   :  { %47 = vrot.lane.b32.xlu1 %v37_v0, %s4212_s17  ;;  %43 = vrot.lane.b32.xlu0 %v35_v1, %s4212_s17  ;;  %v36_v3 = vld [vmem:[%s9288_s1 + $0x8] sm:$0xff]  ;;  %26 = vst.msk [vmem:[#allocation2] sm:$0xff] %vm25_vm0, %v4213_v4  ;;  %vm29_vm1 = vcmask 242688   ;;  %vm72_vm2 = vcmask 128000   ;;  %vm55_vm3 = vcmask 187448   ;;  %vm68_vm4 = vcmask 130048  }
   0x8   :  { %28 = vst.msk [vmem:[#allocation2 + $0x10] sm:$0xff] %vm25_vm0, %v4213_v4  ;;  %s4214_s1 = smov 127   ;;  %s4215_s21 = smov 126  }
   0x9   :  { %31 = vst.msk [vmem:[#allocation2 + $0x20] sm:$0xff] %vm25_vm0, %v4213_v4  ;;  %s3923_s22 = sld [smem:[#allocation4 + $0xf]]  ;;  %s4216_s23 = smov 125  }
   0xa   :  { %32 = vst.msk [vmem:[#allocation2 + $0x28] sm:$0xff] %vm25_vm0, %v4213_v4  ;;  %s78_s24 = sld [smem:[#allocation4]]  ;;  %s4217_s30 = smov 124  }
   0xb   :  { %33 = vst.msk [vmem:[#allocation2 + $0x30] sm:$0xff] %vm25_vm0, %v4213_v4  ;;  %s3924_s25 = sld [smem:[#allocation4 + $0x1e]]  ;;  %s4218_s7 = smov 123  }
   0xc   :  { %27 = vst.msk [vmem:[#allocation2 + $0x8] sm:$0xff] %vm25_vm0, %v4213_v4  ;;  %s3925_s26 = sld [smem:[#allocation4 + $0x2d]]  ;;  %s4219_s18 = smov 122  }
   0xd   :  { %30 = vst.msk [vmem:[#allocation2 + $0x18] sm:$0x3f] %vm29_vm1, %v4213_v4  ;;  %s3926_s27 = sld [smem:[#allocation4 + $0x3c]] }
   0xe   :  { %34 = vst.msk [vmem:[#allocation2 + $0x38] sm:$0x3f] %vm29_vm1, %v4213_v4  ;;  %s3927_s28 = sld [smem:[#allocation4 + $0x4b]] }
   0xf   :  { %49 = vrot.lane.b32.xlu1 %v38_v2, %s4212_s17  ;;  %45 = vrot.lane.b32.xlu0 %v36_v3, %s4212_s17  ;;  %v4305_v22 = vstv %s3923_s22  ;;  %s3928_s29 = sld [smem:[#allocation4 + $0x5a]] }
  0x10   :  { %v4313_v24 = vstv %s78_s24  ;;  %s3929_s3 = sld [smem:[#allocation4 + $0x69]] }
  0x11   :  { %v4317_v29 = vstv %s3924_s25  ;;  %s3930_s4 = sld [smem:[#allocation4 + $0x78]] }
  0x12   :  { %v4329_v35 = vstv %s3925_s26  ;;  %s3931_s5 = sld [smem:[#allocation4 + $0x87]] }
  0x13   :  { %v4338_v42 = vstv %s3926_s27  ;;  %s4391_s6 = sld [smem:[#allocation4 + $0x96]]  ;;  %s4220_s27 = smov 121  }
  0x14   :  { %v63_v12 = vld [vmem:[#allocation2 + $0x18] sm:$0x3f]  ;;  %v4350_v50 = vstv %s3927_s28  ;;  %s4407_s8 = sld [smem:[#allocation4 + $0xa5]] }
  0x15   :  { %v67_v5 = vld [vmem:[#allocation2 + $0x38] sm:$0x3f]  ;;  %73 = vst.msk [vmem:[#allocation3 + $0x18] sm:$0x3f] %vm72_vm2, %v63_v12  ;;  %v4357_v57 = vstv %s3928_s29  ;;  %s4421_s9 = sld [smem:[#allocation4 + $0xb4]] }
  0x16   :  { %77 = vst.msk [vmem:[#allocation3 + $0x38] sm:$0x3f] %vm72_vm2, %v67_v5  ;;  %v291_v17 = vld [vmem:[#allocation2 + $0x18] sm:$0x3f]  ;;  %s3935_s10 = sld [smem:[#allocation4 + $0xc3]] }
  0x17   :  { %v295_v18 = vld [vmem:[#allocation2 + $0x38] sm:$0x3f]  ;;  %s4445_s11 = sld [smem:[#allocation4 + $0x1]] }
  0x18   :  { %v549_v19 = vld [vmem:[#allocation2 + $0x18] sm:$0x3f]  ;;  %s4453_s12 = sld [smem:[#allocation4 + $0xd2]] }
  0x19   :  { %v553_v20 = vld [vmem:[#allocation2 + $0x38] sm:$0x3f]  ;;  %s4463_s13 = sld [smem:[#allocation4 + $0x10]] }
  0x1a   :  { %v811_v28 = vld [vmem:[#allocation2 + $0x38] sm:$0x3f]  ;;  %s4467_s14 = sld [smem:[#allocation4 + $0x1f]] }
  0x1b   :  { %v807_v43 = vld [vmem:[#allocation2 + $0x18] sm:$0x3f]  ;;  %s4474_s15 = sld [smem:[#allocation4 + $0x2e]] }
  0x1c   :  { %s4483_s16 = sld [smem:[#allocation4 + $0x3d]] }
  0x1d   :  { %s4491_s17 = sld [smem:[#allocation4 + $0x4c]] }
  0x1e   :  { %s4500_s19 = sld [smem:[#allocation4 + $0x5b]] }
  0x1f   :  { %s4516_s0 = sld [smem:[#allocation4 + $0x6a]] }
  0x20   :  { %s4535_s20 = sld [smem:[#allocation4 + $0x79]] }
  0x21   :  { %s4586_s22 = sld [smem:[#allocation4 + $0xa6]] }
  0x22   :  { %s4599_s24 = sld [smem:[#allocation4 + $0xc4]] }
  0x23   :  { %s4611_s25 = sld [smem:[#allocation4 + $0xd3]] }
  0x24   :  { %s4627_s26 = sld [smem:[#allocation4 + $0x2]] }
  0x25   :  { %s4670_s28 = sld [smem:[#allocation4 + $0x7a]] }
  0x26   :  { %s4689_s29 = sld [smem:[#allocation4 + $0x11]] }
  0x79   :  { %v48_v6 = vpop.permute.xlu1 %47  ;;  %v44_v7 = vpop.permute.xlu0 %43 }
  0x7a   :  { %58 = vst.msk [vmem:[#allocation2 + $0x27] sm:$0xff] %vm55_vm3, %v48_v6 }
  0x7b   :  { %56 = vst.msk [vmem:[#allocation2 + $0x7] sm:$0xff] %vm55_vm3, %v44_v7 }
  0x81   :  { %v4264_v8 = vld [vmem:[#allocation2 + $0x20] sm:$0xff]  ;;  %v50_v9 = vpop.permute.xlu1 %49  ;;  %v46_v11 = vpop.permute.xlu0 %45 }
  0x82   :  { %74 = vst.msk [vmem:[#allocation3 + $0x20] sm:$0xff] %vm68_vm4, %v4264_v8  ;;  %v4268_v10 = vld [vmem:[#allocation2] sm:$0xff]  ;;  %312 = vrot.lane.b32.xlu0 %v4264_v8, %s4214_s1 }
  0x83   :  { %69 = vst.msk [vmem:[#allocation3] sm:$0xff] %vm68_vm4, %v4268_v10  ;;  %304 = vrot.lane.b32.xlu2 %v4268_v10, %s4214_s1 }
  0x84   :  { %59 = vst.msk [vmem:[#allocation2 + $0x2f] sm:$0xff] %vm55_vm3, %v50_v9 }
  0x85   :  { %57 = vst.msk [vmem:[#allocation2 + $0xf] sm:$0xff] %vm55_vm3, %v46_v11  ;;  %v4379_v11 = vstv %s3929_s3  ;;  %s4710_s3 = sld [smem:[#allocation4 + $0x2f]] }
  0x89   :  { %v81_v0 = vld [vmem:[#allocation3 + $0x20] sm:$0xff] }
  0x8a   :  { %v79_v23 = vld [vmem:[#allocation3] sm:$0xff]  ;;  %v86_v12 = vmul.f32 %v4313_v24, %v81_v0 }
  0x8b   :  { %v4277_v13 = vld [vmem:[#allocation2 + $0x28] sm:$0xff]  ;;  %v4279_v14 = vld [vmem:[#allocation2 + $0x30] sm:$0xff]  ;;  %v84_v25 = vmul.f32 %v4313_v24, %v79_v23 }
  0x8c   :  { %75 = vst.msk [vmem:[#allocation3 + $0x28] sm:$0xff] %vm68_vm4, %v4277_v13  ;;  %v4283_v15 = vld [vmem:[#allocation2 + $0x8] sm:$0xff]  ;;  %v4285_v16 = vld [vmem:[#allocation2 + $0x10] sm:$0xff]  ;;  %314 = vrot.lane.b32.xlu1 %v4277_v13, %s4214_s1  ;;  %316 = vrot.lane.b32.xlu0 %v4279_v14, %s4214_s1 }
  0x8d   :  { %76 = vst.msk [vmem:[#allocation3 + $0x30] sm:$0xff] %vm68_vm4, %v4279_v14  ;;  %306 = vrot.lane.b32.xlu2 %v4283_v15, %s4214_s1 }
  0x8e   :  { %70 = vst.msk [vmem:[#allocation3 + $0x8] sm:$0xff] %vm68_vm4, %v4283_v15 }
  0x8f   :  { %71 = vst.msk [vmem:[#allocation3 + $0x10] sm:$0xff] %vm68_vm4, %v4285_v16 }
  0x93   :  { %v95_v58 = vld [vmem:[#allocation3 + $0x21] sm:$0xff] }
  0x94   :  { %310 = vrot.lane.b32.xlu1 %v291_v17, %s4214_s1  ;;  %562 = vrot.lane.b32.xlu0 %v4268_v10, %s4215_s21  ;;  %v100_v2 = vmul.f32 %v4305_v22, %v95_v58  ;;  %v4371_v3 = vld [vmem:[#allocation3 + $0x28] sm:$0xff] }
  0x95   :  { %308 = vrot.lane.b32.xlu2 %v4285_v16, %s4214_s1  ;;  %v93_v21 = vld [vmem:[#allocation3 + $0x1] sm:$0xff]  ;;  %v4373_v4 = vld [vmem:[#allocation3 + $0x29] sm:$0xff] }
  0x96   :  { %v98_v26 = vmul.f32 %v4305_v22, %v93_v21  ;;  %v107_v27 = vld [vmem:[#allocation3 + $0x2] sm:$0xff]  ;;  %v4336_v40 = vld [vmem:[#allocation3 + $0xa] sm:$0xff]  ;;  %v101_v21 = vmul.f32 %v4305_v22, %v4373_v4  ;;  %v104_v23 = vadd.f32 %v100_v2, %v86_v12 }
  0x97   :  { %v112_v31 = vmul.f32 %v4317_v29, %v107_v27  ;;  %v4320_v32 = vld [vmem:[#allocation3 + $0x8] sm:$0xff]  ;;  %v113_v45 = vmul.f32 %v4317_v29, %v4336_v40 }
  0x98   :  { %v102_v30 = vadd.f32 %v98_v26, %v84_v25  ;;  %v4322_v33 = vld [vmem:[#allocation3 + $0x9] sm:$0xff]  ;;  %v85_v36 = vmul.f32 %v4313_v24, %v4320_v32 }
  0x99   :  { %v121_v34 = vld [vmem:[#allocation3 + $0x3] sm:$0xff]  ;;  %v99_v37 = vmul.f32 %v4305_v22, %v4322_v33  ;;  %v4343_v48 = vld [vmem:[#allocation3 + $0xb] sm:$0xff] }
  0x9a   :  { %v116_v38 = vadd.f32 %v112_v31, %v102_v30  ;;  %v126_v39 = vmul.f32 %v4329_v35, %v121_v34  ;;  %v135_v41 = vld [vmem:[#allocation3 + $0x4] sm:$0xff]  ;;  %v127_v52 = vmul.f32 %v4329_v35, %v4343_v48  ;;  %v4355_v55 = vld [vmem:[#allocation3 + $0xc] sm:$0xff] }
  0x9b   :  { %v103_v44 = vadd.f32 %v99_v37, %v85_v36  ;;  %v140_v47 = vmul.f32 %v4338_v42, %v135_v41  ;;  %v149_v49 = vld [vmem:[#allocation3 + $0x5] sm:$0xff]  ;;  %v141_v60 = vmul.f32 %v4338_v42, %v4355_v55  ;;  %v4362_v63 = vld [vmem:[#allocation3 + $0xd] sm:$0xff] }
  0x9c   :  { %564 = vrot.lane.b32.xlu1 %v4283_v15, %s4215_s21  ;;  %572 = vrot.lane.b32.xlu0 %v4277_v13, %s4215_s21  ;;  %v130_v46 = vadd.f32 %v126_v39, %v116_v38  ;;  %v154_v54 = vmul.f32 %v4350_v50, %v149_v49  ;;  %v163_v56 = vld [vmem:[#allocation3 + $0x6] sm:$0xff]  ;;  %v155_v6 = vmul.f32 %v4350_v50, %v4362_v63  ;;  %v4377_v9 = vld [vmem:[#allocation3 + $0xe] sm:$0xff] }
  0x9d   :  { %318 = vrot.lane.b32.xlu2 %v295_v18, %s4214_s1  ;;  %v117_v51 = vadd.f32 %v113_v45, %v103_v44  ;;  %v168_v62 = vmul.f32 %v4357_v57, %v163_v56  ;;  %v177_v1 = vld [vmem:[#allocation3 + $0x7] sm:$0xff]  ;;  %v169_v26 = vmul.f32 %v4357_v57, %v4377_v9  ;;  %v178_v22 = vld [vmem:[#allocation3 + $0xf] sm:$0xff]  ;;  %s4550_s1 = sld [smem:[#allocation4 + $0x88]] }
  0x9e   :  { %v144_v53 = vadd.f32 %v140_v47, %v130_v46  ;;  %v109_v17 = vld [vmem:[#allocation3 + $0x22] sm:$0xff]  ;;  %v182_v18 = vmul.f32 %v4379_v11, %v177_v1  ;;  %v4394_v31 = vld [vmem:[#allocation3 + $0x2a] sm:$0xff]  ;;  %v183_v47 = vmul.f32 %v4379_v11, %v178_v22 }
  0x9f   :  { %v131_v59 = vadd.f32 %v127_v52, %v117_v51  ;;  %v114_v30 = vmul.f32 %v4317_v29, %v109_v17  ;;  %v123_v34 = vld [vmem:[#allocation3 + $0x23] sm:$0xff]  ;;  %v192_v41 = vld [vmem:[#allocation3 + $0x10] sm:$0xff] }
  0xa0   :  { %v158_v61 = vadd.f32 %v154_v54, %v144_v53  ;;  %v128_v44 = vmul.f32 %v4329_v35, %v123_v34  ;;  %v4410_v45 = vld [vmem:[#allocation3 + $0x2b] sm:$0xff] }
  0xa1   :  { %v145_v5 = vadd.f32 %v141_v60, %v131_v59  ;;  %v118_v37 = vadd.f32 %v114_v30, %v104_v23  ;;  %v137_v46 = vld [vmem:[#allocation3 + $0x24] sm:$0xff]  ;;  %v129_v58 = vmul.f32 %v4329_v35, %v4410_v45  ;;  %v206_v59 = vld [vmem:[#allocation3 + $0x11] sm:$0xff]  ;;  %v4419_v60 = vstv %s4391_s6  ;;  %s4747_s6 = sld [smem:[#allocation4 + $0x5c]] }
  0xa2   :  { %v172_v7 = vadd.f32 %v168_v62, %v158_v61  ;;  %v142_v61 = vmul.f32 %v4338_v42, %v137_v46  ;;  %v4424_v62 = vld [vmem:[#allocation3 + $0x2c] sm:$0xff]  ;;  %v224_v35 = vmul.f32 %v4419_v60, %v4336_v40 }
  0xa3   :  { %v159_v25 = vadd.f32 %v155_v6, %v145_v5  ;;  %v132_v52 = vadd.f32 %v128_v44, %v118_v37  ;;  %v143_v12 = vmul.f32 %v4338_v42, %v4424_v62  ;;  %v220_v17 = vld [vmem:[#allocation3 + $0x12] sm:$0xff]  ;;  %v4471_v44 = vstv %s3935_s10  ;;  %s4787_s10 = sld [smem:[#allocation4 + $0x98]] }
  0xa4   :  { %566 = vrot.lane.b32.xlu1 %v4285_v16, %s4215_s21  ;;  %568 = vrot.lane.b32.xlu0 %v549_v19, %s4215_s21  ;;  %v1065_v19 = vld [vmem:[#allocation2 + $0x18] sm:$0x3f]  ;;  %v186_v27 = vadd.f32 %v182_v18, %v172_v7  ;;  %v4438_v18 = vstv %s4407_s8  ;;  %v225_v42 = vmul.f32 %v4419_v60, %v220_v17  ;;  %s4771_s8 = sld [smem:[#allocation4 + $0x6b]] }
  0xa5   :  { %570 = vrot.lane.b32.xlu2 %v4264_v8, %s4215_s21  ;;  %v173_v38 = vadd.f32 %v169_v26, %v159_v25  ;;  %v146_v2 = vadd.f32 %v142_v61, %v132_v52  ;;  %v1323_v25 = vld [vmem:[#allocation2 + $0x18] sm:$0x3f]  ;;  %v266_v52 = vmul.f32 %v4471_v44, %v4362_v63  ;;  %v4489_v63 = vstv %s4453_s12  ;;  %s4221_s12 = smov 120  }
  0xa7   :  { %v187_v54 = vadd.f32 %v183_v47, %v173_v38  ;;  %v234_v38 = vld [vmem:[#allocation3 + $0x13] sm:$0xff] }
  0xac   :  { %576 = vrot.lane.b32.xlu1 %v553_v20, %s4215_s21  ;;  %822 = vrot.lane.b32.xlu0 %v4283_v15, %s4216_s23  ;;  %v87_v20 = vmul.f32 %v4313_v24, %v4371_v3 }
  0xad   :  { %574 = vrot.lane.b32.xlu2 %v4279_v14, %s4215_s21  ;;  %s4572_s21 = sld [smem:[#allocation4 + $0x97]] }
  0xae   :  { %v105_v36 = vadd.f32 %v101_v21, %v87_v20  ;;  %v165_v20 = vld [vmem:[#allocation3 + $0x26] sm:$0xff]  ;;  %v238_v21 = vmul.f32 %v4438_v18, %v4343_v48 }
  0xaf   :  { %v170_v22 = vmul.f32 %v4357_v57, %v165_v20  ;;  %v179_v48 = vld [vmem:[#allocation3 + $0x27] sm:$0xff] }
  0xb0   :  { %v184_v47 = vmul.f32 %v4379_v11, %v179_v48 }
  0xb4   :  { %828 = vrot.lane.b32.xlu1 %v4264_v8, %s4216_s23  ;;  %824 = vrot.lane.b32.xlu0 %v4285_v16, %s4216_s23 }
  0xb5   :  { %820 = vrot.lane.b32.xlu2 %v4268_v10, %s4216_s23 }
  0xbc   :  { %832 = vrot.lane.b32.xlu1 %v4279_v14, %s4216_s23  ;;  %834 = vrot.lane.b32.xlu0 %v811_v28, %s4216_s23  ;;  %v4389_v28 = vstv %s3930_s4  ;;  %s4718_s4 = sld [smem:[#allocation4 + $0x3e]] }
  0xbd   :  { %830 = vrot.lane.b32.xlu2 %v4277_v13, %s4216_s23  ;;  %v196_v24 = vmul.f32 %v4389_v28, %v4320_v32  ;;  %v4405_v32 = vstv %s3931_s5  ;;  %v197_v53 = vmul.f32 %v4389_v28, %v192_v41  ;;  %s4734_s5 = sld [smem:[#allocation4 + $0x4d]] }
  0xbe   :  { %v210_v49 = vmul.f32 %v4405_v32, %v4322_v33  ;;  %v151_v33 = vld [vmem:[#allocation3 + $0x25] sm:$0xff]  ;;  %v211_v5 = vmul.f32 %v4405_v32, %v206_v59 }
  0xbf   :  { %v200_v39 = vadd.f32 %v196_v24, %v186_v27  ;;  %v201_v6 = vadd.f32 %v197_v53, %v187_v54  ;;  %v156_v40 = vmul.f32 %v4350_v50, %v151_v33  ;;  %v4451_v24 = vstv %s4421_s9  ;;  %s4778_s9 = sld [smem:[#allocation4 + $0x89]] }
  0xc0   :  { %v252_v37 = vmul.f32 %v4451_v24, %v4355_v55  ;;  %v4481_v54 = vstv %s4445_s11  ;;  %v198_v33 = vmul.f32 %v4389_v28, %v4371_v3  ;;  %s4799_s11 = sld [smem:[#allocation4 + $0xa7]] }
  0xc1   :  { %v214_v56 = vadd.f32 %v210_v49, %v200_v39  ;;  %v160_v26 = vadd.f32 %v156_v40, %v146_v2  ;;  %v215_v27 = vadd.f32 %v211_v5, %v201_v6  ;;  %v180_v49 = vld [vmem:[#allocation3 + $0x2f] sm:$0xff]  ;;  %v280_v2 = vmul.f32 %v4489_v63, %v4377_v9 }
  0xc2   :  { %v4508_v9 = vstv %s4467_s14  ;;  %s4824_s14 = sld [smem:[#allocation4 + $0xc5]] }
  0xc3   :  { %v228_v7 = vadd.f32 %v224_v35, %v214_v56  ;;  %v174_v39 = vadd.f32 %v170_v22, %v160_v26  ;;  %v229_v41 = vadd.f32 %v225_v42, %v215_v27  ;;  %v1327_v56 = vld [vmem:[#allocation2 + $0x38] sm:$0x3f]  ;;  %v185_v35 = vmul.f32 %v4379_v11, %v180_v49 }
  0xc4   :  { %1078 = vrot.lane.b32.xlu1 %v4268_v10, %s4217_s30  ;;  %1086 = vrot.lane.b32.xlu0 %v4264_v8, %s4217_s30  ;;  %v262_v11 = vld [vmem:[#allocation3 + $0x15] sm:$0xff]  ;;  %v212_v26 = vmul.f32 %v4405_v32, %v4373_v4  ;;  %v4514_v42 = vstv %s4474_s15  ;;  %v226_v49 = vmul.f32 %v4419_v60, %v4394_v31  ;;  %s4842_s15 = sld [smem:[#allocation4 + $0xd4]] }
  0xc5   :  { %826 = vrot.lane.b32.xlu2 %v807_v43, %s4216_s23  ;;  %v115_v43 = vmul.f32 %v4317_v29, %v4394_v31  ;;  %v1069_v29 = vld [vmem:[#allocation2 + $0x38] sm:$0x3f]  ;;  %v242_v30 = vadd.f32 %v238_v21, %v228_v7  ;;  %v4505_v7 = vstv %s4463_s13  ;;  %s4597_s23 = sld [smem:[#allocation4 + $0xb5]] }
  0xc6   :  { %v208_v27 = vld [vmem:[#allocation3 + $0x31] sm:$0xff]  ;;  %s4811_s13 = sld [smem:[#allocation4 + $0xb6]] }
  0xc7   :  { %v119_v51 = vadd.f32 %v115_v43, %v105_v36  ;;  %v4456_v36 = vld [vmem:[#allocation3 + $0x2e] sm:$0xff]  ;;  %v256_v43 = vadd.f32 %v252_v37, %v242_v30  ;;  %v267_v30 = vmul.f32 %v4471_v44, %v262_v11  ;;  %v240_v11 = vmul.f32 %v4438_v18, %v4410_v45 }
  0xc8   :  { %v171_v55 = vmul.f32 %v4357_v57, %v4456_v36 }
  0xc9   :  { %v133_v0 = vadd.f32 %v129_v58, %v119_v51  ;;  %v239_v51 = vmul.f32 %v4438_v18, %v234_v38  ;;  %v188_v58 = vadd.f32 %v184_v47, %v174_v39  ;;  %v270_v61 = vadd.f32 %v266_v52, %v256_v43  ;;  %v222_v52 = vld [vmem:[#allocation3 + $0x32] sm:$0xff] }
  0xca   :  { %v4523_v38 = vstv %s4483_s16  ;;  %s4862_s16 = sld [smem:[#allocation4 + $0x12]] }
  0xcb   :  { %v147_v23 = vadd.f32 %v143_v12, %v133_v0  ;;  %v243_v59 = vadd.f32 %v239_v51, %v229_v41  ;;  %v194_v0 = vld [vmem:[#allocation3 + $0x30] sm:$0xff]  ;;  %v202_v6 = vadd.f32 %v198_v33, %v188_v58  ;;  %v284_v40 = vadd.f32 %v280_v2, %v270_v61 }
  0xcc   :  { %1088 = vrot.lane.b32.xlu1 %v4277_v13, %s4217_s30  ;;  %1090 = vrot.lane.b32.xlu0 %v4279_v14, %s4217_s30  ;;  %v276_v12 = vld [vmem:[#allocation3 + $0x16] sm:$0xff]  ;;  %v199_v20 = vmul.f32 %v4389_v28, %v194_v0  ;;  %v4533_v51 = vstv %s4491_s17  ;;  %s4875_s17 = sld [smem:[#allocation4 + $0x21]] }
  0xcd   :  { %1080 = vrot.lane.b32.xlu2 %v4283_v15, %s4217_s30  ;;  %v4552_v61 = vld [vmem:[#allocation3 + $0x35] sm:$0xff] }
  0xce   :  { %v4556_v2 = vld [vmem:[#allocation3 + $0x36] sm:$0xff] }
  0xd4   :  { %1084 = vrot.lane.b32.xlu1 %v1065_v19, %s4217_s30  ;;  %1336 = vrot.lane.b32.xlu0 %v4268_v10, %s4218_s7  ;;  %v4441_v19 = vld [vmem:[#allocation3 + $0x2d] sm:$0xff] }
  0xd5   :  { %1082 = vrot.lane.b32.xlu2 %v4285_v16, %s4217_s30  ;;  %v157_v34 = vmul.f32 %v4350_v50, %v4441_v19 }
  0xd7   :  { %v161_v50 = vadd.f32 %v157_v34, %v147_v23 }
  0xd9   :  { %v175_v53 = vadd.f32 %v171_v55, %v161_v50  ;;  %v216_v50 = vadd.f32 %v212_v26, %v202_v6  ;;  %v213_v55 = vmul.f32 %v4405_v32, %v208_v27  ;;  %v4542_v32 = vstv %s4500_s19  ;;  %v1585_v26 = vld [vmem:[#allocation2 + $0x38] sm:$0x3f]  ;;  %s4908_s19 = sld [smem:[#allocation4 + $0x3f]] }
  0xdb   :  { %v189_v3 = vadd.f32 %v185_v35, %v175_v53 }
  0xdc   :  { %1338 = vrot.lane.b32.xlu1 %v4283_v15, %s4218_s7  ;;  %1346 = vrot.lane.b32.xlu0 %v4277_v13, %s4218_s7 }
  0xdd   :  { %1092 = vrot.lane.b32.xlu2 %v1069_v29, %s4217_s30  ;;  %v305_v1 = vpop.permute.xlu2 %304  ;;  %v248_v29 = vld [vmem:[#allocation3 + $0x14] sm:$0xff]  ;;  %v203_v48 = vadd.f32 %v199_v20, %v189_v3  ;;  %s4699_s30 = sld [smem:[#allocation4 + $0x20]] }
  0xde   :  { %328 = vst.msk [vmem:[#allocation3] sm:$0xff] %vm68_vm4, %v305_v1  ;;  %v253_v1 = vmul.f32 %v4451_v24, %v248_v29 }
  0xdf   :  { %v217_v58 = vadd.f32 %v213_v55, %v203_v48  ;;  %v4580_v48 = vstv %s4535_s20  ;;  %v4595_v55 = vstv %s4550_s1  ;;  %s4946_s20 = sld [smem:[#allocation4 + $0x5d]]  ;;  %s4222_s1 = smov 119  }
  0xe0   :  { %v257_v17 = vadd.f32 %v253_v1, %v243_v59  ;;  %v230_v59 = vadd.f32 %v226_v49, %v216_v50  ;;  %v227_v1 = vmul.f32 %v4419_v60, %v222_v52 }
  0xe2   :  { %v271_v39 = vadd.f32 %v267_v30, %v257_v17  ;;  %v244_v45 = vadd.f32 %v240_v11, %v230_v59 }
  0xe4   :  { %1340 = vrot.lane.b32.xlu1 %v4285_v16, %s4218_s7  ;;  %1342 = vrot.lane.b32.xlu0 %v1323_v25, %s4218_s7 }
  0xe5   :  { %1344 = vrot.lane.b32.xlu2 %v4264_v8, %s4218_s7  ;;  %v337_v57 = vld [vmem:[#allocation3] sm:$0xff] }
  0xe6   :  { %v342_v5 = vmul.f32 %v4481_v54, %v337_v57 }
  0xe7   :  { %v307_v46 = vpop.permute.xlu2 %306 }
  0xe8   :  { %329 = vst.msk [vmem:[#allocation3 + $0x8] sm:$0xff] %vm68_vm4, %v307_v46  ;;  %v346_v34 = vadd.f32 %v342_v5, %v284_v40  ;;  %v281_v46 = vmul.f32 %v4489_v63, %v276_v12  ;;  %v4563_v12 = vstv %s4516_s0  ;;  %s4913_s0 = sld [smem:[#allocation4 + $0x4e]] }
  0xea   :  { %v285_v33 = vadd.f32 %v281_v46, %v271_v39 }
  0xec   :  { %1350 = vrot.lane.b32.xlu1 %v1327_v56, %s4218_s7  ;;  %1596 = vrot.lane.b32.xlu0 %v4283_v15, %s4219_s18 }
  0xed   :  { %1348 = vrot.lane.b32.xlu2 %v4279_v14, %s4218_s7  ;;  %s4761_s7 = sld [smem:[#allocation4 + $0x3]] }
  0xef   :  { %v351_v21 = vld [vmem:[#allocation3 + $0x1] sm:$0xff]  ;;  %v309_v25 = vpop.permute.xlu2 %308 }
  0xf0   :  { %v365_v15 = vld [vmem:[#allocation3 + $0x2] sm:$0xff]  ;;  %330 = vst.msk [vmem:[#allocation3 + $0x10] sm:$0xff] %vm68_vm4, %v309_v25  ;;  %v356_v28 = vmul.f32 %v4505_v7, %v351_v21 }
  0xf1   :  { %v379_v23 = vld [vmem:[#allocation3 + $0x3] sm:$0xff]  ;;  %v370_v22 = vmul.f32 %v4508_v9, %v365_v15 }
  0xf2   :  { %v393_v37 = vld [vmem:[#allocation3 + $0x4] sm:$0xff]  ;;  %v360_v41 = vadd.f32 %v356_v28, %v346_v34  ;;  %v384_v43 = vmul.f32 %v4514_v42, %v379_v23  ;;  %v231_v23 = vadd.f32 %v227_v1, %v217_v58  ;;  %v269_v1 = vmul.f32 %v4471_v44, %v4552_v61 }
  0xf3   :  { %v4525_v4 = vld [vmem:[#allocation3 + $0x8] sm:$0xff]  ;;  %v398_v31 = vmul.f32 %v4523_v38, %v393_v37 }
  0xf4   :  { %v407_v47 = vld [vmem:[#allocation3 + $0x5] sm:$0xff]  ;;  %1602 = vrot.lane.b32.xlu1 %v4264_v8, %s4219_s18  ;;  %1598 = vrot.lane.b32.xlu0 %v4285_v16, %s4219_s18  ;;  %v313_v29 = vpop.permute.xlu0 %312  ;;  %v343_v57 = vmul.f32 %v4481_v54, %v4525_v4  ;;  %v374_v56 = vadd.f32 %v370_v22, %v360_v41  ;;  %v236_v8 = vld [vmem:[#allocation3 + $0x33] sm:$0xff]  ;;  %v254_v22 = vmul.f32 %v4451_v24, %v4424_v62 }
  0xf5   :  { %v421_v53 = vld [vmem:[#allocation3 + $0x6] sm:$0xff]  ;;  %1594 = vrot.lane.b32.xlu2 %v4268_v10, %s4219_s18  ;;  %332 = vst.msk [vmem:[#allocation3 + $0x20] sm:$0xff] %vm68_vm4, %v313_v29  ;;  %v250_v16 = vld [vmem:[#allocation3 + $0x34] sm:$0xff]  ;;  %v412_v0 = vmul.f32 %v4533_v51, %v407_v47  ;;  %v241_v34 = vmul.f32 %v4438_v18, %v236_v8 }
  0xf6   :  { %v388_v35 = vadd.f32 %v384_v43, %v374_v56  ;;  %v426_v17 = vmul.f32 %v4542_v32, %v421_v53  ;;  %v435_v40 = vld [vmem:[#allocation3 + $0x7] sm:$0xff]  ;;  %v347_v20 = vadd.f32 %v343_v57, %v285_v33  ;;  %v258_v62 = vadd.f32 %v254_v22, %v244_v45 }
  0xf7   :  { %v352_v5 = vld [vmem:[#allocation3 + $0x9] sm:$0xff]  ;;  %v319_v6 = vpop.permute.xlu2 %318  ;;  %v440_v37 = vmul.f32 %v4563_v12, %v435_v40  ;;  %v245_v41 = vadd.f32 %v241_v34, %v231_v23  ;;  %v454_v53 = vmul.f32 %v4580_v48, %v4525_v4  ;;  %v255_v29 = vmul.f32 %v4451_v24, %v250_v16 }
  0xf8   :  { %v4558_v3 = vld [vmem:[#allocation3 + $0xa] sm:$0xff]  ;;  %335 = vst.msk [vmem:[#allocation3 + $0x38] sm:$0x3f] %vm72_vm2, %v319_v6  ;;  %v357_v60 = vmul.f32 %v4505_v7, %v352_v5  ;;  %v402_v15 = vadd.f32 %v398_v31, %v388_v35  ;;  %v268_v57 = vmul.f32 %v4471_v44, %v4441_v19  ;;  %v468_v16 = vmul.f32 %v4595_v55, %v352_v5  ;;  %v4629_v5 = vld [vmem:[#allocation2 + $0x20] sm:$0xff] }
  0xf9   :  { %v371_v21 = vmul.f32 %v4508_v9, %v4558_v3  ;;  %v4570_v25 = vld [vmem:[#allocation3 + $0xb] sm:$0xff]  ;;  %v259_v8 = vadd.f32 %v255_v29, %v245_v41  ;;  %v4618_v33 = vstv %s4572_s21  ;;  %v282_v6 = vmul.f32 %v4489_v63, %v4456_v36  ;;  %s5108_s21 = sld [smem:[#allocation4 + $0x6c]] }
  0xfa   :  { %v361_v27 = vadd.f32 %v357_v60, %v347_v20  ;;  %v416_v30 = vadd.f32 %v412_v0, %v402_v15  ;;  %v4575_v28 = vld [vmem:[#allocation3 + $0xc] sm:$0xff]  ;;  %v385_v18 = vmul.f32 %v4514_v42, %v4570_v25  ;;  %v272_v24 = vadd.f32 %v268_v57, %v258_v62  ;;  %v1581_v0 = vld [vmem:[#allocation2 + $0x18] sm:$0x3f] }
  0xfb   :  { %v4590_v43 = vld [vmem:[#allocation3 + $0xd] sm:$0xff]  ;;  %v399_v49 = vmul.f32 %v4523_v38, %v4575_v28  ;;  %v273_v44 = vadd.f32 %v269_v1, %v259_v8  ;;  %v283_v36 = vmul.f32 %v4489_v63, %v4556_v2 }
  0xfc   :  { %1606 = vrot.lane.b32.xlu1 %v4279_v14, %s4219_s18  ;;  %1608 = vrot.lane.b32.xlu0 %v1585_v26, %s4219_s18  ;;  %v375_v50 = vadd.f32 %v371_v21, %v361_v27  ;;  %v430_v39 = vadd.f32 %v426_v17, %v416_v30  ;;  %v339_v31 = vld [vmem:[#allocation3 + $0x20] sm:$0xff]  ;;  %v413_v59 = vmul.f32 %v4533_v51, %v4590_v43  ;;  %v436_v11 = vld [vmem:[#allocation3 + $0xf] sm:$0xff]  ;;  %v4641_v26 = vstv %s4586_s22  ;;  %s5132_s22 = sld [smem:[#allocation4 + $0x7b]] }
  0xfd   :  { %1604 = vrot.lane.b32.xlu2 %v4277_v13, %s4219_s18  ;;  %v4606_v13 = vld [vmem:[#allocation3 + $0xe] sm:$0xff]  ;;  %v344_v17 = vmul.f32 %v4481_v54, %v339_v31  ;;  %v286_v61 = vadd.f32 %v282_v6, %v272_v24  ;;  %v482_v21 = vmul.f32 %v4618_v33, %v4558_v3  ;;  %v4647_v27 = vstv %s4599_s24  ;;  %s5238_s24 = sld [smem:[#allocation4 + $0x99]] }
  0xfe   :  { %v315_v14 = vpop.permute.xlu1 %314  ;;  %v317_v46 = vpop.permute.xlu0 %316  ;;  %v389_v47 = vadd.f32 %v385_v18, %v375_v50  ;;  %v444_v52 = vadd.f32 %v440_v37, %v430_v39  ;;  %v427_v35 = vmul.f32 %v4542_v32, %v4606_v13  ;;  %v450_v60 = vld [vmem:[#allocation3 + $0x10] sm:$0xff]  ;;  %v441_v30 = vmul.f32 %v4563_v12, %v436_v11 }
  0xff   :  { %333 = vst.msk [vmem:[#allocation3 + $0x28] sm:$0xff] %vm68_vm4, %v315_v14  ;;  %v571_v56 = vpop.permute.xlu2 %570  ;;  %v348_v34 = vadd.f32 %v344_v17, %v286_v61  ;;  %v4652_v3 = vstv %s4611_s25  ;;  %v4695_v17 = vstv %s4627_s26  ;;  %s5245_s25 = sld [smem:[#allocation4 + $0xa8]] }
 0x100   :  { %334 = vst.msk [vmem:[#allocation3 + $0x30] sm:$0xff] %vm68_vm4, %v317_v46  ;;  %v403_v58 = vadd.f32 %v399_v49, %v389_v47  ;;  %v458_v4 = vadd.f32 %v454_v53, %v444_v52  ;;  %v287_v49 = vadd.f32 %v283_v36, %v273_v44  ;;  %s5256_s26 = sld [smem:[#allocation4 + $0xb7]] }
 0x102   :  { %v417_v19 = vadd.f32 %v413_v59, %v403_v58  ;;  %v472_v40 = vadd.f32 %v468_v16, %v458_v4  ;;  %v496_v58 = vmul.f32 %v4641_v26, %v4570_v25  ;;  %v4668_v59 = vld [vmem:[#allocation2 + $0x28] sm:$0xff]  ;;  %v455_v16 = vmul.f32 %v4580_v48, %v450_v60 }
 0x103   :  { %v4685_v25 = vmul.f32 %v4652_v3, %v4606_v13 }
 0x104   :  { %v431_v20 = vadd.f32 %v427_v35, %v417_v19  ;;  %1852 = vrot.lane.b32.xlu1 %v4268_v10, %s4220_s27  ;;  %1860 = vrot.lane.b32.xlu0 %v4629_v5, %s4220_s27  ;;  %v4644_v10 = vstv %s4597_s23  ;;  %v486_v39 = vadd.f32 %v482_v21, %v472_v40  ;;  %v4687_v35 = vld [vmem:[#allocation2 + $0x30] sm:$0xff]  ;;  %s5228_s23 = sld [smem:[#allocation4 + $0x8a]] }
 0x105   :  { %1600 = vrot.lane.b32.xlu2 %v1581_v0, %s4219_s18  ;;  %v4677_v19 = vmul.f32 %v4644_v10, %v4575_v28  ;;  %s4885_s18 = sld [smem:[#allocation4 + $0x30]] }
 0x106   :  { %v353_v15 = vld [vmem:[#allocation3 + $0x21] sm:$0xff]  ;;  %v311_v63 = vpop.permute.xlu1 %310  ;;  %v563_v2 = vpop.permute.xlu0 %562  ;;  %v445_v47 = vadd.f32 %v441_v30, %v431_v20  ;;  %v4697_v40 = vadd.f32 %v496_v58, %v486_v39 }
 0x107   :  { %v367_v23 = vld [vmem:[#allocation3 + $0x22] sm:$0xff]  ;;  %v358_v18 = vmul.f32 %v4505_v7, %v353_v15  ;;  %331 = vst.msk [vmem:[#allocation3 + $0x18] sm:$0x3f] %vm72_vm2, %v311_v63  ;;  %v575_v41 = vpop.permute.xlu2 %574  ;;  %v4655_v46 = vld [vmem:[#allocation3 + $0x2a] sm:$0xff]  ;;  %v480_v0 = vld [vmem:[#allocation3 + $0x32] sm:$0xff] }
 0x108   :  { %v381_v45 = vld [vmem:[#allocation3 + $0x23] sm:$0xff]  ;;  %586 = vst.msk [vmem:[#allocation3] sm:$0xff] %vm68_vm4, %v563_v2  ;;  %v4658_v52 = vld [vmem:[#allocation3 + $0x2b] sm:$0xff]  ;;  %v372_v31 = vmul.f32 %v4508_v9, %v367_v23  ;;  %v494_v1 = vld [vmem:[#allocation3 + $0x33] sm:$0xff]  ;;  %v459_v60 = vadd.f32 %v455_v16, %v445_v47  ;;  %v373_v23 = vmul.f32 %v4508_v9, %v4655_v46 }
 0x109   :  { %v395_v22 = vld [vmem:[#allocation3 + $0x24] sm:$0xff]  ;;  %v4660_v53 = vld [vmem:[#allocation3 + $0x2c] sm:$0xff]  ;;  %v362_v57 = vadd.f32 %v358_v18, %v348_v34  ;;  %v4691_v11 = vld [vmem:[#allocation3 + $0x34] sm:$0xff]  ;;  %v386_v28 = vmul.f32 %v4514_v42, %v381_v45  ;;  %v387_v63 = vmul.f32 %v4514_v42, %v4658_v52  ;;  %v4775_v58 = vmul.f32 %v4641_v26, %v494_v1 }
 0x10a   :  { %v409_v37 = vld [vmem:[#allocation3 + $0x25] sm:$0xff]  ;;  %v4662_v29 = vld [vmem:[#allocation3 + $0x2d] sm:$0xff]  ;;  %v4703_v13 = vld [vmem:[#allocation3 + $0x36] sm:$0xff]  ;;  %v400_v44 = vmul.f32 %v4523_v38, %v395_v22  ;;  %v4724_v2 = vmul.f32 %v4523_v38, %v4660_v53  ;;  %v4791_v1 = vmul.f32 %v4644_v10, %v4691_v11 }
 0x10b   :  { %v423_v50 = vld [vmem:[#allocation3 + $0x26] sm:$0xff]  ;;  %v4672_v4 = vld [vmem:[#allocation3 + $0x2e] sm:$0xff]  ;;  %v376_v6 = vadd.f32 %v372_v31, %v362_v57  ;;  %v414_v36 = vmul.f32 %v4533_v51, %v409_v37  ;;  %v4764_v57 = vmul.f32 %v4618_v33, %v480_v0 }
 0x10c   :  { %v437_v62 = vld [vmem:[#allocation3 + $0x27] sm:$0xff]  ;;  %v438_v8 = vld [vmem:[#allocation3 + $0x2f] sm:$0xff]  ;;  %v428_v61 = vmul.f32 %v4542_v32, %v423_v50  ;;  %1862 = vrot.lane.b32.xlu1 %v4668_v59, %s4220_s27  ;;  %1864 = vrot.lane.b32.xlu0 %v4687_v35, %s4220_s27  ;;  %v4738_v38 = vmul.f32 %v4542_v32, %v4672_v4  ;;  %v4757_v32 = vmul.f32 %v4618_v33, %v4655_v46  ;;  %v1839_v46 = vld [vmem:[#allocation2 + $0x18] sm:$0x3f] }
 0x10d   :  { %v354_v14 = vld [vmem:[#allocation3 + $0x29] sm:$0xff]  ;;  %590 = vst.msk [vmem:[#allocation3 + $0x20] sm:$0xff] %vm68_vm4, %v571_v56  ;;  %v466_v24 = vld [vmem:[#allocation3 + $0x31] sm:$0xff]  ;;  %v4681_v56 = vmul.f32 %v4647_v27, %v4590_v43  ;;  %v390_v45 = vadd.f32 %v386_v28, %v376_v6  ;;  %v4785_v6 = vmul.f32 %v4644_v10, %v4660_v53 }
 0x10e   :  { %v4701_v43 = vld [vmem:[#allocation3 + $0x35] sm:$0xff]  ;;  %v340_v20 = vld [vmem:[#allocation3 + $0x28] sm:$0xff]  ;;  %v359_v15 = vmul.f32 %v4505_v7, %v354_v14  ;;  %v442_v7 = vmul.f32 %v4563_v12, %v437_v62  ;;  %v565_v22 = vpop.permute.xlu1 %564  ;;  %v573_v37 = vpop.permute.xlu0 %572  ;;  %v4753_v62 = vmul.f32 %v4595_v55, %v466_v24 }
 0x10f   :  { %v345_v21 = vmul.f32 %v4481_v54, %v340_v20  ;;  %v452_v30 = vld [vmem:[#allocation3 + $0x30] sm:$0xff]  ;;  %v4728_v54 = vmul.f32 %v4533_v51, %v4662_v29  ;;  %v4732_v34 = vld [vmem:[#allocation2 + $0x8] sm:$0xff]  ;;  %v404_v50 = vadd.f32 %v400_v44, %v390_v45  ;;  %v4741_v51 = vmul.f32 %v4595_v55, %v354_v14  ;;  %v4745_v39 = vpop.permute.xlu2 %820  ;;  %587 = vst.msk [vmem:[#allocation3 + $0x8] sm:$0xff] %vm68_vm4, %v565_v22 }
 0x110   :  { %v464_v9 = vld [vmem:[#allocation3 + $0x11] sm:$0xff]  ;;  %592 = vst.msk [vmem:[#allocation3 + $0x30] sm:$0xff] %vm68_vm4, %v575_v41  ;;  %1854 = vrot.lane.b32.xlu2 %v4732_v34, %s4220_s27  ;;  %v4750_v41 = vmul.f32 %v4563_v12, %v438_v8  ;;  %v4768_v12 = vmul.f32 %v4641_v26, %v4658_v52  ;;  %v4781_v52 = vmul.f32 %v4580_v48, %v452_v30 }
 0x111   :  { %v349_v42 = vadd.f32 %v345_v21, %v287_v49  ;;  %v478_v18 = vld [vmem:[#allocation3 + $0x12] sm:$0xff]  ;;  %v469_v14 = vmul.f32 %v4595_v55, %v464_v9  ;;  %v418_v49 = vadd.f32 %v414_v36, %v404_v50  ;;  %591 = vst.msk [vmem:[#allocation3 + $0x28] sm:$0xff] %vm68_vm4, %v573_v37  ;;  %v456_v55 = vmul.f32 %v4580_v48, %v340_v20  ;;  %v4797_v48 = vld [vmem:[#allocation2] sm:$0xff] }
 0x112   :  { %v492_v31 = vld [vmem:[#allocation3 + $0x13] sm:$0xff]  ;;  %v483_v24 = vmul.f32 %v4618_v33, %v478_v18  ;;  %v514_v36 = vadd.f32 %v4677_v19, %v4697_v40  ;;  %9411 = vst [vmem:[#allocation10_spill] sm:$0xff] %v4797_v48  ;;  %v4807_v11 = vmul.f32 %v4647_v27, %v4701_v43  ;;  %v4815_v19 = vmul.f32 %v4652_v3, %v4672_v4 }
 0x113   :  { %v363_v47 = vadd.f32 %v359_v15, %v349_v42  ;;  %v473_v8 = vadd.f32 %v469_v14, %v459_v60  ;;  %v432_v0 = vadd.f32 %v428_v61, %v418_v49  ;;  %v506_v28 = vld [vmem:[#allocation3 + $0x14] sm:$0xff]  ;;  %v497_v44 = vmul.f32 %v4641_v26, %v492_v31  ;;  %v595_v15 = vld [vmem:[#allocation3] sm:$0xff] }
 0x114   :  { %v597_v20 = vld [vmem:[#allocation3 + $0x20] sm:$0xff]  ;;  %1858 = vrot.lane.b32.xlu1 %v1839_v46, %s4220_s27  ;;  %v4803_v60 = vmul.f32 %v4647_v27, %v4662_v29  ;;  %v520_v26 = vld [vmem:[#allocation3 + $0x15] sm:$0xff]  ;;  %2110 = vrot.lane.b32.xlu0 %v4797_v48, %s4221_s12  ;;  %v4819_v29 = vmul.f32 %v4652_v3, %v4703_v13  ;;  %v511_v43 = vmul.f32 %v4644_v10, %v506_v28  ;;  %v4840_v37 = vstv %s4670_s28  ;;  %s5293_s28 = sld [smem:[#allocation4 + $0xc6]] }
 0x115   :  { %v377_v16 = vadd.f32 %v373_v23, %v363_v47  ;;  %v487_v33 = vadd.f32 %v483_v24, %v473_v8  ;;  %v446_v61 = vadd.f32 %v442_v7, %v432_v0  ;;  %v534_v21 = vld [vmem:[#allocation3 + $0x16] sm:$0xff]  ;;  %v4828_v4 = vmul.f32 %v4695_v17, %v597_v20 }
 0x116   :  { %v4822_v23 = vld [vmem:[#allocation2 + $0x10] sm:$0xff]  ;;  %v567_v45 = vpop.permute.xlu1 %566  ;;  %v569_v30 = vpop.permute.xlu0 %568  ;;  %v609_v9 = vld [vmem:[#allocation3 + $0x1] sm:$0xff]  ;;  %v525_v42 = vmul.f32 %v4647_v27, %v520_v26  ;;  %v539_v50 = vmul.f32 %v4652_v3, %v534_v21  ;;  %v528_v18 = vadd.f32 %v4681_v56, %v514_v36  ;;  %v600_v46 = vmul.f32 %v4695_v17, %v595_v15 }
 0x117   :  { %v391_v53 = vadd.f32 %v387_v63, %v377_v16  ;;  %v501_v40 = vadd.f32 %v497_v44, %v487_v33  ;;  %v460_v7 = vadd.f32 %v456_v55, %v446_v61  ;;  %v4830_v13 = vld [vmem:[#allocation3 + $0x2] sm:$0xff]  ;;  %588 = vst.msk [vmem:[#allocation3 + $0x10] sm:$0xff] %vm68_vm4, %v567_v45  ;;  %v4837_v10 = vpop.permute.xlu2 %830  ;;  %v4858_v3 = vstv %s4761_s7  ;;  %v1843_v33 = vld [vmem:[#allocation2 + $0x38] sm:$0x3f]  ;;  %s5473_s7 = sld [smem:[#allocation4 + $0x4f]] }
 0x118   :  { %v4832_v22 = vld [vmem:[#allocation3 + $0x3] sm:$0xff]  ;;  %1856 = vrot.lane.b32.xlu2 %v4822_v23, %s4220_s27  ;;  %589 = vst.msk [vmem:[#allocation3 + $0x18] sm:$0x3f] %vm72_vm2, %v569_v30  ;;  %v4867_v8 = vstv %s4689_s29  ;;  %v4870_v24 = vstv %s4699_s30  ;;  %v4880_v0 = vstv %s4718_s4  ;;  %v542_v20 = vadd.f32 %v4685_v25, %v528_v18  ;;  %s5316_s29 = sld [smem:[#allocation4 + $0xd5]] }
 0x119   :  { %v405_v63 = vadd.f32 %v4724_v2, %v391_v53  ;;  %v515_v2 = vadd.f32 %v511_v43, %v501_v40  ;;  %v4847_v14 = vld [vmem:[#allocation3 + $0x4] sm:$0xff]  ;;  %v474_v27 = vadd.f32 %v4741_v51, %v460_v7  ;;  %9412 = vst [vmem:[#allocation11_spill] sm:$0xff] %v4858_v3  ;;  %v4883_v28 = vstv %s4734_s5  ;;  %s5357_s30 = sld [smem:[#allocation4 + $0x4]] }
 0x11a   :  { %v4849_v47 = vld [vmem:[#allocation3 + $0x5] sm:$0xff]  ;;  %v4893_v44 = vstv %s4747_s6  ;;  %v4903_v61 = vstv %s4778_s9  ;;  %v4906_v26 = vstv %s4787_s10  ;;  %v604_v25 = vadd.f32 %v600_v46, %v542_v20  ;;  %s5395_s4 = sld [smem:[#allocation4 + $0x22]]  ;;  %s4224_s9 = smov 117  }
 0x11b   :  { %v4851_v49 = vld [vmem:[#allocation3 + $0x6] sm:$0xff]  ;;  %v419_v31 = vadd.f32 %v4728_v54, %v405_v63  ;;  %v529_v56 = vadd.f32 %v525_v42, %v515_v2  ;;  %v4873_v54 = vstv %s4710_s3  ;;  %v488_v16 = vadd.f32 %v4757_v32, %v474_v27  ;;  %v2097_v27 = vld [vmem:[#allocation2 + $0x18] sm:$0x3f]  ;;  %s5372_s3 = sld [smem:[#allocation4 + $0x13]] }
 0x11c   :  { %v4860_v55 = vld [vmem:[#allocation3 + $0x7] sm:$0xff]  ;;  %2112 = vrot.lane.b32.xlu1 %v4732_v34, %s4221_s12  ;;  %2120 = vrot.lane.b32.xlu0 %v4668_v59, %s4221_s12  ;;  %v4911_v40 = vstv %s4799_s11  ;;  %v614_v59 = vmul.f32 %v4867_v8, %v609_v9  ;;  %v4935_v9 = vstv %s4811_s13  ;;  %v628_v20 = vmul.f32 %v4870_v24, %v4830_v13  ;;  %s5417_s5 = sld [smem:[#allocation4 + $0x31]] }
 0x11d   :  { %844 = vst.msk [vmem:[#allocation3] sm:$0xff] %vm68_vm4, %v4745_v39  ;;  %v433_v51 = vadd.f32 %v4738_v38, %v419_v31  ;;  %v4887_v39 = vld [vmem:[#allocation3 + $0x8] sm:$0xff]  ;;  %v4896_v38 = vstv %s4771_s8  ;;  %v543_v32 = vadd.f32 %v539_v50, %v529_v56  ;;  %v502_v53 = vadd.f32 %v4768_v12, %v488_v16  ;;  %s5459_s6 = sld [smem:[#allocation4 + $0x40]] }
 0x11e   :  { %v577_v21 = vpop.permute.xlu1 %576  ;;  %9413 = vst [vmem:[#allocation12_spill] sm:$0xff] %v4911_v40  ;;  %v4917_v12 = vld [vmem:[#allocation3 + $0x9] sm:$0xff]  ;;  %v823_v42 = vpop.permute.xlu0 %822  ;;  %v4938_v50 = vstv %s4824_s14  ;;  %v611_v56 = vld [vmem:[#allocation3 + $0x21] sm:$0xff]  ;;  %v618_v16 = vadd.f32 %v614_v59, %v604_v25  ;;  %v4990_v40 = vstv %s4875_s17  ;;  %s5514_s8 = sld [smem:[#allocation4 + $0x5e]]  ;;  %s4225_s17 = smov 116  }
 0x11f   :  { %v447_v36 = vadd.f32 %v4750_v41, %v433_v51  ;;  %v601_v41 = vmul.f32 %v4695_v17, %v4887_v39  ;;  %v4920_v43 = vld [vmem:[#allocation3 + $0xa] sm:$0xff]  ;;  %v516_v30 = vadd.f32 %v4785_v6, %v502_v53  ;;  %v4928_v7 = vld [vmem:[#allocation3 + $0x12] sm:$0xff]  ;;  %593 = vst.msk [vmem:[#allocation3 + $0x38] sm:$0x3f] %vm72_vm2, %v577_v21  ;;  %v827_v31 = vpop.permute.xlu2 %826  ;;  %v615_v51 = vmul.f32 %v4867_v8, %v4917_v12  ;;  %s5536_s10 = sld [smem:[#allocation4 + $0x6d]] }
 0x120   :  { %v4922_v15 = vld [vmem:[#allocation3 + $0xb] sm:$0xff]  ;;  %v4930_v2 = vld [vmem:[#allocation3 + $0x13] sm:$0xff]  ;;  %1866 = vrot.lane.b32.xlu2 %v1843_v33, %s4220_s27  ;;  %9415 = vst [vmem:[#allocation14_spill] sm:$0xff] %v4935_v9  ;;  %v4956_v53 = vstv %s4842_s15  ;;  %v4959_v21 = vstv %s4862_s16  ;;  %v639_v25 = vld [vmem:[#allocation3 + $0x23] sm:$0xff]  ;;  %v629_v48 = vmul.f32 %v4870_v24, %v4920_v43  ;;  %s4223_s27 = smov 118   ;;  %s5551_s11 = sld [smem:[#allocation4 + $0x7c]] }
 0x121   :  { %v461_v45 = vadd.f32 %v4781_v52, %v447_v36  ;;  %v4926_v63 = vld [vmem:[#allocation3 + $0x11] sm:$0xff]  ;;  %9414 = vst [vmem:[#allocation13_spill] sm:$0xff] %v4930_v2  ;;  %v605_v46 = vadd.f32 %v601_v41, %v543_v32  ;;  %v530_v36 = vadd.f32 %v4803_v60, %v516_v30  ;;  %v4963_v32 = vld [vmem:[#allocation3 + $0x29] sm:$0xff]  ;;  %s5598_s13 = sld [smem:[#allocation4 + $0x9a]] }
 0x122   :  { %9416 = vst [vmem:[#allocation15_spill] sm:$0xff] %v4938_v50  ;;  %v4940_v52 = vld [vmem:[#allocation3 + $0x14] sm:$0xff]  ;;  %v625_v41 = vld [vmem:[#allocation3 + $0x22] sm:$0xff]  ;;  %v4965_v3 = vld [vmem:[#allocation3 + $0x2a] sm:$0xff]  ;;  %s5628_s14 = sld [smem:[#allocation4 + $0xa9]] }
 0x123   :  { %9417 = vst [vmem:[#allocation16_spill] sm:$0xff] %v4940_v52  ;;  %v4942_v6 = vld [vmem:[#allocation3 + $0x15] sm:$0xff]  ;;  %v475_v33 = vadd.f32 %v4753_v62, %v461_v45  ;;  %v4967_v59 = vld [vmem:[#allocation3 + $0x2b] sm:$0xff]  ;;  %s5643_s15 = sld [smem:[#allocation4 + $0xb8]] }
 0x124   :  { %9418 = vst [vmem:[#allocation17_spill] sm:$0xff] %v4942_v6  ;;  %v4944_v18 = vld [vmem:[#allocation3 + $0x16] sm:$0xff]  ;;  %v4969_v62 = vld [vmem:[#allocation3 + $0xc] sm:$0xff]  ;;  %v653_v60 = vld [vmem:[#allocation3 + $0x24] sm:$0xff]  ;;  %v632_v6 = vadd.f32 %v628_v20, %v618_v16  ;;  %2114 = vrot.lane.b32.xlu1 %v4822_v23, %s4221_s12  ;;  %2116 = vrot.lane.b32.xlu0 %v2097_v27, %s4221_s12  ;;  %v630_v27 = vmul.f32 %v4870_v24, %v625_v41  ;;  %s5649_s16 = sld [smem:[#allocation4 + $0xc7]] }
 0x125   :  { %9419 = vst [vmem:[#allocation18_spill] sm:$0xff] %v4944_v18  ;;  %v4961_v18 = vld [vmem:[#allocation3 + $0x28] sm:$0xff]  ;;  %v489_v2 = vadd.f32 %v4764_v57, %v475_v33  ;;  %v643_v57 = vmul.f32 %v4873_v54, %v4922_v15  ;;  %v656_v33 = vmul.f32 %v4880_v0, %v4847_v14  ;;  %v670_v14 = vmul.f32 %v4883_v28, %v4849_v47 }
 0x126   :  { %847 = vst.msk [vmem:[#allocation3 + $0x18] sm:$0x3f] %vm72_vm2, %v827_v31  ;;  %v4971_v13 = vld [vmem:[#allocation3 + $0x2c] sm:$0xff]  ;;  %v684_v47 = vmul.f32 %v4893_v44, %v4851_v49 }
 0x127   :  { %9420 = vst [vmem:[#allocation19_spill] sm:$0xff] %v4956_v53  ;;  %v4973_v45 = vld [vmem:[#allocation3 + $0xd] sm:$0xff]  ;;  %v4975_v30 = vld [vmem:[#allocation3 + $0x25] sm:$0xff]  ;;  %v642_v53 = vmul.f32 %v4873_v54, %v4832_v22 }
 0x128   :  { %9421 = vst [vmem:[#allocation20_spill] sm:$0xff] %v4959_v21  ;;  %v4977_v31 = vld [vmem:[#allocation3 + $0x2d] sm:$0xff]  ;;  %v619_v21 = vadd.f32 %v615_v51, %v605_v46  ;;  %v4993_v46 = vstv %s4885_s18  ;;  %2118 = vrot.lane.b32.xlu2 %v4629_v5, %s4221_s12  ;;  %s5712_s18 = sld [smem:[#allocation4 + $0xd6]] }
 0x129   :  { %9422 = vst [vmem:[#allocation21_spill] sm:$0xff] %v4971_v13  ;;  %v4983_v50 = vld [vmem:[#allocation3 + $0xe] sm:$0xff]  ;;  %v4985_v52 = vld [vmem:[#allocation3 + $0x26] sm:$0xff]  ;;  %v544_v13 = vadd.f32 %v4815_v19, %v530_v36  ;;  %v646_v19 = vadd.f32 %v642_v53, %v632_v6  ;;  %v503_v36 = vadd.f32 %v4775_v58, %v489_v2  ;;  %v671_v53 = vmul.f32 %v4883_v28, %v4973_v45 }
 0x12a   :  { %v694_v9 = vld [vmem:[#allocation3 + $0xf] sm:$0xff]  ;;  %9423 = vst [vmem:[#allocation22_spill] sm:$0xff] %v4990_v40  ;;  %v4997_v16 = vld [vmem:[#allocation3 + $0x27] sm:$0xff]  ;;  %v633_v22 = vadd.f32 %v629_v48, %v619_v21  ;;  %v5012_v40 = vstv %s4908_s19  ;;  %v657_v21 = vmul.f32 %v4880_v0, %v4969_v62  ;;  %s5734_s19 = sld [smem:[#allocation4 + $0x5]] }
 0x12b   :  { %9424 = vst [vmem:[#allocation23_spill] sm:$0xff] %v4993_v46  ;;  %v4995_v51 = vld [vmem:[#allocation3 + $0x2e] sm:$0xff]  ;;  %v606_v46 = vadd.f32 %v4828_v4, %v544_v13  ;;  %v660_v6 = vadd.f32 %v656_v33, %v646_v19  ;;  %v517_v58 = vadd.f32 %v4791_v1, %v503_v36  ;;  %v5025_v4 = vstv %s4913_s0  ;;  %s5757_s0 = sld [smem:[#allocation4 + $0x14]] }
 0x12c   :  { %v4999_v20 = vld [vmem:[#allocation3 + $0x2f] sm:$0xff]  ;;  %845 = vst.msk [vmem:[#allocation3 + $0x8] sm:$0xff] %vm68_vm4, %v823_v42  ;;  %v616_v42 = vmul.f32 %v4867_v8, %v611_v56  ;;  %v647_v48 = vadd.f32 %v643_v57, %v633_v22  ;;  %v644_v22 = vmul.f32 %v4873_v54, %v639_v25  ;;  %v825_v57 = vpop.permute.xlu0 %824  ;;  %v685_v19 = vmul.f32 %v4893_v44, %v4983_v50 }
 0x12d   :  { %9425 = vst [vmem:[#allocation24_spill] sm:$0xff] %v4999_v20  ;;  %v829_v20 = vpop.permute.xlu1 %828  ;;  %v674_v13 = vadd.f32 %v670_v14, %v660_v6  ;;  %v531_v1 = vadd.f32 %v4807_v11, %v517_v58  ;;  %v698_v36 = vmul.f32 %v4896_v38, %v4860_v55  ;;  %v603_v11 = vmul.f32 %v4695_v17, %v4961_v18 }
 0x12e   :  { %849 = vst.msk [vmem:[#allocation3 + $0x28] sm:$0xff] %vm68_vm4, %v4837_v10  ;;  %v620_v2 = vadd.f32 %v616_v42, %v606_v46  ;;  %v661_v56 = vadd.f32 %v657_v21, %v647_v48  ;;  %v5035_v10 = vstv %s4946_s20  ;;  %v708_v46 = vld [vmem:[#allocation3 + $0x10] sm:$0xff]  ;;  %v658_v25 = vmul.f32 %v4880_v0, %v653_v60  ;;  %2370 = vrot.lane.b32.xlu0 %v4732_v34, %s4222_s1  ;;  %s5765_s20 = sld [smem:[#allocation4 + $0x23]] }
 0x12f   :  { %848 = vst.msk [vmem:[#allocation3 + $0x20] sm:$0xff] %vm68_vm4, %v829_v20  ;;  %v688_v33 = vadd.f32 %v684_v47, %v674_v13  ;;  %v545_v49 = vadd.f32 %v4819_v29, %v531_v1  ;;  %v699_v48 = vmul.f32 %v4896_v38, %v694_v9  ;;  %v712_v6 = vmul.f32 %v4840_v37, %v4887_v39  ;;  %v5071_v1 = vld [vmem:[#allocation3 + $0x30] sm:$0xff] }
 0x130   :  { %v634_v5 = vadd.f32 %v630_v27, %v620_v2  ;;  %v675_v41 = vadd.f32 %v671_v53, %v661_v56  ;;  %846 = vst.msk [vmem:[#allocation3 + $0x10] sm:$0xff] %vm68_vm4, %v825_v57  ;;  %v617_v55 = vmul.f32 %v4867_v8, %v4963_v32  ;;  %v672_v29 = vmul.f32 %v4883_v28, %v4975_v30  ;;  %v5054_v2 = vpop.permute.xlu2 %1080  ;;  %v2101_v27 = vld [vmem:[#allocation2 + $0x38] sm:$0x3f] }
 0x131   :  { %v702_v21 = vadd.f32 %v698_v36, %v688_v33  ;;  %v607_v14 = vadd.f32 %v603_v11, %v545_v49  ;;  %v713_v9 = vmul.f32 %v4840_v37, %v708_v46  ;;  %v726_v39 = vmul.f32 %v4903_v61, %v4917_v12  ;;  %v5061_v56 = vld [vmem:[#allocation3 + $0x31] sm:$0xff]  ;;  %2124 = vrot.lane.b32.xlu1 %v2101_v27, %s4221_s12 }
 0x132   :  { %v648_v20 = vadd.f32 %v644_v22, %v634_v5  ;;  %v689_v42 = vadd.f32 %v685_v19, %v675_v41  ;;  %v5063_v8 = vld [vmem:[#allocation3 + $0x32] sm:$0xff]  ;;  %v631_v13 = vmul.f32 %v4870_v24, %v4965_v3  ;;  %v686_v34 = vmul.f32 %v4893_v44, %v4985_v52  ;;  %2122 = vrot.lane.b32.xlu2 %v4687_v35, %s4221_s12  ;;  %s5578_s12 = sld [smem:[#allocation4 + $0x8b]] }
 0x133   :  { %v716_v60 = vadd.f32 %v712_v6, %v702_v21  ;;  %v5065_v53 = vld [vmem:[#allocation3 + $0x33] sm:$0xff]  ;;  %v621_v30 = vadd.f32 %v617_v55, %v607_v14  ;;  %v727_v57 = vmul.f32 %v4903_v61, %v4926_v63  ;;  %v740_v24 = vmul.f32 %v4906_v26, %v4920_v43  ;;  %v5090_v49 = vld [vmem:[#allocation3 + $0x8] sm:$0xff] }
 0x134   :  { %v662_v58 = vadd.f32 %v658_v25, %v648_v20  ;;  %v703_v17 = vadd.f32 %v699_v48, %v689_v42  ;;  %v5074_v12 = vld [vmem:[#allocation3 + $0x34] sm:$0xff]  ;;  %v645_v19 = vmul.f32 %v4873_v54, %v4967_v59  ;;  %v700_v36 = vmul.f32 %v4896_v38, %v4997_v16  ;;  %v5092_v11 = vld [vmem:[#allocation3 + $0x1] sm:$0xff]  ;;  %v835_v48 = vpop.permute.xlu0 %834 }
 0x135   :  { %v5076_v5 = vld [vmem:[#allocation3 + $0x35] sm:$0xff]  ;;  %v730_v41 = vadd.f32 %v726_v39, %v716_v60  ;;  %v635_v52 = vadd.f32 %v631_v13, %v621_v30  ;;  %v5094_v63 = vld [vmem:[#allocation3 + $0x2] sm:$0xff]  ;;  %v833_v54 = vpop.permute.xlu1 %832  ;;  %v741_v6 = vmul.f32 %v4906_v26, %v4928_v7  ;;  %v714_v7 = vmul.f32 %v4840_v37, %v4961_v18 }
 0x136   :  { %v676_v47 = vadd.f32 %v672_v29, %v662_v58  ;;  %v5078_v22 = vld [vmem:[#allocation3 + $0x36] sm:$0xff]  ;;  %v717_v46 = vadd.f32 %v713_v9, %v703_v17  ;;  %v5096_v20 = vld [vmem:[#allocation3 + $0x3] sm:$0xff]  ;;  %2372 = vrot.lane.b32.xlu0 %v4822_v23, %s4222_s1  ;;  %v742_v23 = vmul.f32 %v4906_v26, %v4965_v3 }
 0x137   :  { %v5098_v43 = vld [vmem:[#allocation3 + $0x4] sm:$0xff]  ;;  %v744_v14 = vadd.f32 %v740_v24, %v730_v41  ;;  %v9426_v55 = vld [vmem:[#allocation12_spill] sm:$0xff]  ;;  %850 = vst.msk [vmem:[#allocation3 + $0x30] sm:$0xff] %vm68_vm4, %v833_v54  ;;  %v649_v60 = vadd.f32 %v645_v19, %v635_v52  ;;  %v9427_v39 = vld [vmem:[#allocation21_spill] sm:$0xff] }
 0x138   :  { %v690_v33 = vadd.f32 %v686_v34, %v676_v47  ;;  %v5100_v25 = vld [vmem:[#allocation3 + $0x5] sm:$0xff]  ;;  %v731_v16 = vadd.f32 %v727_v57, %v717_v46  ;;  %v754_v58 = vmul.f32 %v9426_v55, %v4922_v15  ;;  %v659_v27 = vmul.f32 %v4880_v0, %v9427_v39  ;;  %851 = vst.msk [vmem:[#allocation3 + $0x38] sm:$0x3f] %vm72_vm2, %v835_v48  ;;  %v5126_v13 = vld [vmem:[#allocation3 + $0xd] sm:$0xff]  ;;  %v9428_v46 = vld [vmem:[#allocation13_spill] sm:$0xff] }
 0x139   :  { %v5102_v35 = vld [vmem:[#allocation3 + $0x6] sm:$0xff]  ;;  %v5128_v15 = vld [vmem:[#allocation3 + $0xe] sm:$0xff]  ;;  %v755_v57 = vmul.f32 %v9426_v55, %v9428_v46  ;;  %v728_v48 = vmul.f32 %v4903_v61, %v4963_v32  ;;  %v756_v3 = vmul.f32 %v9426_v55, %v4967_v59 }
 0x13a   :  { %v5104_v42 = vld [vmem:[#allocation3 + $0x7] sm:$0xff]  ;;  %v704_v30 = vadd.f32 %v700_v36, %v690_v33  ;;  %v5130_v47 = vld [vmem:[#allocation3 + $0xf] sm:$0xff]  ;;  %v745_v34 = vadd.f32 %v741_v6, %v731_v16  ;;  %v758_v41 = vadd.f32 %v754_v58, %v744_v14  ;;  %v663_v33 = vadd.f32 %v659_v27, %v649_v60 }
 0x13b   :  { %v5106_v21 = vld [vmem:[#allocation3 + $0x9] sm:$0xff]  ;;  %v9429_v0 = vld [vmem:[#allocation14_spill] sm:$0xff]  ;;  %v5140_v18 = vld [vmem:[#allocation3 + $0x11] sm:$0xff]  ;;  %v673_v36 = vmul.f32 %v4883_v28, %v4977_v31 }
 0x13c   :  { %v5115_v29 = vld [vmem:[#allocation3 + $0xa] sm:$0xff]  ;;  %v768_v24 = vmul.f32 %v9429_v0, %v4969_v62  ;;  %v5142_v19 = vld [vmem:[#allocation3 + $0x12] sm:$0xff]  ;;  %v718_v54 = vadd.f32 %v714_v7, %v704_v30  ;;  %v759_v14 = vadd.f32 %v755_v57, %v745_v34  ;;  %v5164_v32 = vld [vmem:[#allocation2 + $0x20] sm:$0xff]  ;;  %v1083_v34 = vpop.permute.xlu2 %1082 }
 0x13d   :  { %v5117_v17 = vld [vmem:[#allocation3 + $0xb] sm:$0xff]  ;;  %v5150_v16 = vld [vmem:[#allocation3 + $0x13] sm:$0xff]  ;;  %v853_v7 = vld [vmem:[#allocation3] sm:$0xff]  ;;  %v677_v46 = vadd.f32 %v673_v36, %v663_v33  ;;  %2376 = vrot.lane.b32.xlu1 %v5164_v32, %s4222_s1 }
 0x13e   :  { %v5119_v9 = vld [vmem:[#allocation3 + $0xc] sm:$0xff]  ;;  %v5152_v62 = vld [vmem:[#allocation3 + $0x14] sm:$0xff]  ;;  %v772_v60 = vadd.f32 %v768_v24, %v758_v41 }
 0x13f   :  { %v5138_v52 = vld [vmem:[#allocation3 + $0x10] sm:$0xff]  ;;  %1103 = vst.msk [vmem:[#allocation3 + $0x8] sm:$0xff] %vm68_vm4, %v5054_v2  ;;  %v9433_v28 = vld [vmem:[#allocation15_spill] sm:$0xff] }
 0x140   :  { %9430 = vst [vmem:[#allocation12_spill] sm:$0xff] %v5152_v62  ;;  %v5154_v6 = vld [vmem:[#allocation3 + $0x15] sm:$0xff]  ;;  %v782_v27 = vmul.f32 %v9433_v28, %v4973_v45  ;;  %v732_v62 = vadd.f32 %v728_v48, %v718_v54 }
 0x141   :  { %9431 = vst [vmem:[#allocation21_spill] sm:$0xff] %v5154_v6  ;;  %v9432_v58 = vld [vmem:[#allocation16_spill] sm:$0xff]  ;;  %v687_v6 = vmul.f32 %v4893_v44, %v4995_v51  ;;  %v9437_v54 = vld [vmem:[#allocation17_spill] sm:$0xff] }
 0x142   :  { %v769_v2 = vmul.f32 %v9429_v0, %v9432_v58  ;;  %v5162_v30 = vld [vmem:[#allocation3 + $0x16] sm:$0xff]  ;;  %v786_v24 = vadd.f32 %v782_v27, %v772_v60  ;;  %v9436_v58 = vld [vmem:[#allocation19_spill] sm:$0xff]  ;;  %v746_v36 = vadd.f32 %v742_v23, %v732_v62  ;;  %v783_v48 = vmul.f32 %v9433_v28, %v9437_v54 }
 0x143   :  { %9434 = vst [vmem:[#allocation13_spill] sm:$0xff] %v5162_v30  ;;  %v9435_v57 = vld [vmem:[#allocation24_spill] sm:$0xff]  ;;  %v796_v33 = vmul.f32 %v9436_v58, %v4983_v50  ;;  %v691_v44 = vadd.f32 %v687_v6, %v677_v46  ;;  %v9438_v30 = vld [vmem:[#allocation10_spill] sm:$0xff]  ;;  %v715_v50 = vmul.f32 %v4840_v37, %v5071_v1  ;;  %v770_v62 = vmul.f32 %v9429_v0, %v9427_v39 }
 0x144   :  { %v701_v45 = vmul.f32 %v4896_v38, %v9435_v57  ;;  %v773_v41 = vadd.f32 %v769_v2, %v759_v14  ;;  %1104 = vst.msk [vmem:[#allocation3 + $0x10] sm:$0xff] %vm68_vm4, %v1083_v34  ;;  %2368 = vrot.lane.b32.xlu2 %v9438_v30, %s4222_s1  ;;  %v9439_v38 = vld [vmem:[#allocation11_spill] sm:$0xff]  ;;  %v5185_v2 = vstv %s5108_s21  ;;  %v760_v6 = vadd.f32 %v756_v3, %v746_v36  ;;  %v9441_v1 = vld [vmem:[#allocation18_spill] sm:$0xff]  ;;  %s5821_s21 = sld [smem:[#allocation4 + $0x41]] }
 0x145   :  { %v858_v14 = vmul.f32 %v9439_v38, %v853_v7  ;;  %v800_v60 = vadd.f32 %v796_v33, %v786_v24  ;;  %v5192_v46 = vstv %s5132_s22  ;;  %v729_v23 = vmul.f32 %v4903_v61, %v5061_v56  ;;  %v9440_v7 = vld [vmem:[#allocation20_spill] sm:$0xff]  ;;  %v855_v24 = vld [vmem:[#allocation3 + $0x20] sm:$0xff]  ;;  %s5865_s22 = sld [smem:[#allocation4 + $0x7d]] }
 0x146   :  { %v705_v27 = vadd.f32 %v701_v45, %v691_v44  ;;  %v787_v59 = vadd.f32 %v783_v48, %v773_v41  ;;  %v872_v34 = vmul.f32 %v9440_v7, %v5092_v11  ;;  %v774_v54 = vadd.f32 %v770_v62, %v760_v6  ;;  %v9442_v56 = vld [vmem:[#allocation22_spill] sm:$0xff]  ;;  %v5208_v11 = vld [vmem:[#allocation2 + $0x30] sm:$0xff]  ;;  %v5212_v48 = vld [vmem:[#allocation3 + $0x28] sm:$0xff] }
 0x147   :  { %v862_v30 = vadd.f32 %v858_v14, %v800_v60  ;;  %v784_v37 = vmul.f32 %v9433_v28, %v4977_v31  ;;  %v797_v45 = vmul.f32 %v9436_v58, %v9441_v1  ;;  %v743_v39 = vmul.f32 %v4906_v26, %v5063_v8  ;;  %9443 = vst [vmem:[#allocation14_spill] sm:$0xff] %v5208_v11  ;;  %v1079_v14 = vpop.permute.xlu1 %1078  ;;  %v939_v1 = vld [vmem:[#allocation3 + $0x26] sm:$0xff] }
 0x148   :  { %v719_v57 = vadd.f32 %v715_v50, %v705_v27  ;;  %v757_v41 = vmul.f32 %v9426_v55, %v5065_v53  ;;  %v886_v33 = vmul.f32 %v9442_v56, %v5094_v63  ;;  %v798_v31 = vmul.f32 %v9436_v58, %v4995_v51  ;;  %2380 = vrot.lane.b32.xlu1 %v5208_v11, %s4222_s1  ;;  %v869_v53 = vld [vmem:[#allocation3 + $0x21] sm:$0xff] }
 0x149   :  { %v876_v61 = vadd.f32 %v872_v34, %v862_v30  ;;  %v788_v36 = vadd.f32 %v784_v37, %v774_v54  ;;  %v801_v3 = vadd.f32 %v797_v45, %v787_v59  ;;  %v771_v26 = vmul.f32 %v9429_v0, %v5074_v12  ;;  %v9444_v55 = vld [vmem:[#allocation23_spill] sm:$0xff]  ;;  %1102 = vst.msk [vmem:[#allocation3] sm:$0xff] %vm68_vm4, %v1079_v14  ;;  %v5260_v14 = vld [vmem:[#allocation3 + $0x32] sm:$0xff] }
 0x14a   :  { %v733_v44 = vadd.f32 %v729_v23, %v719_v57  ;;  %v785_v8 = vmul.f32 %v9433_v28, %v5076_v5  ;;  %v900_v50 = vmul.f32 %v9444_v55, %v5096_v20  ;;  %v5223_v51 = vld [vmem:[#allocation2 + $0x28] sm:$0xff]  ;;  %v859_v6 = vmul.f32 %v9439_v38, %v5090_v49 }
 0x14b   :  { %v890_v63 = vadd.f32 %v886_v33, %v876_v61  ;;  %v802_v27 = vadd.f32 %v798_v31, %v788_v36  ;;  %v860_v62 = vmul.f32 %v9439_v38, %v855_v24  ;;  %v883_v12 = vld [vmem:[#allocation3 + $0x22] sm:$0xff]  ;;  %v799_v5 = vmul.f32 %v9436_v58, %v5078_v22 }
 0x14c   :  { %v747_v60 = vadd.f32 %v743_v39, %v733_v44  ;;  %v897_v0 = vld [vmem:[#allocation3 + $0x23] sm:$0xff]  ;;  %2378 = vrot.lane.b32.xlu2 %v5223_v51, %s4222_s1  ;;  %v861_v20 = vmul.f32 %v9439_v38, %v5212_v48  ;;  %v914_v23 = vmul.f32 %v5012_v40, %v5098_v43  ;;  %v863_v34 = vadd.f32 %v859_v6, %v801_v3  ;;  %v5258_v3 = vld [vmem:[#allocation3 + $0x31] sm:$0xff] }
 0x14d   :  { %v904_v28 = vadd.f32 %v900_v50, %v890_v63  ;;  %v911_v59 = vld [vmem:[#allocation3 + $0x24] sm:$0xff]  ;;  %v864_v57 = vadd.f32 %v860_v62, %v802_v27  ;;  %v874_v54 = vmul.f32 %v9440_v7, %v869_v53  ;;  %v888_v45 = vmul.f32 %v9442_v56, %v883_v12  ;;  %v1087_v53 = vpop.permute.xlu0 %1086  ;;  %v1093_v63 = vpop.permute.xlu2 %1092  ;;  %v5266_v62 = vld [vmem:[#allocation3 + $0x34] sm:$0xff] }
 0x14e   :  { %v761_v30 = vadd.f32 %v757_v41, %v747_v60  ;;  %v925_v37 = vld [vmem:[#allocation3 + $0x25] sm:$0xff]  ;;  %v902_v22 = vmul.f32 %v9444_v55, %v897_v0  ;;  %v928_v38 = vmul.f32 %v5025_v4, %v5100_v25  ;;  %v916_v41 = vmul.f32 %v5012_v40, %v911_v59  ;;  %v5270_v12 = vld [vmem:[#allocation3 + $0x36] sm:$0xff] }
 0x14f   :  { %v918_v58 = vadd.f32 %v914_v23, %v904_v28  ;;  %v878_v39 = vadd.f32 %v874_v54, %v864_v57  ;;  %v953_v24 = vld [vmem:[#allocation3 + $0x27] sm:$0xff]  ;;  %v873_v33 = vmul.f32 %v9440_v7, %v5106_v21  ;;  %v930_v44 = vmul.f32 %v5025_v4, %v925_v37 }
 0x150   :  { %v775_v43 = vadd.f32 %v771_v26, %v761_v30  ;;  %v5248_v61 = vld [vmem:[#allocation3 + $0x29] sm:$0xff]  ;;  %v942_v31 = vmul.f32 %v5035_v10, %v5102_v35  ;;  %v944_v25 = vmul.f32 %v5035_v10, %v939_v1  ;;  %v5262_v26 = vld [vmem:[#allocation3 + $0x33] sm:$0xff]  ;;  %v887_v6 = vmul.f32 %v9442_v56, %v5115_v29  ;;  %1106 = vst.msk [vmem:[#allocation3 + $0x20] sm:$0xff] %vm68_vm4, %v1087_v53  ;;  %v5279_v23 = vld [vmem:[#allocation2] sm:$0xff] }
 0x151   :  { %v932_v36 = vadd.f32 %v928_v38, %v918_v58  ;;  %v892_v60 = vadd.f32 %v888_v45, %v878_v39  ;;  %v877_v27 = vadd.f32 %v873_v33, %v863_v34  ;;  %v5268_v35 = vld [vmem:[#allocation3 + $0x35] sm:$0xff]  ;;  %v956_v28 = vmul.f32 %v5185_v2, %v5104_v42  ;;  %9445 = vst [vmem:[#allocation16_spill] sm:$0xff] %v5279_v23  ;;  %v5281_v57 = vld [vmem:[#allocation3 + $0x2a] sm:$0xff] }
 0x152   :  { %v789_v50 = vadd.f32 %v785_v8, %v775_v43  ;;  %v958_v8 = vmul.f32 %v5185_v2, %v953_v24  ;;  %v970_v59 = vmul.f32 %v5192_v46, %v5090_v49  ;;  %1109 = vst.msk [vmem:[#allocation3 + $0x38] sm:$0x3f] %vm72_vm2, %v1093_v63  ;;  %v901_v37 = vmul.f32 %v9444_v55, %v5117_v17  ;;  %v5297_v58 = vld [vmem:[#allocation3 + $0x2b] sm:$0xff]  ;;  %v2359_v39 = vld [vmem:[#allocation2 + $0x38] sm:$0x3f] }
 0x153   :  { %v946_v0 = vadd.f32 %v942_v31, %v932_v36  ;;  %v906_v34 = vadd.f32 %v902_v22, %v892_v60  ;;  %v891_v54 = vadd.f32 %v887_v6, %v877_v27  ;;  %2626 = vrot.lane.b32.xlu1 %v5279_v23, %s4223_s27  ;;  %v5288_v1 = vstv %s5228_s23  ;;  %2382 = vrot.lane.b32.xlu0 %v2359_v39, %s4222_s1  ;;  %v5320_v60 = vld [vmem:[#allocation3 + $0x2d] sm:$0xff]  ;;  %s5879_s23 = sld [smem:[#allocation4 + $0x50]] }
 0x154   :  { %v803_v30 = vadd.f32 %v799_v5, %v789_v50  ;;  %v5291_v49 = vstv %s5238_s24  ;;  %v875_v5 = vmul.f32 %v9440_v7, %v5248_v61  ;;  %v915_v43 = vmul.f32 %v5012_v40, %v5119_v9  ;;  %v5322_v27 = vld [vmem:[#allocation3 + $0x2e] sm:$0xff]  ;;  %s5884_s24 = sld [smem:[#allocation4 + $0x5f]] }
 0x155   :  { %v960_v42 = vadd.f32 %v956_v28, %v946_v0  ;;  %v920_v22 = vadd.f32 %v916_v41, %v906_v34  ;;  %v905_v38 = vadd.f32 %v901_v37, %v891_v54  ;;  %v5302_v33 = vstv %s5245_s25  ;;  %v5309_v41 = vld [vmem:[#allocation3 + $0x2c] sm:$0xff]  ;;  %v1089_v28 = vpop.permute.xlu1 %1088  ;;  %s5900_s25 = sld [smem:[#allocation4 + $0x6e]] }
 0x156   :  { %v865_v45 = vadd.f32 %v861_v20, %v803_v30  ;;  %v889_v36 = vmul.f32 %v9442_v56, %v5281_v57  ;;  %v929_v31 = vmul.f32 %v5025_v4, %v5126_v13  ;;  %v984_v63 = vmul.f32 %v5288_v1, %v5106_v21  ;;  %v954_v6 = vld [vmem:[#allocation3 + $0x2f] sm:$0xff]  ;;  %v1091_v21 = vpop.permute.xlu0 %1090 }
 0x157   :  { %v974_v24 = vadd.f32 %v970_v59, %v960_v42  ;;  %v934_v7 = vadd.f32 %v930_v44, %v920_v22  ;;  %v919_v53 = vadd.f32 %v915_v43, %v905_v38  ;;  %v5314_v50 = vstv %s5256_s26  ;;  %v968_v54 = vld [vmem:[#allocation3 + $0x30] sm:$0xff]  ;;  %1107 = vst.msk [vmem:[#allocation3 + $0x28] sm:$0xff] %vm68_vm4, %v1089_v28  ;;  %v5376_v28 = vld [vmem:[#allocation3 + $0x3] sm:$0xff]  ;;  %s4226_s26 = smov 115  }
 0x158   :  { %v879_v20 = vadd.f32 %v875_v5, %v865_v45  ;;  %v903_v56 = vmul.f32 %v9444_v55, %v5297_v58  ;;  %v943_v44 = vmul.f32 %v5035_v10, %v5128_v15  ;;  %v998_v0 = vmul.f32 %v5291_v49, %v5115_v29  ;;  %v5329_v55 = vpop.permute.xlu2 %1344  ;;  %1108 = vst.msk [vmem:[#allocation3 + $0x30] sm:$0xff] %vm68_vm4, %v1091_v21 }
 0x159   :  { %v948_v59 = vadd.f32 %v944_v25, %v934_v7  ;;  %v933_v34 = vadd.f32 %v929_v31, %v919_v53  ;;  %v988_v37 = vadd.f32 %v984_v63, %v974_v24  ;;  %v972_v42 = vmul.f32 %v5192_v46, %v5212_v48  ;;  %v2355_v31 = vld [vmem:[#allocation2 + $0x18] sm:$0x3f]  ;;  %v5361_v63 = vld [vmem:[#allocation3] sm:$0xff] }
 0x15a   :  { %v893_v30 = vadd.f32 %v889_v36, %v879_v20  ;;  %v917_v5 = vmul.f32 %v5012_v40, %v5309_v41  ;;  %v957_v29 = vmul.f32 %v5185_v2, %v5130_v47  ;;  %v1012_v25 = vmul.f32 %v5302_v33, %v5117_v17  ;;  %2374 = vrot.lane.b32.xlu2 %v2355_v31, %s4222_s1  ;;  %s5801_s1 = sld [smem:[#allocation4 + $0x32]] }
 0x15b   :  { %v962_v45 = vadd.f32 %v958_v8, %v948_v59  ;;  %v947_v38 = vadd.f32 %v943_v44, %v933_v34  ;;  %v1002_v43 = vadd.f32 %v998_v0, %v988_v37  ;;  %2636 = vrot.lane.b32.xlu1 %v5223_v51, %s4223_s27  ;;  %v5343_v39 = vstv %s5293_s28  ;;  %2634 = vrot.lane.b32.xlu0 %v5164_v32, %s4223_s27  ;;  %v5374_v0 = vld [vmem:[#allocation3 + $0x2] sm:$0xff]  ;;  %s5989_s28 = sld [smem:[#allocation4 + $0x9b]] }
 0x15c   :  { %v907_v22 = vadd.f32 %v903_v56, %v893_v30  ;;  %v931_v40 = vmul.f32 %v5025_v4, %v5320_v60  ;;  %v971_v47 = vmul.f32 %v5192_v46, %v5138_v52  ;;  %v1026_v17 = vmul.f32 %v5314_v50, %v5119_v9  ;;  %v5363_v56 = vld [vmem:[#allocation3 + $0x1] sm:$0xff] }
 0x15d   :  { %v976_v48 = vadd.f32 %v972_v42, %v962_v45  ;;  %v961_v24 = vadd.f32 %v957_v29, %v947_v38  ;;  %v1016_v36 = vadd.f32 %v1012_v25, %v1002_v43  ;;  %v945_v7 = vmul.f32 %v5035_v10, %v5322_v27  ;;  %v1085_v21 = vpop.permute.xlu1 %1084 }
 0x15e   :  { %v921_v8 = vadd.f32 %v917_v5, %v907_v22  ;;  %v985_v20 = vmul.f32 %v5288_v1, %v5140_v18  ;;  %v986_v9 = vmul.f32 %v5288_v1, %v5248_v61  ;;  %v5367_v10 = vstv %s5316_s29  ;;  %v5378_v61 = vld [vmem:[#allocation3 + $0x4] sm:$0xff]  ;;  %v1337_v59 = vpop.permute.xlu0 %1336  ;;  %1105 = vst.msk [vmem:[#allocation3 + $0x18] sm:$0x3f] %vm72_vm2, %v1085_v21  ;;  %s6048_s29 = sld [smem:[#allocation4 + $0xaa]] }
 0x15f   :  { %v975_v52 = vadd.f32 %v971_v47, %v961_v24  ;;  %v1030_v53 = vadd.f32 %v1026_v17, %v1016_v36  ;;  %v959_v18 = vmul.f32 %v5185_v2, %v954_v6  ;;  %v1040_v44 = vmul.f32 %v5343_v39, %v5126_v13  ;;  %v5382_v2 = vld [vmem:[#allocation3 + $0x5] sm:$0xff]  ;;  %v5407_v17 = vld [vmem:[#allocation3 + $0x2e] sm:$0xff]  ;;  %v2613_v36 = vld [vmem:[#allocation2 + $0x18] sm:$0x3f] }
 0x160   :  { %v935_v4 = vadd.f32 %v931_v40, %v921_v8  ;;  %v990_v37 = vadd.f32 %v986_v9, %v976_v48  ;;  %v999_v42 = vmul.f32 %v5291_v49, %v5142_v19  ;;  %v5384_v6 = vld [vmem:[#allocation3 + $0x6] sm:$0xff]  ;;  %v1349_v5 = vpop.permute.xlu2 %1348  ;;  %v973_v29 = vmul.f32 %v5192_v46, %v968_v54  ;;  %v5409_v48 = vld [vmem:[#allocation3 + $0x2f] sm:$0xff] }
 0x161   :  { %v989_v34 = vadd.f32 %v985_v20, %v975_v52  ;;  %v5386_v13 = vld [vmem:[#allocation3 + $0x7] sm:$0xff]  ;;  %v1044_v25 = vadd.f32 %v1040_v44, %v1030_v53  ;;  %v1000_v22 = vmul.f32 %v5291_v49, %v5281_v57  ;;  %v1013_v19 = vmul.f32 %v5302_v33, %v5150_v16  ;;  %9446 = vst [vmem:[#allocation15_spill] sm:$0xff] %v5409_v48  ;;  %v5411_v57 = vld [vmem:[#allocation3 + $0x30] sm:$0xff] }
 0x162   :  { %v949_v30 = vadd.f32 %v945_v7, %v935_v4  ;;  %1360 = vst.msk [vmem:[#allocation3] sm:$0xff] %vm68_vm4, %v1337_v59  ;;  %v5397_v43 = vld [vmem:[#allocation3 + $0x29] sm:$0xff]  ;;  %v987_v16 = vmul.f32 %v5288_v1, %v5258_v3  ;;  %v1054_v8 = vmul.f32 %v5367_v10, %v5128_v15  ;;  %v5421_v31 = vld [vmem:[#allocation3 + $0x31] sm:$0xff]  ;;  %v1014_v44 = vmul.f32 %v5302_v33, %v5297_v58  ;;  %v5494_v48 = vld [vmem:[#allocation3 + $0x20] sm:$0xff] }
 0x163   :  { %v1003_v38 = vadd.f32 %v999_v42, %v989_v34  ;;  %v5399_v40 = vld [vmem:[#allocation3 + $0x2a] sm:$0xff]  ;;  %9447 = vst [vmem:[#allocation24_spill] sm:$0xff] %v5411_v57  ;;  %v5423_v7 = vld [vmem:[#allocation3 + $0x32] sm:$0xff]  ;;  %v1004_v4 = vadd.f32 %v1000_v22, %v990_v37  ;;  %2632 = vrot.lane.b32.xlu1 %v2613_v36, %s4223_s27  ;;  %2638 = vrot.lane.b32.xlu0 %v5208_v11, %s4223_s27  ;;  %v5469_v36 = vld [vmem:[#allocation3 + $0x22] sm:$0xff] }
 0x164   :  { %v963_v45 = vadd.f32 %v959_v18, %v949_v30  ;;  %v5401_v47 = vld [vmem:[#allocation3 + $0x2b] sm:$0xff]  ;;  %9449 = vst [vmem:[#allocation17_spill] sm:$0xff] %v5421_v31  ;;  %v5428_v3 = vld [vmem:[#allocation3 + $0x33] sm:$0xff]  ;;  %v1001_v18 = vmul.f32 %v5291_v49, %v5260_v14  ;;  %v1058_v21 = vadd.f32 %v1054_v8, %v1044_v25  ;;  %v5455_v14 = vstv %s5357_s30  ;;  %v5467_v8 = vld [vmem:[#allocation3 + $0x21] sm:$0xff]  ;;  %s6078_s30 = sld [smem:[#allocation4 + $0xb9]] }
 0x165   :  { %v5403_v46 = vld [vmem:[#allocation3 + $0x2c] sm:$0xff]  ;;  %9450 = vst [vmem:[#allocation10_spill] sm:$0xff] %v5423_v7  ;;  %v1017_v52 = vadd.f32 %v1013_v19, %v1003_v38  ;;  %v5430_v15 = vld [vmem:[#allocation3 + $0x34] sm:$0xff] }
 0x166   :  { %v5405_v54 = vld [vmem:[#allocation3 + $0x2d] sm:$0xff]  ;;  %v977_v20 = vadd.f32 %v973_v29, %v963_v45  ;;  %9452 = vst [vmem:[#allocation11_spill] sm:$0xff] %v5428_v3  ;;  %v5432_v1 = vld [vmem:[#allocation3 + $0x35] sm:$0xff]  ;;  %v1018_v3 = vadd.f32 %v1014_v44, %v1004_v4 }
 0x167   :  { %v5419_v24 = vld [vmem:[#allocation2 + $0x8] sm:$0xff]  ;;  %v9451_v9 = vld [vmem:[#allocation12_spill] sm:$0xff]  ;;  %9453 = vst [vmem:[#allocation20_spill] sm:$0xff] %v5430_v15  ;;  %v9456_v25 = vld [vmem:[#allocation21_spill] sm:$0xff] }
 0x168   :  { %9448 = vst [vmem:[#allocation19_spill] sm:$0xff] %v5419_v24  ;;  %v1027_v53 = vmul.f32 %v5314_v50, %v9451_v9  ;;  %v5438_v59 = vld [vmem:[#allocation3 + $0x8] sm:$0xff]  ;;  %v5452_v22 = vld [vmem:[#allocation3 + $0x36] sm:$0xff]  ;;  %v991_v49 = vadd.f32 %v987_v16, %v977_v20  ;;  %v1041_v38 = vmul.f32 %v5343_v39, %v9456_v25  ;;  %2628 = vrot.lane.b32.xlu2 %v5419_v24, %s4223_s27  ;;  %v1339_v9 = vpop.permute.xlu1 %1338  ;;  %v5487_v31 = vpop.permute.xlu2 %1594 }
 0x169   :  { %9454 = vst [vmem:[#allocation18_spill] sm:$0xff] %v5432_v1  ;;  %v5440_v30 = vld [vmem:[#allocation3 + $0x9] sm:$0xff]  ;;  %v9457_v16 = vld [vmem:[#allocation13_spill] sm:$0xff] }
 0x16a   :  { %v5442_v34 = vld [vmem:[#allocation3 + $0xa] sm:$0xff]  ;;  %9455 = vst [vmem:[#allocation22_spill] sm:$0xff] %v5452_v22  ;;  %v1031_v58 = vadd.f32 %v1027_v53, %v1017_v52  ;;  %v1055_v20 = vmul.f32 %v5367_v10, %v9457_v16  ;;  %v1116_v52 = vmul.f32 %v5455_v14, %v5361_v63  ;;  %v1347_v53 = vpop.permute.xlu0 %1346  ;;  %v1005_v15 = vadd.f32 %v1001_v18, %v991_v49 }
 0x16b   :  { %v5444_v37 = vld [vmem:[#allocation3 + $0xb] sm:$0xff]  ;;  %1366 = vst.msk [vmem:[#allocation3 + $0x30] sm:$0xff] %vm68_vm4, %v1349_v5  ;;  %v5478_v25 = vld [vmem:[#allocation3 + $0x23] sm:$0xff]  ;;  %v5485_v16 = vstv %s5372_s3  ;;  %v1015_v63 = vmul.f32 %v5302_v33, %v5262_v26  ;;  %v1028_v18 = vmul.f32 %v5314_v50, %v5309_v41  ;;  %v1117_v49 = vmul.f32 %v5455_v14, %v5438_v59  ;;  %2886 = vrot.lane.b32.xlu1 %v5419_v24, %s4224_s9  ;;  %s6098_s3 = sld [smem:[#allocation4 + $0xc8]] }
 0x16c   :  { %v5446_v42 = vld [vmem:[#allocation3 + $0xc] sm:$0xff]  ;;  %v5480_v22 = vld [vmem:[#allocation3 + $0x24] sm:$0xff]  ;;  %v1045_v7 = vadd.f32 %v1041_v38, %v1031_v58  ;;  %v1120_v5 = vadd.f32 %v1116_v52, %v1058_v21  ;;  %v1130_v57 = vmul.f32 %v5485_v16, %v5363_v56  ;;  %v5505_v58 = vstv %s5395_s4  ;;  %2884 = vrot.lane.b32.xlu0 %v5279_v23, %s4224_s9  ;;  %s6158_s4 = sld [smem:[#allocation4 + $0xd7]] }
 0x16d   :  { %v5448_v29 = vld [vmem:[#allocation3 + $0xd] sm:$0xff]  ;;  %v5482_v1 = vld [vmem:[#allocation3 + $0x25] sm:$0xff]  ;;  %v5512_v33 = vstv %s5417_s5  ;;  %v1144_v41 = vmul.f32 %v5505_v58, %v5374_v0  ;;  %v1032_v21 = vadd.f32 %v1028_v18, %v1018_v3  ;;  %v1042_v3 = vmul.f32 %v5343_v39, %v5320_v60  ;;  %s6168_s5 = sld [smem:[#allocation4 + $0x6]] }
 0x16e   :  { %v5450_v45 = vld [vmem:[#allocation3 + $0xe] sm:$0xff]  ;;  %v5496_v11 = vld [vmem:[#allocation3 + $0x26] sm:$0xff]  ;;  %v1059_v44 = vadd.f32 %v1055_v20, %v1045_v7  ;;  %v1134_v56 = vadd.f32 %v1130_v57, %v1120_v5  ;;  %v1019_v7 = vadd.f32 %v1015_v63, %v1005_v15  ;;  %v1131_v20 = vmul.f32 %v5485_v16, %v5440_v30 }
 0x16f   :  { %v5461_v19 = vld [vmem:[#allocation3 + $0xf] sm:$0xff]  ;;  %v5498_v4 = vld [vmem:[#allocation3 + $0x27] sm:$0xff]  ;;  %v1158_v0 = vmul.f32 %v5512_v33, %v5376_v28  ;;  %v1145_v63 = vmul.f32 %v5505_v58, %v5442_v34  ;;  %v5549_v5 = vstv %s5473_s7  ;;  %v1046_v23 = vadd.f32 %v1042_v3, %v1032_v21  ;;  %s6201_s7 = sld [smem:[#allocation4 + $0x24]] }
 0x170   :  { %1361 = vst.msk [vmem:[#allocation3 + $0x8] sm:$0xff] %vm68_vm4, %v1339_v9  ;;  %v5507_v26 = vld [vmem:[#allocation3 + $0x28] sm:$0xff]  ;;  %v1121_v38 = vadd.f32 %v1117_v49, %v1059_v44  ;;  %v1148_v57 = vadd.f32 %v1144_v41, %v1134_v56  ;;  %v5527_v52 = vld [vmem:[#allocation3 + $0x10] sm:$0xff]  ;;  %v5534_v9 = vstv %s5459_s6  ;;  %v1341_v41 = vpop.permute.xlu1 %1340  ;;  %s6188_s6 = sld [smem:[#allocation4 + $0x15]] }
 0x171   :  { %1364 = vst.msk [vmem:[#allocation3 + $0x20] sm:$0xff] %vm68_vm4, %v5329_v55  ;;  %v1029_v55 = vmul.f32 %v5314_v50, %v5266_v62  ;;  %v5529_v15 = vld [vmem:[#allocation2 + $0x10] sm:$0xff]  ;;  %v1172_v18 = vmul.f32 %v5534_v9, %v5378_v61  ;;  %v5566_v61 = vpop.permute.xlu2 %1604 }
 0x172   :  { %1365 = vst.msk [vmem:[#allocation3 + $0x28] sm:$0xff] %vm68_vm4, %v1347_v53  ;;  %v1135_v53 = vadd.f32 %v1131_v20, %v1121_v38  ;;  %v5540_v62 = vld [vmem:[#allocation3 + $0x11] sm:$0xff]  ;;  %v1162_v60 = vadd.f32 %v1158_v0, %v1148_v57  ;;  %2630 = vrot.lane.b32.xlu2 %v5529_v15, %s4223_s27  ;;  %v1343_v38 = vpop.permute.xlu0 %1342  ;;  %v1159_v57 = vmul.f32 %v5512_v33, %v5444_v37 }
 0x173   :  { %9458 = vst [vmem:[#allocation23_spill] sm:$0xff] %v5529_v15  ;;  %v5542_v50 = vld [vmem:[#allocation3 + $0x12] sm:$0xff]  ;;  %v1033_v20 = vadd.f32 %v1029_v55, %v1019_v7  ;;  %v1056_v7 = vmul.f32 %v5367_v10, %v5322_v27  ;;  %v5576_v55 = vstv %s5514_s8  ;;  %2888 = vrot.lane.b32.xlu1 %v5529_v15, %s4224_s9  ;;  %v1057_v27 = vmul.f32 %v5367_v10, %v5270_v12  ;;  %s4227_s8 = smov 114  }
 0x174   :  { %v5544_v28 = vld [vmem:[#allocation3 + $0x13] sm:$0xff]  ;;  %v1176_v0 = vadd.f32 %v1172_v18, %v1162_v60  ;;  %v1200_v60 = vmul.f32 %v5576_v55, %v5384_v6  ;;  %v1118_v18 = vmul.f32 %v5455_v14, %v5494_v48  ;;  %2894 = vrot.lane.b32.xlu0 %v5223_v51, %s4224_s9 }
 0x175   :  { %9459 = vst [vmem:[#allocation12_spill] sm:$0xff] %v5544_v28  ;;  %v5555_v44 = vld [vmem:[#allocation3 + $0x14] sm:$0xff]  ;;  %v1149_v28 = vadd.f32 %v1145_v63, %v1135_v53  ;;  %v1060_v63 = vadd.f32 %v1056_v7, %v1046_v23  ;;  %v5593_v23 = vstv %s5536_s10  ;;  %s6249_s10 = sld [smem:[#allocation4 + $0x42]] }
 0x176   :  { %v5557_v49 = vld [vmem:[#allocation3 + $0x15] sm:$0xff]  ;;  %v1214_v48 = vmul.f32 %v5593_v23, %v5386_v13  ;;  %v1119_v13 = vmul.f32 %v5455_v14, %v5507_v26  ;;  %v1133_v14 = vmul.f32 %v5485_v16, %v5397_v43 }
 0x177   :  { %9460 = vst [vmem:[#allocation21_spill] sm:$0xff] %v5557_v49  ;;  %v5559_v56 = vld [vmem:[#allocation3 + $0x16] sm:$0xff]  ;;  %v1043_v49 = vmul.f32 %v5343_v39, %v5268_v35  ;;  %v1163_v21 = vadd.f32 %v1159_v57, %v1149_v28 }
 0x178   :  { %9461 = vst [vmem:[#allocation13_spill] sm:$0xff] %v5559_v56  ;;  %v1186_v56 = vmul.f32 %v5549_v5, %v5382_v2  ;;  %v1173_v2 = vmul.f32 %v5534_v9, %v5446_v42  ;;  %v2617_v35 = vld [vmem:[#allocation2 + $0x38] sm:$0x3f]  ;;  %v1351_v6 = vpop.permute.xlu1 %1350 }
 0x179   :  { %1362 = vst.msk [vmem:[#allocation3 + $0x10] sm:$0xff] %vm68_vm4, %v1341_v41  ;;  %v1047_v53 = vadd.f32 %v1043_v49, %v1033_v20  ;;  %v5596_v49 = vstv %s5551_s11  ;;  %v2875_v12 = vld [vmem:[#allocation2 + $0x38] sm:$0x3f]  ;;  %v1187_v41 = vmul.f32 %v5549_v5, %v5448_v29  ;;  %s6264_s11 = sld [smem:[#allocation4 + $0x51]] }
 0x17a   :  { %1363 = vst.msk [vmem:[#allocation3 + $0x18] sm:$0x3f] %vm72_vm2, %v1343_v38  ;;  %v1190_v3 = vadd.f32 %v1186_v56, %v1176_v0  ;;  %v1177_v39 = vadd.f32 %v1173_v2, %v1163_v21  ;;  %2640 = vrot.lane.b32.xlu2 %v2617_v35, %s4223_s27  ;;  %v5601_v56 = vpop.permute.xlu0 %1596  ;;  %v1122_v38 = vadd.f32 %v1118_v18, %v1060_v63  ;;  %v5626_v35 = vstv %s5578_s12  ;;  %s5960_s27 = sld [smem:[#allocation4 + $0x8c]] }
 0x17b   :  { %v1061_v10 = vadd.f32 %v1057_v27, %v1047_v53  ;;  %1367 = vst.msk [vmem:[#allocation3 + $0x38] sm:$0x3f] %vm72_vm2, %v1351_v6  ;;  %v1601_v53 = vpop.permute.xlu2 %1600  ;;  %v1132_v63 = vmul.f32 %v5485_v16, %v5467_v8  ;;  %v1201_v27 = vmul.f32 %v5576_v55, %v5450_v45  ;;  %2898 = vrot.lane.b32.xlu1 %v2875_v12, %s4224_s9  ;;  %s6286_s12 = sld [smem:[#allocation4 + $0x60]] }
 0x17c   :  { %v1204_v28 = vadd.f32 %v1200_v60, %v1190_v3  ;;  %v1191_v2 = vadd.f32 %v1187_v41, %v1177_v39  ;;  %v1228_v39 = vmul.f32 %v5596_v49, %v5438_v59  ;;  %v1146_v8 = vmul.f32 %v5505_v58, %v5469_v36 }
 0x17d   :  { %v1123_v18 = vadd.f32 %v1119_v13, %v1061_v10  ;;  %v1136_v6 = vadd.f32 %v1132_v63, %v1122_v38  ;;  %v1147_v41 = vmul.f32 %v5505_v58, %v5399_v40  ;;  %v5647_v13 = vstv %s5598_s13  ;;  %s6367_s13 = sld [smem:[#allocation4 + $0x6f]] }
 0x17e   :  { %v1218_v60 = vadd.f32 %v1214_v48, %v1204_v28  ;;  %v2871_v28 = vld [vmem:[#allocation2 + $0x18] sm:$0x3f]  ;;  %v1160_v48 = vmul.f32 %v5512_v33, %v5478_v25  ;;  %v1205_v59 = vadd.f32 %v1201_v27, %v1191_v2  ;;  %v1215_v36 = vmul.f32 %v5593_v23, %v5461_v19 }
 0x17f   :  { %2890 = vrot.lane.b32.xlu0 %v2871_v28, %s4224_s9  ;;  %v1137_v12 = vadd.f32 %v1133_v14, %v1123_v18  ;;  %v1150_v10 = vadd.f32 %v1146_v8, %v1136_v6  ;;  %v1242_v16 = vmul.f32 %v5626_v35, %v5440_v30  ;;  %v1161_v2 = vmul.f32 %v5512_v33, %v5401_v47 }
 0x180   :  { %v5657_v25 = vpop.permute.xlu1 %1602  ;;  %v1174_v63 = vmul.f32 %v5534_v9, %v5480_v22  ;;  %v1175_v19 = vmul.f32 %v5534_v9, %v5403_v46  ;;  %v1188_v30 = vmul.f32 %v5549_v5, %v5482_v1  ;;  %v1219_v27 = vadd.f32 %v1215_v36, %v1205_v59  ;;  %v5704_v36 = vld [vmem:[#allocation3 + $0x9] sm:$0xff] }
 0x181   :  { %v5607_v20 = vld [vmem:[#allocation3 + $0x11] sm:$0xff]  ;;  %v1151_v38 = vadd.f32 %v1147_v41, %v1137_v12  ;;  %v5670_v14 = vstv %s5628_s14  ;;  %v1229_v6 = vmul.f32 %v5596_v49, %v5527_v52  ;;  %v1256_v33 = vmul.f32 %v5647_v13, %v5442_v34  ;;  %v5682_v41 = vld [vmem:[#allocation3 + $0x1] sm:$0xff]  ;;  %s6412_s14 = sld [smem:[#allocation4 + $0x7e]] }
 0x182   :  { %9462 = vst [vmem:[#allocation25_spill] sm:$0xff] %v5607_v20  ;;  %v5609_v57 = vld [vmem:[#allocation3 + $0x12] sm:$0xff]  ;;  %2892 = vrot.lane.b32.xlu2 %v5164_v32, %s4224_s9  ;;  %v5659_v58 = vpop.permute.xlu0 %1598  ;;  %v1189_v1 = vmul.f32 %v5549_v5, %v5405_v54  ;;  %v1202_v8 = vmul.f32 %v5576_v55, %v5496_v11  ;;  %v5686_v52 = vld [vmem:[#allocation3 + $0x3] sm:$0xff]  ;;  %v1203_v11 = vmul.f32 %v5576_v55, %v5407_v17 }
 0x183   :  { %9463 = vst [vmem:[#allocation26_spill] sm:$0xff] %v5609_v57  ;;  %v5611_v0 = vld [vmem:[#allocation3 + $0x13] sm:$0xff]  ;;  %v1165_v28 = vadd.f32 %v1161_v2, %v1151_v38  ;;  %3150 = vrot.lane.b32.xlu1 %v5164_v32, %s4225_s17  ;;  %v5708_v38 = vld [vmem:[#allocation3 + $0x5] sm:$0xff]  ;;  %v1233_v2 = vadd.f32 %v1229_v6, %v1219_v27  ;;  %v1270_v27 = vmul.f32 %v5670_v14, %v5444_v37 }
 0x184   :  { %9464 = vst [vmem:[#allocation27_spill] sm:$0xff] %v5611_v0  ;;  %v5614_v7 = vld [vmem:[#allocation3 + $0x14] sm:$0xff]  ;;  %v5716_v55 = vld [vmem:[#allocation3 + $0xb] sm:$0xff]  ;;  %v9474_v6 = vld [vmem:[#allocation14_spill] sm:$0xff] }
 0x185   :  { %9465 = vst [vmem:[#allocation28_spill] sm:$0xff] %v5614_v7  ;;  %v5616_v21 = vld [vmem:[#allocation3 + $0x15] sm:$0xff]  ;;  %v1179_v22 = vadd.f32 %v1175_v19, %v1165_v28  ;;  %v5721_v28 = vstv %s5643_s15  ;;  %v5805_v57 = vld [vmem:[#allocation3 + $0x26] sm:$0xff]  ;;  %s6420_s15 = sld [smem:[#allocation4 + $0x8d]] }
 0x186   :  { %9466 = vst [vmem:[#allocation29_spill] sm:$0xff] %v5616_v21  ;;  %v5618_v3 = vld [vmem:[#allocation3 + $0x16] sm:$0xff]  ;;  %v5747_v21 = vld [vmem:[#allocation3] sm:$0xff]  ;;  %v5825_v20 = vld [vmem:[#allocation3 + $0x2e] sm:$0xff] }
 0x187   :  { %9467 = vst [vmem:[#allocation30_spill] sm:$0xff] %v5618_v3  ;;  %v5688_v59 = vld [vmem:[#allocation3 + $0x31] sm:$0xff]  ;;  %3144 = vrot.lane.b32.xlu0 %v5419_v24, %s4225_s17  ;;  %v5803_v24 = vld [vmem:[#allocation3 + $0x25] sm:$0xff] }
 0x188   :  { %1621 = vst.msk [vmem:[#allocation3 + $0x18] sm:$0x3f] %vm72_vm2, %v1601_v53  ;;  %v1232_v53 = vadd.f32 %v1228_v39, %v1218_v60  ;;  %v1164_v60 = vadd.f32 %v1160_v48, %v1150_v10  ;;  %v5684_v48 = vld [vmem:[#allocation3 + $0x2] sm:$0xff]  ;;  %v5690_v34 = vld [vmem:[#allocation3 + $0x32] sm:$0xff]  ;;  %v1216_v10 = vmul.f32 %v5593_v23, %v5498_v4 }
 0x189   :  { %9468 = vst [vmem:[#allocation31_spill] sm:$0xff] %v5688_v59  ;;  %v5694_v32 = vld [vmem:[#allocation3 + $0x34] sm:$0xff]  ;;  %v5718_v4 = vld [vmem:[#allocation3 + $0x6] sm:$0xff] }
 0x18a   :  { %v1246_v39 = vadd.f32 %v1242_v16, %v1232_v53  ;;  %v1178_v18 = vadd.f32 %v1174_v63, %v1164_v60  ;;  %9469 = vst [vmem:[#allocation32_spill] sm:$0xff] %v5690_v34  ;;  %v5692_v53 = vld [vmem:[#allocation3 + $0x33] sm:$0xff]  ;;  %v5706_v16 = vld [vmem:[#allocation3 + $0x4] sm:$0xff]  ;;  %v1193_v63 = vadd.f32 %v1189_v1, %v1179_v22  ;;  %2896 = vrot.lane.b32.xlu2 %v9474_v6, %s4224_s9  ;;  %v1609_v22 = vpop.permute.xlu0 %1608  ;;  %s6231_s9 = sld [smem:[#allocation4 + $0x33]] }
 0x18b   :  { %9470 = vst [vmem:[#allocation33_spill] sm:$0xff] %v5692_v53  ;;  %v5696_v12 = vld [vmem:[#allocation3 + $0x35] sm:$0xff]  ;;  %v5736_v1 = vld [vmem:[#allocation3 + $0xc] sm:$0xff]  ;;  %3154 = vrot.lane.b32.xlu1 %v9474_v6, %s4225_s17  ;;  %v9483_v6 = vld [vmem:[#allocation10_spill] sm:$0xff] }
 0x18c   :  { %v1192_v9 = vadd.f32 %v1188_v30, %v1178_v18  ;;  %9471 = vst [vmem:[#allocation34_spill] sm:$0xff] %v5694_v32  ;;  %v5698_v5 = vld [vmem:[#allocation3 + $0x36] sm:$0xff]  ;;  %v1260_v60 = vadd.f32 %v1256_v33, %v1246_v39  ;;  %v5714_v30 = vld [vmem:[#allocation3 + $0xa] sm:$0xff]  ;;  %v5724_v18 = vstv %s5649_s16  ;;  %v1243_v39 = vmul.f32 %v5626_v35, %v5540_v62  ;;  %v5732_v33 = vpop.permute.xlu1 %1606  ;;  %s6430_s16 = sld [smem:[#allocation4 + $0x9c]] }
 0x18d   :  { %9472 = vst [vmem:[#allocation35_spill] sm:$0xff] %v5696_v12  ;;  %v1207_v37 = vadd.f32 %v1203_v11, %v1193_v63  ;;  %v1230_v12 = vmul.f32 %v5596_v49, %v5507_v26  ;;  %v5749_v32 = vld [vmem:[#allocation3 + $0x7] sm:$0xff]  ;;  %v5751_v7 = vld [vmem:[#allocation3 + $0xf] sm:$0xff] }
 0x18e   :  { %9473 = vst [vmem:[#allocation36_spill] sm:$0xff] %v5698_v5  ;;  %v1206_v19 = vadd.f32 %v1202_v8, %v1192_v9  ;;  %v5738_v9 = vld [vmem:[#allocation3 + $0xd] sm:$0xff]  ;;  %v5763_v63 = vld [vmem:[#allocation3 + $0x21] sm:$0xff] }
 0x18f   :  { %v5740_v8 = vld [vmem:[#allocation3 + $0xe] sm:$0xff]  ;;  %1625 = vst.msk [vmem:[#allocation3 + $0x38] sm:$0x3f] %vm72_vm2, %v1609_v22  ;;  %3146 = vrot.lane.b32.xlu0 %v5529_v15, %s4225_s17  ;;  %v5858_v15 = vmul.f32 %v5724_v18, %v5405_v54 }
 0x190   :  { %v9475_v5 = vld [vmem:[#allocation15_spill] sm:$0xff]  ;;  %v1220_v3 = vadd.f32 %v1216_v10, %v1206_v19  ;;  %9476 = vst [vmem:[#allocation14_spill] sm:$0xff] %v5749_v32  ;;  %v9478_v53 = vld [vmem:[#allocation24_spill] sm:$0xff]  ;;  %v5761_v10 = vld [vmem:[#allocation3 + $0x20] sm:$0xff] }
 0x191   :  { %v1217_v62 = vmul.f32 %v5593_v23, %v9475_v5  ;;  %9477 = vst [vmem:[#allocation15_spill] sm:$0xff] %v5751_v7  ;;  %v1231_v0 = vmul.f32 %v5596_v49, %v9478_v53  ;;  %v5755_v34 = vld [vmem:[#allocation3 + $0x8] sm:$0xff]  ;;  %v1274_v23 = vadd.f32 %v1270_v27, %v1260_v60  ;;  %v1247_v5 = vadd.f32 %v1243_v39, %v1233_v2  ;;  %v5771_v53 = vld [vmem:[#allocation3 + $0x10] sm:$0xff] }
 0x192   :  { %1618 = vst.msk [vmem:[#allocation3] sm:$0xff] %vm68_vm4, %v5487_v31  ;;  %v1234_v26 = vadd.f32 %v1230_v12, %v1220_v3  ;;  %v5767_v19 = vld [vmem:[#allocation3 + $0x22] sm:$0xff]  ;;  %v1284_v31 = vmul.f32 %v5721_v28, %v5446_v42  ;;  %v1298_v3 = vmul.f32 %v5724_v18, %v5448_v29  ;;  %v5783_v60 = vld [vmem:[#allocation3 + $0x2a] sm:$0xff]  ;;  %v1257_v42 = vmul.f32 %v5647_v13, %v5542_v50  ;;  %v9482_v50 = vld [vmem:[#allocation17_spill] sm:$0xff] }
 0x193   :  { %v1221_v11 = vadd.f32 %v1217_v62, %v1207_v37  ;;  %v5769_v49 = vld [vmem:[#allocation3 + $0x23] sm:$0xff]  ;;  %9479 = vst [vmem:[#allocation24_spill] sm:$0xff] %v5771_v53  ;;  %v5785_v27 = vld [vmem:[#allocation3 + $0x2b] sm:$0xff]  ;;  %v1244_v62 = vmul.f32 %v5626_v35, %v5397_v43  ;;  %v1245_v59 = vmul.f32 %v5626_v35, %v9482_v50  ;;  %v5819_v43 = vmul.f32 %v5670_v14, %v5401_v47 }
 0x194   :  { %1619 = vst.msk [vmem:[#allocation3 + $0x8] sm:$0xff] %vm68_vm4, %v5601_v56  ;;  %v5779_v12 = vld [vmem:[#allocation3 + $0x28] sm:$0xff]  ;;  %v9480_v56 = vld [vmem:[#allocation12_spill] sm:$0xff]  ;;  %v1261_v35 = vadd.f32 %v1257_v42, %v1247_v5  ;;  %v1311_v50 = vstv %s5712_s18  ;;  %v5854_v42 = vpop.permute.xlu2 %1854  ;;  %v1373_v7 = vstv %s5734_s19  ;;  %s6446_s18 = sld [smem:[#allocation4 + $0xba]] }
 0x195   :  { %v5781_v2 = vld [vmem:[#allocation3 + $0x29] sm:$0xff]  ;;  %1620 = vst.msk [vmem:[#allocation3 + $0x10] sm:$0xff] %vm68_vm4, %v5659_v58  ;;  %v1271_v29 = vmul.f32 %v5670_v14, %v9480_v56  ;;  %v1235_v37 = vadd.f32 %v1231_v0, %v1221_v11  ;;  %v1258_v56 = vmul.f32 %v5647_v13, %v5399_v40  ;;  %v5815_v0 = vmul.f32 %v5647_v13, %v9483_v6  ;;  %s6497_s19 = sld [smem:[#allocation4 + $0xc9]] }
 0x196   :  { %v5787_v39 = vld [vmem:[#allocation3 + $0x24] sm:$0xff]  ;;  %v5789_v22 = vld [vmem:[#allocation3 + $0x2c] sm:$0xff]  ;;  %v1288_v40 = vadd.f32 %v1284_v31, %v1274_v23  ;;  %v9488_v31 = vld [vmem:[#allocation21_spill] sm:$0xff]  ;;  %9489 = vst [vmem:[#allocation10_spill] sm:$0xff] %v5858_v15  ;;  %v5876_v54 = vmul.f32 %v1311_v50, %v5407_v17  ;;  %v1401_v15 = vstv %s5765_s20  ;;  %v5895_v32 = vmul.f32 %v1373_v7, %v5755_v34  ;;  %s6514_s20 = sld [smem:[#allocation4 + $0x7]] }
 0x197   :  { %v5807_v58 = vld [vmem:[#allocation3 + $0x27] sm:$0xff]  ;;  %v5827_v53 = vld [vmem:[#allocation3 + $0x2f] sm:$0xff] }
 0x198   :  { %9481 = vst [vmem:[#allocation12_spill] sm:$0xff] %v5807_v58  ;;  %v5823_v11 = vld [vmem:[#allocation3 + $0x2d] sm:$0xff]  ;;  %v1853_v58 = vpop.permute.xlu1 %1852  ;;  %v9496_v17 = vld [vmem:[#allocation22_spill] sm:$0xff] }
 0x199   :  { %9484 = vst [vmem:[#allocation17_spill] sm:$0xff] %v5827_v53  ;;  %v9485_v13 = vld [vmem:[#allocation11_spill] sm:$0xff]  ;;  %v9486_v6 = vld [vmem:[#allocation16_spill] sm:$0xff]  ;;  %v1285_v53 = vmul.f32 %v5721_v28, %v5555_v44  ;;  %v9490_v44 = vld [vmem:[#allocation18_spill] sm:$0xff] }
 0x19a   :  { %1622 = vst.msk [vmem:[#allocation3 + $0x20] sm:$0xff] %vm68_vm4, %v5657_v25  ;;  %v5835_v47 = vmul.f32 %v5670_v14, %v9485_v13  ;;  %3142 = vrot.lane.b32.xlu2 %v9486_v6, %s4225_s17  ;;  %v5844_v25 = vmul.f32 %v5721_v28, %v5403_v46  ;;  %v9487_v23 = vld [vmem:[#allocation20_spill] sm:$0xff]  ;;  %v5852_v14 = vmul.f32 %v5724_v18, %v9488_v31  ;;  %v1387_v31 = vstv %s5757_s0  ;;  %s6507_s0 = sld [smem:[#allocation4 + $0xd8]] }
 0x19b   :  { %v5848_v5 = vmul.f32 %v5721_v28, %v9487_v23  ;;  %v1248_v13 = vadd.f32 %v1244_v62, %v1234_v26  ;;  %v5862_v46 = vmul.f32 %v5724_v18, %v9490_v44  ;;  %v5867_v28 = vld [vmem:[#allocation3 + $0x30] sm:$0xff]  ;;  %1623 = vst.msk [vmem:[#allocation3 + $0x28] sm:$0xff] %vm68_vm4, %v5566_v61  ;;  %v1312_v23 = vmul.f32 %v1311_v50, %v5450_v45  ;;  %v9493_v26 = vld [vmem:[#allocation13_spill] sm:$0xff]  ;;  %v5886_v45 = vld [vmem:[#allocation3] sm:$0xff] }
 0x19c   :  { %9492 = vst [vmem:[#allocation16_spill] sm:$0xff] %v5867_v28  ;;  %v5873_v62 = vmul.f32 %v1311_v50, %v9493_v26  ;;  %v1302_v18 = vadd.f32 %v1298_v3, %v1288_v40  ;;  %v3133_v44 = vld [vmem:[#allocation2 + $0x38] sm:$0x3f]  ;;  %v1249_v28 = vadd.f32 %v1245_v59, %v1235_v37  ;;  %v5888_v61 = vld [vmem:[#allocation3 + $0x1] sm:$0xff]  ;;  %v5891_v26 = vmul.f32 %v1311_v50, %v9496_v17 }
 0x19d   :  { %9491 = vst [vmem:[#allocation11_spill] sm:$0xff] %v5862_v46  ;;  %v1275_v46 = vadd.f32 %v1271_v29, %v1261_v35  ;;  %v5902_v59 = vld [vmem:[#allocation3 + $0x2] sm:$0xff]  ;;  %3400 = vrot.lane.b32.xlu1 %v9486_v6, %s4226_s26  ;;  %v5911_v37 = vmul.f32 %v1373_v7, %v5779_v12  ;;  %v1415_v40 = vstv %s5801_s1  ;;  %v1429_v6 = vstv %s5821_s21  ;;  %3156 = vrot.lane.b32.xlu0 %v3133_v44, %s4225_s17  ;;  %s6524_s1 = sld [smem:[#allocation4 + $0x16]] }
 0x19e   :  { %9494 = vst [vmem:[#allocation20_spill] sm:$0xff] %v5876_v54  ;;  %v1374_v54 = vmul.f32 %v1373_v7, %v5747_v21  ;;  %v5904_v3 = vld [vmem:[#allocation3 + $0x3] sm:$0xff]  ;;  %v1262_v21 = vadd.f32 %v1258_v56, %v1248_v13  ;;  %v1402_v56 = vmul.f32 %v1401_v15, %v5684_v48  ;;  %v5942_v48 = vmul.f32 %v1401_v15, %v5783_v60  ;;  %s6555_s21 = sld [smem:[#allocation4 + $0x25]] }
 0x19f   :  { %1624 = vst.msk [vmem:[#allocation3 + $0x30] sm:$0xff] %vm68_vm4, %v5732_v33  ;;  %v5898_v33 = vmul.f32 %v1373_v7, %v5761_v10  ;;  %v5906_v29 = vld [vmem:[#allocation3 + $0x4] sm:$0xff]  ;;  %v1388_v10 = vmul.f32 %v1387_v31, %v5682_v41  ;;  %v5930_v7 = vpop.permute.xlu0 %1860  ;;  %v1263_v41 = vadd.f32 %v5815_v0, %v1249_v28  ;;  %v1289_v13 = vadd.f32 %v1285_v53, %v1275_v46 }
 0x1a0   :  { %9495 = vst [vmem:[#allocation21_spill] sm:$0xff] %v5888_v61  ;;  %v5915_v35 = vld [vmem:[#allocation3 + $0x5] sm:$0xff]  ;;  %v5946_v44 = vmul.f32 %v1415_v40, %v5769_v49  ;;  %v5949_v53 = vmul.f32 %v1415_v40, %v5785_v27  ;;  %v5958_v28 = vmul.f32 %v1401_v15, %v5714_v30 }
 0x1a1   :  { %9497 = vst [vmem:[#allocation18_spill] sm:$0xff] %v5902_v59  ;;  %v5917_v50 = vld [vmem:[#allocation3 + $0x6] sm:$0xff] }
 0x1a2   :  { %9498 = vst [vmem:[#allocation13_spill] sm:$0xff] %v5904_v3  ;;  %v5919_v17 = vld [vmem:[#allocation3 + $0x7] sm:$0xff]  ;;  %v5922_v3 = vmul.f32 %v1387_v31, %v5763_v63  ;;  %3152 = vrot.lane.b32.xlu2 %v5223_v51, %s4225_s17  ;;  %v5939_v63 = vpop.permute.xlu1 %1862  ;;  %v5955_v51 = vmul.f32 %v1387_v31, %v5704_v36 }
 0x1a3   :  { %9499 = vst [vmem:[#allocation22_spill] sm:$0xff] %v5906_v29  ;;  %v5925_v29 = vmul.f32 %v1387_v31, %v5781_v2  ;;  %v5951_v0 = vld [vmem:[#allocation3 + $0x9] sm:$0xff]  ;;  %v5991_v59 = vld [vmem:[#allocation3 + $0x20] sm:$0xff] }
 0x1a4   :  { %9500 = vst [vmem:[#allocation37_spill] sm:$0xff] %v5915_v35  ;;  %v5964_v49 = vld [vmem:[#allocation3 + $0xb] sm:$0xff]  ;;  %v5984_v35 = vpop.permute.xlu2 %1856 }
 0x1a5   :  { %9501 = vst [vmem:[#allocation38_spill] sm:$0xff] %v5917_v50  ;;  %v1316_v50 = vadd.f32 %v1312_v23, %v1302_v18  ;;  %v5966_v23 = vld [vmem:[#allocation3 + $0xc] sm:$0xff]  ;;  %v5969_v18 = vmul.f32 %v1415_v40, %v5716_v55  ;;  %v5999_v61 = vld [vmem:[#allocation3 + $0x24] sm:$0xff] }
 0x1a6   :  { %9502 = vst [vmem:[#allocation39_spill] sm:$0xff] %v5919_v17  ;;  %v5935_v17 = vmul.f32 %v1401_v15, %v5767_v19  ;;  %v1276_v19 = vadd.f32 %v5819_v43, %v1262_v21  ;;  %v5972_v43 = vmul.f32 %v1429_v6, %v5706_v16  ;;  %v1443_v15 = vstv %s5879_s23  ;;  %v5978_v31 = vld [vmem:[#allocation3 + $0x8] sm:$0xff]  ;;  %s6582_s23 = sld [smem:[#allocation4 + $0x43]] }
 0x1a7   :  { %1876 = vst.msk [vmem:[#allocation3] sm:$0xff] %vm68_vm4, %v1853_v58  ;;  %v1416_v58 = vmul.f32 %v1415_v40, %v5686_v52  ;;  %v1378_v46 = vadd.f32 %v1374_v54, %v1316_v50  ;;  %v5962_v52 = vld [vmem:[#allocation3 + $0xa] sm:$0xff]  ;;  %v5975_v54 = vmul.f32 %v1429_v6, %v5736_v1  ;;  %v1277_v40 = vadd.f32 %v5835_v47, %v1263_v41 }
 0x1a8   :  { %9503 = vst [vmem:[#allocation40_spill] sm:$0xff] %v5951_v0  ;;  %v5980_v21 = vld [vmem:[#allocation3 + $0xd] sm:$0xff]  ;;  %v1303_v16 = vadd.f32 %v5852_v14, %v1289_v13  ;;  %v5993_v0 = vld [vmem:[#allocation3 + $0x21] sm:$0xff]  ;;  %v6004_v47 = vmul.f32 %v1429_v6, %v5787_v39  ;;  %v6007_v14 = vmul.f32 %v1429_v6, %v5789_v22  ;;  %v6011_v41 = vstv %s5865_s22  ;;  %s6570_s22 = sld [smem:[#allocation4 + $0x34]] }
 0x1a9   :  { %9504 = vst [vmem:[#allocation41_spill] sm:$0xff] %v5962_v52  ;;  %v5982_v50 = vld [vmem:[#allocation3 + $0xe] sm:$0xff]  ;;  %v1457_v52 = vstv %s5884_s24  ;;  %v6013_v13 = vld [vmem:[#allocation3 + $0x25] sm:$0xff]  ;;  %v1290_v39 = vadd.f32 %v5844_v25, %v1276_v19  ;;  %s6612_s24 = sld [smem:[#allocation4 + $0x52]] }
 0x1aa   :  { %9505 = vst [vmem:[#allocation42_spill] sm:$0xff] %v5964_v49  ;;  %v1392_v49 = vadd.f32 %v1388_v10, %v1378_v46  ;;  %v1471_v10 = vstv %s5900_s25  ;;  %v6015_v46 = vld [vmem:[#allocation3 + $0x26] sm:$0xff]  ;;  %v6043_v25 = vmul.f32 %v1457_v52, %v5718_v4  ;;  %v6052_v19 = vld [vmem:[#allocation3 + $0x14] sm:$0xff]  ;;  %v1291_v4 = vadd.f32 %v5848_v5, %v1277_v40  ;;  %s6628_s25 = sld [smem:[#allocation4 + $0x61]] }
 0x1ab   :  { %9506 = vst [vmem:[#allocation43_spill] sm:$0xff] %v5966_v23  ;;  %v3129_v23 = vld [vmem:[#allocation2 + $0x18] sm:$0x3f]  ;;  %v9529_v5 = vld [vmem:[#allocation12_spill] sm:$0xff] }
 0x1ac   :  { %9507 = vst [vmem:[#allocation44_spill] sm:$0xff] %v5978_v31  ;;  %v6001_v31 = vld [vmem:[#allocation3 + $0xf] sm:$0xff]  ;;  %v1406_v6 = vadd.f32 %v1402_v56, %v1392_v49  ;;  %3148 = vrot.lane.b32.xlu2 %v3129_v23, %s4225_s17  ;;  %v6076_v40 = vmul.f32 %v1471_v10, %v9529_v5  ;;  %s6436_s17 = sld [smem:[#allocation4 + $0xab]] }
 0x1ad   :  { %9508 = vst [vmem:[#allocation45_spill] sm:$0xff] %v5980_v21  ;;  %v5995_v21 = vld [vmem:[#allocation3 + $0x22] sm:$0xff]  ;;  %v6050_v56 = vld [vmem:[#allocation3 + $0x13] sm:$0xff]  ;;  %v6086_v23 = vld [vmem:[#allocation3 + $0x2b] sm:$0xff] }
 0x1ae   :  { %9509 = vst [vmem:[#allocation46_spill] sm:$0xff] %v5982_v50  ;;  %v5997_v50 = vld [vmem:[#allocation3 + $0x23] sm:$0xff]  ;;  %v6054_v49 = vld [vmem:[#allocation3 + $0x15] sm:$0xff] }
 0x1af   :  { %9510 = vst [vmem:[#allocation47_spill] sm:$0xff] %v5993_v0  ;;  %v6040_v0 = vmul.f32 %v1443_v15, %v5823_v11 }
 0x1b0   :  { %9511 = vst [vmem:[#allocation48_spill] sm:$0xff] %v5995_v21  ;;  %v6017_v21 = vld [vmem:[#allocation3 + $0x27] sm:$0xff] }
 0x1b1   :  { %9512 = vst [vmem:[#allocation49_spill] sm:$0xff] %v5997_v50  ;;  %v6028_v50 = vmul.f32 %v1443_v15, %v5738_v9 }
 0x1b2   :  { %9513 = vst [vmem:[#allocation50_spill] sm:$0xff] %v5999_v61  ;;  %v6021_v61 = vld [vmem:[#allocation2 + $0x28] sm:$0xff] }
 0x1b3   :  { %9514 = vst [vmem:[#allocation51_spill] sm:$0xff] %v6001_v31  ;;  %3410 = vrot.lane.b32.xlu1 %v6021_v61, %s4226_s26  ;;  %v1444_v31 = vmul.f32 %v1443_v15, %v5708_v38  ;;  %v6046_v38 = vmul.f32 %v1457_v52, %v5740_v8 }
 0x1b4   :  { %9515 = vst [vmem:[#allocation52_spill] sm:$0xff] %v6013_v13  ;;  %v6030_v13 = vld [vmem:[#allocation3 + $0x10] sm:$0xff] }
 0x1b5   :  { %9516 = vst [vmem:[#allocation53_spill] sm:$0xff] %v6015_v46  ;;  %v6032_v46 = vld [vmem:[#allocation3 + $0x11] sm:$0xff] }
 0x1b6   :  { %9517 = vst [vmem:[#allocation54_spill] sm:$0xff] %v6017_v21  ;;  %v6034_v21 = vld [vmem:[#allocation3 + $0x12] sm:$0xff] }
 0x1b7   :  { %1877 = vst.msk [vmem:[#allocation3 + $0x8] sm:$0xff] %vm68_vm4, %v5854_v42  ;;  %v6037_v42 = vmul.f32 %v1443_v15, %v5803_v24  ;;  %v6058_v24 = vld [vmem:[#allocation2 + $0x20] sm:$0xff]  ;;  %v1317_v15 = vadd.f32 %v5873_v62, %v1303_v16  ;;  %v6082_v62 = vld [vmem:[#allocation3 + $0x29] sm:$0xff] }
 0x1b8   :  { %9518 = vst [vmem:[#allocation55_spill] sm:$0xff] %v6021_v61  ;;  %3408 = vrot.lane.b32.xlu0 %v6058_v24, %s4226_s26  ;;  %v9528_v61 = vld [vmem:[#allocation15_spill] sm:$0xff] }
 0x1b9   :  { %9519 = vst [vmem:[#allocation56_spill] sm:$0xff] %v6030_v13  ;;  %v6090_v16 = vld [vmem:[#allocation3 + $0x2d] sm:$0xff] }
 0x1ba   :  { %9520 = vst [vmem:[#allocation57_spill] sm:$0xff] %v6032_v46  ;;  %v6065_v46 = vmul.f32 %v1457_v52, %v5805_v57  ;;  %v6080_v57 = vld [vmem:[#allocation3 + $0x28] sm:$0xff] }
 0x1bb   :  { %9521 = vst [vmem:[#allocation58_spill] sm:$0xff] %v6034_v21  ;;  %v1420_v21 = vadd.f32 %v1416_v58, %v1406_v6  ;;  %v6084_v58 = vld [vmem:[#allocation3 + $0x2a] sm:$0xff]  ;;  %v6092_v6 = vld [vmem:[#allocation3 + $0x16] sm:$0xff] }
 0x1bc   :  { %9522 = vst [vmem:[#allocation59_spill] sm:$0xff] %v6050_v56  ;;  %v6069_v56 = vmul.f32 %v1457_v52, %v5825_v20  ;;  %v6088_v52 = vld [vmem:[#allocation3 + $0x2c] sm:$0xff] }
 0x1bd   :  { %9523 = vst [vmem:[#allocation60_spill] sm:$0xff] %v6052_v19  ;;  %v1859_v19 = vpop.permute.xlu1 %1858 }
 0x1be   :  { %9524 = vst [vmem:[#allocation61_spill] sm:$0xff] %v6054_v49  ;;  %v3387_v49 = vld [vmem:[#allocation2 + $0x18] sm:$0x3f] }
 0x1bf   :  { %1880 = vst.msk [vmem:[#allocation3 + $0x20] sm:$0xff] %vm68_vm4, %v5930_v7  ;;  %v9527_v7 = vld [vmem:[#allocation14_spill] sm:$0xff]  ;;  %3406 = vrot.lane.b32.xlu1 %v3387_v49, %s4226_s26  ;;  %v1527_v49 = vstv %s6048_s29  ;;  %s6700_s29 = sld [smem:[#allocation4 + $0x9d]] }
 0x1c0   :  { %9525 = vst [vmem:[#allocation62_spill] sm:$0xff] %v6058_v24  ;;  %v1472_v13 = vmul.f32 %v1471_v10, %v9527_v7  ;;  %v6073_v24 = vmul.f32 %v1471_v10, %v9528_v61  ;;  %v1865_v61 = vpop.permute.xlu0 %1864  ;;  %v9537_v7 = vld [vmem:[#allocation10_spill] sm:$0xff] }
 0x1c1   :  { %9526 = vst [vmem:[#allocation63_spill] sm:$0xff] %v6069_v56  ;;  %v1304_v5 = vadd.f32 %v9537_v7, %v1290_v39  ;;  %v1434_v56 = vadd.f32 %v5972_v43, %v1420_v21  ;;  %v9542_v43 = vld [vmem:[#allocation24_spill] sm:$0xff]  ;;  %v6119_v39 = vmul.f32 %v6011_v41, %v5779_v12 }
 0x1c2   :  { %9530 = vst [vmem:[#allocation14_spill] sm:$0xff] %v6076_v40  ;;  %v1379_v40 = vadd.f32 %v5895_v32, %v1317_v15  ;;  %v1486_v32 = vmul.f32 %v6011_v41, %v5755_v34  ;;  %v6115_v21 = vmul.f32 %v6011_v41, %v9542_v43  ;;  %v6121_v15 = vld [vmem:[#allocation3 + $0x31] sm:$0xff] }
 0x1c3   :  { %9531 = vst [vmem:[#allocation15_spill] sm:$0xff] %v6080_v57  ;;  %v1499_v57 = vstv %s5960_s27  ;;  %v6123_v7 = vld [vmem:[#allocation3 + $0x32] sm:$0xff]  ;;  %s6659_s27 = sld [smem:[#allocation4 + $0x7f]] }
 0x1c4   :  { %9532 = vst [vmem:[#allocation12_spill] sm:$0xff] %v6084_v58  ;;  %v6100_v58 = vld [vmem:[#allocation3 + $0x2e] sm:$0xff]  ;;  %v1393_v34 = vadd.f32 %v5955_v51, %v1379_v40  ;;  %v6135_v12 = vld [vmem:[#allocation3 + $0x36] sm:$0xff] }
 0x1c5   :  { %9533 = vst [vmem:[#allocation64_spill] sm:$0xff] %v6086_v23  ;;  %v6102_v23 = vld [vmem:[#allocation3 + $0x2f] sm:$0xff] }
 0x1c6   :  { %9534 = vst [vmem:[#allocation65_spill] sm:$0xff] %v6088_v52  ;;  %v6104_v52 = vld [vmem:[#allocation3 + $0x30] sm:$0xff] }
 0x1c7   :  { %9535 = vst [vmem:[#allocation66_spill] sm:$0xff] %v6090_v16  ;;  %v6131_v43 = vld [vmem:[#allocation3 + $0x34] sm:$0xff] }
 0x1c8   :  { %9536 = vst [vmem:[#allocation67_spill] sm:$0xff] %v6092_v6  ;;  %v9541_v6 = vld [vmem:[#allocation17_spill] sm:$0xff]  ;;  %v9549_v40 = vld [vmem:[#allocation20_spill] sm:$0xff] }
 0x1c9   :  { %9538 = vst [vmem:[#allocation10_spill] sm:$0xff] %v6100_v58  ;;  %v6109_v16 = vmul.f32 %v1471_v10, %v9541_v6  ;;  %v1448_v6 = vadd.f32 %v1444_v31, %v1434_v56  ;;  %v6133_v58 = vld [vmem:[#allocation3 + $0x35] sm:$0xff]  ;;  %v6148_v31 = vmul.f32 %v1499_v57, %v5781_v2  ;;  %v1867_v56 = vpop.permute.xlu2 %1866  ;;  %v9551_v2 = vld [vmem:[#allocation26_spill] sm:$0xff] }
 0x1ca   :  { %9539 = vst [vmem:[#allocation68_spill] sm:$0xff] %v6102_v23  ;;  %v1513_v23 = vstv %s5989_s28  ;;  %s6671_s28 = sld [smem:[#allocation4 + $0x8e]] }
 0x1cb   :  { %9540 = vst [vmem:[#allocation69_spill] sm:$0xff] %v6104_v52  ;;  %v6125_v52 = vld [vmem:[#allocation3 + $0x33] sm:$0xff] }
 0x1cc   :  { %1878 = vst.msk [vmem:[#allocation3 + $0x10] sm:$0xff] %vm68_vm4, %v5984_v35  ;;  %v9545_v35 = vld [vmem:[#allocation11_spill] sm:$0xff] }
 0x1cd   :  { %9543 = vst [vmem:[#allocation17_spill] sm:$0xff] %v6123_v7  ;;  %v1305_v10 = vadd.f32 %v9545_v35, %v1291_v4  ;;  %v9547_v7 = vld [vmem:[#allocation16_spill] sm:$0xff]  ;;  %v9548_v4 = vld [vmem:[#allocation25_spill] sm:$0xff]  ;;  %v1407_v35 = vadd.f32 %v5958_v28, %v1393_v34 }
 0x1ce   :  { %9544 = vst [vmem:[#allocation24_spill] sm:$0xff] %v6125_v52  ;;  %v6141_v52 = vmul.f32 %v6011_v41, %v9547_v7  ;;  %v6145_v51 = vmul.f32 %v1499_v57, %v9548_v4  ;;  %v1462_v41 = vadd.f32 %v6043_v25, %v1448_v6  ;;  %v9550_v7 = vld [vmem:[#allocation31_spill] sm:$0xff]  ;;  %v6162_v4 = vmul.f32 %v1513_v23, %v9551_v2  ;;  %v6171_v28 = vld [vmem:[#allocation2 + $0x30] sm:$0xff] }
 0x1cf   :  { %1879 = vst.msk [vmem:[#allocation3 + $0x18] sm:$0x3f] %vm72_vm2, %v1859_v19  ;;  %v1500_v19 = vmul.f32 %v1499_v57, %v5704_v36  ;;  %v1514_v36 = vmul.f32 %v1513_v23, %v5714_v30  ;;  %3412 = vrot.lane.b32.xlu0 %v6171_v28, %s4226_s26  ;;  %v1319_v25 = vadd.f32 %v5891_v26, %v1305_v10  ;;  %v9553_v34 = vld [vmem:[#allocation32_spill] sm:$0xff]  ;;  %v1541_v2 = vstv %s6078_s30  ;;  %s6736_s30 = sld [smem:[#allocation4 + $0xac]] }
 0x1d0   :  { %9546 = vst [vmem:[#allocation11_spill] sm:$0xff] %v6135_v12  ;;  %v6156_v12 = vmul.f32 %v1499_v57, %v9550_v7  ;;  %v1421_v57 = vadd.f32 %v5969_v18, %v1407_v35  ;;  %v6181_v6 = vmul.f32 %v1513_v23, %v9553_v34  ;;  %v6194_v10 = vmul.f32 %v1527_v49, %v5785_v27 }
 0x1d1   :  { %1881 = vst.msk [vmem:[#allocation3 + $0x28] sm:$0xff] %vm68_vm4, %v5939_v63  ;;  %v1318_v63 = vadd.f32 %v9549_v40, %v1304_v5  ;;  %v1476_v5 = vadd.f32 %v1472_v13, %v1462_v41  ;;  %v9554_v40 = vld [vmem:[#allocation27_spill] sm:$0xff]  ;;  %v1381_v26 = vadd.f32 %v5911_v37, %v1319_v25  ;;  %v1555_v35 = vstv %s6098_s3  ;;  %v9557_v25 = vld [vmem:[#allocation34_spill] sm:$0xff]  ;;  %s6747_s3 = sld [smem:[#allocation4 + $0xbb]] }
 0x1d2   :  { %1882 = vst.msk [vmem:[#allocation3 + $0x30] sm:$0xff] %vm68_vm4, %v1865_v61  ;;  %v6165_v61 = vmul.f32 %v1513_v23, %v5783_v60  ;;  %v9552_v60 = vld [vmem:[#allocation19_spill] sm:$0xff]  ;;  %v6185_v7 = vmul.f32 %v1527_v49, %v9554_v40  ;;  %v1435_v18 = vadd.f32 %v5975_v54, %v1421_v57  ;;  %v9555_v23 = vld [vmem:[#allocation33_spill] sm:$0xff]  ;;  %v6221_v57 = vpop.permute.xlu0 %2110  ;;  %v6227_v34 = vmul.f32 %v1555_v35, %v5823_v11 }
 0x1d3   :  { %1883 = vst.msk [vmem:[#allocation3 + $0x38] sm:$0x3f] %vm72_vm2, %v1867_v56  ;;  %v1380_v30 = vadd.f32 %v5898_v33, %v1318_v63  ;;  %3402 = vrot.lane.b32.xlu2 %v9552_v60, %s4226_s26  ;;  %v1528_v56 = vmul.f32 %v1527_v49, %v5716_v55  ;;  %v1490_v13 = vadd.f32 %v1486_v32, %v1476_v5  ;;  %v9556_v32 = vld [vmem:[#allocation28_spill] sm:$0xff]  ;;  %v1631_v40 = vstv %s6168_s5  ;;  %v9560_v11 = vld [vmem:[#allocation35_spill] sm:$0xff]  ;;  %s6817_s5 = sld [smem:[#allocation4 + $0xd9]] }
 0x1d4   :  { %v6197_v63 = vmul.f32 %v1527_v49, %v9555_v23  ;;  %v1542_v55 = vmul.f32 %v1541_v2, %v5736_v1  ;;  %v1395_v41 = vadd.f32 %v5925_v29, %v1381_v26  ;;  %v6207_v27 = vmul.f32 %v1541_v2, %v9556_v32  ;;  %3660 = vrot.lane.b32.xlu1 %v9552_v60, %s4227_s8  ;;  %v4170_v60 = vld [vmem:[#allocation2] sm:$0xff] }
 0x1d5   :  { %v1394_v33 = vadd.f32 %v5922_v3, %v1380_v30  ;;  %v1449_v3 = vadd.f32 %v6028_v50, %v1435_v18  ;;  %v1504_v54 = vadd.f32 %v1500_v19, %v1490_v13  ;;  %v6210_v49 = vmul.f32 %v1541_v2, %v5789_v22  ;;  %v9558_v22 = vld [vmem:[#allocation29_spill] sm:$0xff]  ;;  %v9561_v18 = vld [vmem:[#allocation30_spill] sm:$0xff] }
 0x1d6   :  { %v6213_v1 = vmul.f32 %v1541_v2, %v9557_v25  ;;  %v1556_v30 = vmul.f32 %v1555_v35, %v5738_v9  ;;  %v1409_v29 = vadd.f32 %v5942_v48, %v1395_v41  ;;  %v6224_v5 = vmul.f32 %v1555_v35, %v9558_v22  ;;  %v9559_v2 = vld [vmem:[#allocation23_spill] sm:$0xff]  ;;  %v6271_v32 = vld [vmem:[#allocation3] sm:$0xff]  ;;  %v9566_v22 = vld [vmem:[#allocation21_spill] sm:$0xff] }
 0x1d7   :  { %v1408_v37 = vadd.f32 %v5935_v17, %v1394_v33  ;;  %v1463_v50 = vadd.f32 %v6046_v38, %v1449_v3  ;;  %v1518_v19 = vadd.f32 %v1514_v36, %v1504_v54  ;;  %v1569_v9 = vstv %s6158_s4  ;;  %3658 = vrot.lane.b32.xlu0 %v4170_v60, %s4227_s8  ;;  %v6266_v54 = vpop.permute.xlu1 %2112  ;;  %v6273_v25 = vld [vmem:[#allocation3 + $0x1] sm:$0xff]  ;;  %s6781_s4 = sld [smem:[#allocation4 + $0xca]] }
 0x1d8   :  { %v1423_v48 = vadd.f32 %v5949_v53, %v1409_v29  ;;  %v6240_v26 = vmul.f32 %v1555_v35, %v9560_v11  ;;  %v1570_v33 = vmul.f32 %v1569_v9, %v5740_v8  ;;  %v6244_v13 = vmul.f32 %v1569_v9, %v9561_v18  ;;  %v9562_v35 = vld [vmem:[#allocation36_spill] sm:$0xff]  ;;  %9563 = vst [vmem:[#allocation16_spill] sm:$0xff] %v6273_v25  ;;  %v9571_v60 = vld [vmem:[#allocation14_spill] sm:$0xff] }
 0x1d9   :  { %v1422_v17 = vadd.f32 %v5946_v44, %v1408_v37  ;;  %v1477_v38 = vadd.f32 %v6073_v24, %v1463_v50  ;;  %v1532_v36 = vadd.f32 %v1528_v56, %v1518_v19  ;;  %v6247_v23 = vstv %s6188_s6  ;;  %v9564_v29 = vld [vmem:[#allocation44_spill] sm:$0xff]  ;;  %v9565_v50 = vld [vmem:[#allocation15_spill] sm:$0xff]  ;;  %s6849_s6 = sld [smem:[#allocation4 + $0x8]] }
 0x1da   :  { %v1437_v53 = vadd.f32 %v6007_v14, %v1423_v48  ;;  %v6255_v41 = vmul.f32 %v1569_v9, %v5825_v20  ;;  %v6258_v37 = vmul.f32 %v1569_v9, %v9562_v35  ;;  %v1632_v8 = vmul.f32 %v1631_v40, %v5886_v45  ;;  %v3391_v14 = vld [vmem:[#allocation2 + $0x38] sm:$0x3f]  ;;  %v6303_v11 = vld [vmem:[#allocation3 + $0x7] sm:$0xff]  ;;  %v9575_v18 = vld [vmem:[#allocation40_spill] sm:$0xff] }
 0x1db   :  { %v1436_v44 = vadd.f32 %v6004_v47, %v1422_v17  ;;  %3404 = vrot.lane.b32.xlu2 %v9559_v2, %s4226_s26  ;;  %v1491_v24 = vadd.f32 %v6115_v21, %v1477_v38  ;;  %v1546_v56 = vadd.f32 %v1542_v55, %v1532_v36  ;;  %v6262_v3 = vstv %s6201_s7  ;;  %v6299_v38 = vld [vmem:[#allocation3 + $0x5] sm:$0xff]  ;;  %9574 = vst [vmem:[#allocation32_spill] sm:$0xff] %v6303_v11  ;;  %s6867_s7 = sld [smem:[#allocation4 + $0x80]] }
 0x1dc   :  { %v6276_v45 = vmul.f32 %v1631_v40, %v9564_v29  ;;  %v6279_v17 = vmul.f32 %v1631_v40, %v5991_v59  ;;  %v6282_v19 = vmul.f32 %v1631_v40, %v9565_v50  ;;  %3662 = vrot.lane.b32.xlu1 %v9559_v2, %s4227_s8  ;;  %v9570_v59 = vld [vmem:[#allocation63_spill] sm:$0xff]  ;;  %9572 = vst [vmem:[#allocation26_spill] sm:$0xff] %v6299_v38  ;;  %v1673_v35 = vstv %s6231_s9  ;;  %s6891_s9 = sld [smem:[#allocation4 + $0x26]] }
 0x1dd   :  { %v1450_v47 = vadd.f32 %v6037_v42, %v1436_v44  ;;  %v1451_v42 = vadd.f32 %v6040_v0, %v1437_v53  ;;  %v1505_v55 = vadd.f32 %v6145_v51, %v1491_v24  ;;  %v1560_v20 = vadd.f32 %v1556_v30, %v1546_v56  ;;  %v6290_v51 = vld [vmem:[#allocation3 + $0x3] sm:$0xff] }
 0x1de   :  { %v1646_v0 = vmul.f32 %v6247_v23, %v9566_v22  ;;  %9568 = vst [vmem:[#allocation20_spill] sm:$0xff] %v6290_v51  ;;  %v6292_v30 = vld [vmem:[#allocation3 + $0x4] sm:$0xff]  ;;  %v6307_v53 = vmul.f32 %v6247_v23, %v9575_v18  ;;  %v6380_v51 = vld [vmem:[#allocation3 + $0x2c] sm:$0xff] }
 0x1df   :  { %v1464_v21 = vadd.f32 %v6065_v46, %v1450_v47  ;;  %v6288_v46 = vld [vmem:[#allocation3 + $0x2] sm:$0xff]  ;;  %9569 = vst [vmem:[#allocation31_spill] sm:$0xff] %v6292_v30  ;;  %v1465_v9 = vadd.f32 %v9570_v59, %v1451_v42  ;;  %v1519_v48 = vadd.f32 %v6162_v4, %v1505_v55  ;;  %v1574_v44 = vadd.f32 %v1570_v33, %v1560_v20  ;;  %v6326_v20 = vld [vmem:[#allocation3 + $0xb] sm:$0xff] }
 0x1e0   :  { %9567 = vst [vmem:[#allocation25_spill] sm:$0xff] %v6288_v46  ;;  %v6301_v36 = vld [vmem:[#allocation3 + $0x6] sm:$0xff]  ;;  %v9601_v46 = vld [vmem:[#allocation13_spill] sm:$0xff] }
 0x1e1   :  { %v1478_v40 = vadd.f32 %v9571_v60, %v1464_v21  ;;  %9573 = vst [vmem:[#allocation19_spill] sm:$0xff] %v6301_v36  ;;  %v9576_v47 = vld [vmem:[#allocation47_spill] sm:$0xff]  ;;  %v9577_v24 = vld [vmem:[#allocation18_spill] sm:$0xff]  ;;  %v1479_v36 = vadd.f32 %v6109_v16, %v1465_v9  ;;  %v1533_v30 = vadd.f32 %v6185_v7, %v1519_v48  ;;  %v6356_v16 = vmul.f32 %v6247_v23, %v6082_v62 }
 0x1e2   :  { %v6311_v2 = vmul.f32 %v6247_v23, %v9576_v47  ;;  %v1660_v56 = vmul.f32 %v6262_v3, %v9577_v24  ;;  %v6316_v4 = vld [vmem:[#allocation3 + $0x8] sm:$0xff]  ;;  %9582 = vst [vmem:[#allocation29_spill] sm:$0xff] %v6326_v20  ;;  %v3649_v20 = vld [vmem:[#allocation2 + $0x38] sm:$0x3f]  ;;  %v2119_v23 = vpop.permute.xlu2 %2118 }
 0x1e3   :  { %v6318_v33 = vld [vmem:[#allocation3 + $0x9] sm:$0xff]  ;;  %v6320_v42 = vld [vmem:[#allocation3 + $0x21] sm:$0xff]  ;;  %2134 = vst.msk [vmem:[#allocation3] sm:$0xff] %vm68_vm4, %v6221_v57  ;;  %v1492_v38 = vadd.f32 %v6119_v39, %v1478_v40  ;;  %v2121_v57 = vpop.permute.xlu0 %2120  ;;  %3414 = vrot.lane.b32.xlu2 %v3391_v14, %s4226_s26  ;;  %v9592_v39 = vld [vmem:[#allocation41_spill] sm:$0xff]  ;;  %v1687_v40 = vstv %s6249_s10  ;;  %s6642_s26 = sld [smem:[#allocation4 + $0x70]] }
 0x1e4   :  { %9578 = vst [vmem:[#allocation27_spill] sm:$0xff] %v6318_v33  ;;  %v6322_v21 = vld [vmem:[#allocation3 + $0xa] sm:$0xff]  ;;  %v6324_v55 = vld [vmem:[#allocation3 + $0x22] sm:$0xff]  ;;  %v6360_v7 = vmul.f32 %v6262_v3, %v9592_v39  ;;  %3672 = vrot.lane.b32.xlu1 %v3649_v20, %s4227_s8  ;;  %s6923_s10 = sld [smem:[#allocation4 + $0x35]] }
 0x1e5   :  { %9579 = vst [vmem:[#allocation33_spill] sm:$0xff] %v6320_v42  ;;  %v6328_v22 = vld [vmem:[#allocation3 + $0x23] sm:$0xff]  ;;  %v6330_v59 = vld [vmem:[#allocation3 + $0xc] sm:$0xff]  ;;  %v1715_v42 = vstv %s6286_s12  ;;  %s6987_s12 = sld [smem:[#allocation4 + $0x53]] }
 0x1e6   :  { %9580 = vst [vmem:[#allocation28_spill] sm:$0xff] %v6322_v21  ;;  %v6332_v60 = vld [vmem:[#allocation3 + $0xd] sm:$0xff] }
 0x1e7   :  { %9581 = vst [vmem:[#allocation34_spill] sm:$0xff] %v6324_v55  ;;  %v6334_v47 = vld [vmem:[#allocation3 + $0xe] sm:$0xff] }
 0x1e8   :  { %9583 = vst [vmem:[#allocation23_spill] sm:$0xff] %v6328_v22  ;;  %v6336_v24 = vld [vmem:[#allocation3 + $0xf] sm:$0xff]  ;;  %v6345_v22 = vld [vmem:[#allocation3 + $0x20] sm:$0xff] }
 0x1e9   :  { %9584 = vst [vmem:[#allocation35_spill] sm:$0xff] %v6330_v59  ;;  %v9588_v11 = vld [vmem:[#allocation55_spill] sm:$0xff]  ;;  %v1636_v59 = vadd.f32 %v1632_v8, %v1574_v44  ;;  %v9593_v8 = vld [vmem:[#allocation48_spill] sm:$0xff] }
 0x1ea   :  { %9585 = vst [vmem:[#allocation30_spill] sm:$0xff] %v6332_v60  ;;  %3668 = vrot.lane.b32.xlu0 %v9588_v11, %s4227_s8  ;;  %v6347_v60 = vld [vmem:[#allocation3 + $0x24] sm:$0xff]  ;;  %v6364_v9 = vmul.f32 %v6262_v3, %v9593_v8  ;;  %v1493_v11 = vadd.f32 %v6141_v52, %v1479_v36  ;;  %v9600_v21 = vld [vmem:[#allocation12_spill] sm:$0xff]  ;;  %v1674_v52 = vmul.f32 %v1673_v35, %v9601_v46  ;;  %v3645_v46 = vld [vmem:[#allocation2 + $0x18] sm:$0x3f]  ;;  %v2123_v25 = vpop.permute.xlu2 %2122 }
 0x1eb   :  { %9586 = vst [vmem:[#allocation36_spill] sm:$0xff] %v6334_v47  ;;  %v6349_v47 = vld [vmem:[#allocation3 + $0x25] sm:$0xff] }
 0x1ec   :  { %9587 = vst [vmem:[#allocation44_spill] sm:$0xff] %v6336_v24  ;;  %v6351_v24 = vld [vmem:[#allocation3 + $0x26] sm:$0xff] }
 0x1ed   :  { %9589 = vst [vmem:[#allocation15_spill] sm:$0xff] %v6347_v60  ;;  %v6369_v48 = vld [vmem:[#allocation3 + $0x28] sm:$0xff]  ;;  %v1650_v60 = vadd.f32 %v1646_v0, %v1636_v59  ;;  %v9602_v36 = vld [vmem:[#allocation42_spill] sm:$0xff] }
 0x1ee   :  { %9590 = vst [vmem:[#allocation21_spill] sm:$0xff] %v6349_v47  ;;  %v6371_v14 = vld [vmem:[#allocation3 + $0x29] sm:$0xff]  ;;  %v1547_v47 = vadd.f32 %v6207_v27, %v1533_v30  ;;  %v1701_v27 = vstv %s6264_s11  ;;  %s6937_s11 = sld [smem:[#allocation4 + $0x44]] }
 0x1ef   :  { %9591 = vst [vmem:[#allocation63_spill] sm:$0xff] %v6351_v24  ;;  %v6373_v44 = vld [vmem:[#allocation3 + $0x2a] sm:$0xff]  ;;  %v1506_v24 = vadd.f32 %v6148_v31, %v1492_v38  ;;  %v1675_v31 = vmul.f32 %v1673_v35, %v9602_v36 }
 0x1f0   :  { %9594 = vst [vmem:[#allocation14_spill] sm:$0xff] %v6369_v48  ;;  %v6378_v8 = vld [vmem:[#allocation3 + $0x2b] sm:$0xff] }
 0x1f1   :  { %9595 = vst [vmem:[#allocation40_spill] sm:$0xff] %v6371_v14  ;;  %v6382_v55 = vld [vmem:[#allocation3 + $0x27] sm:$0xff]  ;;  %v6397_v38 = vld [vmem:[#allocation3 + $0x2f] sm:$0xff]  ;;  %v1520_v59 = vadd.f32 %v6165_v61, %v1506_v24 }
 0x1f2   :  { %9596 = vst [vmem:[#allocation47_spill] sm:$0xff] %v6373_v44  ;;  %v6388_v44 = vmul.f32 %v6262_v3, %v9600_v21  ;;  %v6393_v0 = vld [vmem:[#allocation3 + $0x2d] sm:$0xff]  ;;  %v1561_v3 = vadd.f32 %v6224_v5, %v1547_v47  ;;  %v9610_v47 = vld [vmem:[#allocation50_spill] sm:$0xff]  ;;  %3664 = vrot.lane.b32.xlu0 %v3645_v46, %s4227_s8  ;;  %v1729_v46 = vstv %s6367_s13  ;;  %s7002_s13 = sld [smem:[#allocation4 + $0x62]] }
 0x1f3   :  { %9597 = vst [vmem:[#allocation18_spill] sm:$0xff] %v6378_v8  ;;  %v6395_v30 = vld [vmem:[#allocation3 + $0x2e] sm:$0xff]  ;;  %v1534_v5 = vadd.f32 %v6194_v10, %v1520_v59  ;;  %v6424_v24 = vmul.f32 %v1687_v40, %v9610_v47 }
 0x1f4   :  { %9598 = vst [vmem:[#allocation55_spill] sm:$0xff] %v6380_v51  ;;  %v9606_v51 = vld [vmem:[#allocation49_spill] sm:$0xff] }
 0x1f5   :  { %9599 = vst [vmem:[#allocation41_spill] sm:$0xff] %v6382_v55  ;;  %v1664_v55 = vadd.f32 %v1660_v56, %v1650_v60  ;;  %v6405_v8 = vmul.f32 %v1673_v35, %v9606_v51  ;;  %v1575_v56 = vadd.f32 %v6244_v13, %v1561_v3  ;;  %v1548_v10 = vadd.f32 %v6210_v49, %v1534_v5  ;;  %v9616_v3 = vld [vmem:[#allocation38_spill] sm:$0xff] }
 0x1f6   :  { %2135 = vst.msk [vmem:[#allocation3 + $0x8] sm:$0xff] %vm68_vm4, %v6266_v54  ;;  %v1507_v54 = vadd.f32 %v6156_v12, %v1493_v11  ;;  %v6414_v12 = vpop.permute.xlu1 %2114  ;;  %v9612_v11 = vld [vmem:[#allocation37_spill] sm:$0xff]  ;;  %v1716_v47 = vmul.f32 %v1715_v42, %v9616_v3 }
 0x1f7   :  { %9603 = vst [vmem:[#allocation48_spill] sm:$0xff] %v6393_v0  ;;  %v9607_v0 = vld [vmem:[#allocation64_spill] sm:$0xff]  ;;  %v1678_v51 = vadd.f32 %v1674_v52, %v1664_v55  ;;  %v1702_v20 = vmul.f32 %v1701_v27, %v9612_v11  ;;  %v1637_v13 = vadd.f32 %v6276_v45, %v1575_v56  ;;  %v9613_v52 = vld [vmem:[#allocation62_spill] sm:$0xff]  ;;  %v1562_v49 = vadd.f32 %v6227_v34, %v1548_v10  ;;  %v9619_v11 = vld [vmem:[#allocation53_spill] sm:$0xff] }
 0x1f8   :  { %9604 = vst [vmem:[#allocation12_spill] sm:$0xff] %v6395_v30  ;;  %v6408_v14 = vmul.f32 %v1673_v35, %v9607_v0  ;;  %v9608_v30 = vld [vmem:[#allocation22_spill] sm:$0xff]  ;;  %v1521_v61 = vadd.f32 %v6181_v6, %v1507_v54  ;;  %v9609_v35 = vld [vmem:[#allocation43_spill] sm:$0xff]  ;;  %3666 = vrot.lane.b32.xlu2 %v9613_v52, %s4227_s8  ;;  %v9615_v54 = vld [vmem:[#allocation52_spill] sm:$0xff]  ;;  %v6456_v52 = vmul.f32 %v1715_v42, %v9619_v11  ;;  %v1743_v11 = vstv %s6412_s14  ;;  %s7012_s14 = sld [smem:[#allocation4 + $0x71]] }
 0x1f9   :  { %9605 = vst [vmem:[#allocation13_spill] sm:$0xff] %v6397_v38  ;;  %v1688_v38 = vmul.f32 %v1687_v40, %v9608_v30  ;;  %v1689_v60 = vmul.f32 %v1687_v40, %v9609_v35  ;;  %v6442_v59 = vmul.f32 %v1701_v27, %v9615_v54  ;;  %v1651_v45 = vadd.f32 %v6307_v53, %v1637_v13  ;;  %v9618_v56 = vld [vmem:[#allocation46_spill] sm:$0xff]  ;;  %v9621_v53 = vld [vmem:[#allocation39_spill] sm:$0xff] }
 0x1fa   :  { %2138 = vst.msk [vmem:[#allocation3 + $0x20] sm:$0xff] %vm68_vm4, %v2119_v23  ;;  %v1535_v6 = vadd.f32 %v6197_v63, %v1521_v61  ;;  %v9617_v61 = vld [vmem:[#allocation66_spill] sm:$0xff] }
 0x1fb   :  { %2139 = vst.msk [vmem:[#allocation3 + $0x28] sm:$0xff] %vm68_vm4, %v2121_v57  ;;  %v9611_v57 = vld [vmem:[#allocation65_spill] sm:$0xff]  ;;  %v1692_v55 = vadd.f32 %v1688_v38, %v1678_v51  ;;  %v6452_v5 = vmul.f32 %v1701_v27, %v9617_v61  ;;  %v1717_v51 = vmul.f32 %v1715_v42, %v9618_v56  ;;  %v9620_v54 = vld [vmem:[#allocation10_spill] sm:$0xff]  ;;  %v1665_v34 = vadd.f32 %v6360_v7, %v1651_v45  ;;  %v6475_v7 = vld [vmem:[#allocation3 + $0x30] sm:$0xff] }
 0x1fc   :  { %v6427_v23 = vmul.f32 %v1687_v40, %v9611_v57  ;;  %v9614_v40 = vld [vmem:[#allocation45_spill] sm:$0xff]  ;;  %v1549_v63 = vadd.f32 %v6213_v1, %v1535_v6  ;;  %v6459_v3 = vmul.f32 %v1715_v42, %v9620_v54  ;;  %v1576_v1 = vadd.f32 %v6255_v41, %v1562_v49  ;;  %v9623_v13 = vld [vmem:[#allocation54_spill] sm:$0xff] }
 0x1fd   :  { %v1703_v30 = vmul.f32 %v1701_v27, %v9614_v40  ;;  %v1706_v38 = vadd.f32 %v1702_v20, %v1692_v55  ;;  %v1730_v20 = vmul.f32 %v1729_v46, %v9621_v53  ;;  %v9622_v27 = vld [vmem:[#allocation51_spill] sm:$0xff]  ;;  %v6467_v55 = vmul.f32 %v1729_v46, %v9623_v13  ;;  %v6479_v49 = vld [vmem:[#allocation3 + $0x32] sm:$0xff] }
 0x1fe   :  { %v1563_v33 = vadd.f32 %v6240_v26, %v1549_v63  ;;  %v1731_v10 = vmul.f32 %v1729_v46, %v9622_v27  ;;  %v1638_v48 = vadd.f32 %v6279_v17, %v1576_v1  ;;  %v1679_v26 = vadd.f32 %v1675_v31, %v1665_v34  ;;  %v9624_v63 = vld [vmem:[#allocation68_spill] sm:$0xff]  ;;  %v2125_v1 = vpop.permute.xlu1 %2124 }
 0x1ff   :  { %v1720_v6 = vadd.f32 %v1716_v47, %v1706_v38  ;;  %v6473_v41 = vmul.f32 %v1729_v46, %v9624_v63  ;;  %v6477_v47 = vld [vmem:[#allocation3 + $0x31] sm:$0xff]  ;;  %v1744_v38 = vmul.f32 %v1743_v11, %v9564_v29  ;;  %v1757_v17 = vstv %s6420_s15  ;;  %s7060_s15 = sld [smem:[#allocation4 + $0x8f]] }
 0x200   :  { %v1577_v42 = vadd.f32 %v6258_v37, %v1563_v33  ;;  %v9625_v53 = vld [vmem:[#allocation56_spill] sm:$0xff]  ;;  %v1652_v27 = vadd.f32 %v6311_v2, %v1638_v48  ;;  %3670 = vrot.lane.b32.xlu2 %v6171_v28, %s4227_s8  ;;  %v9628_v29 = vld [vmem:[#allocation69_spill] sm:$0xff]  ;;  %v1771_v63 = vstv %s6430_s16  ;;  %v2117_v28 = vpop.permute.xlu0 %2116  ;;  %s6877_s8 = sld [smem:[#allocation4 + $0x17]] }
 0x201   :  { %v1734_v45 = vadd.f32 %v1730_v20, %v1720_v6  ;;  %v6483_v37 = vmul.f32 %v1743_v11, %v9625_v53  ;;  %v6486_v33 = vld [vmem:[#allocation3 + $0x33] sm:$0xff]  ;;  %v1693_v6 = vadd.f32 %v1689_v60, %v1679_v26  ;;  %v6495_v20 = vmul.f32 %v1743_v11, %v9565_v50  ;;  %s7088_s16 = sld [smem:[#allocation4 + $0x9e]] }
 0x202   :  { %v6488_v31 = vld [vmem:[#allocation3 + $0x34] sm:$0xff]  ;;  %v1639_v34 = vadd.f32 %v6282_v19, %v1577_v42  ;;  %v6502_v13 = vmul.f32 %v1743_v11, %v9628_v29  ;;  %v1785_v53 = vstv %s6436_s17  ;;  %v1666_v50 = vadd.f32 %v6364_v9, %v1652_v27  ;;  %s7106_s17 = sld [smem:[#allocation4 + $0xad]] }
 0x203   :  { %9626 = vst [vmem:[#allocation42_spill] sm:$0xff] %v6488_v31  ;;  %v6490_v46 = vld [vmem:[#allocation3 + $0x35] sm:$0xff]  ;;  %v1707_v48 = vadd.f32 %v1703_v30, %v1693_v6  ;;  %v1758_v60 = vmul.f32 %v1757_v17, %v9575_v18  ;;  %v1748_v11 = vadd.f32 %v1744_v38, %v1734_v45  ;;  %v6519_v29 = vmul.f32 %v1757_v17, %v6082_v62  ;;  %v9631_v45 = vld [vmem:[#allocation58_spill] sm:$0xff] }
 0x204   :  { %9627 = vst [vmem:[#allocation49_spill] sm:$0xff] %v6490_v46  ;;  %v1799_v46 = vstv %s6446_s18  ;;  %v6509_v19 = vld [vmem:[#allocation3 + $0x36] sm:$0xff]  ;;  %v1653_v2 = vadd.f32 %v6356_v16, %v1639_v34  ;;  %v1680_v16 = vadd.f32 %v6405_v8, %v1666_v50  ;;  %v1773_v38 = vmul.f32 %v1771_v63, %v9631_v45  ;;  %v9633_v8 = vld [vmem:[#allocation59_spill] sm:$0xff]  ;;  %s7151_s18 = sld [smem:[#allocation4 + $0xbc]] }
 0x205   :  { %9629 = vst [vmem:[#allocation64_spill] sm:$0xff] %v6509_v19  ;;  %v9630_v42 = vld [vmem:[#allocation57_spill] sm:$0xff]  ;;  %v6522_v19 = vmul.f32 %v1757_v17, %v6121_v15  ;;  %v1721_v9 = vadd.f32 %v1717_v51, %v1707_v48  ;;  %v1762_v30 = vadd.f32 %v1758_v60, %v1748_v11  ;;  %v6532_v62 = vmul.f32 %v1771_v63, %v9600_v21  ;;  %v6547_v21 = vld [vmem:[#allocation3 + $0x10] sm:$0xff] }
 0x206   :  { %2140 = vst.msk [vmem:[#allocation3 + $0x30] sm:$0xff] %vm68_vm4, %v2123_v25  ;;  %v1759_v26 = vmul.f32 %v1757_v17, %v9630_v42  ;;  %v1667_v18 = vadd.f32 %v6388_v44, %v1653_v2  ;;  %v1772_v25 = vmul.f32 %v1771_v63, %v9592_v39  ;;  %v9632_v15 = vld [vmem:[#allocation17_spill] sm:$0xff]  ;;  %v1786_v44 = vmul.f32 %v1785_v53, %v9602_v36  ;;  %v9634_v2 = vld [vmem:[#allocation24_spill] sm:$0xff] }
 0x207   :  { %2141 = vst.msk [vmem:[#allocation3 + $0x38] sm:$0x3f] %vm72_vm2, %v2125_v1  ;;  %v6535_v17 = vmul.f32 %v1771_v63, %v9632_v15  ;;  %v1694_v1 = vadd.f32 %v6424_v24, %v1680_v16  ;;  %v1787_v51 = vmul.f32 %v1785_v53, %v9633_v8  ;;  %v1735_v27 = vadd.f32 %v1731_v10, %v1721_v9  ;;  %v6549_v63 = vpop.permute.xlu2 %2368  ;;  %v6559_v10 = vld [vmem:[#allocation3 + $0x12] sm:$0xff] }
 0x208   :  { %v1681_v34 = vadd.f32 %v6408_v14, %v1667_v18  ;;  %v1776_v39 = vadd.f32 %v1772_v25, %v1762_v30  ;;  %v6542_v6 = vmul.f32 %v1785_v53, %v9607_v0  ;;  %v6545_v50 = vmul.f32 %v1785_v53, %v9634_v2  ;;  %v6557_v0 = vld [vmem:[#allocation3 + $0x11] sm:$0xff]  ;;  %v9639_v2 = vld [vmem:[#allocation67_spill] sm:$0xff] }
 0x209   :  { %v1708_v24 = vadd.f32 %v6442_v59, %v1694_v1  ;;  %v1800_v36 = vmul.f32 %v1799_v46, %v9609_v35  ;;  %v1813_v48 = vstv %s6497_s19  ;;  %v6561_v53 = vld [vmem:[#allocation3 + $0x13] sm:$0xff]  ;;  %v6568_v35 = vmul.f32 %v1799_v46, %v6131_v43  ;;  %v6586_v43 = vpop.permute.xlu1 %2376  ;;  %s7189_s19 = sld [smem:[#allocation4 + $0xcb]] }
 0x20a   :  { %v1695_v14 = vadd.f32 %v6427_v23, %v1681_v34  ;;  %v1790_v60 = vadd.f32 %v1786_v44, %v1776_v39  ;;  %v9635_v11 = vld [vmem:[#allocation60_spill] sm:$0xff]  ;;  %v6565_v23 = vmul.f32 %v1799_v46, %v9611_v57  ;;  %v1827_v30 = vstv %s6507_s0  ;;  %s7203_s0 = sld [smem:[#allocation4 + $0xda]] }
 0x20b   :  { %v1801_v42 = vmul.f32 %v1799_v46, %v9635_v11  ;;  %v6572_v59 = vld [vmem:[#allocation3 + $0x14] sm:$0xff]  ;;  %v1722_v25 = vadd.f32 %v6456_v52, %v1708_v24  ;;  %v1889_v45 = vstv %s6514_s20  ;;  %v1749_v57 = vadd.f32 %v6483_v37, %v1735_v27  ;;  %s7240_s20 = sld [smem:[#allocation4 + $0x9]] }
 0x20c   :  { %v6574_v18 = vld [vmem:[#allocation3 + $0x15] sm:$0xff]  ;;  %v1709_v9 = vadd.f32 %v6452_v5, %v1695_v14  ;;  %v1804_v46 = vadd.f32 %v1800_v36, %v1790_v60  ;;  %v1814_v15 = vmul.f32 %v1813_v48, %v9614_v40  ;;  %v1903_v34 = vstv %s6524_s1  ;;  %v9640_v14 = vld [vmem:[#allocation11_spill] sm:$0xff]  ;;  %s7253_s1 = sld [smem:[#allocation4 + $0x18]] }
 0x20d   :  { %9636 = vst [vmem:[#allocation22_spill] sm:$0xff] %v6574_v18  ;;  %v6576_v16 = vld [vmem:[#allocation3 + $0x16] sm:$0xff]  ;;  %v6595_v44 = vmul.f32 %v1813_v48, %v9617_v61  ;;  %v6598_v8 = vmul.f32 %v1813_v48, %v6133_v58  ;;  %v1736_v37 = vadd.f32 %v6467_v55, %v1722_v25  ;;  %v1763_v27 = vadd.f32 %v1759_v26, %v1749_v57 }
 0x20e   :  { %9637 = vst [vmem:[#allocation43_spill] sm:$0xff] %v6576_v16  ;;  %v1723_v5 = vadd.f32 %v6459_v3, %v1709_v9  ;;  %v9638_v52 = vld [vmem:[#allocation61_spill] sm:$0xff]  ;;  %v1818_v39 = vadd.f32 %v1814_v15, %v1804_v46  ;;  %v1828_v40 = vmul.f32 %v1827_v30, %v9618_v56  ;;  %v6606_v3 = vmul.f32 %v1827_v30, %v9620_v54  ;;  %v9641_v54 = vld [vmem:[#allocation14_spill] sm:$0xff]  ;;  %v9642_v60 = vld [vmem:[#allocation16_spill] sm:$0xff] }
 0x20f   :  { %2136 = vst.msk [vmem:[#allocation3 + $0x10] sm:$0xff] %vm68_vm4, %v6414_v12  ;;  %v1815_v1 = vmul.f32 %v1813_v48, %v9638_v52  ;;  %v6600_v12 = vpop.permute.xlu0 %2370  ;;  %v6609_v61 = vmul.f32 %v1827_v30, %v9640_v14  ;;  %v1890_v58 = vmul.f32 %v1889_v45, %v6271_v32  ;;  %v1777_v55 = vadd.f32 %v1773_v38, %v1763_v27  ;;  %v9643_v9 = vld [vmem:[#allocation27_spill] sm:$0xff]  ;;  %v6630_v57 = vpop.permute.xlu2 %2378  ;;  %v9644_v46 = vld [vmem:[#allocation33_spill] sm:$0xff]  ;;  %v9645_v15 = vld [vmem:[#allocation40_spill] sm:$0xff] }
 0x210   :  { %2137 = vst.msk [vmem:[#allocation3 + $0x18] sm:$0x3f] %vm72_vm2, %v2117_v28  ;;  %v1829_v28 = vmul.f32 %v1827_v30, %v9639_v2  ;;  %v1737_v24 = vadd.f32 %v6473_v41, %v1723_v5  ;;  %v1832_v26 = vadd.f32 %v1828_v40, %v1818_v39  ;;  %v1891_v56 = vmul.f32 %v1889_v45, %v6316_v4  ;;  %v9647_v2 = vld [vmem:[#allocation28_spill] sm:$0xff]  ;;  %v9659_v16 = vld [vmem:[#allocation35_spill] sm:$0xff] }
 0x211   :  { %v6617_v36 = vmul.f32 %v1889_v45, %v6345_v22  ;;  %v6620_v48 = vmul.f32 %v1889_v45, %v9641_v54  ;;  %v1904_v11 = vmul.f32 %v1903_v34, %v9642_v60  ;;  %v6624_v32 = vmul.f32 %v1903_v34, %v9643_v9  ;;  %v6654_v60 = vpop.permute.xlu1 %2380 }
 0x212   :  { %v1750_v25 = vadd.f32 %v6495_v20, %v1736_v37  ;;  %v1791_v41 = vadd.f32 %v1787_v51, %v1777_v55  ;;  %v1894_v30 = vadd.f32 %v1890_v58, %v1832_v26  ;;  %v1917_v38 = vstv %s6555_s21  ;;  %v9646_v37 = vld [vmem:[#allocation25_spill] sm:$0xff]  ;;  %v9648_v58 = vld [vmem:[#allocation34_spill] sm:$0xff]  ;;  %9650 = vst [vmem:[#allocation50_spill] sm:$0xff] %v6654_v60  ;;  %s7262_s21 = sld [smem:[#allocation4 + $0x27]] }
 0x213   :  { %v6633_v22 = vmul.f32 %v1903_v34, %v9644_v46  ;;  %v6636_v45 = vmul.f32 %v1903_v34, %v9645_v15  ;;  %v1931_v5 = vstv %s6570_s22  ;;  %v1945_v52 = vstv %s6582_s23  ;;  %v9649_v34 = vld [vmem:[#allocation47_spill] sm:$0xff]  ;;  %s7276_s22 = sld [smem:[#allocation4 + $0x36]] }
 0x214   :  { %v1751_v27 = vadd.f32 %v6502_v13, %v1737_v24  ;;  %v1764_v39 = vadd.f32 %v6519_v29, %v1750_v25  ;;  %v1805_v20 = vadd.f32 %v1801_v42, %v1791_v41  ;;  %v1908_v51 = vadd.f32 %v1904_v11, %v1894_v30  ;;  %v9651_v24 = vld [vmem:[#allocation20_spill] sm:$0xff]  ;;  %v9652_v25 = vld [vmem:[#allocation29_spill] sm:$0xff]  ;;  %v9653_v30 = vld [vmem:[#allocation23_spill] sm:$0xff]  ;;  %s7286_s23 = sld [smem:[#allocation4 + $0x45]] }
 0x215   :  { %v1918_v40 = vmul.f32 %v1917_v38, %v9646_v37  ;;  %v6646_v14 = vmul.f32 %v1917_v38, %v9647_v2  ;;  %v6649_v55 = vmul.f32 %v1917_v38, %v9648_v58  ;;  %v6652_v26 = vmul.f32 %v1917_v38, %v9649_v34  ;;  %v9655_v37 = vld [vmem:[#allocation18_spill] sm:$0xff] }
 0x216   :  { %v1765_v13 = vadd.f32 %v6522_v19, %v1751_v27  ;;  %v1778_v29 = vadd.f32 %v6532_v62, %v1764_v39  ;;  %v1819_v42 = vadd.f32 %v1815_v1, %v1805_v20  ;;  %v1932_v11 = vmul.f32 %v1931_v5, %v9651_v24  ;;  %v6677_v20 = vld [vmem:[#allocation3 + $0x1] sm:$0xff] }
 0x217   :  { %v6662_v41 = vmul.f32 %v1931_v5, %v9652_v25  ;;  %v6665_v46 = vmul.f32 %v1931_v5, %v9653_v30  ;;  %v6668_v38 = vmul.f32 %v1931_v5, %v9655_v37  ;;  %v1959_v58 = vstv %s6612_s24  ;;  %v6673_v19 = vpop.permute.xlu0 %2372  ;;  %9657 = vst [vmem:[#allocation62_spill] sm:$0xff] %v6677_v20  ;;  %v9658_v24 = vld [vmem:[#allocation31_spill] sm:$0xff]  ;;  %s7367_s24 = sld [smem:[#allocation4 + $0x54]] }
 0x218   :  { %v1779_v62 = vadd.f32 %v6535_v17, %v1765_v13  ;;  %v1792_v1 = vadd.f32 %v6542_v6, %v1778_v29  ;;  %v1833_v27 = vadd.f32 %v1829_v28, %v1819_v42  ;;  %v1922_v39 = vadd.f32 %v1918_v40, %v1908_v51  ;;  %v6691_v60 = vld [vmem:[#allocation3 + $0x2] sm:$0xff] }
 0x219   :  { %9654 = vst [vmem:[#allocation65_spill] sm:$0xff] %v6665_v46  ;;  %v6680_v30 = vmul.f32 %v1945_v52, %v9658_v24  ;;  %v6683_v5 = vmul.f32 %v1945_v52, %v9659_v16  ;;  %v9661_v46 = vld [vmem:[#allocation55_spill] sm:$0xff]  ;;  %v1973_v13 = vstv %s6628_s25  ;;  %v6702_v29 = vld [vmem:[#allocation3] sm:$0xff]  ;;  %v1987_v20 = vstv %s6642_s26  ;;  %s7376_s25 = sld [smem:[#allocation4 + $0x63]] }
 0x21a   :  { %9656 = vst [vmem:[#allocation37_spill] sm:$0xff] %v6668_v38  ;;  %v9660_v38 = vld [vmem:[#allocation15_spill] sm:$0xff]  ;;  %v6689_v31 = vmul.f32 %v1945_v52, %v9661_v46  ;;  %v1793_v28 = vadd.f32 %v6545_v50, %v1779_v62  ;;  %v1806_v51 = vadd.f32 %v6565_v23, %v1792_v1  ;;  %v1895_v40 = vadd.f32 %v1891_v56, %v1833_v27  ;;  %v9675_v1 = vld [vmem:[#allocation26_spill] sm:$0xff]  ;;  %s7386_s26 = sld [smem:[#allocation4 + $0x72]] }
 0x21b   :  { %v6686_v18 = vmul.f32 %v1945_v52, %v9660_v38  ;;  %9663 = vst [vmem:[#allocation52_spill] sm:$0xff] %v6691_v60  ;;  %v6693_v17 = vld [vmem:[#allocation3 + $0x3] sm:$0xff]  ;;  %v6716_v50 = vld [vmem:[#allocation3 + $0x2b] sm:$0xff]  ;;  %v6725_v27 = vmul.f32 %v1959_v58, %v9675_v1 }
 0x21c   :  { %9662 = vst [vmem:[#allocation45_spill] sm:$0xff] %v6689_v31  ;;  %v6695_v6 = vld [vmem:[#allocation3 + $0x4] sm:$0xff]  ;;  %v6720_v56 = vld [vmem:[#allocation3 + $0x2c] sm:$0xff]  ;;  %v1807_v1 = vadd.f32 %v6568_v35, %v1793_v28 }
 0x21d   :  { %9664 = vst [vmem:[#allocation38_spill] sm:$0xff] %v6693_v17  ;;  %v6704_v42 = vld [vmem:[#allocation3 + $0x28] sm:$0xff]  ;;  %v9676_v60 = vld [vmem:[#allocation30_spill] sm:$0xff]  ;;  %v9688_v35 = vld [vmem:[#allocation36_spill] sm:$0xff] }
 0x21e   :  { %9665 = vst [vmem:[#allocation66_spill] sm:$0xff] %v6695_v6  ;;  %v6706_v52 = vld [vmem:[#allocation3 + $0x21] sm:$0xff]  ;;  %v6708_v38 = vld [vmem:[#allocation3 + $0x29] sm:$0xff] }
 0x21f   :  { %9666 = vst [vmem:[#allocation46_spill] sm:$0xff] %v6706_v52  ;;  %v6710_v24 = vld [vmem:[#allocation3 + $0x22] sm:$0xff]  ;;  %v6712_v17 = vld [vmem:[#allocation3 + $0x2a] sm:$0xff]  ;;  %v1936_v52 = vadd.f32 %v1932_v11, %v1922_v39 }
 0x220   :  { %9667 = vst [vmem:[#allocation53_spill] sm:$0xff] %v6708_v38  ;;  %v6714_v6 = vld [vmem:[#allocation3 + $0x23] sm:$0xff]  ;;  %v6728_v38 = vmul.f32 %v1959_v58, %v9676_v60 }
 0x221   :  { %9668 = vst [vmem:[#allocation10_spill] sm:$0xff] %v6710_v24  ;;  %v6718_v23 = vld [vmem:[#allocation3 + $0x24] sm:$0xff]  ;;  %v9677_v24 = vld [vmem:[#allocation21_spill] sm:$0xff] }
 0x222   :  { %9669 = vst [vmem:[#allocation39_spill] sm:$0xff] %v6712_v17  ;;  %v6722_v62 = vld [vmem:[#allocation3 + $0x5] sm:$0xff]  ;;  %v6731_v31 = vmul.f32 %v1959_v58, %v9677_v24  ;;  %v9679_v17 = vld [vmem:[#allocation48_spill] sm:$0xff] }
 0x223   :  { %9670 = vst [vmem:[#allocation51_spill] sm:$0xff] %v6714_v6  ;;  %v6734_v6 = vmul.f32 %v1959_v58, %v9679_v17  ;;  %v6749_v24 = vld [vmem:[#allocation3 + $0x26] sm:$0xff]  ;;  %v6751_v58 = vld [vmem:[#allocation3 + $0x2e] sm:$0xff] }
 0x224   :  { %9671 = vst [vmem:[#allocation54_spill] sm:$0xff] %v6716_v50  ;;  %v6738_v50 = vld [vmem:[#allocation3 + $0x25] sm:$0xff] }
 0x225   :  { %9672 = vst [vmem:[#allocation68_spill] sm:$0xff] %v6718_v23  ;;  %v6740_v23 = vld [vmem:[#allocation3 + $0x2d] sm:$0xff]  ;;  %v6767_v28 = vld [vmem:[#allocation3 + $0x20] sm:$0xff] }
 0x226   :  { %9673 = vst [vmem:[#allocation56_spill] sm:$0xff] %v6720_v56  ;;  %v6742_v56 = vld [vmem:[#allocation3 + $0x6] sm:$0xff] }
 0x227   :  { %9674 = vst [vmem:[#allocation69_spill] sm:$0xff] %v6722_v62  ;;  %v1820_v62 = vadd.f32 %v6595_v44, %v1806_v51  ;;  %v6762_v44 = vmul.f32 %v1973_v13, %v9688_v35  ;;  %v9689_v11 = vld [vmem:[#allocation63_spill] sm:$0xff] }
 0x228   :  { %9678 = vst [vmem:[#allocation57_spill] sm:$0xff] %v6731_v31  ;;  %v6765_v39 = vmul.f32 %v1973_v13, %v9689_v11  ;;  %v6769_v51 = vld [vmem:[#allocation3 + $0x27] sm:$0xff] }
 0x229   :  { %9680 = vst [vmem:[#allocation58_spill] sm:$0xff] %v6734_v6  ;;  %v6753_v6 = vld [vmem:[#allocation3 + $0x7] sm:$0xff] }
 0x22a   :  { %9681 = vst [vmem:[#allocation17_spill] sm:$0xff] %v6738_v50  ;;  %v6755_v50 = vpop.permute.xlu2 %2374  ;;  %v6783_v11 = vld [vmem:[#allocation3 + $0x9] sm:$0xff] }
 0x22b   :  { %9682 = vst [vmem:[#allocation59_spill] sm:$0xff] %v6740_v23  ;;  %v1909_v23 = vadd.f32 %v6624_v32, %v1895_v40  ;;  %v1821_v32 = vadd.f32 %v6598_v8, %v1807_v1  ;;  %v1834_v40 = vadd.f32 %v6606_v3, %v1820_v62  ;;  %v9698_v8 = vld [vmem:[#allocation44_spill] sm:$0xff]  ;;  %v2015_v1 = vstv %s6671_s28  ;;  %s7474_s28 = sld [smem:[#allocation4 + $0x90]] }
 0x22c   :  { %9683 = vst [vmem:[#allocation24_spill] sm:$0xff] %v6742_v56  ;;  %v9687_v56 = vld [vmem:[#allocation19_spill] sm:$0xff]  ;;  %v6795_v3 = vmul.f32 %v1987_v20, %v9698_v8 }
 0x22d   :  { %9684 = vst [vmem:[#allocation60_spill] sm:$0xff] %v6749_v24  ;;  %v6759_v31 = vmul.f32 %v1973_v13, %v9687_v56  ;;  %v9693_v56 = vld [vmem:[#allocation12_spill] sm:$0xff]  ;;  %v2001_v24 = vstv %s6659_s27  ;;  %v1896_v8 = vadd.f32 %v6617_v36, %v1834_v40  ;;  %s7444_s27 = sld [smem:[#allocation4 + $0x81]] }
 0x22e   :  { %9685 = vst [vmem:[#allocation61_spill] sm:$0xff] %v6751_v58  ;;  %v6771_v58 = vld [vmem:[#allocation3 + $0x2f] sm:$0xff]  ;;  %v6830_v36 = vmul.f32 %v2001_v24, %v6547_v21  ;;  %v6846_v21 = vmul.f32 %v2001_v24, %v6475_v7  ;;  %v2043_v7 = vstv %s6736_s30  ;;  %s7518_s30 = sld [smem:[#allocation4 + $0xae]] }
 0x22f   :  { %9686 = vst [vmem:[#allocation67_spill] sm:$0xff] %v6753_v6  ;;  %v6778_v6 = vmul.f32 %v1973_v13, %v9693_v56  ;;  %v9700_v13 = vld [vmem:[#allocation41_spill] sm:$0xff] }
 0x230   :  { %9690 = vst [vmem:[#allocation11_spill] sm:$0xff] %v6765_v39  ;;  %v6785_v39 = vld [vmem:[#allocation3 + $0xa] sm:$0xff]  ;;  %v6798_v62 = vmul.f32 %v1987_v20, %v9700_v13  ;;  %v9705_v13 = vld [vmem:[#allocation13_spill] sm:$0xff] }
 0x231   :  { %9691 = vst [vmem:[#allocation14_spill] sm:$0xff] %v6769_v51  ;;  %v6787_v51 = vld [vmem:[#allocation3 + $0xb] sm:$0xff]  ;;  %v6851_v40 = vld [vmem:[#allocation3 + $0x14] sm:$0xff] }
 0x232   :  { %9692 = vst [vmem:[#allocation16_spill] sm:$0xff] %v6771_v58 }
 0x233   :  { %2392 = vst.msk [vmem:[#allocation3] sm:$0xff] %vm68_vm4, %v6549_v63  ;;  %v9697_v63 = vld [vmem:[#allocation32_spill] sm:$0xff] }
 0x234   :  { %9694 = vst [vmem:[#allocation27_spill] sm:$0xff] %v6778_v6  ;;  %v6792_v58 = vmul.f32 %v1987_v20, %v9697_v63  ;;  %v6801_v6 = vld [vmem:[#allocation3 + $0xc] sm:$0xff]  ;;  %v1835_v63 = vadd.f32 %v6609_v61, %v1821_v32  ;;  %v6827_v61 = vmul.f32 %v2001_v24, %v6316_v4 }
 0x235   :  { %9695 = vst [vmem:[#allocation33_spill] sm:$0xff] %v6783_v11  ;;  %v6803_v11 = vld [vmem:[#allocation3 + $0xd] sm:$0xff] }
 0x236   :  { %9696 = vst [vmem:[#allocation40_spill] sm:$0xff] %v6785_v39  ;;  %v6805_v39 = vld [vmem:[#allocation3 + $0xe] sm:$0xff]  ;;  %v1897_v4 = vadd.f32 %v6620_v48, %v1835_v63  ;;  %v6861_v48 = vmul.f32 %v2015_v1, %v6557_v0 }
 0x237   :  { %2396 = vst.msk [vmem:[#allocation3 + $0x20] sm:$0xff] %vm68_vm4, %v6586_v43  ;;  %v6809_v43 = vpop.permute.xlu1 %2626  ;;  %v6839_v32 = vld [vmem:[#allocation3 + $0x13] sm:$0xff] }
 0x238   :  { %9699 = vst [vmem:[#allocation25_spill] sm:$0xff] %v6795_v3  ;;  %v1950_v3 = vadd.f32 %v6680_v30, %v1936_v52  ;;  %v6835_v30 = vld [vmem:[#allocation3 + $0x11] sm:$0xff] }
 0x239   :  { %9701 = vst [vmem:[#allocation28_spill] sm:$0xff] %v6798_v62  ;;  %v6815_v62 = vmul.f32 %v1987_v20, %v9705_v13  ;;  %v6833_v20 = vmul.f32 %v2001_v24, %v9641_v54  ;;  %v6837_v52 = vld [vmem:[#allocation3 + $0x12] sm:$0xff]  ;;  %v2029_v54 = vstv %s6700_s29  ;;  %v1911_v24 = vadd.f32 %v6636_v45, %v1897_v4  ;;  %s7504_s29 = sld [smem:[#allocation4 + $0x9f]] }
 0x23a   :  { %9702 = vst [vmem:[#allocation34_spill] sm:$0xff] %v6801_v6  ;;  %v6823_v6 = vld [vmem:[#allocation3 + $0x10] sm:$0xff]  ;;  %v1964_v63 = vadd.f32 %v6725_v27, %v1950_v3  ;;  %v6889_v45 = vmul.f32 %v2029_v54, %v9649_v34  ;;  %v6897_v3 = vmul.f32 %v2029_v54, %v6479_v49  ;;  %v6918_v49 = vmul.f32 %v2043_v7, %v6486_v33 }
 0x23b   :  { %9703 = vst [vmem:[#allocation47_spill] sm:$0xff] %v6803_v11  ;;  %v6819_v11 = vld [vmem:[#allocation3 + $0x8] sm:$0xff]  ;;  %v6853_v13 = vld [vmem:[#allocation3 + $0x15] sm:$0xff]  ;;  %v2085_v33 = vstv %s6817_s5  ;;  %s7598_s5 = sld [smem:[#allocation4 + $0xdb]] }
 0x23c   :  { %9704 = vst [vmem:[#allocation20_spill] sm:$0xff] %v6805_v39  ;;  %v6821_v39 = vld [vmem:[#allocation3 + $0xf] sm:$0xff] }
 0x23d   :  { %2397 = vst.msk [vmem:[#allocation3 + $0x28] sm:$0xff] %vm68_vm4, %v6630_v57  ;;  %v1923_v57 = vadd.f32 %v6646_v14, %v1909_v23  ;;  %v2383_v14 = vpop.permute.xlu0 %2382  ;;  %v1910_v23 = vadd.f32 %v6633_v22, %v1896_v8  ;;  %v6864_v22 = vmul.f32 %v2015_v1, %v9645_v15  ;;  %v2057_v8 = vstv %s6747_s3  ;;  %v6907_v34 = vld [vmem:[#allocation3 + $0x33] sm:$0xff]  ;;  %s7540_s3 = sld [smem:[#allocation4 + $0xbd]] }
 0x23e   :  { %9706 = vst [vmem:[#allocation29_spill] sm:$0xff] %v6839_v32  ;;  %v6855_v32 = vld [vmem:[#allocation3 + $0x16] sm:$0xff]  ;;  %v6883_v15 = vmul.f32 %v2029_v54, %v9647_v2  ;;  %v2071_v2 = vstv %s6781_s4  ;;  %s7570_s4 = sld [smem:[#allocation4 + $0xcc]] }
 0x23f   :  { %2393 = vst.msk [vmem:[#allocation3 + $0x8] sm:$0xff] %vm68_vm4, %v6600_v12  ;;  %v6858_v12 = vmul.f32 %v2015_v1, %v9643_v9  ;;  %v6874_v9 = vmul.f32 %v2015_v1, %v6477_v47  ;;  %v1937_v0 = vadd.f32 %v6662_v41, %v1923_v57  ;;  %v6893_v47 = vld [vmem:[#allocation3 + $0x30] sm:$0xff]  ;;  %v1924_v27 = vadd.f32 %v6649_v55, %v1910_v23  ;;  %v6909_v1 = vpop.permute.xlu2 %2628 }
 0x240   :  { %2394 = vst.msk [vmem:[#allocation3 + $0x10] sm:$0xff] %vm68_vm4, %v6673_v19  ;;  %v6886_v19 = vmul.f32 %v2029_v54, %v6559_v10  ;;  %v6900_v41 = vmul.f32 %v2043_v7, %v9652_v25  ;;  %v6905_v10 = vld [vmem:[#allocation3 + $0x32] sm:$0xff]  ;;  %v6912_v57 = vmul.f32 %v2043_v7, %v6561_v53  ;;  %v6915_v55 = vmul.f32 %v2043_v7, %v9655_v37  ;;  %v6941_v7 = vld [vmem:[#allocation3] sm:$0xff] }
 0x241   :  { %2395 = vst.msk [vmem:[#allocation3 + $0x18] sm:$0x3f] %vm72_vm2, %v6755_v50  ;;  %v6903_v50 = vld [vmem:[#allocation3 + $0x31] sm:$0xff]  ;;  %v6921_v25 = vmul.f32 %v2057_v8, %v9659_v16  ;;  %v1925_v53 = vadd.f32 %v6652_v26, %v1911_v24  ;;  %v6934_v37 = vmul.f32 %v2057_v8, %v6572_v59  ;;  %v9711_v16 = vld [vmem:[#allocation50_spill] sm:$0xff]  ;;  %v6947_v26 = vmul.f32 %v2057_v8, %v9661_v46 }
 0x242   :  { %9707 = vst [vmem:[#allocation23_spill] sm:$0xff] %v6897_v3  ;;  %v6925_v4 = vld [vmem:[#allocation3 + $0x34] sm:$0xff]  ;;  %v1978_v3 = vadd.f32 %v6759_v31, %v1964_v63  ;;  %v9715_v31 = vld [vmem:[#allocation42_spill] sm:$0xff]  ;;  %v6953_v59 = vmul.f32 %v2071_v2, %v9676_v60  ;;  %v6969_v60 = vmul.f32 %v2071_v2, %v9679_v17  ;;  %v6990_v17 = vstv %s6867_s7  ;;  %s7636_s7 = sld [smem:[#allocation4 + $0x19]] }
 0x243   :  { %9708 = vst [vmem:[#allocation18_spill] sm:$0xff] %v6915_v55  ;;  %v6927_v23 = vld [vmem:[#allocation3 + $0x35] sm:$0xff]  ;;  %v1951_v55 = vadd.f32 %v6683_v5, %v1937_v0  ;;  %v6950_v24 = vmul.f32 %v2057_v8, %v9715_v31  ;;  %v9721_v0 = vld [vmem:[#allocation22_spill] sm:$0xff]  ;;  %v2147_v8 = vstv %s6849_s6  ;;  %s7627_s6 = sld [smem:[#allocation4 + $0xa]] }
 0x244   :  { %9709 = vst [vmem:[#allocation31_spill] sm:$0xff] %v6918_v49  ;;  %v6929_v54 = vld [vmem:[#allocation3 + $0x36] sm:$0xff] }
 0x245   :  { %9710 = vst [vmem:[#allocation35_spill] sm:$0xff] %v6934_v37  ;;  %v9720_v5 = vld [vmem:[#allocation65_spill] sm:$0xff] }
 0x246   :  { %2398 = vst.msk [vmem:[#allocation3 + $0x30] sm:$0xff] %vm68_vm4, %v9711_v16  ;;  %v6943_v49 = vld [vmem:[#allocation3 + $0x1] sm:$0xff]  ;;  %v1938_v46 = vadd.f32 %v9720_v5, %v1924_v27  ;;  %v6982_v27 = vmul.f32 %v2085_v33, %v9688_v35  ;;  %v6999_v35 = vmul.f32 %v2085_v33, %v9693_v56  ;;  %v7016_v56 = vmul.f32 %v2147_v8, %v6819_v11 }
 0x247   :  { %9712 = vst [vmem:[#allocation15_spill] sm:$0xff] %v6941_v7  ;;  %v6956_v63 = vld [vmem:[#allocation3 + $0x2] sm:$0xff] }
 0x248   :  { %9713 = vst [vmem:[#allocation55_spill] sm:$0xff] %v6943_v49  ;;  %v6958_v16 = vld [vmem:[#allocation3 + $0x3] sm:$0xff]  ;;  %v6962_v49 = vpop.permute.xlu1 %2636 }
 0x249   :  { %9714 = vst [vmem:[#allocation26_spill] sm:$0xff] %v6947_v26  ;;  %v6960_v37 = vld [vmem:[#allocation3 + $0x4] sm:$0xff]  ;;  %v6966_v26 = vmul.f32 %v2071_v2, %v9721_v0 }
 0x24a   :  { %9716 = vst [vmem:[#allocation30_spill] sm:$0xff] %v6950_v24  ;;  %v6974_v31 = vld [vmem:[#allocation3 + $0x6] sm:$0xff] }
 0x24b   :  { %2399 = vst.msk [vmem:[#allocation3 + $0x38] sm:$0x3f] %vm72_vm2, %v2383_v14  ;;  %v6972_v14 = vld [vmem:[#allocation3 + $0x5] sm:$0xff] }
 0x24c   :  { %9717 = vst [vmem:[#allocation21_spill] sm:$0xff] %v6956_v63  ;;  %v6976_v24 = vld [vmem:[#allocation3 + $0x7] sm:$0xff] }
 0x24d   :  { %9718 = vst [vmem:[#allocation48_spill] sm:$0xff] %v6958_v16  ;;  %v9727_v16 = vld [vmem:[#allocation49_spill] sm:$0xff]  ;;  %v9730_v5 = vld [vmem:[#allocation43_spill] sm:$0xff]  ;;  %v9771_v63 = vld [vmem:[#allocation38_spill] sm:$0xff] }
 0x24e   :  { %9719 = vst [vmem:[#allocation19_spill] sm:$0xff] %v6960_v37  ;;  %v6979_v37 = vmul.f32 %v2071_v2, %v9727_v16  ;;  %v6985_v0 = vmul.f32 %v2085_v33, %v9730_v5  ;;  %v1992_v2 = vadd.f32 %v6792_v58, %v1978_v3  ;;  %v2161_v16 = vstv %s6877_s8  ;;  %s7648_s8 = sld [smem:[#allocation4 + $0x28]] }
 0x24f   :  { %9722 = vst [vmem:[#allocation36_spill] sm:$0xff] %v6966_v26  ;;  %v1965_v5 = vadd.f32 %v6728_v38, %v1951_v55  ;;  %v1952_v58 = vadd.f32 %v6686_v18, %v1938_v46  ;;  %v7019_v3 = vmul.f32 %v2147_v8, %v6767_v28  ;;  %v7022_v38 = vmul.f32 %v2147_v8, %v6704_v42  ;;  %v9745_v18 = vld [vmem:[#allocation45_spill] sm:$0xff]  ;;  %v9748_v28 = vld [vmem:[#allocation52_spill] sm:$0xff]  ;;  %v7062_v26 = vld [vmem:[#allocation3 + $0x20] sm:$0xff] }
 0x250   :  { %9723 = vst [vmem:[#allocation63_spill] sm:$0xff] %v6969_v60  ;;  %v6994_v60 = vpop.permute.xlu0 %2634  ;;  %v2006_v55 = vadd.f32 %v6827_v61, %v1992_v2  ;;  %v7044_v61 = vld [vmem:[#allocation3 + $0xa] sm:$0xff] }
 0x251   :  { %9724 = vst [vmem:[#allocation12_spill] sm:$0xff] %v6972_v14  ;;  %v2175_v14 = vstv %s6891_s9  ;;  %v7046_v2 = vld [vmem:[#allocation3 + $0xb] sm:$0xff]  ;;  %s7698_s9 = sld [smem:[#allocation4 + $0x37]] }
 0x252   :  { %9725 = vst [vmem:[#allocation32_spill] sm:$0xff] %v6974_v31 }
 0x253   :  { %9726 = vst [vmem:[#allocation44_spill] sm:$0xff] %v6976_v24  ;;  %v9732_v24 = vld [vmem:[#allocation37_spill] sm:$0xff] }
 0x254   :  { %9728 = vst [vmem:[#allocation41_spill] sm:$0xff] %v6979_v37  ;;  %v1939_v31 = vadd.f32 %v9732_v24, %v1925_v53  ;;  %v9734_v37 = vld [vmem:[#allocation64_spill] sm:$0xff]  ;;  %v9740_v53 = vld [vmem:[#allocation62_spill] sm:$0xff]  ;;  %v2189_v24 = vstv %s6923_s10  ;;  %s7725_s10 = sld [smem:[#allocation4 + $0x46]] }
 0x255   :  { %9729 = vst [vmem:[#allocation13_spill] sm:$0xff] %v6982_v27  ;;  %v7083_v27 = vmul.f32 %v2189_v24, %v9771_v63  ;;  %v9781_v63 = vld [vmem:[#allocation66_spill] sm:$0xff] }
 0x256   :  { %9731 = vst [vmem:[#allocation50_spill] sm:$0xff] %v6985_v0  ;;  %v7006_v0 = vmul.f32 %v2085_v33, %v9734_v37  ;;  %v7026_v37 = vmul.f32 %v2161_v16, %v9740_v53  ;;  %v1953_v46 = vadd.f32 %v9745_v18, %v1939_v31  ;;  %v7048_v53 = vld [vmem:[#allocation3 + $0xc] sm:$0xff]  ;;  %v9756_v18 = vld [vmem:[#allocation10_spill] sm:$0xff] }
 0x257   :  { %2650 = vst.msk [vmem:[#allocation3] sm:$0xff] %vm68_vm4, %v6809_v43  ;;  %v7009_v43 = vmul.f32 %v2147_v8, %v6702_v29  ;;  %v9742_v29 = vld [vmem:[#allocation46_spill] sm:$0xff]  ;;  %v2203_v8 = vstv %s6937_s11  ;;  %s7733_s11 = sld [smem:[#allocation4 + $0x55]] }
 0x258   :  { %9733 = vst [vmem:[#allocation42_spill] sm:$0xff] %v6999_v35  ;;  %v7029_v33 = vmul.f32 %v2161_v16, %v9742_v29  ;;  %v2631_v29 = vpop.permute.xlu2 %2630 }
 0x259   :  { %9735 = vst [vmem:[#allocation65_spill] sm:$0xff] %v7006_v0  ;;  %v7032_v0 = vld [vmem:[#allocation3 + $0x9] sm:$0xff] }
 0x25a   :  { %9736 = vst [vmem:[#allocation22_spill] sm:$0xff] %v7009_v43  ;;  %v7064_v43 = vld [vmem:[#allocation3 + $0x21] sm:$0xff] }
 0x25b   :  { %9737 = vst [vmem:[#allocation49_spill] sm:$0xff] %v7016_v56  ;;  %v9746_v56 = vld [vmem:[#allocation53_spill] sm:$0xff] }
 0x25c   :  { %9738 = vst [vmem:[#allocation43_spill] sm:$0xff] %v7019_v3  ;;  %v7036_v35 = vmul.f32 %v2161_v16, %v9746_v56  ;;  %v7039_v3 = vmul.f32 %v2175_v14, %v9748_v28  ;;  %v9758_v28 = vld [vmem:[#allocation39_spill] sm:$0xff] }
 0x25d   :  { %9739 = vst [vmem:[#allocation37_spill] sm:$0xff] %v7022_v38  ;;  %v7042_v38 = vld [vmem:[#allocation3 + $0x8] sm:$0xff] }
 0x25e   :  { %9741 = vst [vmem:[#allocation64_spill] sm:$0xff] %v7026_v37  ;;  %v9754_v37 = vld [vmem:[#allocation33_spill] sm:$0xff] }
 0x25f   :  { %9743 = vst [vmem:[#allocation62_spill] sm:$0xff] %v7029_v33  ;;  %v1979_v33 = vadd.f32 %v6762_v44, %v1965_v5  ;;  %v7052_v31 = vmul.f32 %v2161_v16, %v9754_v37  ;;  %v7070_v44 = vld [vmem:[#allocation3 + $0x24] sm:$0xff]  ;;  %v7072_v16 = vld [vmem:[#allocation3 + $0xd] sm:$0xff] }
 0x260   :  { %9744 = vst [vmem:[#allocation46_spill] sm:$0xff] %v7032_v0  ;;  %v7074_v5 = vld [vmem:[#allocation3 + $0x25] sm:$0xff] }
 0x261   :  { %9747 = vst [vmem:[#allocation45_spill] sm:$0xff] %v7036_v35  ;;  %v7055_v35 = vmul.f32 %v2175_v14, %v9756_v18  ;;  %v7076_v18 = vld [vmem:[#allocation3 + $0xe] sm:$0xff] }
 0x262   :  { %9749 = vst [vmem:[#allocation53_spill] sm:$0xff] %v7039_v3  ;;  %v7058_v3 = vmul.f32 %v2175_v14, %v9758_v28 }
 0x263   :  { %9750 = vst [vmem:[#allocation52_spill] sm:$0xff] %v7042_v38  ;;  %v9799_v38 = vld [vmem:[#allocation69_spill] sm:$0xff] }
 0x264   :  { %9751 = vst [vmem:[#allocation70_spill] sm:$0xff] %v7044_v61 }
 0x265   :  { %9752 = vst [vmem:[#allocation71_spill] sm:$0xff] %v7046_v2  ;;  %v7066_v2 = vld [vmem:[#allocation3 + $0x22] sm:$0xff] }
 0x266   :  { %9753 = vst [vmem:[#allocation72_spill] sm:$0xff] %v7048_v53  ;;  %v7068_v53 = vld [vmem:[#allocation3 + $0x23] sm:$0xff] }
 0x267   :  { %9755 = vst [vmem:[#allocation33_spill] sm:$0xff] %v7052_v31  ;;  %v9769_v31 = vld [vmem:[#allocation40_spill] sm:$0xff] }
 0x268   :  { %9757 = vst [vmem:[#allocation10_spill] sm:$0xff] %v7055_v35  ;;  %v7080_v61 = vmul.f32 %v2175_v14, %v9769_v31  ;;  %v9779_v14 = vld [vmem:[#allocation54_spill] sm:$0xff] }
 0x269   :  { %9759 = vst [vmem:[#allocation39_spill] sm:$0xff] %v7058_v3  ;;  %v9768_v3 = vld [vmem:[#allocation57_spill] sm:$0xff] }
 0x26a   :  { %9760 = vst [vmem:[#allocation73_spill] sm:$0xff] %v7062_v26  ;;  %v1966_v35 = vadd.f32 %v9768_v3, %v1952_v58  ;;  %v7100_v3 = vmul.f32 %v2189_v24, %v9779_v14  ;;  %v9798_v26 = vld [vmem:[#allocation11_spill] sm:$0xff] }
 0x26b   :  { %9761 = vst [vmem:[#allocation74_spill] sm:$0xff] %v7064_v43  ;;  %v7124_v43 = vld [vmem:[#allocation3 + $0x13] sm:$0xff] }
 0x26c   :  { %9762 = vst [vmem:[#allocation75_spill] sm:$0xff] %v7066_v2  ;;  %v7086_v2 = vmul.f32 %v2189_v24, %v6787_v51 }
 0x26d   :  { %9763 = vst [vmem:[#allocation76_spill] sm:$0xff] %v7068_v53  ;;  %v2231_v53 = vstv %s7002_s13  ;;  %s7785_s13 = sld [smem:[#allocation4 + $0x73]] }
 0x26e   :  { %9764 = vst [vmem:[#allocation77_spill] sm:$0xff] %v7070_v44  ;;  %v7090_v44 = vld [vmem:[#allocation3 + $0x26] sm:$0xff] }
 0x26f   :  { %9765 = vst [vmem:[#allocation78_spill] sm:$0xff] %v7072_v16  ;;  %v7092_v16 = vld [vmem:[#allocation3 + $0xf] sm:$0xff] }
 0x270   :  { %9766 = vst [vmem:[#allocation79_spill] sm:$0xff] %v7074_v5  ;;  %v7094_v5 = vld [vmem:[#allocation3 + $0x27] sm:$0xff] }
 0x271   :  { %9767 = vst [vmem:[#allocation80_spill] sm:$0xff] %v7076_v18  ;;  %v9777_v18 = vld [vmem:[#allocation51_spill] sm:$0xff] }
 0x272   :  { %9770 = vst [vmem:[#allocation57_spill] sm:$0xff] %v7080_v61  ;;  %v7097_v58 = vmul.f32 %v2189_v24, %v9777_v18  ;;  %v7103_v61 = vmul.f32 %v2203_v8, %v9781_v63  ;;  %v2633_v18 = vpop.permute.xlu1 %2632  ;;  %v9789_v63 = vld [vmem:[#allocation68_spill] sm:$0xff] }
 0x273   :  { %9772 = vst [vmem:[#allocation40_spill] sm:$0xff] %v7083_v27  ;;  %v2217_v27 = vstv %s6987_s12  ;;  %s7745_s12 = sld [smem:[#allocation4 + $0x64]] }
 0x274   :  { %9773 = vst [vmem:[#allocation38_spill] sm:$0xff] %v7086_v2  ;;  %v7108_v2 = vld [vmem:[#allocation3 + $0x10] sm:$0xff] }
 0x275   :  { %9774 = vst [vmem:[#allocation81_spill] sm:$0xff] %v7090_v44  ;;  %v7110_v44 = vld [vmem:[#allocation3 + $0x11] sm:$0xff] }
 0x276   :  { %9775 = vst [vmem:[#allocation82_spill] sm:$0xff] %v7092_v16  ;;  %v7112_v16 = vld [vmem:[#allocation3 + $0x12] sm:$0xff] }
 0x277   :  { %9776 = vst [vmem:[#allocation83_spill] sm:$0xff] %v7094_v5 }
 0x278   :  { %9778 = vst [vmem:[#allocation51_spill] sm:$0xff] %v7097_v58  ;;  %v9786_v58 = vld [vmem:[#allocation58_spill] sm:$0xff] }
 0x279   :  { %9780 = vst [vmem:[#allocation54_spill] sm:$0xff] %v7100_v3  ;;  %v1967_v24 = vadd.f32 %v9786_v58, %v1953_v46  ;;  %v9787_v3 = vld [vmem:[#allocation34_spill] sm:$0xff]  ;;  %v2020_v46 = vadd.f32 %v6858_v12, %v2006_v55  ;;  %v9795_v58 = vld [vmem:[#allocation56_spill] sm:$0xff]  ;;  %v7153_v12 = vld [vmem:[#allocation3 + $0x28] sm:$0xff] }
 0x27a   :  { %9782 = vst [vmem:[#allocation66_spill] sm:$0xff] %v7103_v61  ;;  %v7118_v5 = vmul.f32 %v2203_v8, %v9787_v3  ;;  %v7121_v61 = vmul.f32 %v2203_v8, %v9789_v63  ;;  %v7135_v0 = vmul.f32 %v2203_v8, %v9795_v58  ;;  %v7138_v63 = vld [vmem:[#allocation3 + $0x16] sm:$0xff]  ;;  %v7155_v55 = vld [vmem:[#allocation3 + $0x29] sm:$0xff] }
 0x27b   :  { %9783 = vst [vmem:[#allocation84_spill] sm:$0xff] %v7108_v2  ;;  %v7126_v2 = vld [vmem:[#allocation3 + $0x14] sm:$0xff] }
 0x27c   :  { %9784 = vst [vmem:[#allocation85_spill] sm:$0xff] %v7110_v44  ;;  %v7128_v44 = vld [vmem:[#allocation3 + $0x15] sm:$0xff] }
 0x27d   :  { %9785 = vst [vmem:[#allocation86_spill] sm:$0xff] %v7112_v16 }
 0x27e   :  { %2651 = vst.msk [vmem:[#allocation3 + $0x8] sm:$0xff] %vm68_vm4, %v6909_v1  ;;  %v9794_v1 = vld [vmem:[#allocation25_spill] sm:$0xff] }
 0x27f   :  { %9788 = vst [vmem:[#allocation58_spill] sm:$0xff] %v7118_v5  ;;  %v1993_v16 = vadd.f32 %v9794_v1, %v1979_v33  ;;  %v2245_v5 = vstv %s7012_s14  ;;  %v7157_v33 = vld [vmem:[#allocation3 + $0x2a] sm:$0xff]  ;;  %s7817_s14 = sld [smem:[#allocation4 + $0x82]] }
 0x280   :  { %9790 = vst [vmem:[#allocation34_spill] sm:$0xff] %v7121_v61  ;;  %v2639_v61 = vpop.permute.xlu0 %2638  ;;  %v9809_v1 = vld [vmem:[#allocation24_spill] sm:$0xff] }
 0x281   :  { %9791 = vst [vmem:[#allocation68_spill] sm:$0xff] %v7124_v43  ;;  %v1980_v43 = vadd.f32 %v9798_v26, %v1966_v35  ;;  %v9805_v26 = vld [vmem:[#allocation17_spill] sm:$0xff] }
 0x282   :  { %9792 = vst [vmem:[#allocation87_spill] sm:$0xff] %v7126_v2  ;;  %v7142_v2 = vmul.f32 %v2217_v27, %v9799_v38  ;;  %v7161_v35 = vmul.f32 %v2217_v27, %v9805_v26  ;;  %v9807_v38 = vld [vmem:[#allocation59_spill] sm:$0xff] }
 0x283   :  { %9793 = vst [vmem:[#allocation88_spill] sm:$0xff] %v7128_v44  ;;  %v9801_v44 = vld [vmem:[#allocation47_spill] sm:$0xff]  ;;  %v7164_v8 = vmul.f32 %v2217_v27, %v9807_v38 }
 0x284   :  { %2654 = vst.msk [vmem:[#allocation3 + $0x20] sm:$0xff] %vm68_vm4, %v6994_v60  ;;  %v7145_v7 = vmul.f32 %v2217_v27, %v9801_v44  ;;  %v7149_v60 = vmul.f32 %v6990_v17, %v6819_v11  ;;  %v9811_v11 = vld [vmem:[#allocation20_spill] sm:$0xff] }
 0x285   :  { %9796 = vst [vmem:[#allocation25_spill] sm:$0xff] %v7135_v0  ;;  %v7170_v0 = vmul.f32 %v2231_v53, %v9811_v11 }
 0x286   :  { %9797 = vst [vmem:[#allocation56_spill] sm:$0xff] %v7138_v63  ;;  %v7167_v63 = vmul.f32 %v2231_v53, %v9809_v1 }
 0x287   :  { %9800 = vst [vmem:[#allocation11_spill] sm:$0xff] %v7142_v2  ;;  %v7176_v2 = vld [vmem:[#allocation3 + $0x2d] sm:$0xff] }
 0x288   :  { %9802 = vst [vmem:[#allocation69_spill] sm:$0xff] %v7145_v7  ;;  %v7172_v7 = vld [vmem:[#allocation3 + $0x2b] sm:$0xff] }
 0x289   :  { %9803 = vst [vmem:[#allocation47_spill] sm:$0xff] %v7149_v60  ;;  %v7174_v60 = vld [vmem:[#allocation3 + $0x2c] sm:$0xff] }
 0x28a   :  { %9804 = vst [vmem:[#allocation89_spill] sm:$0xff] %v7157_v33 }
 0x28b   :  { %2652 = vst.msk [vmem:[#allocation3 + $0x10] sm:$0xff] %vm68_vm4, %v2631_v29  ;;  %v9815_v29 = vld [vmem:[#allocation27_spill] sm:$0xff] }
 0x28c   :  { %9806 = vst [vmem:[#allocation17_spill] sm:$0xff] %v7161_v35  ;;  %v1981_v26 = vadd.f32 %v9815_v29, %v1967_v24  ;;  %v9816_v35 = vld [vmem:[#allocation60_spill] sm:$0xff]  ;;  %v2034_v24 = vadd.f32 %v6883_v15, %v2020_v46  ;;  %v9827_v15 = vld [vmem:[#allocation14_spill] sm:$0xff] }
 0x28d   :  { %9808 = vst [vmem:[#allocation59_spill] sm:$0xff] %v7164_v8  ;;  %v7181_v27 = vmul.f32 %v2231_v53, %v9816_v35  ;;  %v9818_v8 = vld [vmem:[#allocation61_spill] sm:$0xff]  ;;  %v7200_v35 = vmul.f32 %v2245_v5, %v6821_v39  ;;  %v7215_v46 = vmul.f32 %v2245_v5, %v9827_v15  ;;  %v9828_v39 = vld [vmem:[#allocation16_spill] sm:$0xff] }
 0x28e   :  { %9810 = vst [vmem:[#allocation24_spill] sm:$0xff] %v7167_v63  ;;  %v7184_v1 = vmul.f32 %v2231_v53, %v9818_v8  ;;  %v9820_v63 = vld [vmem:[#allocation67_spill] sm:$0xff]  ;;  %v2273_v53 = vstv %s7060_s15  ;;  %v7207_v29 = vld [vmem:[#allocation3 + $0x32] sm:$0xff]  ;;  %s7847_s15 = sld [smem:[#allocation4 + $0x91]] }
 0x28f   :  { %9812 = vst [vmem:[#allocation20_spill] sm:$0xff] %v7170_v0  ;;  %v7187_v33 = vmul.f32 %v2245_v5, %v9820_v63  ;;  %v7191_v0 = vld [vmem:[#allocation3 + $0x2e] sm:$0xff]  ;;  %v7245_v15 = vmul.f32 %v2273_v53, %v9754_v37  ;;  %v7260_v37 = vmul.f32 %v2273_v53, %v6903_v50  ;;  %v9830_v50 = vld [vmem:[#allocation29_spill] sm:$0xff] }
 0x290   :  { %9813 = vst [vmem:[#allocation90_spill] sm:$0xff] %v7174_v60  ;;  %v7193_v60 = vld [vmem:[#allocation3 + $0x2f] sm:$0xff] }
 0x291   :  { %9814 = vst [vmem:[#allocation91_spill] sm:$0xff] %v7176_v2  ;;  %v7195_v2 = vld [vmem:[#allocation3 + $0x30] sm:$0xff] }
 0x292   :  { %2653 = vst.msk [vmem:[#allocation3 + $0x18] sm:$0x3f] %vm72_vm2, %v2633_v18  ;;  %v2007_v18 = vadd.f32 %v6830_v36, %v1993_v16  ;;  %v7205_v63 = vld [vmem:[#allocation3 + $0x31] sm:$0xff] }
 0x293   :  { %9817 = vst [vmem:[#allocation27_spill] sm:$0xff] %v7181_v27  ;;  %v9826_v36 = vld [vmem:[#allocation28_spill] sm:$0xff]  ;;  %v7222_v27 = vmul.f32 %v6990_v17, %v6823_v6  ;;  %v1995_v6 = vadd.f32 %v6815_v62, %v1981_v26  ;;  %v2048_v62 = vadd.f32 %v6900_v41, %v2034_v24  ;;  %v2887_v24 = vpop.permute.xlu1 %2886 }
 0x294   :  { %9819 = vst [vmem:[#allocation60_spill] sm:$0xff] %v7184_v1  ;;  %v7209_v1 = vld [vmem:[#allocation3 + $0x33] sm:$0xff]  ;;  %v1994_v16 = vadd.f32 %v9826_v36, %v1980_v43  ;;  %v7236_v43 = vmul.f32 %v6990_v17, %v6893_v47  ;;  %v2301_v36 = vstv %s7106_s17  ;;  %s7939_s17 = sld [smem:[#allocation4 + $0xaf]] }
 0x295   :  { %9821 = vst [vmem:[#allocation61_spill] sm:$0xff] %v7187_v33  ;;  %v2641_v33 = vpop.permute.xlu2 %2640  ;;  %v7280_v41 = vmul.f32 %v2301_v36, %v6787_v51  ;;  %v7300_v51 = vld [vmem:[#allocation3 + $0x1] sm:$0xff] }
 0x296   :  { %9822 = vst [vmem:[#allocation67_spill] sm:$0xff] %v7200_v35  ;;  %v7218_v35 = vmul.f32 %v2245_v5, %v9828_v39  ;;  %v2287_v5 = vstv %s7088_s16  ;;  %v7248_v39 = vmul.f32 %v2273_v53, %v6835_v30  ;;  %v2008_v47 = vadd.f32 %v6833_v20, %v1994_v16  ;;  %s7865_s16 = sld [smem:[#allocation4 + $0xa0]] }
 0x297   :  { %9823 = vst [vmem:[#allocation92_spill] sm:$0xff] %v7205_v63  ;;  %v7224_v63 = vld [vmem:[#allocation3 + $0x34] sm:$0xff]  ;;  %v7265_v30 = vmul.f32 %v2287_v5, %v9769_v31  ;;  %v7274_v20 = vmul.f32 %v2287_v5, %v6905_v10  ;;  %v7283_v31 = vmul.f32 %v2301_v36, %v9830_v50  ;;  %v7292_v10 = vmul.f32 %v2301_v36, %v6907_v34  ;;  %v7310_v34 = vld [vmem:[#allocation3 + $0x9] sm:$0xff] }
 0x298   :  { %9824 = vst [vmem:[#allocation93_spill] sm:$0xff] %v7207_v29  ;;  %v7226_v29 = vld [vmem:[#allocation3 + $0x35] sm:$0xff]  ;;  %v2062_v16 = vadd.f32 %v6921_v25, %v2048_v62  ;;  %v7316_v50 = vld [vmem:[#allocation3 + $0x3] sm:$0xff]  ;;  %v7322_v25 = vld [vmem:[#allocation3 + $0xc] sm:$0xff] }
 0x299   :  { %9825 = vst [vmem:[#allocation94_spill] sm:$0xff] %v7209_v1  ;;  %v7228_v1 = vld [vmem:[#allocation3 + $0x36] sm:$0xff] }
 0x29a   :  { %2655 = vst.msk [vmem:[#allocation3 + $0x28] sm:$0xff] %vm68_vm4, %v6962_v49  ;;  %v7232_v49 = vmul.f32 %v6990_v17, %v6704_v42  ;;  %v7251_v42 = vmul.f32 %v2273_v53, %v9746_v56  ;;  %v2021_v17 = vadd.f32 %v6861_v48, %v2007_v18  ;;  %v7268_v56 = vmul.f32 %v2287_v5, %v6837_v52  ;;  %v2885_v52 = vpop.permute.xlu0 %2884  ;;  %v7298_v18 = vld [vmem:[#allocation3] sm:$0xff] }
 0x29b   :  { %2656 = vst.msk [vmem:[#allocation3 + $0x30] sm:$0xff] %vm68_vm4, %v2639_v61  ;;  %v7271_v61 = vmul.f32 %v2287_v5, %v9758_v28  ;;  %v2009_v48 = vadd.f32 %v6846_v21, %v1995_v6  ;;  %v7289_v28 = vmul.f32 %v2301_v36, %v9779_v14  ;;  %v2329_v21 = vstv %s7189_s19  ;;  %v7308_v6 = vld [vmem:[#allocation3 + $0x8] sm:$0xff]  ;;  %s7986_s19 = sld [smem:[#allocation4 + $0xcd]] }
 0x29c   :  { %2657 = vst.msk [vmem:[#allocation3 + $0x38] sm:$0x3f] %vm72_vm2, %v2641_v33  ;;  %v2315_v33 = vstv %s7151_s18  ;;  %v2035_v53 = vadd.f32 %v6886_v19, %v2021_v17  ;;  %v2343_v14 = vstv %s7203_s0  ;;  %v7314_v36 = vld [vmem:[#allocation3 + $0xa] sm:$0xff]  ;;  %s7977_s18 = sld [smem:[#allocation4 + $0xbe]] }
 0x29d   :  { %9829 = vst [vmem:[#allocation28_spill] sm:$0xff] %v7274_v20  ;;  %v7295_v26 = vmul.f32 %v2315_v33, %v9787_v3  ;;  %v7305_v5 = vmul.f32 %v2315_v33, %v6851_v40  ;;  %v7312_v3 = vld [vmem:[#allocation3 + $0x2] sm:$0xff]  ;;  %v2022_v40 = vadd.f32 %v6864_v22, %v2008_v47  ;;  %v7326_v17 = vmul.f32 %v2315_v33, %v9795_v58  ;;  %v7350_v47 = vld [vmem:[#allocation3 + $0xd] sm:$0xff]  ;;  %s7999_s0 = sld [smem:[#allocation4 + $0xdc]] }
 0x29e   :  { %9831 = vst [vmem:[#allocation14_spill] sm:$0xff] %v7289_v28  ;;  %v7320_v19 = vld [vmem:[#allocation3 + $0x4] sm:$0xff]  ;;  %v7329_v62 = vmul.f32 %v2315_v33, %v6925_v4  ;;  %v7344_v22 = vmul.f32 %v2329_v21, %v9807_v38  ;;  %v7347_v58 = vmul.f32 %v2329_v21, %v6927_v23  ;;  %v2405_v4 = vstv %s7240_s20  ;;  %v7354_v33 = vld [vmem:[#allocation3 + $0xf] sm:$0xff]  ;;  %s8045_s20 = sld [smem:[#allocation4 + $0xb]] }
 0x29f   :  { %9832 = vst [vmem:[#allocation16_spill] sm:$0xff] %v7292_v10  ;;  %v7318_v10 = vld [vmem:[#allocation3 + $0xb] sm:$0xff]  ;;  %v7362_v38 = vmul.f32 %v2343_v14, %v6855_v32  ;;  %v7365_v23 = vmul.f32 %v2343_v14, %v9818_v8  ;;  %v2036_v32 = vadd.f32 %v6889_v45, %v2022_v40  ;;  %v9919_v28 = vld [vmem:[#allocation78_spill] sm:$0xff] }
 0x2a0   :  { %9833 = vst [vmem:[#allocation29_spill] sm:$0xff] %v7300_v51  ;;  %v9863_v45 = vld [vmem:[#allocation55_spill] sm:$0xff]  ;;  %v9951_v51 = vld [vmem:[#allocation84_spill] sm:$0xff] }
 0x2a1   :  { %9834 = vst [vmem:[#allocation95_spill] sm:$0xff] %v7305_v5  ;;  %v9905_v5 = vld [vmem:[#allocation64_spill] sm:$0xff] }
 0x2a2   :  { %9835 = vst [vmem:[#allocation96_spill] sm:$0xff] %v7310_v34  ;;  %v9934_v34 = vld [vmem:[#allocation41_spill] sm:$0xff] }
 0x2a3   :  { %9836 = vst [vmem:[#allocation97_spill] sm:$0xff] %v7312_v3  ;;  %v7332_v3 = vmul.f32 %v2329_v21, %v9801_v44  ;;  %v7352_v44 = vld [vmem:[#allocation3 + $0xe] sm:$0xff] }
 0x2a4   :  { %9837 = vst [vmem:[#allocation98_spill] sm:$0xff] %v7314_v36  ;;  %v7334_v36 = vld [vmem:[#allocation3 + $0x5] sm:$0xff] }
 0x2a5   :  { %9838 = vst [vmem:[#allocation99_spill] sm:$0xff] %v7316_v50  ;;  %v7336_v50 = vld [vmem:[#allocation3 + $0x6] sm:$0xff] }
 0x2a6   :  { %9839 = vst [vmem:[#allocation100_spill] sm:$0xff] %v7318_v10  ;;  %v7338_v10 = vld [vmem:[#allocation3 + $0x7] sm:$0xff] }
 0x2a7   :  { %9840 = vst [vmem:[#allocation101_spill] sm:$0xff] %v7320_v19  ;;  %v7341_v19 = vmul.f32 %v2329_v21, %v6853_v13  ;;  %v2023_v13 = vadd.f32 %v6874_v9, %v2009_v48  ;;  %v2049_v21 = vadd.f32 %v6912_v57, %v2035_v53  ;;  %v7373_v9 = vmul.f32 %v2343_v14, %v6929_v54  ;;  %v9856_v48 = vld [vmem:[#allocation15_spill] sm:$0xff]  ;;  %v9859_v57 = vld [vmem:[#allocation73_spill] sm:$0xff] }
 0x2a8   :  { %9841 = vst [vmem:[#allocation102_spill] sm:$0xff] %v7322_v25  ;;  %v7380_v8 = vmul.f32 %v2405_v4, %v9856_v48  ;;  %v7392_v54 = vmul.f32 %v2405_v4, %v7153_v12  ;;  %v2461_v53 = vstv %s7286_s23  ;;  %v9865_v48 = vld [vmem:[#allocation46_spill] sm:$0xff]  ;;  %s8150_s23 = sld [smem:[#allocation4 + $0x47]] }
 0x2a9   :  { %9842 = vst [vmem:[#allocation103_spill] sm:$0xff] %v7326_v17  ;;  %v7466_v17 = vld [vmem:[#allocation3 + $0x2c] sm:$0xff] }
 0x2aa   :  { %9843 = vst [vmem:[#allocation104_spill] sm:$0xff] %v7329_v62  ;;  %v7452_v62 = vld [vmem:[#allocation3 + $0x25] sm:$0xff] }
 0x2ab   :  { %9844 = vst [vmem:[#allocation105_spill] sm:$0xff] %v7334_v36  ;;  %v9867_v36 = vld [vmem:[#allocation74_spill] sm:$0xff] }
 0x2ac   :  { %9845 = vst [vmem:[#allocation106_spill] sm:$0xff] %v7336_v50  ;;  %v2433_v50 = vstv %s7262_s21  ;;  %s8093_s21 = sld [smem:[#allocation4 + $0x29]] }
 0x2ad   :  { %9846 = vst [vmem:[#allocation107_spill] sm:$0xff] %v7338_v10  ;;  %v7359_v10 = vmul.f32 %v2343_v14, %v9811_v11  ;;  %v2419_v11 = vstv %s7253_s1  ;;  %s8079_s1 = sld [smem:[#allocation4 + $0x1a]] }
 0x2ae   :  { %9847 = vst [vmem:[#allocation108_spill] sm:$0xff] %v7341_v19  ;;  %v7398_v40 = vmul.f32 %v2419_v11, %v9863_v45  ;;  %v7404_v25 = vmul.f32 %v2419_v11, %v9867_v36  ;;  %v7464_v19 = vld [vmem:[#allocation3 + $0x2b] sm:$0xff] }
 0x2af   :  { %9848 = vst [vmem:[#allocation109_spill] sm:$0xff] %v7344_v22  ;;  %v7446_v22 = vld [vmem:[#allocation3 + $0x28] sm:$0xff] }
 0x2b0   :  { %9849 = vst [vmem:[#allocation110_spill] sm:$0xff] %v7347_v58  ;;  %v9876_v58 = vld [vmem:[#allocation70_spill] sm:$0xff] }
 0x2b1   :  { %9850 = vst [vmem:[#allocation111_spill] sm:$0xff] %v7350_v47  ;;  %v7401_v47 = vmul.f32 %v2419_v11, %v9865_v48 }
 0x2b2   :  { %9851 = vst [vmem:[#allocation112_spill] sm:$0xff] %v7352_v44 }
 0x2b3   :  { %9852 = vst [vmem:[#allocation113_spill] sm:$0xff] %v7354_v33  ;;  %v9857_v33 = vld [vmem:[#allocation52_spill] sm:$0xff] }
 0x2b4   :  { %2908 = vst.msk [vmem:[#allocation3] sm:$0xff] %vm68_vm4, %v2885_v52  ;;  %v2076_v52 = vadd.f32 %v6953_v59, %v2062_v16  ;;  %v7383_v44 = vmul.f32 %v2405_v4, %v9857_v33  ;;  %v2447_v59 = vstv %s7276_s22  ;;  %v9862_v16 = vld [vmem:[#allocation23_spill] sm:$0xff]  ;;  %s8111_s22 = sld [smem:[#allocation4 + $0x38]] }
 0x2b5   :  { %9853 = vst [vmem:[#allocation114_spill] sm:$0xff] %v7362_v38  ;;  %v2037_v14 = vadd.f32 %v9862_v16, %v2023_v13  ;;  %v7414_v13 = vld [vmem:[#allocation3 + $0x21] sm:$0xff]  ;;  %v7418_v38 = vmul.f32 %v2433_v50, %v9876_v58 }
 0x2b6   :  { %9854 = vst [vmem:[#allocation115_spill] sm:$0xff] %v7365_v23  ;;  %v9875_v16 = vld [vmem:[#allocation18_spill] sm:$0xff] }
 0x2b7   :  { %2909 = vst.msk [vmem:[#allocation3 + $0x8] sm:$0xff] %vm68_vm4, %v2887_v24  ;;  %v7389_v24 = vmul.f32 %v2405_v4, %v9859_v57  ;;  %v9870_v57 = vld [vmem:[#allocation13_spill] sm:$0xff]  ;;  %v7409_v4 = vmul.f32 %v2419_v11, %v7155_v55  ;;  %v2050_v45 = vadd.f32 %v9875_v16, %v2036_v32  ;;  %v7430_v11 = vld [vmem:[#allocation3 + $0x23] sm:$0xff] }
 0x2b8   :  { %9855 = vst [vmem:[#allocation116_spill] sm:$0xff] %v7373_v9  ;;  %v9869_v9 = vld [vmem:[#allocation35_spill] sm:$0xff]  ;;  %v9885_v32 = vld [vmem:[#allocation22_spill] sm:$0xff] }
 0x2b9   :  { %9858 = vst [vmem:[#allocation15_spill] sm:$0xff] %v7383_v44  ;;  %v2063_v44 = vadd.f32 %v9869_v9, %v2049_v21  ;;  %v7428_v9 = vld [vmem:[#allocation3 + $0x22] sm:$0xff] }
 0x2ba   :  { %9860 = vst [vmem:[#allocation52_spill] sm:$0xff] %v7389_v24  ;;  %v2090_v24 = vadd.f32 %v9870_v57, %v2076_v52  ;;  %v7426_v52 = vld [vmem:[#allocation3 + $0x20] sm:$0xff]  ;;  %v2895_v57 = vpop.permute.xlu0 %2894 }
 0x2bb   :  { %9861 = vst [vmem:[#allocation73_spill] sm:$0xff] %v7392_v54  ;;  %v9872_v54 = vld [vmem:[#allocation21_spill] sm:$0xff] }
 0x2bc   :  { %9864 = vst [vmem:[#allocation23_spill] sm:$0xff] %v7398_v40  ;;  %v7412_v23 = vmul.f32 %v2433_v50, %v9872_v54  ;;  %v7432_v54 = vld [vmem:[#allocation3 + $0x24] sm:$0xff]  ;;  %v2152_v16 = vadd.f32 %v9885_v32, %v2090_v24 }
 0x2bd   :  { %9866 = vst [vmem:[#allocation55_spill] sm:$0xff] %v7401_v47  ;;  %v9878_v47 = vld [vmem:[#allocation75_spill] sm:$0xff] }
 0x2be   :  { %9868 = vst [vmem:[#allocation46_spill] sm:$0xff] %v7404_v25  ;;  %v7421_v36 = vmul.f32 %v2433_v50, %v9878_v47  ;;  %v9880_v25 = vld [vmem:[#allocation89_spill] sm:$0xff]  ;;  %v9888_v47 = vld [vmem:[#allocation71_spill] sm:$0xff] }
 0x2bf   :  { %9871 = vst [vmem:[#allocation74_spill] sm:$0xff] %v7409_v4  ;;  %v7424_v21 = vmul.f32 %v2433_v50, %v9880_v25  ;;  %v9886_v4 = vld [vmem:[#allocation48_spill] sm:$0xff]  ;;  %v7454_v24 = vld [vmem:[#allocation3 + $0x26] sm:$0xff] }
 0x2c0   :  { %9873 = vst [vmem:[#allocation35_spill] sm:$0xff] %v7412_v23  ;;  %v9890_v50 = vld [vmem:[#allocation76_spill] sm:$0xff]  ;;  %v9896_v32 = vld [vmem:[#allocation31_spill] sm:$0xff]  ;;  %v2475_v23 = vstv %s7367_s24  ;;  %s8182_s24 = sld [smem:[#allocation4 + $0x56]] }
 0x2c1   :  { %9874 = vst [vmem:[#allocation13_spill] sm:$0xff] %v7414_v13 }
 0x2c2   :  { %9877 = vst [vmem:[#allocation21_spill] sm:$0xff] %v7418_v38  ;;  %v7436_v38 = vmul.f32 %v2447_v59, %v9886_v4  ;;  %v2893_v4 = vpop.permute.xlu2 %2892 }
 0x2c3   :  { %9879 = vst [vmem:[#allocation18_spill] sm:$0xff] %v7421_v36  ;;  %v7439_v36 = vmul.f32 %v2447_v59, %v9888_v47 }
 0x2c4   :  { %9881 = vst [vmem:[#allocation70_spill] sm:$0xff] %v7424_v21  ;;  %v7442_v21 = vmul.f32 %v2447_v59, %v9890_v50  ;;  %v9898_v50 = vld [vmem:[#allocation19_spill] sm:$0xff] }
 0x2c5   :  { %9882 = vst [vmem:[#allocation75_spill] sm:$0xff] %v7428_v9 }
 0x2c6   :  { %9883 = vst [vmem:[#allocation89_spill] sm:$0xff] %v7430_v11  ;;  %v7448_v11 = vld [vmem:[#allocation3 + $0x29] sm:$0xff] }
 0x2c7   :  { %9884 = vst [vmem:[#allocation117_spill] sm:$0xff] %v7432_v54  ;;  %v7450_v54 = vld [vmem:[#allocation3 + $0x2a] sm:$0xff] }
 0x2c8   :  { %9887 = vst [vmem:[#allocation22_spill] sm:$0xff] %v7436_v38  ;;  %v2051_v38 = vadd.f32 %v9896_v32, %v2037_v14  ;;  %v2166_v14 = vadd.f32 %v9905_v5, %v2152_v16  ;;  %v2489_v32 = vstv %s7376_s25  ;;  %v2503_v5 = vstv %s7386_s26  ;;  %v7494_v16 = vpop.permute.xlu1 %2888  ;;  %s8200_s25 = sld [smem:[#allocation4 + $0x65]] }
 0x2c9   :  { %9889 = vst [vmem:[#allocation48_spill] sm:$0xff] %v7439_v36  ;;  %v7458_v36 = vmul.f32 %v2447_v59, %v7172_v7  ;;  %v7476_v59 = vld [vmem:[#allocation3 + $0x2d] sm:$0xff]  ;;  %s8218_s26 = sld [smem:[#allocation4 + $0x74]] }
 0x2ca   :  { %9891 = vst [vmem:[#allocation71_spill] sm:$0xff] %v7442_v21  ;;  %v7461_v21 = vmul.f32 %v2461_v53, %v9898_v50  ;;  %v7478_v50 = vld [vmem:[#allocation3 + $0x2e] sm:$0xff] }
 0x2cb   :  { %9892 = vst [vmem:[#allocation76_spill] sm:$0xff] %v7448_v11 }
 0x2cc   :  { %9893 = vst [vmem:[#allocation118_spill] sm:$0xff] %v7450_v54  ;;  %v7468_v54 = vld [vmem:[#allocation3 + $0x27] sm:$0xff] }
 0x2cd   :  { %9894 = vst [vmem:[#allocation119_spill] sm:$0xff] %v7452_v62  ;;  %v9903_v62 = vld [vmem:[#allocation26_spill] sm:$0xff] }
 0x2ce   :  { %9895 = vst [vmem:[#allocation120_spill] sm:$0xff] %v7454_v24  ;;  %v2064_v9 = vadd.f32 %v9903_v62, %v2050_v45  ;;  %v9904_v24 = vld [vmem:[#allocation36_spill] sm:$0xff] }
 0x2cf   :  { %9897 = vst [vmem:[#allocation31_spill] sm:$0xff] %v7458_v36  ;;  %v2077_v40 = vadd.f32 %v9904_v24, %v2063_v44  ;;  %v7480_v36 = vld [vmem:[#allocation3 + $0x2f] sm:$0xff]  ;;  %v9913_v44 = vld [vmem:[#allocation90_spill] sm:$0xff] }
 0x2d0   :  { %9899 = vst [vmem:[#allocation19_spill] sm:$0xff] %v7461_v21  ;;  %v7490_v45 = vmul.f32 %v2461_v53, %v9913_v44  ;;  %v9915_v24 = vld [vmem:[#allocation30_spill] sm:$0xff] }
 0x2d1   :  { %9900 = vst [vmem:[#allocation121_spill] sm:$0xff] %v7464_v19  ;;  %v9917_v19 = vld [vmem:[#allocation12_spill] sm:$0xff] }
 0x2d2   :  { %9901 = vst [vmem:[#allocation122_spill] sm:$0xff] %v7466_v17  ;;  %v9909_v17 = vld [vmem:[#allocation72_spill] sm:$0xff] }
 0x2d3   :  { %9902 = vst [vmem:[#allocation123_spill] sm:$0xff] %v7468_v54  ;;  %v7484_v21 = vmul.f32 %v2461_v53, %v9909_v17  ;;  %v9911_v54 = vld [vmem:[#allocation77_spill] sm:$0xff] }
 0x2d4   :  { %9906 = vst [vmem:[#allocation26_spill] sm:$0xff] %v7476_v59  ;;  %v7487_v62 = vmul.f32 %v2461_v53, %v9911_v54  ;;  %v9916_v59 = vld [vmem:[#allocation53_spill] sm:$0xff]  ;;  %v9921_v54 = vld [vmem:[#allocation79_spill] sm:$0xff] }
 0x2d5   :  { %9907 = vst [vmem:[#allocation36_spill] sm:$0xff] %v7478_v50  ;;  %v2065_v50 = vadd.f32 %v9915_v24, %v2051_v38  ;;  %v7507_v53 = vmul.f32 %v2475_v23, %v9921_v54  ;;  %v9927_v38 = vld [vmem:[#allocation80_spill] sm:$0xff]  ;;  %v9930_v24 = vld [vmem:[#allocation50_spill] sm:$0xff]  ;;  %v9932_v54 = vld [vmem:[#allocation81_spill] sm:$0xff] }
 0x2d6   :  { %9908 = vst [vmem:[#allocation64_spill] sm:$0xff] %v7480_v36  ;;  %v2180_v36 = vadd.f32 %v9916_v59, %v2166_v14  ;;  %v7516_v14 = vmul.f32 %v2489_v32, %v9927_v38 }
 0x2d7   :  { %2912 = vst.msk [vmem:[#allocation3 + $0x20] sm:$0xff] %vm68_vm4, %v2893_v4  ;;  %v7499_v4 = vmul.f32 %v2475_v23, %v9917_v19  ;;  %v9929_v19 = vld [vmem:[#allocation63_spill] sm:$0xff] }
 0x2d8   :  { %9910 = vst [vmem:[#allocation72_spill] sm:$0xff] %v7484_v21  ;;  %v7502_v21 = vmul.f32 %v2475_v23, %v9919_v28  ;;  %v2078_v59 = vadd.f32 %v9929_v19, %v2064_v9  ;;  %v9940_v9 = vld [vmem:[#allocation42_spill] sm:$0xff] }
 0x2d9   :  { %9912 = vst [vmem:[#allocation77_spill] sm:$0xff] %v7487_v62  ;;  %v9925_v62 = vld [vmem:[#allocation32_spill] sm:$0xff] }
 0x2da   :  { %9914 = vst [vmem:[#allocation90_spill] sm:$0xff] %v7490_v45  ;;  %v9923_v45 = vld [vmem:[#allocation91_spill] sm:$0xff]  ;;  %v7513_v11 = vmul.f32 %v2489_v32, %v9925_v62  ;;  %v7528_v62 = vmul.f32 %v2489_v32, %v7191_v0  ;;  %v2092_v19 = vadd.f32 %v9940_v9, %v2078_v59 }
 0x2db   :  { %2913 = vst.msk [vmem:[#allocation3 + $0x28] sm:$0xff] %vm68_vm4, %v2895_v57  ;;  %v7510_v57 = vmul.f32 %v2475_v23, %v9923_v45  ;;  %v2079_v23 = vadd.f32 %v9934_v34, %v2065_v50  ;;  %v9943_v34 = vld [vmem:[#allocation65_spill] sm:$0xff]  ;;  %v9947_v59 = vld [vmem:[#allocation43_spill] sm:$0xff] }
 0x2dc   :  { %9918 = vst [vmem:[#allocation30_spill] sm:$0xff] %v7499_v4  ;;  %v9931_v4 = vld [vmem:[#allocation40_spill] sm:$0xff]  ;;  %v2154_v9 = vadd.f32 %v9947_v59, %v2092_v19  ;;  %v9956_v19 = vld [vmem:[#allocation57_spill] sm:$0xff] }
 0x2dd   :  { %9920 = vst [vmem:[#allocation53_spill] sm:$0xff] %v7502_v21  ;;  %v2091_v21 = vadd.f32 %v9930_v24, %v2077_v40  ;;  %v2194_v13 = vadd.f32 %v9931_v4, %v2180_v36  ;;  %v9941_v40 = vld [vmem:[#allocation49_spill] sm:$0xff]  ;;  %v9942_v36 = vld [vmem:[#allocation66_spill] sm:$0xff]  ;;  %v2093_v50 = vadd.f32 %v9943_v34, %v2079_v23 }
 0x2de   :  { %9922 = vst [vmem:[#allocation12_spill] sm:$0xff] %v7507_v53  ;;  %v7524_v53 = vmul.f32 %v2489_v32, %v9932_v54  ;;  %v2517_v54 = vstv %s7444_s27  ;;  %v9944_v32 = vld [vmem:[#allocation83_spill] sm:$0xff]  ;;  %s8295_s27 = sld [smem:[#allocation4 + $0x83]] }
 0x2df   :  { %9924 = vst [vmem:[#allocation78_spill] sm:$0xff] %v7510_v57  ;;  %v9936_v57 = vld [vmem:[#allocation44_spill] sm:$0xff]  ;;  %v2153_v24 = vadd.f32 %v9941_v40, %v2091_v21  ;;  %v2208_v4 = vadd.f32 %v9942_v36, %v2194_v13  ;;  %v9948_v21 = vld [vmem:[#allocation33_spill] sm:$0xff]  ;;  %v9949_v13 = vld [vmem:[#allocation11_spill] sm:$0xff]  ;;  %v7558_v23 = vmul.f32 %v2517_v54, %v9951_v51  ;;  %v7561_v34 = vmul.f32 %v2517_v54, %v7153_v12  ;;  %v2897_v12 = vpop.permute.xlu2 %2896 }
 0x2e0   :  { %9926 = vst [vmem:[#allocation79_spill] sm:$0xff] %v7513_v11  ;;  %v7531_v11 = vmul.f32 %v2503_v5, %v9936_v57  ;;  %v7547_v57 = vmul.f32 %v2503_v5, %v7193_v60  ;;  %v7564_v60 = vmul.f32 %v2517_v54, %v7195_v2  ;;  %v7576_v51 = vld [vmem:[#allocation3 + $0x32] sm:$0xff] }
 0x2e1   :  { %9928 = vst [vmem:[#allocation91_spill] sm:$0xff] %v7516_v14  ;;  %v9938_v14 = vld [vmem:[#allocation82_spill] sm:$0xff]  ;;  %v2167_v40 = vadd.f32 %v9948_v21, %v2153_v24  ;;  %v2222_v36 = vadd.f32 %v9949_v13, %v2208_v4  ;;  %v9957_v24 = vld [vmem:[#allocation24_spill] sm:$0xff]  ;;  %v2545_v4 = vstv %s7504_s29  ;;  %v9959_v21 = vld [vmem:[#allocation45_spill] sm:$0xff]  ;;  %s8313_s29 = sld [smem:[#allocation4 + $0xa1]] }
 0x2e2   :  { %9933 = vst [vmem:[#allocation32_spill] sm:$0xff] %v7524_v53  ;;  %v7534_v20 = vmul.f32 %v2503_v5, %v9938_v14  ;;  %v7550_v14 = vmul.f32 %v2517_v54, %v9857_v33  ;;  %v9950_v53 = vld [vmem:[#allocation37_spill] sm:$0xff]  ;;  %v9955_v33 = vld [vmem:[#allocation62_spill] sm:$0xff] }
 0x2e3   :  { %9935 = vst [vmem:[#allocation80_spill] sm:$0xff] %v7528_v62  ;;  %v7544_v62 = vmul.f32 %v2503_v5, %v9944_v32  ;;  %v2168_v5 = vadd.f32 %v9955_v33, %v2154_v9  ;;  %v2181_v32 = vadd.f32 %v9956_v19, %v2167_v40  ;;  %v2236_v59 = vadd.f32 %v9957_v24, %v2222_v36  ;;  %v9960_v54 = vld [vmem:[#allocation85_spill] sm:$0xff]  ;;  %v2899_v24 = vpop.permute.xlu1 %2898 }
 0x2e4   :  { %9937 = vst [vmem:[#allocation63_spill] sm:$0xff] %v7531_v11  ;;  %v2155_v11 = vadd.f32 %v9950_v53, %v2093_v50  ;;  %v7572_v53 = vld [vmem:[#allocation3 + $0x30] sm:$0xff]  ;;  %v2559_v40 = vstv %s7518_s30  ;;  %s8331_s30 = sld [smem:[#allocation4 + $0xb0]] }
 0x2e5   :  { %9939 = vst [vmem:[#allocation50_spill] sm:$0xff] %v7534_v20  ;;  %v2531_v20 = vstv %s7474_s28  ;;  %v7574_v50 = vld [vmem:[#allocation3 + $0x31] sm:$0xff]  ;;  %s8303_s28 = sld [smem:[#allocation4 + $0x92]] }
 0x2e6   :  { %9945 = vst [vmem:[#allocation40_spill] sm:$0xff] %v7544_v62  ;;  %v2169_v13 = vadd.f32 %v9959_v21, %v2155_v11  ;;  %v7580_v2 = vmul.f32 %v2531_v20, %v9865_v48  ;;  %v7583_v9 = vmul.f32 %v2531_v20, %v9960_v54  ;;  %v7586_v36 = vld [vmem:[#allocation3 + $0x33] sm:$0xff]  ;;  %v7596_v48 = vmul.f32 %v2531_v20, %v7155_v55  ;;  %v9969_v54 = vld [vmem:[#allocation39_spill] sm:$0xff] }
 0x2e7   :  { %9946 = vst [vmem:[#allocation81_spill] sm:$0xff] %v7547_v57  ;;  %v7588_v33 = vld [vmem:[#allocation3 + $0x34] sm:$0xff]  ;;  %v9966_v57 = vld [vmem:[#allocation38_spill] sm:$0xff] }
 0x2e8   :  { %9952 = vst [vmem:[#allocation41_spill] sm:$0xff] %v7558_v23  ;;  %v7590_v19 = vld [vmem:[#allocation3 + $0x35] sm:$0xff] }
 0x2e9   :  { %9953 = vst [vmem:[#allocation44_spill] sm:$0xff] %v7561_v34  ;;  %v9967_v11 = vld [vmem:[#allocation61_spill] sm:$0xff] }
 0x2ea   :  { %9954 = vst [vmem:[#allocation82_spill] sm:$0xff] %v7564_v60  ;;  %v9965_v60 = vld [vmem:[#allocation10_spill] sm:$0xff]  ;;  %v2250_v21 = vadd.f32 %v9967_v11, %v2236_v59  ;;  %v9975_v59 = vld [vmem:[#allocation47_spill] sm:$0xff] }
 0x2eb   :  { %9958 = vst [vmem:[#allocation42_spill] sm:$0xff] %v7576_v51  ;;  %v2182_v34 = vadd.f32 %v9965_v60, %v2168_v5  ;;  %v2195_v51 = vadd.f32 %v9966_v57, %v2181_v32  ;;  %v7610_v60 = vld [vmem:[#allocation3 + $0x36] sm:$0xff]  ;;  %v9973_v57 = vld [vmem:[#allocation51_spill] sm:$0xff]  ;;  %v9974_v32 = vld [vmem:[#allocation58_spill] sm:$0xff] }
 0x2ec   :  { %9961 = vst [vmem:[#allocation49_spill] sm:$0xff] %v7583_v9  ;;  %v2183_v9 = vadd.f32 %v9969_v54, %v2169_v13  ;;  %v2264_v11 = vadd.f32 %v9975_v59, %v2250_v21  ;;  %v9976_v13 = vld [vmem:[#allocation54_spill] sm:$0xff]  ;;  %v9979_v21 = vld [vmem:[#allocation69_spill] sm:$0xff] }
 0x2ed   :  { %9962 = vst [vmem:[#allocation66_spill] sm:$0xff] %v7586_v36  ;;  %v9970_v36 = vld [vmem:[#allocation92_spill] sm:$0xff]  ;;  %v2196_v5 = vadd.f32 %v9973_v57, %v2182_v34  ;;  %v2209_v55 = vadd.f32 %v9974_v32, %v2195_v51  ;;  %v9978_v34 = vld [vmem:[#allocation34_spill] sm:$0xff] }
 0x2ee   :  { %9963 = vst [vmem:[#allocation65_spill] sm:$0xff] %v7588_v33  ;;  %v7602_v23 = vmul.f32 %v2531_v20, %v9970_v36  ;;  %v7605_v33 = vmul.f32 %v2545_v4, %v9876_v58  ;;  %v2197_v20 = vadd.f32 %v9976_v13, %v2183_v9  ;;  %v7619_v36 = vmul.f32 %v2545_v4, %v9880_v25  ;;  %v9977_v58 = vld [vmem:[#allocation93_spill] sm:$0xff]  ;;  %v9980_v57 = vld [vmem:[#allocation68_spill] sm:$0xff]  ;;  %v9982_v59 = vld [vmem:[#allocation94_spill] sm:$0xff] }
 0x2ef   :  { %9964 = vst [vmem:[#allocation83_spill] sm:$0xff] %v7590_v19  ;;  %v9971_v19 = vld [vmem:[#allocation86_spill] sm:$0xff]  ;;  %v7622_v54 = vmul.f32 %v2545_v4, %v9977_v58  ;;  %v2210_v51 = vadd.f32 %v9978_v34, %v2196_v5  ;;  %v2278_v9 = vadd.f32 %v7245_v15, %v2264_v11  ;;  %v7634_v25 = vmul.f32 %v2559_v40, %v9980_v57  ;;  %v9983_v15 = vld [vmem:[#allocation17_spill] sm:$0xff] }
 0x2f0   :  { %9968 = vst [vmem:[#allocation43_spill] sm:$0xff] %v7596_v48  ;;  %v7608_v62 = vmul.f32 %v2545_v4, %v9971_v19  ;;  %v2573_v48 = vstv %s7540_s3  ;;  %v7625_v19 = vmul.f32 %v2559_v40, %v9888_v47  ;;  %v9981_v4 = vld [vmem:[#allocation25_spill] sm:$0xff]  ;;  %v7640_v47 = vmul.f32 %v2559_v40, %v7172_v7  ;;  %v9986_v7 = vld [vmem:[#allocation87_spill] sm:$0xff]  ;;  %s8377_s3 = sld [smem:[#allocation4 + $0xbf]] }
 0x2f1   :  { %9972 = vst [vmem:[#allocation33_spill] sm:$0xff] %v7610_v60  ;;  %v2211_v32 = vadd.f32 %v9981_v4, %v2197_v20  ;;  %v7643_v13 = vmul.f32 %v2559_v40, %v9982_v59  ;;  %v2224_v5 = vadd.f32 %v9983_v15, %v2210_v51  ;;  %v2292_v58 = vadd.f32 %v7265_v30, %v2278_v9  ;;  %v9985_v20 = vld [vmem:[#allocation59_spill] sm:$0xff]  ;;  %v7664_v4 = vld [vmem:[#allocation3 + $0x10] sm:$0xff]  ;;  %v2891_v59 = vpop.permute.xlu0 %2890 }
 0x2f2   :  { %2914 = vst.msk [vmem:[#allocation3 + $0x30] sm:$0xff] %vm68_vm4, %v2897_v12  ;;  %v2223_v12 = vadd.f32 %v9979_v21, %v2209_v55  ;;  %v9984_v55 = vld [vmem:[#allocation20_spill] sm:$0xff]  ;;  %v2587_v34 = vstv %s7570_s4  ;;  %v7656_v57 = vmul.f32 %v2573_v48, %v9986_v7  ;;  %v7659_v40 = vmul.f32 %v2573_v48, %v9913_v44  ;;  %v9988_v51 = vld [vmem:[#allocation27_spill] sm:$0xff]  ;;  %s8407_s4 = sld [smem:[#allocation4 + $0xce]] }
 0x2f3   :  { %2915 = vst.msk [vmem:[#allocation3 + $0x38] sm:$0x3f] %vm72_vm2, %v2899_v24  ;;  %v7646_v24 = vmul.f32 %v2573_v48, %v9909_v17  ;;  %v2225_v21 = vadd.f32 %v9985_v20, %v2211_v32  ;;  %v7662_v17 = vmul.f32 %v2573_v48, %v7224_v63  ;;  %v2238_v15 = vadd.f32 %v9988_v51, %v2224_v5  ;;  %v7670_v32 = vld [vmem:[#allocation3 + $0x11] sm:$0xff] }
 0x2f4   :  { %v2237_v11 = vadd.f32 %v9984_v55, %v2223_v12  ;;  %v9989_v12 = vld [vmem:[#allocation67_spill] sm:$0xff]  ;;  %v2306_v30 = vadd.f32 %v7280_v41, %v2292_v58  ;;  %v2601_v9 = vstv %s7598_s5  ;;  %v7672_v20 = vld [vmem:[#allocation3 + $0x12] sm:$0xff]  ;;  %v7678_v63 = vmul.f32 %v2587_v34, %v9919_v28  ;;  %s8421_s5 = sld [smem:[#allocation4 + $0xdd]] }
 0x2f5   :  { %9987 = vst [vmem:[#allocation11_spill] sm:$0xff] %v7662_v17  ;;  %v7674_v7 = vld [vmem:[#allocation3 + $0x13] sm:$0xff]  ;;  %v7684_v5 = vmul.f32 %v2587_v34, %v9923_v45  ;;  %v2252_v51 = vadd.f32 %v7215_v46, %v2238_v15 }
 0x2f6   :  { %v2251_v55 = vadd.f32 %v9989_v12, %v2237_v11  ;;  %v9990_v44 = vld [vmem:[#allocation60_spill] sm:$0xff]  ;;  %v2320_v28 = vadd.f32 %v7295_v26, %v2306_v30  ;;  %v7696_v12 = vmul.f32 %v2587_v34, %v7226_v29  ;;  %v2691_v30 = vstv %s7648_s8  ;;  %s8495_s8 = sld [smem:[#allocation4 + $0x2a]] }
 0x2f7   :  { %v2239_v60 = vadd.f32 %v9990_v44, %v2225_v21  ;;  %v9991_v48 = vld [vmem:[#allocation88_spill] sm:$0xff]  ;;  %9993 = vst [vmem:[#allocation84_spill] sm:$0xff] %v7684_v5  ;;  %v7704_v44 = vmul.f32 %v2601_v9, %v9927_v38  ;;  %v2266_v29 = vadd.f32 %v7232_v49, %v2252_v51  ;;  %v7721_v38 = vmul.f32 %v2601_v9, %v7228_v1 }
 0x2f8   :  { %v7681_v17 = vmul.f32 %v2587_v34, %v9991_v48  ;;  %v7686_v11 = vld [vmem:[#allocation3 + $0x14] sm:$0xff]  ;;  %v2265_v21 = vadd.f32 %v7222_v27, %v2251_v55  ;;  %9994 = vst [vmem:[#allocation62_spill] sm:$0xff] %v7696_v12  ;;  %v7710_v27 = vmul.f32 %v2601_v9, %v7191_v0  ;;  %v2334_v34 = vadd.f32 %v7332_v3, %v2320_v28  ;;  %v7717_v55 = vpop.permute.xlu2 %3142 }
 0x2f9   :  { %v7688_v41 = vld [vmem:[#allocation3 + $0x15] sm:$0xff]  ;;  %v2253_v45 = vadd.f32 %v7218_v35, %v2239_v60  ;;  %9998 = vst [vmem:[#allocation45_spill] sm:$0xff] %v7721_v38  ;;  %v2677_v60 = vstv %s7636_s7  ;;  %v2280_v0 = vadd.f32 %v7251_v42, %v2266_v29  ;;  %v7807_v38 = vld [vmem:[#allocation3 + $0x4] sm:$0xff]  ;;  %v7815_v12 = vstv %s7745_s12  ;;  %s8473_s7 = sld [smem:[#allocation4 + $0x1b]] }
 0x2fa   :  { %9992 = vst [vmem:[#allocation37_spill] sm:$0xff] %v7681_v17  ;;  %v7690_v58 = vld [vmem:[#allocation3 + $0x16] sm:$0xff]  ;;  %v2279_v26 = vadd.f32 %v7248_v39, %v2265_v21  ;;  %v2348_v39 = vadd.f32 %v7359_v10, %v2334_v34  ;;  %v10011_v34 = vld [vmem:[#allocation95_spill] sm:$0xff]  ;;  %s8608_s12 = sld [smem:[#allocation4 + $0x66]] }
 0x2fb   :  { %2910 = vst.msk [vmem:[#allocation3 + $0x10] sm:$0xff] %vm68_vm4, %v7494_v16  ;;  %v9995_v46 = vld [vmem:[#allocation56_spill] sm:$0xff]  ;;  %v2663_v16 = vstv %s7627_s6  ;;  %v2267_v35 = vadd.f32 %v7236_v43, %v2253_v45  ;;  %s8434_s6 = sld [smem:[#allocation4 + $0xc]] }
 0x2fc   :  { %v7707_v15 = vmul.f32 %v2601_v9, %v9995_v46  ;;  %9997 = vst [vmem:[#allocation24_spill] sm:$0xff] %v7710_v27  ;;  %v2293_v49 = vadd.f32 %v7268_v56, %v2279_v26  ;;  %v7731_v3 = vmul.f32 %v2663_v16, %v7298_v18  ;;  %v7737_v1 = vmul.f32 %v2663_v16, %v7308_v6  ;;  %v10002_v9 = vld [vmem:[#allocation29_spill] sm:$0xff]  ;;  %v10003_v48 = vld [vmem:[#allocation28_spill] sm:$0xff]  ;;  %v10010_v26 = vld [vmem:[#allocation14_spill] sm:$0xff] }
 0x2fd   :  { %2911 = vst.msk [vmem:[#allocation3 + $0x18] sm:$0x3f] %vm72_vm2, %v2891_v59  ;;  %v2281_v43 = vadd.f32 %v7260_v37, %v2267_v35  ;;  %v7740_v59 = vmul.f32 %v2663_v16, %v7426_v52  ;;  %v7743_v42 = vmul.f32 %v2663_v16, %v7446_v22  ;;  %v2294_v56 = vadd.f32 %v7271_v61, %v2280_v0  ;;  %v10004_v21 = vld [vmem:[#allocation96_spill] sm:$0xff]  ;;  %v10006_v52 = vld [vmem:[#allocation13_spill] sm:$0xff]  ;;  %v10012_v16 = vld [vmem:[#allocation23_spill] sm:$0xff]  ;;  %v7767_v0 = vpop.permute.xlu0 %3144 }
 0x2fe   :  { %9996 = vst [vmem:[#allocation57_spill] sm:$0xff] %v7707_v15  ;;  %v2307_v10 = vadd.f32 %v7283_v31, %v2293_v49  ;;  %v2410_v18 = vadd.f32 %v7380_v8, %v2348_v39  ;;  %v7751_v37 = vmul.f32 %v2677_v60, %v10002_v9  ;;  %v7755_v28 = vmul.f32 %v2677_v60, %v10004_v21  ;;  %v10008_v46 = vld [vmem:[#allocation76_spill] sm:$0xff]  ;;  %v10056_v15 = vld [vmem:[#allocation101_spill] sm:$0xff] }
 0x2ff   :  { %9999 = vst [vmem:[#allocation85_spill] sm:$0xff] %v7737_v1  ;;  %v2295_v51 = vadd.f32 %v10003_v48, %v2281_v43  ;;  %v7758_v45 = vmul.f32 %v2677_v60, %v10006_v52  ;;  %v7761_v29 = vmul.f32 %v2677_v60, %v10008_v46  ;;  %v2308_v61 = vadd.f32 %v10010_v26, %v2294_v56  ;;  %v10013_v49 = vld [vmem:[#allocation16_spill] sm:$0xff]  ;;  %v10014_v43 = vld [vmem:[#allocation97_spill] sm:$0xff]  ;;  %v10016_v48 = vld [vmem:[#allocation98_spill] sm:$0xff] }
 0x300   :  { %10000 = vst [vmem:[#allocation10_spill] sm:$0xff] %v7740_v59  ;;  %v2321_v31 = vadd.f32 %v10011_v34, %v2307_v10  ;;  %v2424_v8 = vadd.f32 %v10012_v16, %v2410_v18  ;;  %v2705_v35 = vstv %s7698_s9  ;;  %v7771_v9 = vmul.f32 %v2691_v30, %v10014_v43  ;;  %v10020_v56 = vld [vmem:[#allocation103_spill] sm:$0xff]  ;;  %v10021_v10 = vld [vmem:[#allocation108_spill] sm:$0xff]  ;;  %v10039_v1 = vld [vmem:[#allocation110_spill] sm:$0xff]  ;;  %s8503_s9 = sld [smem:[#allocation4 + $0x39]] }
 0x301   :  { %10001 = vst [vmem:[#allocation38_spill] sm:$0xff] %v7743_v42  ;;  %v2309_v39 = vadd.f32 %v10013_v49, %v2295_v51  ;;  %v7774_v52 = vmul.f32 %v2691_v30, %v10016_v48  ;;  %v2322_v26 = vadd.f32 %v10020_v56, %v2308_v61  ;;  %v10022_v18 = vld [vmem:[#allocation35_spill] sm:$0xff]  ;;  %v10025_v51 = vld [vmem:[#allocation104_spill] sm:$0xff]  ;;  %v10030_v61 = vld [vmem:[#allocation89_spill] sm:$0xff] }
 0x302   :  { %10005 = vst [vmem:[#allocation61_spill] sm:$0xff] %v7755_v28  ;;  %v2335_v34 = vadd.f32 %v10021_v10, %v2321_v31  ;;  %v2438_v16 = vadd.f32 %v10022_v18, %v2424_v8  ;;  %v10026_v43 = vld [vmem:[#allocation99_spill] sm:$0xff]  ;;  %v10028_v28 = vld [vmem:[#allocation100_spill] sm:$0xff]  ;;  %v7795_v56 = vmul.f32 %v2705_v35, %v10030_v61  ;;  %v3151_v8 = vpop.permute.xlu1 %3150  ;;  %v10034_v18 = vld [vmem:[#allocation114_spill] sm:$0xff] }
 0x303   :  { %10007 = vst [vmem:[#allocation39_spill] sm:$0xff] %v7758_v45  ;;  %v10018_v45 = vld [vmem:[#allocation75_spill] sm:$0xff]  ;;  %v2323_v49 = vadd.f32 %v10025_v51, %v2309_v39  ;;  %v2719_v51 = vstv %s7725_s10  ;;  %s8515_s10 = sld [smem:[#allocation4 + $0x48]] }
 0x304   :  { %10009 = vst [vmem:[#allocation92_spill] sm:$0xff] %v7761_v29  ;;  %v7777_v60 = vmul.f32 %v2691_v30, %v10018_v45  ;;  %v10023_v29 = vld [vmem:[#allocation118_spill] sm:$0xff]  ;;  %v7792_v45 = vmul.f32 %v2705_v35, %v10028_v28 }
 0x305   :  { %10015 = vst [vmem:[#allocation86_spill] sm:$0xff] %v7771_v9  ;;  %v7783_v42 = vmul.f32 %v2691_v30, %v10023_v29  ;;  %v7797_v31 = vld [vmem:[#allocation3 + $0x1] sm:$0xff]  ;;  %v10033_v30 = vld [vmem:[#allocation109_spill] sm:$0xff]  ;;  %v2337_v61 = vadd.f32 %v10039_v1, %v2323_v49 }
 0x306   :  { %10017 = vst [vmem:[#allocation51_spill] sm:$0xff] %v7774_v52  ;;  %v7789_v52 = vmul.f32 %v2705_v35, %v10026_v43  ;;  %v2336_v10 = vadd.f32 %v10033_v30, %v2322_v26  ;;  %v7803_v59 = vld [vmem:[#allocation3 + $0x2] sm:$0xff] }
 0x307   :  { %10019 = vst [vmem:[#allocation58_spill] sm:$0xff] %v7777_v60  ;;  %v10035_v60 = vld [vmem:[#allocation22_spill] sm:$0xff] }
 0x308   :  { %10024 = vst [vmem:[#allocation47_spill] sm:$0xff] %v7783_v42  ;;  %v2349_v42 = vadd.f32 %v10034_v18, %v2335_v34  ;;  %v2452_v39 = vadd.f32 %v10035_v60, %v2438_v16  ;;  %v7805_v43 = vld [vmem:[#allocation3 + $0x3] sm:$0xff] }
 0x309   :  { %10027 = vst [vmem:[#allocation54_spill] sm:$0xff] %v7789_v52  ;;  %v7819_v26 = vld [vmem:[#allocation3] sm:$0xff]  ;;  %v7821_v60 = vld [vmem:[#allocation3 + $0x28] sm:$0xff] }
 0x30a   :  { %10029 = vst [vmem:[#allocation93_spill] sm:$0xff] %v7792_v45  ;;  %v3153_v45 = vpop.permute.xlu2 %3152  ;;  %v7823_v34 = vld [vmem:[#allocation3 + $0x21] sm:$0xff]  ;;  %v7825_v16 = vld [vmem:[#allocation3 + $0x29] sm:$0xff] }
 0x30b   :  { %10031 = vst [vmem:[#allocation34_spill] sm:$0xff] %v7795_v56  ;;  %v10040_v56 = vld [vmem:[#allocation121_spill] sm:$0xff]  ;;  %v7827_v30 = vld [vmem:[#allocation3 + $0x22] sm:$0xff]  ;;  %v7829_v18 = vld [vmem:[#allocation3 + $0x2a] sm:$0xff] }
 0x30c   :  { %10032 = vst [vmem:[#allocation69_spill] sm:$0xff] %v7797_v31  ;;  %v7811_v27 = vmul.f32 %v2705_v35, %v10040_v56  ;;  %v2733_v31 = vstv %s7733_s11  ;;  %v7831_v1 = vld [vmem:[#allocation3 + $0x23] sm:$0xff]  ;;  %v7833_v35 = vld [vmem:[#allocation3 + $0x2b] sm:$0xff]  ;;  %s8557_s11 = sld [smem:[#allocation4 + $0x57]] }
 0x30d   :  { %10036 = vst [vmem:[#allocation68_spill] sm:$0xff] %v7803_v59  ;;  %v7835_v49 = vld [vmem:[#allocation3 + $0x24] sm:$0xff] }
 0x30e   :  { %10037 = vst [vmem:[#allocation25_spill] sm:$0xff] %v7805_v43  ;;  %v10053_v43 = vld [vmem:[#allocation115_spill] sm:$0xff] }
 0x30f   :  { %10038 = vst [vmem:[#allocation94_spill] sm:$0xff] %v7807_v38  ;;  %v7839_v38 = vld [vmem:[#allocation3 + $0x5] sm:$0xff]  ;;  %v2350_v59 = vadd.f32 %v10053_v43, %v2336_v10  ;;  %v10064_v10 = vld [vmem:[#allocation117_spill] sm:$0xff]  ;;  %v7869_v43 = vld [vmem:[#allocation3 + $0x2e] sm:$0xff] }
 0x310   :  { %10041 = vst [vmem:[#allocation17_spill] sm:$0xff] %v7811_v27  ;;  %v7837_v27 = vld [vmem:[#allocation3 + $0x2c] sm:$0xff] }
 0x311   :  { %10042 = vst [vmem:[#allocation20_spill] sm:$0xff] %v7819_v26  ;;  %v10055_v52 = vld [vmem:[#allocation19_spill] sm:$0xff]  ;;  %v7969_v26 = vld [vmem:[#allocation3 + $0x16] sm:$0xff] }
 0x312   :  { %10043 = vst [vmem:[#allocation59_spill] sm:$0xff] %v7821_v60  ;;  %v10054_v60 = vld [vmem:[#allocation15_spill] sm:$0xff] }
 0x313   :  { %10044 = vst [vmem:[#allocation87_spill] sm:$0xff] %v7823_v34  ;;  %v2411_v34 = vadd.f32 %v10054_v60, %v2349_v42  ;;  %v7860_v42 = vmul.f32 %v2719_v51, %v10064_v10  ;;  %v7871_v60 = vld [vmem:[#allocation3 + $0x7] sm:$0xff] }
 0x314   :  { %10045 = vst [vmem:[#allocation27_spill] sm:$0xff] %v7825_v16  ;;  %v2466_v16 = vadd.f32 %v10055_v52, %v2452_v39  ;;  %v10066_v52 = vld [vmem:[#allocation122_spill] sm:$0xff] }
 0x315   :  { %10046 = vst [vmem:[#allocation67_spill] sm:$0xff] %v7827_v30  ;;  %v7845_v30 = vmul.f32 %v2719_v51, %v10056_v15  ;;  %v7863_v39 = vmul.f32 %v2719_v51, %v10066_v52  ;;  %v7867_v15 = vld [vmem:[#allocation3 + $0x26] sm:$0xff] }
 0x316   :  { %10047 = vst [vmem:[#allocation60_spill] sm:$0xff] %v7829_v18 }
 0x317   :  { %10048 = vst [vmem:[#allocation88_spill] sm:$0xff] %v7831_v1  ;;  %v7849_v1 = vld [vmem:[#allocation3 + $0x25] sm:$0xff] }
 0x318   :  { %10049 = vst [vmem:[#allocation56_spill] sm:$0xff] %v7833_v35  ;;  %v7851_v35 = vld [vmem:[#allocation3 + $0x2d] sm:$0xff] }
 0x319   :  { %10050 = vst [vmem:[#allocation29_spill] sm:$0xff] %v7835_v49  ;;  %v7853_v49 = vld [vmem:[#allocation3 + $0x6] sm:$0xff] }
 0x31a   :  { %10051 = vst [vmem:[#allocation28_spill] sm:$0xff] %v7837_v27  ;;  %v10061_v27 = vld [vmem:[#allocation116_spill] sm:$0xff] }
 0x31b   :  { %10052 = vst [vmem:[#allocation96_spill] sm:$0xff] %v7839_v38  ;;  %v2351_v18 = vadd.f32 %v10061_v27, %v2337_v61  ;;  %v10062_v38 = vld [vmem:[#allocation102_spill] sm:$0xff]  ;;  %v10072_v27 = vld [vmem:[#allocation55_spill] sm:$0xff] }
 0x31c   :  { %10057 = vst [vmem:[#allocation13_spill] sm:$0xff] %v7845_v30  ;;  %v7857_v5 = vmul.f32 %v2719_v51, %v10062_v38  ;;  %v2425_v61 = vadd.f32 %v10072_v27, %v2411_v34  ;;  %v10074_v30 = vld [vmem:[#allocation105_spill] sm:$0xff]  ;;  %v7879_v51 = vld [vmem:[#allocation3 + $0x20] sm:$0xff]  ;;  %v10082_v34 = vld [vmem:[#allocation119_spill] sm:$0xff] }
 0x31d   :  { %10058 = vst [vmem:[#allocation76_spill] sm:$0xff] %v7849_v1  ;;  %v10073_v1 = vld [vmem:[#allocation30_spill] sm:$0xff]  ;;  %v7877_v10 = vmul.f32 %v2733_v31, %v10074_v30  ;;  %v7897_v27 = vld [vmem:[#allocation3 + $0x9] sm:$0xff] }
 0x31e   :  { %10059 = vst [vmem:[#allocation14_spill] sm:$0xff] %v7851_v35  ;;  %v10084_v30 = vld [vmem:[#allocation26_spill] sm:$0xff] }
 0x31f   :  { %10060 = vst [vmem:[#allocation95_spill] sm:$0xff] %v7853_v49  ;;  %v10071_v49 = vld [vmem:[#allocation52_spill] sm:$0xff] }
 0x320   :  { %10063 = vst [vmem:[#allocation23_spill] sm:$0xff] %v7857_v5  ;;  %v2412_v35 = vadd.f32 %v10071_v49, %v2350_v59  ;;  %v2480_v5 = vadd.f32 %v10073_v1, %v2466_v16  ;;  %v10080_v59 = vld [vmem:[#allocation111_spill] sm:$0xff]  ;;  %v7892_v16 = vmul.f32 %v2733_v31, %v10082_v34  ;;  %v7895_v1 = vmul.f32 %v2733_v31, %v10084_v30 }
 0x321   :  { %10065 = vst [vmem:[#allocation16_spill] sm:$0xff] %v7860_v42  ;;  %v7883_v42 = vld [vmem:[#allocation3 + $0x2f] sm:$0xff]  ;;  %v7889_v49 = vmul.f32 %v2733_v31, %v10080_v59 }
 0x322   :  { %10067 = vst [vmem:[#allocation97_spill] sm:$0xff] %v7863_v39  ;;  %v7881_v39 = vld [vmem:[#allocation3 + $0x27] sm:$0xff] }
 0x323   :  { %10068 = vst [vmem:[#allocation98_spill] sm:$0xff] %v7867_v15  ;;  %v7899_v15 = vld [vmem:[#allocation3 + $0xa] sm:$0xff] }
 0x324   :  { %10069 = vst [vmem:[#allocation75_spill] sm:$0xff] %v7869_v43  ;;  %v7908_v34 = vld [vmem:[#allocation3 + $0xc] sm:$0xff] }
 0x325   :  { %10070 = vst [vmem:[#allocation103_spill] sm:$0xff] %v7871_v60  ;;  %v10079_v60 = vld [vmem:[#allocation73_spill] sm:$0xff]  ;;  %v7912_v31 = vld [vmem:[#allocation3 + $0xe] sm:$0xff] }
 0x326   :  { %10075 = vst [vmem:[#allocation108_spill] sm:$0xff] %v7877_v10  ;;  %v2413_v43 = vadd.f32 %v10079_v60, %v2351_v18  ;;  %v10090_v18 = vld [vmem:[#allocation21_spill] sm:$0xff]  ;;  %v10091_v10 = vld [vmem:[#allocation79_spill] sm:$0xff] }
 0x327   :  { %10076 = vst [vmem:[#allocation35_spill] sm:$0xff] %v7879_v51  ;;  %v2439_v60 = vadd.f32 %v10090_v18, %v2425_v61  ;;  %v2761_v51 = vstv %s7785_s13  ;;  %v10100_v61 = vld [vmem:[#allocation120_spill] sm:$0xff]  ;;  %s8623_s13 = sld [smem:[#allocation4 + $0x84]] }
 0x328   :  { %10077 = vst [vmem:[#allocation118_spill] sm:$0xff] %v7881_v39  ;;  %v7901_v39 = vld [vmem:[#allocation3 + $0xb] sm:$0xff] }
 0x329   :  { %10078 = vst [vmem:[#allocation104_spill] sm:$0xff] %v7883_v42  ;;  %v7930_v18 = vld [vmem:[#allocation3 + $0xf] sm:$0xff] }
 0x32a   :  { %3166 = vst.msk [vmem:[#allocation3] sm:$0xff] %vm68_vm4, %v7717_v55  ;;  %v10089_v55 = vld [vmem:[#allocation46_spill] sm:$0xff] }
 0x32b   :  { %10081 = vst [vmem:[#allocation99_spill] sm:$0xff] %v7889_v49  ;;  %v2426_v42 = vadd.f32 %v10089_v55, %v2412_v35  ;;  %v2494_v49 = vadd.f32 %v10091_v10, %v2480_v5  ;;  %v10098_v35 = vld [vmem:[#allocation112_spill] sm:$0xff]  ;;  %v7926_v10 = vmul.f32 %v7815_v12, %v10100_v61  ;;  %v7928_v55 = vld [vmem:[#allocation3 + $0x8] sm:$0xff]  ;;  %v10110_v61 = vld [vmem:[#allocation70_spill] sm:$0xff] }
 0x32c   :  { %10083 = vst [vmem:[#allocation100_spill] sm:$0xff] %v7892_v16  ;;  %v7910_v16 = vld [vmem:[#allocation3 + $0xd] sm:$0xff]  ;;  %v7922_v5 = vmul.f32 %v7815_v12, %v10098_v35 }
 0x32d   :  { %10085 = vst [vmem:[#allocation89_spill] sm:$0xff] %v7895_v1  ;;  %v3147_v1 = vpop.permute.xlu0 %3146 }
 0x32e   :  { %10086 = vst [vmem:[#allocation109_spill] sm:$0xff] %v7897_v27  ;;  %v10096_v27 = vld [vmem:[#allocation106_spill] sm:$0xff] }
 0x32f   :  { %10087 = vst [vmem:[#allocation114_spill] sm:$0xff] %v7899_v15  ;;  %v10095_v15 = vld [vmem:[#allocation74_spill] sm:$0xff] }
 0x330   :  { %10088 = vst [vmem:[#allocation22_spill] sm:$0xff] %v7901_v39  ;;  %v2427_v39 = vadd.f32 %v10095_v15, %v2413_v43  ;;  %v10105_v15 = vld [vmem:[#allocation48_spill] sm:$0xff] }
 0x331   :  { %3170 = vst.msk [vmem:[#allocation3 + $0x20] sm:$0xff] %vm68_vm4, %v3151_v8  ;;  %v7918_v8 = vmul.f32 %v7815_v12, %v10096_v27  ;;  %v2453_v43 = vadd.f32 %v10105_v15, %v2439_v60  ;;  %v10107_v27 = vld [vmem:[#allocation36_spill] sm:$0xff]  ;;  %v3155_v15 = vpop.permute.xlu1 %3154 }
 0x332   :  { %10092 = vst [vmem:[#allocation110_spill] sm:$0xff] %v7908_v34 }
 0x333   :  { %10093 = vst [vmem:[#allocation121_spill] sm:$0xff] %v7910_v16  ;;  %v10106_v16 = vld [vmem:[#allocation63_spill] sm:$0xff] }
 0x334   :  { %10094 = vst [vmem:[#allocation115_spill] sm:$0xff] %v7912_v31  ;;  %v2508_v34 = vadd.f32 %v10106_v16, %v2494_v49  ;;  %v2775_v49 = vstv %s7817_s14  ;;  %v7955_v16 = vld [vmem:[#allocation3 + $0x12] sm:$0xff]  ;;  %s8643_s14 = sld [smem:[#allocation4 + $0x75]] }
 0x335   :  { %3171 = vst.msk [vmem:[#allocation3 + $0x28] sm:$0xff] %vm68_vm4, %v3153_v45  ;;  %v10104_v45 = vld [vmem:[#allocation18_spill] sm:$0xff] }
 0x336   :  { %10097 = vst [vmem:[#allocation15_spill] sm:$0xff] %v7918_v8  ;;  %v2440_v31 = vadd.f32 %v10104_v45, %v2426_v42  ;;  %v7937_v8 = vmul.f32 %v7815_v12, %v10107_v27  ;;  %v10113_v42 = vld [vmem:[#allocation113_spill] sm:$0xff] }
 0x337   :  { %10099 = vst [vmem:[#allocation19_spill] sm:$0xff] %v7922_v5  ;;  %v7941_v5 = vld [vmem:[#allocation3 + $0x10] sm:$0xff]  ;;  %v7950_v60 = vmul.f32 %v2761_v51, %v10113_v42 }
 0x338   :  { %10101 = vst [vmem:[#allocation101_spill] sm:$0xff] %v7926_v10  ;;  %v2441_v10 = vadd.f32 %v10110_v61, %v2427_v39  ;;  %v7953_v12 = vld [vmem:[#allocation3 + $0x11] sm:$0xff]  ;;  %v10120_v61 = vld [vmem:[#allocation123_spill] sm:$0xff] }
 0x339   :  { %10102 = vst [vmem:[#allocation116_spill] sm:$0xff] %v7928_v55  ;;  %v7957_v45 = vld [vmem:[#allocation3 + $0x13] sm:$0xff] }
 0x33a   :  { %10103 = vst [vmem:[#allocation102_spill] sm:$0xff] %v7930_v18  ;;  %v10111_v18 = vld [vmem:[#allocation107_spill] sm:$0xff]  ;;  %v7965_v42 = vld [vmem:[#allocation3 + $0x14] sm:$0xff] }
 0x33b   :  { %10108 = vst [vmem:[#allocation117_spill] sm:$0xff] %v7937_v8  ;;  %v7947_v55 = vmul.f32 %v2761_v51, %v10111_v18  ;;  %v10119_v8 = vld [vmem:[#allocation72_spill] sm:$0xff]  ;;  %v2522_v18 = vadd.f32 %v7550_v14, %v2508_v34  ;;  %v10126_v14 = vld [vmem:[#allocation77_spill] sm:$0xff] }
 0x33c   :  { %10109 = vst [vmem:[#allocation122_spill] sm:$0xff] %v7941_v5  ;;  %v10118_v5 = vld [vmem:[#allocation71_spill] sm:$0xff]  ;;  %v2467_v39 = vadd.f32 %v10119_v8, %v2453_v43  ;;  %v10127_v8 = vld [vmem:[#allocation53_spill] sm:$0xff] }
 0x33d   :  { %3167 = vst.msk [vmem:[#allocation3 + $0x8] sm:$0xff] %vm68_vm4, %v7767_v0  ;;  %v2454_v0 = vadd.f32 %v10118_v5, %v2440_v31  ;;  %v2789_v31 = vstv %s7847_s15  ;;  %v2803_v5 = vstv %s7865_s16  ;;  %s8701_s15 = sld [smem:[#allocation4 + $0x93]] }
 0x33e   :  { %10112 = vst [vmem:[#allocation52_spill] sm:$0xff] %v7947_v55  ;;  %v7963_v55 = vmul.f32 %v2761_v51, %v10120_v61  ;;  %v2481_v43 = vadd.f32 %v10127_v8, %v2467_v39  ;;  %v2536_v61 = vadd.f32 %v7580_v2, %v2522_v18  ;;  %v10131_v18 = vld [vmem:[#allocation78_spill] sm:$0xff]  ;;  %s8725_s16 = sld [smem:[#allocation4 + $0xa2]] }
 0x33f   :  { %10114 = vst [vmem:[#allocation55_spill] sm:$0xff] %v7950_v60  ;;  %v7967_v60 = vld [vmem:[#allocation3 + $0x15] sm:$0xff]  ;;  %v2468_v34 = vadd.f32 %v10126_v14, %v2454_v0  ;;  %v10130_v0 = vld [vmem:[#allocation91_spill] sm:$0xff]  ;;  %v8009_v14 = vmul.f32 %v2789_v31, %v7670_v32  ;;  %v10133_v8 = vld [vmem:[#allocation50_spill] sm:$0xff]  ;;  %v8025_v32 = vmul.f32 %v2803_v5, %v10016_v48 }
 0x340   :  { %10115 = vst [vmem:[#allocation30_spill] sm:$0xff] %v7953_v12  ;;  %v3149_v12 = vpop.permute.xlu2 %3148  ;;  %v2495_v39 = vadd.f32 %v10130_v0, %v2481_v43  ;;  %v10135_v0 = vld [vmem:[#allocation40_spill] sm:$0xff] }
 0x341   :  { %10116 = vst [vmem:[#allocation105_spill] sm:$0xff] %v7955_v16  ;;  %v10124_v16 = vld [vmem:[#allocation31_spill] sm:$0xff] }
 0x342   :  { %10117 = vst [vmem:[#allocation73_spill] sm:$0xff] %v7957_v45  ;;  %v2455_v9 = vadd.f32 %v10124_v16, %v2441_v10  ;;  %v10125_v45 = vld [vmem:[#allocation64_spill] sm:$0xff]  ;;  %v7991_v16 = vmul.f32 %v2775_v49, %v7664_v4  ;;  %v2509_v43 = vadd.f32 %v10133_v8, %v2495_v39 }
 0x343   :  { %10121 = vst [vmem:[#allocation111_spill] sm:$0xff] %v7965_v42  ;;  %v7973_v17 = vmul.f32 %v2761_v51, %v10125_v45  ;;  %v10128_v51 = vld [vmem:[#allocation90_spill] sm:$0xff]  ;;  %v7997_v45 = vmul.f32 %v2775_v49, %v7572_v53  ;;  %v8015_v53 = vmul.f32 %v2789_v31, %v7574_v50  ;;  %v8031_v50 = vmul.f32 %v2803_v5, %v10023_v29  ;;  %v8049_v29 = vld [vmem:[#allocation3 + $0x35] sm:$0xff] }
 0x344   :  { %10122 = vst [vmem:[#allocation119_spill] sm:$0xff] %v7967_v60  ;;  %v2469_v10 = vadd.f32 %v10128_v51, %v2455_v9  ;;  %v8005_v9 = vmul.f32 %v2789_v31, %v10004_v21  ;;  %v8021_v21 = vld [vmem:[#allocation3 + $0x30] sm:$0xff]  ;;  %v3157_v51 = vpop.permute.xlu0 %3156  ;;  %v2845_v42 = vstv %s7986_s19  ;;  %s8783_s19 = sld [smem:[#allocation4 + $0xcf]] }
 0x345   :  { %10123 = vst [vmem:[#allocation26_spill] sm:$0xff] %v7969_v26  ;;  %v7984_v26 = vmul.f32 %v2775_v49, %v7308_v6  ;;  %v10129_v6 = vld [vmem:[#allocation12_spill] sm:$0xff] }
 0x346   :  { %3168 = vst.msk [vmem:[#allocation3 + $0x10] sm:$0xff] %vm68_vm4, %v3147_v1  ;;  %v7994_v1 = vmul.f32 %v2775_v49, %v7446_v22  ;;  %v2482_v2 = vadd.f32 %v10129_v6, %v2468_v34  ;;  %v2483_v4 = vadd.f32 %v10131_v18, %v2469_v10  ;;  %v8012_v22 = vmul.f32 %v2789_v31, %v10008_v46  ;;  %v10132_v49 = vld [vmem:[#allocation32_spill] sm:$0xff] }
 0x347   :  { %3169 = vst.msk [vmem:[#allocation3 + $0x18] sm:$0x3f] %vm72_vm2, %v3149_v12  ;;  %v2550_v12 = vadd.f32 %v7605_v33, %v2536_v61  ;;  %v2817_v61 = vstv %s7939_s17  ;;  %v10134_v10 = vld [vmem:[#allocation80_spill] sm:$0xff]  ;;  %v8028_v46 = vmul.f32 %v2803_v5, %v7672_v20  ;;  %s8733_s17 = sld [smem:[#allocation4 + $0xb1]] }
 0x348   :  { %v2496_v34 = vadd.f32 %v10132_v49, %v2482_v2  ;;  %v2497_v6 = vadd.f32 %v10134_v10, %v2483_v4  ;;  %v8033_v31 = vld [vmem:[#allocation3 + $0x31] sm:$0xff]  ;;  %v10137_v4 = vld [vmem:[#allocation42_spill] sm:$0xff]  ;;  %10139 = vst [vmem:[#allocation21_spill] sm:$0xff] %v8049_v29  ;;  %v8066_v29 = vmul.f32 %v2817_v61, %v10040_v56 }
 0x349   :  { %v2564_v33 = vadd.f32 %v7625_v19, %v2550_v12  ;;  %v8035_v2 = vld [vmem:[#allocation3 + $0x32] sm:$0xff]  ;;  %v8043_v49 = vmul.f32 %v2803_v5, %v10137_v4  ;;  %v2831_v5 = vstv %s7977_s18  ;;  %v8085_v56 = vld [vmem:[#allocation3 + $0x4] sm:$0xff]  ;;  %s8745_s18 = sld [smem:[#allocation4 + $0xc0]] }
 0x34a   :  { %v8037_v19 = vld [vmem:[#allocation3 + $0x33] sm:$0xff]  ;;  %v2510_v39 = vadd.f32 %v10135_v0, %v2496_v34  ;;  %v8055_v34 = vmul.f32 %v2817_v61, %v10028_v28  ;;  %v8069_v28 = vld [vmem:[#allocation3] sm:$0xff]  ;;  %10150 = vst [vmem:[#allocation18_spill] sm:$0xff] %v8085_v56  ;;  %v8103_v56 = vmul.f32 %v2831_v5, %v7686_v11  ;;  %v8118_v11 = vmul.f32 %v2845_v42, %v10080_v59 }
 0x34b   :  { %v10136_v12 = vld [vmem:[#allocation41_spill] sm:$0xff]  ;;  %v2578_v48 = vadd.f32 %v7646_v24, %v2564_v33  ;;  %v8058_v24 = vmul.f32 %v2817_v61, %v7674_v7  ;;  %v10142_v33 = vld [vmem:[#allocation44_spill] sm:$0xff]  ;;  %10144 = vst [vmem:[#allocation74_spill] sm:$0xff] %v8069_v28  ;;  %v10146_v7 = vld [vmem:[#allocation82_spill] sm:$0xff]  ;;  %v2921_v59 = vstv %s8045_s20  ;;  %s8827_s20 = sld [smem:[#allocation4 + $0xd]] }
 0x34c   :  { %v2523_v18 = vadd.f32 %v10136_v12, %v2509_v43  ;;  %v8047_v20 = vld [vmem:[#allocation3 + $0x34] sm:$0xff]  ;;  %v3401_v43 = vpop.permute.xlu1 %3400  ;;  %v2524_v0 = vadd.f32 %v10142_v33, %v2510_v39  ;;  %v2859_v39 = vstv %s7999_s0  ;;  %v10195_v28 = vld [vmem:[#allocation87_spill] sm:$0xff]  ;;  %s8817_s0 = sld [smem:[#allocation4 + $0xde]] }
 0x34d   :  { %10138 = vst [vmem:[#allocation46_spill] sm:$0xff] %v8047_v20  ;;  %v8051_v8 = vld [vmem:[#allocation3 + $0x36] sm:$0xff]  ;;  %v10147_v20 = vld [vmem:[#allocation66_spill] sm:$0xff] }
 0x34e   :  { %10140 = vst [vmem:[#allocation79_spill] sm:$0xff] %v8051_v8  ;;  %v10141_v10 = vld [vmem:[#allocation81_spill] sm:$0xff]  ;;  %v2592_v8 = vadd.f32 %v7678_v63, %v2578_v48  ;;  %v8083_v63 = vld [vmem:[#allocation3 + $0x3] sm:$0xff] }
 0x34f   :  { %v2511_v60 = vadd.f32 %v10141_v10, %v2497_v6  ;;  %3172 = vst.msk [vmem:[#allocation3 + $0x30] sm:$0xff] %vm68_vm4, %v3155_v15  ;;  %v10143_v12 = vld [vmem:[#allocation49_spill] sm:$0xff]  ;;  %v8071_v6 = vld [vmem:[#allocation3 + $0x1] sm:$0xff]  ;;  %v8075_v15 = vmul.f32 %v2817_v61, %v10147_v20 }
 0x350   :  { %v2537_v4 = vadd.f32 %v10143_v12, %v2523_v18  ;;  %3173 = vst.msk [vmem:[#allocation3 + $0x38] sm:$0x3f] %vm72_vm2, %v3157_v51  ;;  %v8081_v18 = vld [vmem:[#allocation3 + $0x2] sm:$0xff]  ;;  %v2606_v12 = vadd.f32 %v7704_v44, %v2592_v8  ;;  %v10155_v44 = vld [vmem:[#allocation65_spill] sm:$0xff] }
 0x351   :  { %10145 = vst [vmem:[#allocation106_spill] sm:$0xff] %v8071_v6  ;;  %v2525_v10 = vadd.f32 %v10146_v7, %v2511_v60  ;;  %v10151_v51 = vld [vmem:[#allocation43_spill] sm:$0xff]  ;;  %v8091_v60 = vmul.f32 %v2831_v5, %v10062_v38  ;;  %v8109_v38 = vmul.f32 %v2831_v5, %v10155_v44  ;;  %v10190_v6 = vld [vmem:[#allocation69_spill] sm:$0xff] }
 0x352   :  { %10148 = vst [vmem:[#allocation112_spill] sm:$0xff] %v8081_v18  ;;  %v2538_v48 = vadd.f32 %v10151_v51, %v2524_v0  ;;  %v2551_v33 = vadd.f32 %v7608_v62, %v2537_v4  ;;  %v8095_v61 = vld [vmem:[#allocation3 + $0x5] sm:$0xff]  ;;  %v8106_v62 = vmul.f32 %v2831_v5, %v10066_v52  ;;  %v8122_v52 = vmul.f32 %v2845_v42, %v7688_v41 }
 0x353   :  { %10149 = vst [vmem:[#allocation120_spill] sm:$0xff] %v8083_v63  ;;  %v8097_v20 = vld [vmem:[#allocation3 + $0x6] sm:$0xff]  ;;  %v2539_v63 = vadd.f32 %v7602_v23, %v2525_v10  ;;  %v2668_v23 = vadd.f32 %v7731_v3, %v2606_v12  ;;  %v8125_v5 = vmul.f32 %v2845_v42, %v10084_v30  ;;  %v8139_v41 = vmul.f32 %v2859_v39, %v7690_v58  ;;  %v10166_v12 = vld [vmem:[#allocation20_spill] sm:$0xff] }
 0x354   :  { %10152 = vst [vmem:[#allocation48_spill] sm:$0xff] %v8095_v61  ;;  %v8099_v7 = vld [vmem:[#allocation3 + $0x7] sm:$0xff]  ;;  %v2552_v8 = vadd.f32 %v7619_v36, %v2538_v48  ;;  %v2565_v0 = vadd.f32 %v7634_v25, %v2551_v33  ;;  %v8142_v30 = vmul.f32 %v2859_v39, %v10107_v27  ;;  %v8154_v44 = vmul.f32 %v2921_v59, %v10166_v12  ;;  %v10167_v58 = vld [vmem:[#allocation116_spill] sm:$0xff] }
 0x355   :  { %10153 = vst [vmem:[#allocation63_spill] sm:$0xff] %v8097_v20  ;;  %v2553_v4 = vadd.f32 %v7622_v54, %v2539_v63  ;;  %v10157_v10 = vld [vmem:[#allocation83_spill] sm:$0xff]  ;;  %v2682_v3 = vadd.f32 %v7751_v37, %v2668_v23  ;;  %v8136_v54 = vmul.f32 %v2859_v39, %v10098_v35  ;;  %v10163_v37 = vld [vmem:[#allocation33_spill] sm:$0xff]  ;;  %v2935_v27 = vstv %s8079_s1  ;;  %v10177_v12 = vld [vmem:[#allocation62_spill] sm:$0xff]  ;;  %s8840_s1 = sld [smem:[#allocation4 + $0x1c]] }
 0x356   :  { %10154 = vst [vmem:[#allocation36_spill] sm:$0xff] %v8099_v7  ;;  %v8128_v51 = vmul.f32 %v2845_v42, %v10157_v10  ;;  %v2566_v36 = vadd.f32 %v7640_v47, %v2552_v8  ;;  %v2579_v25 = vadd.f32 %v7656_v57, %v2565_v0  ;;  %v10161_v42 = vld [vmem:[#allocation37_spill] sm:$0xff]  ;;  %v10162_v57 = vld [vmem:[#allocation86_spill] sm:$0xff]  ;;  %v8148_v33 = vmul.f32 %v2859_v39, %v10163_v37  ;;  %v10170_v0 = vld [vmem:[#allocation84_spill] sm:$0xff]  ;;  %v3403_v37 = vpop.permute.xlu2 %3402 }
 0x357   :  { %3424 = vst.msk [vmem:[#allocation3] sm:$0xff] %vm68_vm4, %v3401_v43  ;;  %v2567_v43 = vadd.f32 %v7643_v13, %v2553_v4  ;;  %v2696_v48 = vadd.f32 %v10162_v57, %v2682_v3  ;;  %v10165_v13 = vld [vmem:[#allocation11_spill] sm:$0xff]  ;;  %v8157_v8 = vmul.f32 %v2921_v59, %v10167_v58  ;;  %v10171_v4 = vld [vmem:[#allocation57_spill] sm:$0xff]  ;;  %v10172_v39 = vld [vmem:[#allocation54_spill] sm:$0xff] }
 0x358   :  { %10156 = vst [vmem:[#allocation70_spill] sm:$0xff] %v8125_v5  ;;  %v2580_v47 = vadd.f32 %v7659_v40, %v2566_v36  ;;  %v2593_v63 = vadd.f32 %v10161_v42, %v2579_v25  ;;  %v8160_v40 = vld [vmem:[#allocation3 + $0x9] sm:$0xff]  ;;  %v2949_v25 = vstv %s8093_s21  ;;  %s8877_s21 = sld [smem:[#allocation4 + $0x2b]] }
 0x359   :  { %10158 = vst [vmem:[#allocation107_spill] sm:$0xff] %v8128_v51  ;;  %v2581_v35 = vadd.f32 %v10165_v13, %v2567_v43  ;;  %v2710_v36 = vadd.f32 %v10172_v39, %v2696_v48  ;;  %v8166_v3 = vld [vmem:[#allocation3 + $0x8] sm:$0xff]  ;;  %v3409_v13 = vpop.permute.xlu0 %3408  ;;  %v2963_v48 = vstv %s8111_s22  ;;  %s8911_s22 = sld [smem:[#allocation4 + $0x3a]] }
 0x35a   :  { %10159 = vst [vmem:[#allocation113_spill] sm:$0xff] %v8139_v41  ;;  %v2594_v23 = vadd.f32 %v10170_v0, %v2580_v47  ;;  %v2607_v10 = vadd.f32 %v10171_v4, %v2593_v63  ;;  %v8168_v43 = vld [vmem:[#allocation3 + $0xa] sm:$0xff]  ;;  %v8184_v0 = vld [vmem:[#allocation3 + $0x20] sm:$0xff]  ;;  %v10259_v41 = vld [vmem:[#allocation121_spill] sm:$0xff] }
 0x35b   :  { %10160 = vst [vmem:[#allocation71_spill] sm:$0xff] %v8142_v30  ;;  %v8170_v42 = vld [vmem:[#allocation3 + $0xb] sm:$0xff]  ;;  %v2595_v7 = vadd.f32 %v10177_v12, %v2581_v35  ;;  %v8186_v4 = vld [vmem:[#allocation3 + $0x21] sm:$0xff]  ;;  %v3411_v35 = vpop.permute.xlu1 %3410 }
 0x35c   :  { %10164 = vst [vmem:[#allocation72_spill] sm:$0xff] %v8148_v33  ;;  %v8172_v57 = vld [vmem:[#allocation3 + $0xc] sm:$0xff]  ;;  %v8188_v39 = vld [vmem:[#allocation3 + $0x22] sm:$0xff] }
 0x35d   :  { %10168 = vst [vmem:[#allocation123_spill] sm:$0xff] %v8157_v8  ;;  %v10178_v20 = vld [vmem:[#allocation35_spill] sm:$0xff]  ;;  %v10187_v12 = vld [vmem:[#allocation24_spill] sm:$0xff] }
 0x35e   :  { %10169 = vst [vmem:[#allocation31_spill] sm:$0xff] %v8160_v40  ;;  %v8176_v61 = vmul.f32 %v2921_v59, %v10178_v20  ;;  %v10180_v47 = vld [vmem:[#allocation59_spill] sm:$0xff]  ;;  %v2608_v20 = vadd.f32 %v10187_v12, %v2594_v23 }
 0x35f   :  { %10173 = vst [vmem:[#allocation64_spill] sm:$0xff] %v8166_v3  ;;  %v8179_v63 = vmul.f32 %v2921_v59, %v10180_v47  ;;  %v10189_v59 = vld [vmem:[#allocation13_spill] sm:$0xff]  ;;  %v8198_v3 = vmul.f32 %v2935_v27, %v10190_v6  ;;  %v10197_v23 = vld [vmem:[#allocation27_spill] sm:$0xff] }
 0x360   :  { %10174 = vst [vmem:[#allocation77_spill] sm:$0xff] %v8168_v43  ;;  %v10188_v43 = vld [vmem:[#allocation85_spill] sm:$0xff]  ;;  %v2724_v40 = vadd.f32 %v10189_v59, %v2710_v36  ;;  %v10199_v36 = vld [vmem:[#allocation68_spill] sm:$0xff]  ;;  %v8220_v6 = vld [vmem:[#allocation3 + $0x25] sm:$0xff] }
 0x361   :  { %10175 = vst [vmem:[#allocation53_spill] sm:$0xff] %v8170_v42  ;;  %v8192_v42 = vld [vmem:[#allocation3 + $0xe] sm:$0xff]  ;;  %v2669_v18 = vadd.f32 %v10188_v43, %v2607_v10  ;;  %v8213_v10 = vmul.f32 %v2935_v27, %v10197_v23  ;;  %v8216_v43 = vmul.f32 %v2949_v25, %v10199_v36  ;;  %v8222_v12 = vld [vmem:[#allocation3 + $0x26] sm:$0xff] }
 0x362   :  { %10176 = vst [vmem:[#allocation90_spill] sm:$0xff] %v8172_v57  ;;  %v8190_v57 = vld [vmem:[#allocation3 + $0xd] sm:$0xff] }
 0x363   :  { %10179 = vst [vmem:[#allocation12_spill] sm:$0xff] %v8176_v61  ;;  %v8224_v59 = vld [vmem:[#allocation3 + $0x27] sm:$0xff] }
 0x364   :  { %10181 = vst [vmem:[#allocation91_spill] sm:$0xff] %v8179_v63  ;;  %v8210_v63 = vmul.f32 %v2935_v27, %v10195_v28  ;;  %v10209_v61 = vld [vmem:[#allocation114_spill] sm:$0xff]  ;;  %v8274_v51 = vld [vmem:[#allocation3 + $0x2d] sm:$0xff] }
 0x365   :  { %10182 = vst [vmem:[#allocation78_spill] sm:$0xff] %v8184_v0  ;;  %v8202_v0 = vld [vmem:[#allocation3 + $0x23] sm:$0xff]  ;;  %v8236_v33 = vmul.f32 %v2949_v25, %v10209_v61 }
 0x366   :  { %10183 = vst [vmem:[#allocation32_spill] sm:$0xff] %v8186_v4  ;;  %v8204_v4 = vld [vmem:[#allocation3 + $0x24] sm:$0xff] }
 0x367   :  { %10184 = vst [vmem:[#allocation50_spill] sm:$0xff] %v8188_v39  ;;  %v8206_v39 = vld [vmem:[#allocation3 + $0xf] sm:$0xff] }
 0x368   :  { %10185 = vst [vmem:[#allocation80_spill] sm:$0xff] %v8190_v57  ;;  %v10194_v57 = vld [vmem:[#allocation45_spill] sm:$0xff] }
 0x369   :  { %10186 = vst [vmem:[#allocation40_spill] sm:$0xff] %v8192_v42  ;;  %v2609_v42 = vadd.f32 %v10194_v57, %v2595_v7  ;;  %v10203_v7 = vld [vmem:[#allocation10_spill] sm:$0xff]  ;;  %v10204_v57 = vld [vmem:[#allocation61_spill] sm:$0xff] }
 0x36a   :  { %10191 = vst [vmem:[#allocation41_spill] sm:$0xff] %v8202_v0  ;;  %v2670_v28 = vadd.f32 %v10203_v7, %v2608_v20  ;;  %v10215_v20 = vld [vmem:[#allocation39_spill] sm:$0xff] }
 0x36b   :  { %10192 = vst [vmem:[#allocation42_spill] sm:$0xff] %v8204_v4  ;;  %v10205_v4 = vld [vmem:[#allocation108_spill] sm:$0xff]  ;;  %v10216_v7 = vld [vmem:[#allocation51_spill] sm:$0xff] }
 0x36c   :  { %10193 = vst [vmem:[#allocation81_spill] sm:$0xff] %v8206_v39  ;;  %v2683_v39 = vadd.f32 %v10204_v57, %v2669_v18  ;;  %v2738_v0 = vadd.f32 %v10205_v4, %v2724_v40  ;;  %v2684_v18 = vadd.f32 %v10215_v20, %v2670_v28  ;;  %v10217_v4 = vld [vmem:[#allocation15_spill] sm:$0xff]  ;;  %v2977_v57 = vstv %s8150_s23  ;;  %s8918_s23 = sld [smem:[#allocation4 + $0x49]] }
 0x36d   :  { %10196 = vst [vmem:[#allocation44_spill] sm:$0xff] %v8210_v63  ;;  %v10208_v63 = vld [vmem:[#allocation38_spill] sm:$0xff]  ;;  %v8266_v20 = vld [vmem:[#allocation3 + $0x2c] sm:$0xff] }
 0x36e   :  { %10198 = vst [vmem:[#allocation49_spill] sm:$0xff] %v8213_v10  ;;  %v10206_v10 = vld [vmem:[#allocation109_spill] sm:$0xff]  ;;  %v2697_v40 = vadd.f32 %v10216_v7, %v2683_v39  ;;  %v8262_v39 = vld [vmem:[#allocation3 + $0x2a] sm:$0xff]  ;;  %v10230_v7 = vld [vmem:[#allocation58_spill] sm:$0xff] }
 0x36f   :  { %10200 = vst [vmem:[#allocation82_spill] sm:$0xff] %v8220_v6  ;;  %v8231_v36 = vmul.f32 %v2935_v27, %v10206_v10  ;;  %v2671_v6 = vadd.f32 %v10208_v63, %v2609_v42  ;;  %v2752_v27 = vadd.f32 %v10217_v4, %v2738_v0  ;;  %v10220_v42 = vld [vmem:[#allocation92_spill] sm:$0xff]  ;;  %v2698_v4 = vadd.f32 %v10230_v7, %v2684_v18  ;;  %v10241_v18 = vld [vmem:[#allocation110_spill] sm:$0xff]  ;;  %v10244_v7 = vld [vmem:[#allocation23_spill] sm:$0xff] }
 0x370   :  { %10201 = vst [vmem:[#allocation66_spill] sm:$0xff] %v8222_v12  ;;  %v10211_v12 = vld [vmem:[#allocation67_spill] sm:$0xff] }
 0x371   :  { %10202 = vst [vmem:[#allocation43_spill] sm:$0xff] %v8224_v59  ;;  %v8239_v59 = vmul.f32 %v2949_v25, %v10211_v12  ;;  %v2685_v63 = vadd.f32 %v10220_v42, %v2671_v6  ;;  %v10223_v12 = vld [vmem:[#allocation22_spill] sm:$0xff]  ;;  %v8264_v0 = vld [vmem:[#allocation3 + $0x2b] sm:$0xff] }
 0x372   :  { %3425 = vst.msk [vmem:[#allocation3 + $0x8] sm:$0xff] %vm68_vm4, %v3403_v37  ;;  %v10213_v37 = vld [vmem:[#allocation60_spill] sm:$0xff] }
 0x373   :  { %10207 = vst [vmem:[#allocation65_spill] sm:$0xff] %v8231_v36  ;;  %v8242_v8 = vmul.f32 %v2949_v25, %v10213_v37  ;;  %v8248_v36 = vld [vmem:[#allocation3 + $0x28] sm:$0xff]  ;;  %v8257_v25 = vmul.f32 %v2963_v48, %v10223_v12  ;;  %v10232_v42 = vld [vmem:[#allocation52_spill] sm:$0xff] }
 0x374   :  { %3428 = vst.msk [vmem:[#allocation3 + $0x20] sm:$0xff] %vm68_vm4, %v3409_v13  ;;  %v8250_v13 = vld [vmem:[#allocation3 + $0x29] sm:$0xff] }
 0x375   :  { %10210 = vst [vmem:[#allocation83_spill] sm:$0xff] %v8236_v33  ;;  %v10221_v33 = vld [vmem:[#allocation25_spill] sm:$0xff] }
 0x376   :  { %10212 = vst [vmem:[#allocation37_spill] sm:$0xff] %v8239_v59  ;;  %v8254_v30 = vmul.f32 %v2963_v48, %v10221_v33  ;;  %v2766_v33 = vadd.f32 %v10232_v42, %v2752_v27  ;;  %v2991_v27 = vstv %s8182_s24  ;;  %s8930_s24 = sld [smem:[#allocation4 + $0x58]] }
 0x377   :  { %10214 = vst [vmem:[#allocation86_spill] sm:$0xff] %v8242_v8  ;;  %v10225_v8 = vld [vmem:[#allocation88_spill] sm:$0xff]  ;;  %v8323_v5 = vmul.f32 %v2991_v27, %v10259_v41 }
 0x378   :  { %10218 = vst [vmem:[#allocation33_spill] sm:$0xff] %v8248_v36  ;;  %v8260_v28 = vmul.f32 %v2963_v48, %v10225_v8  ;;  %v10233_v36 = vld [vmem:[#allocation56_spill] sm:$0xff] }
 0x379   :  { %10219 = vst [vmem:[#allocation11_spill] sm:$0xff] %v8250_v13  ;;  %v10231_v13 = vld [vmem:[#allocation93_spill] sm:$0xff]  ;;  %v8272_v59 = vmul.f32 %v2963_v48, %v10233_v36  ;;  %v8276_v8 = vld [vmem:[#allocation3 + $0x2e] sm:$0xff]  ;;  %v10243_v48 = vld [vmem:[#allocation34_spill] sm:$0xff] }
 0x37a   :  { %10222 = vst [vmem:[#allocation20_spill] sm:$0xff] %v8254_v30  ;;  %v2711_v6 = vadd.f32 %v10231_v13, %v2697_v40  ;;  %v8285_v40 = vmul.f32 %v2977_v57, %v10241_v18  ;;  %v2712_v13 = vadd.f32 %v10243_v48, %v2698_v4  ;;  %v3019_v30 = vstv %s8218_s26  ;;  %v3407_v4 = vpop.permute.xlu1 %3406  ;;  %s8981_s26 = sld [smem:[#allocation4 + $0x76]] }
 0x37b   :  { %10224 = vst [vmem:[#allocation116_spill] sm:$0xff] %v8257_v25 }
 0x37c   :  { %10226 = vst [vmem:[#allocation84_spill] sm:$0xff] %v8260_v28  ;;  %v2725_v42 = vadd.f32 %v10244_v7, %v2711_v6  ;;  %v10251_v6 = vld [vmem:[#allocation16_spill] sm:$0xff] }
 0x37d   :  { %10227 = vst [vmem:[#allocation57_spill] sm:$0xff] %v8262_v39  ;;  %v8278_v39 = vld [vmem:[#allocation3 + $0x2f] sm:$0xff] }
 0x37e   :  { %10228 = vst [vmem:[#allocation54_spill] sm:$0xff] %v8264_v0  ;;  %v10238_v0 = vld [vmem:[#allocation47_spill] sm:$0xff]  ;;  %v10253_v7 = vld [vmem:[#allocation96_spill] sm:$0xff] }
 0x37f   :  { %10229 = vst [vmem:[#allocation62_spill] sm:$0xff] %v8266_v20  ;;  %v2699_v28 = vadd.f32 %v10238_v0, %v2685_v63  ;;  %v10239_v20 = vld [vmem:[#allocation94_spill] sm:$0xff]  ;;  %v3405_v63 = vpop.permute.xlu2 %3404  ;;  %v10247_v0 = vld [vmem:[#allocation17_spill] sm:$0xff] }
 0x380   :  { %10234 = vst [vmem:[#allocation35_spill] sm:$0xff] %v8272_v59  ;;  %v8282_v25 = vmul.f32 %v2977_v57, %v10239_v20 }
 0x381   :  { %10235 = vst [vmem:[#allocation59_spill] sm:$0xff] %v8274_v51  ;;  %v10245_v51 = vld [vmem:[#allocation29_spill] sm:$0xff]  ;;  %v2713_v20 = vadd.f32 %v10247_v0, %v2699_v28 }
 0x382   :  { %10236 = vst [vmem:[#allocation24_spill] sm:$0xff] %v8276_v8  ;;  %v2780_v8 = vadd.f32 %v7984_v26, %v2766_v33  ;;  %v8293_v59 = vmul.f32 %v2977_v57, %v10245_v51  ;;  %v2726_v26 = vadd.f32 %v10251_v6, %v2712_v13  ;;  %v10252_v33 = vld [vmem:[#allocation99_spill] sm:$0xff]  ;;  %v8317_v28 = vld [vmem:[#allocation3 + $0x12] sm:$0xff] }
 0x383   :  { %10237 = vst [vmem:[#allocation85_spill] sm:$0xff] %v8278_v39  ;;  %v10248_v39 = vld [vmem:[#allocation28_spill] sm:$0xff]  ;;  %v2739_v51 = vadd.f32 %v10252_v33, %v2725_v42 }
 0x384   :  { %10240 = vst [vmem:[#allocation13_spill] sm:$0xff] %v8282_v25  ;;  %v8299_v25 = vmul.f32 %v2977_v57, %v10248_v39  ;;  %v2794_v48 = vadd.f32 %v8005_v9, %v2780_v8  ;;  %v8315_v57 = vld [vmem:[#allocation3 + $0x11] sm:$0xff]  ;;  %v10263_v9 = vld [vmem:[#allocation14_spill] sm:$0xff] }
 0x385   :  { %10242 = vst [vmem:[#allocation69_spill] sm:$0xff] %v8285_v40  ;;  %v3005_v40 = vstv %s8200_s25  ;;  %v8319_v0 = vld [vmem:[#allocation3 + $0x13] sm:$0xff]  ;;  %v8329_v8 = vmul.f32 %v2991_v27, %v10263_v9  ;;  %s8962_s25 = sld [smem:[#allocation4 + $0x67]] }
 0x386   :  { %3429 = vst.msk [vmem:[#allocation3 + $0x28] sm:$0xff] %vm68_vm4, %v3411_v35  ;;  %v8305_v35 = vld [vmem:[#allocation3 + $0x10] sm:$0xff] }
 0x387   :  { %10246 = vst [vmem:[#allocation45_spill] sm:$0xff] %v8293_v59  ;;  %v8311_v59 = vmul.f32 %v2991_v27, %v10253_v7  ;;  %v10261_v13 = vld [vmem:[#allocation76_spill] sm:$0xff] }
 0x388   :  { %10249 = vst [vmem:[#allocation87_spill] sm:$0xff] %v8299_v25  ;;  %v10258_v25 = vld [vmem:[#allocation97_spill] sm:$0xff]  ;;  %v8326_v42 = vmul.f32 %v2991_v27, %v10261_v13 }
 0x389   :  { %10250 = vst [vmem:[#allocation27_spill] sm:$0xff] %v8305_v35  ;;  %v2727_v35 = vadd.f32 %v10258_v25, %v2713_v20  ;;  %v8333_v6 = vld [vmem:[#allocation3 + $0x14] sm:$0xff]  ;;  %v10269_v25 = vld [vmem:[#allocation19_spill] sm:$0xff] }
 0x38a   :  { %10254 = vst [vmem:[#allocation68_spill] sm:$0xff] %v8311_v59  ;;  %v8335_v33 = vld [vmem:[#allocation3 + $0x15] sm:$0xff]  ;;  %v2753_v20 = vadd.f32 %v10269_v25, %v2739_v51 }
 0x38b   :  { %10255 = vst [vmem:[#allocation10_spill] sm:$0xff] %v8315_v57  ;;  %v8337_v7 = vld [vmem:[#allocation3 + $0x16] sm:$0xff]  ;;  %v2808_v57 = vadd.f32 %v8025_v32, %v2794_v48 }
 0x38c   :  { %10256 = vst [vmem:[#allocation61_spill] sm:$0xff] %v8317_v28  ;;  %v10272_v27 = vld [vmem:[#allocation89_spill] sm:$0xff] }
 0x38d   :  { %10257 = vst [vmem:[#allocation108_spill] sm:$0xff] %v8319_v0  ;;  %v10268_v0 = vld [vmem:[#allocation100_spill] sm:$0xff]  ;;  %v10278_v32 = vld [vmem:[#allocation101_spill] sm:$0xff] }
 0x38e   :  { %10260 = vst [vmem:[#allocation109_spill] sm:$0xff] %v8323_v5  ;;  %v2740_v28 = vadd.f32 %v10268_v0, %v2726_v26  ;;  %v10270_v5 = vld [vmem:[#allocation95_spill] sm:$0xff]  ;;  %v10281_v25 = vld [vmem:[#allocation117_spill] sm:$0xff] }
 0x38f   :  { %10262 = vst [vmem:[#allocation38_spill] sm:$0xff] %v8326_v42  ;;  %v8343_v13 = vmul.f32 %v3005_v40, %v10270_v5  ;;  %v10273_v42 = vld [vmem:[#allocation115_spill] sm:$0xff] }
 0x390   :  { %10264 = vst [vmem:[#allocation114_spill] sm:$0xff] %v8329_v8  ;;  %v2741_v8 = vadd.f32 %v10272_v27, %v2727_v35  ;;  %v2754_v51 = vadd.f32 %v10278_v32, %v2740_v28  ;;  %v10279_v5 = vld [vmem:[#allocation55_spill] sm:$0xff] }
 0x391   :  { %10265 = vst [vmem:[#allocation67_spill] sm:$0xff] %v8333_v6  ;;  %v8348_v6 = vmul.f32 %v3005_v40, %v10273_v42  ;;  %v2767_v48 = vadd.f32 %v10279_v5, %v2753_v20  ;;  %v10280_v0 = vld [vmem:[#allocation103_spill] sm:$0xff]  ;;  %v10285_v5 = vld [vmem:[#allocation122_spill] sm:$0xff] }
 0x392   :  { %10266 = vst [vmem:[#allocation60_spill] sm:$0xff] %v8335_v33  ;;  %v10275_v33 = vld [vmem:[#allocation98_spill] sm:$0xff]  ;;  %v8361_v35 = vmul.f32 %v3019_v30, %v10280_v0  ;;  %v2755_v27 = vadd.f32 %v10281_v25, %v2741_v8  ;;  %v2768_v28 = vadd.f32 %v7963_v55, %v2754_v51  ;;  %v3413_v8 = vpop.permute.xlu0 %3412  ;;  %v8395_v0 = vld [vmem:[#allocation3 + $0x31] sm:$0xff] }
 0x393   :  { %10267 = vst [vmem:[#allocation39_spill] sm:$0xff] %v8337_v7  ;;  %v8351_v59 = vmul.f32 %v3005_v40, %v10275_v33  ;;  %v10277_v7 = vld [vmem:[#allocation75_spill] sm:$0xff]  ;;  %v10283_v33 = vld [vmem:[#allocation118_spill] sm:$0xff]  ;;  %v2781_v20 = vadd.f32 %v7991_v16, %v2767_v48  ;;  %v8389_v16 = vld [vmem:[#allocation3 + $0x30] sm:$0xff] }
 0x394   :  { %10271 = vst [vmem:[#allocation51_spill] sm:$0xff] %v8343_v13  ;;  %v8354_v26 = vmul.f32 %v3005_v40, %v10277_v7  ;;  %v10284_v40 = vld [vmem:[#allocation104_spill] sm:$0xff] }
 0x395   :  { %3426 = vst.msk [vmem:[#allocation3 + $0x10] sm:$0xff] %vm68_vm4, %v3405_v63  ;;  %v2822_v63 = vadd.f32 %v8055_v34, %v2808_v57  ;;  %v3033_v57 = vstv %s8295_s27  ;;  %v2795_v51 = vadd.f32 %v8009_v14, %v2781_v20  ;;  %v8411_v14 = vld [vmem:[#allocation3 + $0x35] sm:$0xff]  ;;  %s8986_s27 = sld [smem:[#allocation4 + $0x85]] }
 0x396   :  { %10274 = vst [vmem:[#allocation15_spill] sm:$0xff] %v8348_v6  ;;  %v10282_v6 = vld [vmem:[#allocation102_spill] sm:$0xff]  ;;  %v8381_v32 = vmul.f32 %v3033_v57, %v10167_v58  ;;  %v8387_v55 = vmul.f32 %v3033_v57, %v10180_v47  ;;  %v8399_v58 = vld [vmem:[#allocation3 + $0x33] sm:$0xff]  ;;  %v8403_v47 = vmul.f32 %v3033_v57, %v8021_v21 }
 0x397   :  { %10276 = vst [vmem:[#allocation92_spill] sm:$0xff] %v8351_v59  ;;  %v8365_v13 = vmul.f32 %v3019_v30, %v10282_v6  ;;  %v8368_v59 = vmul.f32 %v3019_v30, %v10283_v33  ;;  %v2836_v34 = vadd.f32 %v8091_v60, %v2822_v63  ;;  %v2769_v6 = vadd.f32 %v7973_v17, %v2755_v27  ;;  %v8397_v17 = vld [vmem:[#allocation3 + $0x32] sm:$0xff] }
 0x398   :  { %3427 = vst.msk [vmem:[#allocation3 + $0x18] sm:$0x3f] %vm72_vm2, %v3407_v4  ;;  %v8371_v4 = vmul.f32 %v3019_v30, %v10284_v40  ;;  %v8384_v30 = vmul.f32 %v3033_v57, %v10285_v5  ;;  %v2782_v60 = vadd.f32 %v7994_v1, %v2768_v28  ;;  %v3047_v63 = vstv %s8303_s28  ;;  %v8409_v1 = vld [vmem:[#allocation3 + $0x34] sm:$0xff]  ;;  %v3415_v40 = vpop.permute.xlu2 %3414  ;;  %v10291_v57 = vld [vmem:[#allocation30_spill] sm:$0xff]  ;;  %s8998_s28 = sld [smem:[#allocation4 + $0x94]] }
 0x399   :  { %v2850_v48 = vadd.f32 %v8118_v11, %v2836_v34  ;;  %10286 = vst [vmem:[#allocation25_spill] sm:$0xff] %v8397_v17  ;;  %v2783_v25 = vadd.f32 %v7997_v45, %v2769_v6  ;;  %v3061_v27 = vstv %s8313_s29  ;;  %v3075_v33 = vstv %s8331_s30  ;;  %v8413_v11 = vld [vmem:[#allocation3 + $0x36] sm:$0xff]  ;;  %s9029_s29 = sld [smem:[#allocation4 + $0xa3]] }
 0x39a   :  { %10287 = vst [vmem:[#allocation22_spill] sm:$0xff] %v8399_v58  ;;  %v2796_v28 = vadd.f32 %v8012_v22, %v2782_v60  ;;  %v2809_v20 = vadd.f32 %v8028_v46, %v2795_v51  ;;  %v8419_v21 = vmul.f32 %v3047_v63, %v10206_v10  ;;  %v8426_v6 = vmul.f32 %v3047_v63, %v10291_v57  ;;  %v10299_v57 = vld [vmem:[#allocation46_spill] sm:$0xff]  ;;  %s9048_s30 = sld [smem:[#allocation4 + $0xb2]] }
 0x39b   :  { %10288 = vst [vmem:[#allocation88_spill] sm:$0xff] %v8409_v1  ;;  %v2864_v45 = vadd.f32 %v8136_v54, %v2850_v48  ;;  %v2797_v34 = vadd.f32 %v8015_v53, %v2783_v25  ;;  %v8429_v5 = vmul.f32 %v3047_v63, %v10197_v23  ;;  %v8432_v22 = vmul.f32 %v3047_v63, %v8033_v31  ;;  %v10292_v23 = vld [vmem:[#allocation105_spill] sm:$0xff] }
 0x39c   :  { %10289 = vst [vmem:[#allocation58_spill] sm:$0xff] %v8411_v14  ;;  %v2810_v46 = vadd.f32 %v8031_v50, %v2796_v28  ;;  %v2823_v54 = vadd.f32 %v8058_v24, %v2809_v20  ;;  %v8441_v10 = vmul.f32 %v3061_v27, %v10209_v61  ;;  %v8445_v60 = vmul.f32 %v3061_v27, %v10292_v23  ;;  %v10293_v63 = vld [vmem:[#allocation73_spill] sm:$0xff]  ;;  %v10297_v20 = vld [vmem:[#allocation20_spill] sm:$0xff] }
 0x39d   :  { %10290 = vst [vmem:[#allocation93_spill] sm:$0xff] %v8413_v11  ;;  %v2926_v53 = vadd.f32 %v8154_v44, %v2864_v45  ;;  %v8448_v31 = vmul.f32 %v3061_v27, %v10213_v37  ;;  %v8451_v51 = vmul.f32 %v3061_v27, %v8035_v2  ;;  %v3089_v48 = vstv %s8377_s3  ;;  %v10296_v28 = vld [vmem:[#allocation113_spill] sm:$0xff]  ;;  %v10298_v45 = vld [vmem:[#allocation107_spill] sm:$0xff]  ;;  %s9053_s3 = sld [smem:[#allocation4 + $0xc1]] }
 0x39e   :  { %3430 = vst.msk [vmem:[#allocation3 + $0x30] sm:$0xff] %vm68_vm4, %v3413_v8  ;;  %v2811_v8 = vadd.f32 %v8043_v49, %v2797_v34  ;;  %v2824_v50 = vadd.f32 %v8066_v29, %v2810_v46  ;;  %v2837_v24 = vadd.f32 %v8103_v56, %v2823_v54  ;;  %v8459_v49 = vmul.f32 %v3075_v33, %v10223_v12  ;;  %v10300_v54 = vld [vmem:[#allocation71_spill] sm:$0xff]  ;;  %v10302_v23 = vld [vmem:[#allocation13_spill] sm:$0xff] }
 0x39f   :  { %3431 = vst.msk [vmem:[#allocation3 + $0x38] sm:$0x3f] %vm72_vm2, %v3415_v40  ;;  %v2940_v44 = vadd.f32 %v8198_v3, %v2926_v53  ;;  %v8462_v25 = vmul.f32 %v3075_v33, %v10293_v63  ;;  %v8465_v37 = vmul.f32 %v3075_v33, %v10233_v36  ;;  %v8477_v12 = vmul.f32 %v3089_v48, %v10241_v18  ;;  %v10294_v36 = vld [vmem:[#allocation111_spill] sm:$0xff]  ;;  %v10295_v40 = vld [vmem:[#allocation70_spill] sm:$0xff] }
 0x3a0   :  { %v2825_v61 = vadd.f32 %v8075_v15, %v2811_v8  ;;  %v2838_v2 = vadd.f32 %v8106_v62, %v2824_v50  ;;  %v2851_v29 = vadd.f32 %v8122_v52, %v2837_v24  ;;  %v8471_v15 = vmul.f32 %v3075_v33, %v8037_v19  ;;  %v8595_v1 = vld [vmem:[#allocation3 + $0xd] sm:$0xff] }
 0x3a1   :  { %v2954_v56 = vadd.f32 %v8216_v43, %v2940_v44  ;;  %v8480_v27 = vmul.f32 %v3089_v48, %v10294_v36  ;;  %v8483_v62 = vmul.f32 %v3089_v48, %v10248_v39  ;;  %v3103_v33 = vstv %s8407_s4  ;;  %v10301_v39 = vld [vmem:[#allocation123_spill] sm:$0xff]  ;;  %v3659_v44 = vpop.permute.xlu0 %3658  ;;  %v10306_v36 = vld [vmem:[#allocation12_spill] sm:$0xff]  ;;  %10345 = vst [vmem:[#allocation100_spill] sm:$0xff] %v8595_v1  ;;  %s9063_s4 = sld [smem:[#allocation4 + $0xd0]] }
 0x3a2   :  { %v2839_v3 = vadd.f32 %v8109_v38, %v2825_v61  ;;  %v2852_v52 = vadd.f32 %v10295_v40, %v2838_v2  ;;  %v2865_v43 = vadd.f32 %v10296_v28, %v2851_v29  ;;  %v8491_v38 = vmul.f32 %v3089_v48, %v10299_v57  ;;  %v10303_v61 = vld [vmem:[#allocation72_spill] sm:$0xff]  ;;  %v10304_v48 = vld [vmem:[#allocation119_spill] sm:$0xff]  ;;  %v10307_v40 = vld [vmem:[#allocation65_spill] sm:$0xff] }
 0x3a3   :  { %v2968_v19 = vadd.f32 %v10297_v20, %v2954_v56  ;;  %v3117_v18 = vstv %s8421_s5  ;;  %v3179_v46 = vstv %s8434_s6  ;;  %v8501_v24 = vmul.f32 %v3103_v33, %v10259_v41  ;;  %v10305_v56 = vld [vmem:[#allocation21_spill] sm:$0xff]  ;;  %v10308_v28 = vld [vmem:[#allocation68_spill] sm:$0xff]  ;;  %v8627_v1 = vld [vmem:[#allocation3 + $0x24] sm:$0xff]  ;;  %s9090_s5 = sld [smem:[#allocation4 + $0xdf]] }
 0x3a4   :  { %v2853_v34 = vadd.f32 %v10298_v45, %v2839_v3  ;;  %v2866_v53 = vadd.f32 %v10300_v54, %v2852_v52  ;;  %v2927_v8 = vadd.f32 %v10301_v39, %v2865_v43  ;;  %v8507_v2 = vmul.f32 %v3103_v33, %v10304_v48  ;;  %v10312_v39 = vld [vmem:[#allocation44_spill] sm:$0xff]  ;;  %10358 = vst [vmem:[#allocation55_spill] sm:$0xff] %v8627_v1  ;;  %s9107_s6 = sld [smem:[#allocation4 + $0xe]] }
 0x3a5   :  { %v2982_v50 = vadd.f32 %v10302_v23, %v2968_v19  ;;  %v8510_v29 = vmul.f32 %v3103_v33, %v10263_v9  ;;  %v8513_v3 = vmul.f32 %v3103_v33, %v10305_v56  ;;  %v8521_v20 = vmul.f32 %v3117_v18, %v10273_v42  ;;  %v10309_v19 = vld [vmem:[#allocation91_spill] sm:$0xff]  ;;  %v10315_v42 = vld [vmem:[#allocation49_spill] sm:$0xff] }
 0x3a6   :  { %v2867_v63 = vadd.f32 %v10303_v61, %v2853_v34  ;;  %v2928_v41 = vadd.f32 %v10306_v36, %v2866_v53  ;;  %v2941_v52 = vadd.f32 %v10307_v40, %v2927_v8  ;;  %v10310_v34 = vld [vmem:[#allocation26_spill] sm:$0xff]  ;;  %v8528_v9 = vmul.f32 %v3117_v18, %v10277_v7  ;;  %v10311_v33 = vld [vmem:[#allocation79_spill] sm:$0xff]  ;;  %v10317_v40 = vld [vmem:[#allocation64_spill] sm:$0xff] }
 0x3a7   :  { %v2996_v43 = vadd.f32 %v10308_v28, %v2982_v50  ;;  %v8525_v57 = vmul.f32 %v3117_v18, %v10310_v34  ;;  %v8531_v54 = vmul.f32 %v3117_v18, %v10311_v33  ;;  %v10313_v23 = vld [vmem:[#allocation83_spill] sm:$0xff]  ;;  %v3193_v48 = vstv %s8473_s7  ;;  %v10316_v36 = vld [vmem:[#allocation74_spill] sm:$0xff]  ;;  %s9112_s7 = sld [smem:[#allocation4 + $0x1d]] }
 0x3a8   :  { %v2929_v45 = vadd.f32 %v10309_v19, %v2867_v63  ;;  %v2942_v53 = vadd.f32 %v10312_v39, %v2928_v41  ;;  %v2955_v8 = vadd.f32 %v10313_v23, %v2941_v52  ;;  %v10314_v61 = vld [vmem:[#allocation51_spill] sm:$0xff]  ;;  %v8539_v63 = vmul.f32 %v3179_v46, %v10316_v36  ;;  %v10318_v7 = vld [vmem:[#allocation78_spill] sm:$0xff]  ;;  %v3661_v41 = vpop.permute.xlu1 %3660  ;;  %v10322_v52 = vld [vmem:[#allocation37_spill] sm:$0xff] }
 0x3a9   :  { %v3010_v50 = vadd.f32 %v10314_v61, %v2996_v43  ;;  %v8542_v28 = vmul.f32 %v3179_v46, %v10317_v40  ;;  %v8545_v19 = vmul.f32 %v3179_v46, %v10318_v7  ;;  %v8547_v18 = vld [vmem:[#allocation3] sm:$0xff]  ;;  %v10323_v43 = vld [vmem:[#allocation116_spill] sm:$0xff]  ;;  %v10324_v23 = vld [vmem:[#allocation33_spill] sm:$0xff] }
 0x3aa   :  { %v2943_v56 = vadd.f32 %v10315_v42, %v2929_v45  ;;  %10320 = vst [vmem:[#allocation56_spill] sm:$0xff] %v8547_v18  ;;  %v8549_v34 = vld [vmem:[#allocation3 + $0x1] sm:$0xff]  ;;  %v2956_v33 = vadd.f32 %v10322_v52, %v2942_v53  ;;  %v2969_v39 = vadd.f32 %v10323_v43, %v2955_v8  ;;  %v8555_v61 = vmul.f32 %v3179_v46, %v10324_v23  ;;  %v8561_v36 = vld [vmem:[#allocation3 + $0x9] sm:$0xff] }
 0x3ab   :  { %10319 = vst [vmem:[#allocation52_spill] sm:$0xff] %v8545_v19  ;;  %v3024_v45 = vadd.f32 %v8361_v35, %v3010_v50  ;;  %v8559_v42 = vld [vmem:[#allocation3 + $0x8] sm:$0xff]  ;;  %v10334_v46 = vld [vmem:[#allocation86_spill] sm:$0xff] }
 0x3ac   :  { %10321 = vst [vmem:[#allocation47_spill] sm:$0xff] %v8549_v34  ;;  %v8563_v7 = vld [vmem:[#allocation3 + $0x2] sm:$0xff]  ;;  %v8565_v34 = vld [vmem:[#allocation3 + $0xa] sm:$0xff]  ;;  %v2957_v50 = vadd.f32 %v10334_v46, %v2943_v56 }
 0x3ad   :  { %10325 = vst [vmem:[#allocation94_spill] sm:$0xff] %v8555_v61  ;;  %v8567_v18 = vld [vmem:[#allocation3 + $0x3] sm:$0xff]  ;;  %v8569_v53 = vld [vmem:[#allocation3 + $0xb] sm:$0xff]  ;;  %v3038_v56 = vadd.f32 %v8381_v32, %v3024_v45 }
 0x3ae   :  { %10326 = vst [vmem:[#allocation110_spill] sm:$0xff] %v8559_v42  ;;  %v8571_v8 = vld [vmem:[#allocation3 + $0x4] sm:$0xff]  ;;  %v8573_v35 = vld [vmem:[#allocation3 + $0xc] sm:$0xff] }
 0x3af   :  { %10327 = vst [vmem:[#allocation34_spill] sm:$0xff] %v8561_v36  ;;  %v10335_v52 = vld [vmem:[#allocation106_spill] sm:$0xff]  ;;  %v10336_v42 = vld [vmem:[#allocation31_spill] sm:$0xff]  ;;  %v10343_v46 = vld [vmem:[#allocation32_spill] sm:$0xff] }
 0x3b0   :  { %10328 = vst [vmem:[#allocation23_spill] sm:$0xff] %v8563_v7  ;;  %v8577_v43 = vmul.f32 %v3193_v48, %v10335_v52  ;;  %v8580_v36 = vmul.f32 %v3193_v48, %v10336_v42  ;;  %v3207_v7 = vstv %s8495_s8  ;;  %v8593_v52 = vmul.f32 %v3193_v48, %v10343_v46  ;;  %v8597_v58 = vld [vmem:[#allocation3 + $0xe] sm:$0xff]  ;;  %v8610_v32 = vld [vmem:[#allocation3 + $0x21] sm:$0xff]  ;;  %s9122_s8 = sld [smem:[#allocation4 + $0x2c]] }
 0x3b1   :  { %10329 = vst [vmem:[#allocation29_spill] sm:$0xff] %v8565_v34  ;;  %v8583_v34 = vld [vmem:[#allocation3 + $0x5] sm:$0xff]  ;;  %v8599_v61 = vld [vmem:[#allocation3 + $0xf] sm:$0xff] }
 0x3b2   :  { %10330 = vst [vmem:[#allocation17_spill] sm:$0xff] %v8567_v18  ;;  %v8585_v18 = vld [vmem:[#allocation3 + $0x6] sm:$0xff] }
 0x3b3   :  { %10331 = vst [vmem:[#allocation28_spill] sm:$0xff] %v8569_v53  ;;  %v8587_v53 = vld [vmem:[#allocation3 + $0x7] sm:$0xff] }
 0x3b4   :  { %10332 = vst [vmem:[#allocation16_spill] sm:$0xff] %v8571_v8  ;;  %v10341_v8 = vld [vmem:[#allocation84_spill] sm:$0xff]  ;;  %v8612_v45 = vld [vmem:[#allocation3 + $0x22] sm:$0xff] }
 0x3b5   :  { %10333 = vst [vmem:[#allocation99_spill] sm:$0xff] %v8573_v35  ;;  %v2970_v11 = vadd.f32 %v10341_v8, %v2956_v33  ;;  %v10342_v35 = vld [vmem:[#allocation69_spill] sm:$0xff]  ;;  %v3221_v33 = vstv %s8503_s9  ;;  %v8614_v8 = vld [vmem:[#allocation3 + $0x23] sm:$0xff]  ;;  %s9143_s9 = sld [smem:[#allocation4 + $0x3b]] }
 0x3b6   :  { %10337 = vst [vmem:[#allocation96_spill] sm:$0xff] %v8580_v36  ;;  %v2983_v14 = vadd.f32 %v10342_v35, %v2969_v39  ;;  %v3235_v39 = vstv %s8515_s10  ;;  %v10354_v35 = vld [vmem:[#allocation45_spill] sm:$0xff]  ;;  %v8647_v1 = vld [vmem:[#allocation3 + $0x29] sm:$0xff]  ;;  %s9155_s10 = sld [smem:[#allocation4 + $0x4a]] }
 0x3b7   :  { %10338 = vst [vmem:[#allocation97_spill] sm:$0xff] %v8583_v34  ;;  %v2984_v46 = vadd.f32 %v10354_v35, %v2970_v11  ;;  %v10362_v35 = vld [vmem:[#allocation77_spill] sm:$0xff] }
 0x3b8   :  { %10339 = vst [vmem:[#allocation121_spill] sm:$0xff] %v8585_v18  ;;  %v10348_v18 = vld [vmem:[#allocation35_spill] sm:$0xff] }
 0x3b9   :  { %10340 = vst [vmem:[#allocation76_spill] sm:$0xff] %v8587_v53  ;;  %v2971_v34 = vadd.f32 %v10348_v18, %v2957_v50  ;;  %v10349_v53 = vld [vmem:[#allocation11_spill] sm:$0xff]  ;;  %v3052_v18 = vadd.f32 %v8419_v21, %v3038_v56  ;;  %v10364_v21 = vld [vmem:[#allocation50_spill] sm:$0xff] }
 0x3ba   :  { %10344 = vst [vmem:[#allocation14_spill] sm:$0xff] %v8593_v52  ;;  %v8604_v36 = vmul.f32 %v3193_v48, %v10349_v53  ;;  %v10356_v48 = vld [vmem:[#allocation112_spill] sm:$0xff]  ;;  %v8638_v56 = vmul.f32 %v3207_v7, %v10364_v21 }
 0x3bb   :  { %10346 = vst [vmem:[#allocation19_spill] sm:$0xff] %v8597_v58  ;;  %v8621_v50 = vmul.f32 %v3207_v7, %v10356_v48  ;;  %v8625_v58 = vld [vmem:[#allocation3 + $0x20] sm:$0xff]  ;;  %v10373_v21 = vld [vmem:[#allocation120_spill] sm:$0xff] }
 0x3bc   :  { %10347 = vst [vmem:[#allocation95_spill] sm:$0xff] %v8599_v61 }
 0x3bd   :  { %3682 = vst.msk [vmem:[#allocation3] sm:$0xff] %vm68_vm4, %v3659_v44  ;;  %v10355_v44 = vld [vmem:[#allocation109_spill] sm:$0xff] }
 0x3be   :  { %10350 = vst [vmem:[#allocation89_spill] sm:$0xff] %v8604_v36  ;;  %v2997_v61 = vadd.f32 %v10355_v44, %v2983_v14  ;;  %v8635_v14 = vmul.f32 %v3207_v7, %v10362_v35  ;;  %v10366_v44 = vld [vmem:[#allocation57_spill] sm:$0xff]  ;;  %v10371_v36 = vld [vmem:[#allocation38_spill] sm:$0xff] }
 0x3bf   :  { %10351 = vst [vmem:[#allocation115_spill] sm:$0xff] %v8610_v32  ;;  %v10361_v32 = vld [vmem:[#allocation87_spill] sm:$0xff]  ;;  %v8641_v48 = vmul.f32 %v3207_v7, %v10366_v44 }
 0x3c0   :  { %10352 = vst [vmem:[#allocation98_spill] sm:$0xff] %v8612_v45  ;;  %v8629_v45 = vld [vmem:[#allocation3 + $0x25] sm:$0xff]  ;;  %v2985_v11 = vadd.f32 %v10361_v32, %v2971_v34  ;;  %v2998_v34 = vadd.f32 %v10371_v36, %v2984_v46  ;;  %v10379_v36 = vld [vmem:[#allocation41_spill] sm:$0xff] }
 0x3c1   :  { %10353 = vst [vmem:[#allocation75_spill] sm:$0xff] %v8614_v8  ;;  %v8631_v8 = vld [vmem:[#allocation3 + $0x26] sm:$0xff]  ;;  %v8668_v46 = vmul.f32 %v3221_v33, %v10379_v36  ;;  %v3249_v36 = vstv %s8557_s11  ;;  %s9171_s11 = sld [smem:[#allocation4 + $0x59]] }
 0x3c2   :  { %3683 = vst.msk [vmem:[#allocation3 + $0x8] sm:$0xff] %vm68_vm4, %v3661_v41  ;;  %v3669_v41 = vpop.permute.xlu0 %3668  ;;  %v10372_v32 = vld [vmem:[#allocation15_spill] sm:$0xff] }
 0x3c3   :  { %10357 = vst [vmem:[#allocation101_spill] sm:$0xff] %v8625_v58  ;;  %v8645_v58 = vld [vmem:[#allocation3 + $0x28] sm:$0xff]  ;;  %v3011_v52 = vadd.f32 %v10372_v32, %v2997_v61  ;;  %v10380_v61 = vld [vmem:[#allocation54_spill] sm:$0xff] }
 0x3c4   :  { %10359 = vst [vmem:[#allocation103_spill] sm:$0xff] %v8629_v45  ;;  %v8649_v45 = vld [vmem:[#allocation3 + $0x2a] sm:$0xff] }
 0x3c5   :  { %10360 = vst [vmem:[#allocation117_spill] sm:$0xff] %v8631_v8  ;;  %v3667_v8 = vpop.permute.xlu2 %3666  ;;  %v8657_v7 = vld [vmem:[#allocation3 + $0x2b] sm:$0xff] }
 0x3c6   :  { %10363 = vst [vmem:[#allocation102_spill] sm:$0xff] %v8635_v14  ;;  %v3066_v14 = vadd.f32 %v8441_v10, %v3052_v18  ;;  %v8671_v10 = vmul.f32 %v3221_v33, %v10380_v61  ;;  %v8673_v18 = vld [vmem:[#allocation3 + $0x2d] sm:$0xff] }
 0x3c7   :  { %10365 = vst [vmem:[#allocation118_spill] sm:$0xff] %v8638_v56  ;;  %v8655_v56 = vmul.f32 %v3221_v33, %v10373_v21  ;;  %v8675_v32 = vld [vmem:[#allocation3 + $0x2e] sm:$0xff] }
 0x3c8   :  { %10367 = vst [vmem:[#allocation104_spill] sm:$0xff] %v8641_v48  ;;  %v8659_v48 = vld [vmem:[#allocation3 + $0x2c] sm:$0xff] }
 0x3c9   :  { %10368 = vst [vmem:[#allocation122_spill] sm:$0xff] %v8645_v58  ;;  %v8661_v58 = vld [vmem:[#allocation3 + $0x27] sm:$0xff]  ;;  %v8677_v21 = vld [vmem:[#allocation3 + $0x2f] sm:$0xff] }
 0x3ca   :  { %10369 = vst [vmem:[#allocation30_spill] sm:$0xff] %v8647_v1  ;;  %v10377_v1 = vld [vmem:[#allocation114_spill] sm:$0xff] }
 0x3cb   :  { %10370 = vst [vmem:[#allocation105_spill] sm:$0xff] %v8649_v45  ;;  %v2999_v19 = vadd.f32 %v10377_v1, %v2985_v11  ;;  %v10378_v45 = vld [vmem:[#allocation53_spill] sm:$0xff]  ;;  %v3025_v1 = vadd.f32 %v8365_v13, %v3011_v52  ;;  %v3080_v11 = vadd.f32 %v8459_v49, %v3066_v14  ;;  %v10389_v52 = vld [vmem:[#allocation62_spill] sm:$0xff] }
 0x3cc   :  { %10374 = vst [vmem:[#allocation73_spill] sm:$0xff] %v8657_v7  ;;  %v8665_v17 = vmul.f32 %v3221_v33, %v10378_v45  ;;  %v10386_v7 = vld [vmem:[#allocation18_spill] sm:$0xff] }
 0x3cd   :  { %10375 = vst [vmem:[#allocation111_spill] sm:$0xff] %v8659_v48  ;;  %v3013_v33 = vadd.f32 %v8354_v26, %v2999_v19  ;;  %v3039_v13 = vadd.f32 %v8384_v30, %v3025_v1  ;;  %v3094_v49 = vadd.f32 %v8477_v12, %v3080_v11  ;;  %v10391_v19 = vld [vmem:[#allocation48_spill] sm:$0xff]  ;;  %v10395_v11 = vld [vmem:[#allocation59_spill] sm:$0xff] }
 0x3ce   :  { %10376 = vst [vmem:[#allocation70_spill] sm:$0xff] %v8661_v58  ;;  %v10385_v58 = vld [vmem:[#allocation92_spill] sm:$0xff]  ;;  %v8705_v14 = vmul.f32 %v3249_v36, %v10391_v19  ;;  %v3277_v19 = vstv %s8643_s14  ;;  %s9212_s14 = sld [smem:[#allocation4 + $0x86]] }
 0x3cf   :  { %10381 = vst [vmem:[#allocation113_spill] sm:$0xff] %v8671_v10  ;;  %v3012_v48 = vadd.f32 %v10385_v58, %v2998_v34  ;;  %v3027_v26 = vadd.f32 %v8371_v4, %v3013_v33  ;;  %v10392_v34 = vld [vmem:[#allocation80_spill] sm:$0xff]  ;;  %v3053_v12 = vadd.f32 %v8426_v6, %v3039_v13  ;;  %v8721_v33 = vmul.f32 %v3249_v36, %v10395_v11 }
 0x3d0   :  { %10382 = vst [vmem:[#allocation20_spill] sm:$0xff] %v8673_v18  ;;  %v8687_v18 = vmul.f32 %v3235_v39, %v10386_v7  ;;  %v8708_v7 = vmul.f32 %v3249_v36, %v10392_v34  ;;  %v10397_v13 = vld [vmem:[#allocation40_spill] sm:$0xff] }
 0x3d1   :  { %10383 = vst [vmem:[#allocation107_spill] sm:$0xff] %v8675_v32  ;;  %v10387_v32 = vld [vmem:[#allocation90_spill] sm:$0xff]  ;;  %v3026_v58 = vadd.f32 %v8368_v59, %v3012_v48  ;;  %v3263_v59 = vstv %s8608_s12  ;;  %v8711_v48 = vpop.permute.xlu1 %3662  ;;  %v3041_v4 = vadd.f32 %v8403_v47, %v3027_v26  ;;  %s9183_s12 = sld [smem:[#allocation4 + $0x68]] }
 0x3d2   :  { %10384 = vst [vmem:[#allocation46_spill] sm:$0xff] %v8677_v21  ;;  %v8690_v10 = vmul.f32 %v3235_v39, %v10387_v32  ;;  %v10388_v21 = vld [vmem:[#allocation42_spill] sm:$0xff] }
 0x3d3   :  { %3686 = vst.msk [vmem:[#allocation3 + $0x20] sm:$0xff] %vm68_vm4, %v3667_v8  ;;  %v8693_v8 = vmul.f32 %v3235_v39, %v10388_v21  ;;  %v3040_v30 = vadd.f32 %v8387_v55, %v3026_v58  ;;  %v10394_v21 = vld [vmem:[#allocation82_spill] sm:$0xff]  ;;  %v3067_v55 = vadd.f32 %v8445_v60, %v3053_v12  ;;  %v10396_v58 = vld [vmem:[#allocation63_spill] sm:$0xff]  ;;  %v3055_v47 = vadd.f32 %v8432_v22, %v3041_v4  ;;  %v10402_v12 = vld [vmem:[#allocation36_spill] sm:$0xff] }
 0x3d4   :  { %3687 = vst.msk [vmem:[#allocation3 + $0x28] sm:$0xff] %vm68_vm4, %v3669_v41  ;;  %v8699_v41 = vmul.f32 %v3235_v39, %v10389_v52  ;;  %v3108_v39 = vadd.f32 %v8501_v24, %v3094_v49  ;;  %v8717_v1 = vmul.f32 %v3249_v36, %v10394_v21  ;;  %v8731_v24 = vmul.f32 %v3263_v59, %v10396_v58  ;;  %v10398_v49 = vld [vmem:[#allocation66_spill] sm:$0xff]  ;;  %v10400_v21 = vld [vmem:[#allocation24_spill] sm:$0xff]  ;;  %v10403_v4 = vld [vmem:[#allocation81_spill] sm:$0xff] }
 0x3d5   :  { %10393 = vst [vmem:[#allocation123_spill] sm:$0xff] %v8708_v7  ;;  %v3054_v7 = vadd.f32 %v8429_v5, %v3040_v30  ;;  %v8737_v36 = vmul.f32 %v3263_v59, %v10397_v13  ;;  %v8740_v26 = vmul.f32 %v3263_v59, %v10398_v49  ;;  %v8743_v5 = vmul.f32 %v3263_v59, %v10400_v21  ;;  %v10404_v49 = vld [vmem:[#allocation43_spill] sm:$0xff]  ;;  %v10405_v59 = vld [vmem:[#allocation85_spill] sm:$0xff] }
 0x3d6   :  { %10390 = vst [vmem:[#allocation71_spill] sm:$0xff] %v8699_v41  ;;  %v3291_v41 = vstv %s8623_s13  ;;  %v3122_v6 = vadd.f32 %v8521_v20, %v3108_v39  ;;  %v3081_v20 = vadd.f32 %v8462_v25, %v3067_v55  ;;  %v8751_v22 = vmul.f32 %v3277_v19, %v10402_v12  ;;  %s9195_s13 = sld [smem:[#allocation4 + $0x77]] }
 0x3d7   :  { %10399 = vst [vmem:[#allocation13_spill] sm:$0xff] %v8740_v26  ;;  %v3068_v60 = vadd.f32 %v8448_v31, %v3054_v7  ;;  %v3069_v39 = vadd.f32 %v8451_v51, %v3055_v47  ;;  %v8755_v58 = vmul.f32 %v3277_v19, %v10403_v4  ;;  %v8758_v26 = vmul.f32 %v3277_v19, %v10404_v49 }
 0x3d8   :  { %10401 = vst [vmem:[#allocation72_spill] sm:$0xff] %v8743_v5  ;;  %v3184_v30 = vadd.f32 %v8539_v63, %v3122_v6  ;;  %v8761_v5 = vmul.f32 %v3277_v19, %v10405_v59  ;;  %v3095_v25 = vadd.f32 %v8480_v27, %v3081_v20  ;;  %v3305_v7 = vstv %s8701_s15  ;;  %v10406_v6 = vld [vmem:[#allocation27_spill] sm:$0xff]  ;;  %s9223_s15 = sld [smem:[#allocation4 + $0x95]] }
 0x3d9   :  { %v3082_v31 = vadd.f32 %v8465_v37, %v3068_v60  ;;  %v3083_v55 = vadd.f32 %v8471_v15, %v3069_v39  ;;  %v8769_v51 = vmul.f32 %v3291_v41, %v10317_v40  ;;  %v8772_v47 = vmul.f32 %v3291_v41, %v10406_v6  ;;  %v8785_v15 = vld [vmem:[#allocation3 + $0x30] sm:$0xff]  ;;  %v3673_v4 = vpop.permute.xlu1 %3672 }
 0x3da   :  { %v3198_v63 = vadd.f32 %v8577_v43, %v3184_v30  ;;  %v8775_v12 = vmul.f32 %v3291_v41, %v10324_v23  ;;  %v3109_v37 = vadd.f32 %v8507_v2, %v3095_v25  ;;  %v8781_v43 = vmul.f32 %v3291_v41, %v8389_v16  ;;  %v8787_v40 = vld [vmem:[#allocation3 + $0x31] sm:$0xff]  ;;  %v3671_v23 = vpop.permute.xlu2 %3670 }
 0x3db   :  { %v3096_v19 = vadd.f32 %v8483_v62, %v3082_v31  ;;  %v8789_v60 = vld [vmem:[#allocation3 + $0x32] sm:$0xff]  ;;  %v3097_v62 = vadd.f32 %v8491_v38, %v3083_v55  ;;  %v8793_v2 = vmul.f32 %v3305_v7, %v10336_v42  ;;  %v3319_v16 = vstv %s8725_s16  ;;  %s9234_s16 = sld [smem:[#allocation4 + $0xa4]] }
 0x3dc   :  { %v3212_v27 = vadd.f32 %v8621_v50, %v3198_v63  ;;  %v10407_v50 = vld [vmem:[#allocation10_spill] sm:$0xff]  ;;  %v8799_v41 = vld [vmem:[#allocation3 + $0x33] sm:$0xff]  ;;  %v3123_v59 = vadd.f32 %v8525_v57, %v3109_v37  ;;  %v8809_v42 = vmul.f32 %v3305_v7, %v10349_v53  ;;  %v8813_v25 = vmul.f32 %v3305_v7, %v8395_v0 }
 0x3dd   :  { %v8796_v20 = vmul.f32 %v3305_v7, %v10407_v50  ;;  %10408 = vst [vmem:[#allocation119_spill] sm:$0xff] %v8799_v41  ;;  %v8801_v30 = vld [vmem:[#allocation3 + $0x34] sm:$0xff]  ;;  %v3110_v49 = vadd.f32 %v8510_v29, %v3096_v19  ;;  %v3111_v31 = vadd.f32 %v8513_v3, %v3097_v62  ;;  %v3333_v63 = vstv %s8733_s17  ;;  %v10416_v62 = vld [vmem:[#allocation94_spill] sm:$0xff]  ;;  %s9242_s17 = sld [smem:[#allocation4 + $0xb3]] }
 0x3de   :  { %10409 = vst [vmem:[#allocation21_spill] sm:$0xff] %v8801_v30  ;;  %v8803_v39 = vld [vmem:[#allocation3 + $0x35] sm:$0xff]  ;;  %v3226_v38 = vadd.f32 %v8655_v56, %v3212_v27  ;;  %v3347_v55 = vstv %s8745_s18  ;;  %v3185_v57 = vadd.f32 %v8542_v28, %v3123_v59  ;;  %v8825_v53 = vmul.f32 %v3319_v16, %v10362_v35  ;;  %v10418_v59 = vld [vmem:[#allocation22_spill] sm:$0xff]  ;;  %s9250_s18 = sld [smem:[#allocation4 + $0xc2]] }
 0x3df   :  { %10410 = vst [vmem:[#allocation12_spill] sm:$0xff] %v8803_v39  ;;  %v8819_v6 = vld [vmem:[#allocation3 + $0x36] sm:$0xff]  ;;  %v3124_v29 = vadd.f32 %v8528_v9, %v3110_v49  ;;  %v3125_v0 = vadd.f32 %v8531_v54, %v3111_v31  ;;  %v8835_v19 = vmul.f32 %v3319_v16, %v10366_v44  ;;  %v3451_v39 = vstv %s8840_s1 }
 0x3e0   :  { %10411 = vst [vmem:[#allocation65_spill] sm:$0xff] %v8819_v6  ;;  %v3240_v56 = vadd.f32 %v8687_v18, %v3226_v38  ;;  %v10412_v3 = vld [vmem:[#allocation61_spill] sm:$0xff]  ;;  %v10414_v35 = vld [vmem:[#allocation52_spill] sm:$0xff]  ;;  %v8855_v38 = vmul.f32 %v3333_v63, %v10418_v59  ;;  %v3437_v6 = vstv %s8827_s20  ;;  %s4228_s20 = smov [#allocation7]  }
 0x3e1   :  { %3688 = vst.msk [vmem:[#allocation3 + $0x30] sm:$0xff] %vm68_vm4, %v3671_v23  ;;  %v8832_v7 = vmul.f32 %v3319_v16, %v10412_v3  ;;  %v10413_v9 = vld [vmem:[#allocation25_spill] sm:$0xff]  ;;  %v3186_v18 = vadd.f32 %v10414_v35, %v3124_v29  ;;  %v10415_v37 = vld [vmem:[#allocation96_spill] sm:$0xff]  ;;  %v3334_v23 = vmul.f32 %v3333_v63, %v10378_v45  ;;  %v3187_v50 = vadd.f32 %v10416_v62, %v3125_v0  ;;  %v10420_v29 = vld [vmem:[#allocation102_spill] sm:$0xff]  ;;  %s3908_s1 = sshll.u32 %s4228_s20, 4  ;;  %s3909_s1 = int_to_ptr.vmem [resolvable:$true] %s3908_s1 }
 0x3e2   :  { %v8838_v28 = vmul.f32 %v3319_v16, %v10413_v9  ;;  %3689 = vst.msk [vmem:[#allocation3 + $0x38] sm:$0x3f] %vm72_vm2, %v3673_v4  ;;  %v3199_v27 = vadd.f32 %v10415_v37, %v3185_v57  ;;  %v3254_v54 = vadd.f32 %v8705_v14, %v3240_v56  ;;  %v10417_v49 = vld [vmem:[#allocation108_spill] sm:$0xff]  ;;  %v8852_v16 = vmul.f32 %v3333_v63, %v10380_v61  ;;  %v10419_v4 = vld [vmem:[#allocation14_spill] sm:$0xff]  ;;  %v10421_v56 = vld [vmem:[#allocation89_spill] sm:$0xff]  ;;  %v3665_v37 = vpop.permute.xlu0 %3664 }
 0x3e3   :  { %v8849_v44 = vmul.f32 %v3333_v63, %v10417_v49  ;;  %v3200_v31 = vadd.f32 %v10419_v4, %v3186_v18  ;;  %v3361_v14 = vstv %s8783_s19  ;;  %v3201_v45 = vadd.f32 %v10421_v56, %v3187_v50  ;;  %v10422_v9 = vld [vmem:[#allocation67_spill] sm:$0xff]  ;;  %v8869_v63 = vld [vmem:[#allocation3 + $0x10] sm:$0xff]  ;;  %v10423_v18 = vld [vmem:[#allocation118_spill] sm:$0xff]  ;;  %s9257_s19 = sld [smem:[#allocation4 + $0xd1]] }
 0x3e4   :  { %v3213_v3 = vadd.f32 %v10420_v29, %v3199_v27  ;;  %v3268_v57 = vadd.f32 %v8731_v24, %v3254_v54  ;;  %v3348_v0 = vmul.f32 %v3347_v55, %v10387_v32  ;;  %v8864_v35 = vmul.f32 %v3347_v55, %v10422_v9  ;;  %v10424_v54 = vld [vmem:[#allocation88_spill] sm:$0xff] }
 0x3e5   :  { %v8867_v61 = vmul.f32 %v3347_v55, %v10389_v52  ;;  %v3214_v62 = vadd.f32 %v10423_v18, %v3200_v31  ;;  %v8875_v50 = vmul.f32 %v3347_v55, %v10424_v54  ;;  %v8879_v32 = vld [vmem:[#allocation3 + $0x11] sm:$0xff]  ;;  %v3362_v31 = vmul.f32 %v3361_v14, %v10392_v34 }
 0x3e6   :  { %v3227_v27 = vadd.f32 %v8665_v17, %v3213_v3  ;;  %v3282_v24 = vadd.f32 %v8751_v22, %v3268_v57  ;;  %v8881_v49 = vld [vmem:[#allocation3 + $0x12] sm:$0xff]  ;;  %v3375_v22 = vstv %s8817_s0  ;;  %s9262_s0 = sld [smem:[#allocation4 + $0xe0]] }
 0x3e7   :  { %v8883_v52 = vld [vmem:[#allocation3 + $0x13] sm:$0xff]  ;;  %v3228_v56 = vadd.f32 %v8668_v46, %v3214_v62  ;;  %v3376_v62 = vmul.f32 %v3375_v22, %v10397_v13 }
 0x3e8   :  { %v10425_v59 = vld [vmem:[#allocation104_spill] sm:$0xff]  ;;  %v3241_v9 = vadd.f32 %v8690_v10, %v3227_v27  ;;  %v3296_v18 = vadd.f32 %v8769_v51, %v3282_v24  ;;  %v10430_v34 = vld [vmem:[#allocation113_spill] sm:$0xff]  ;;  %v10432_v10 = vld [vmem:[#allocation123_spill] sm:$0xff] }
 0x3e9   :  { %v3215_v4 = vadd.f32 %v10425_v59, %v3201_v45  ;;  %v10426_v17 = vld [vmem:[#allocation60_spill] sm:$0xff]  ;;  %v8901_v45 = vmul.f32 %v3361_v14, %v10395_v11  ;;  %v10431_v59 = vld [vmem:[#allocation58_spill] sm:$0xff]  ;;  %v3242_v46 = vadd.f32 %v8693_v8, %v3228_v56 }
 0x3ea   :  { %v8888_v29 = vmul.f32 %v3361_v14, %v10426_v17  ;;  %v8891_v55 = vld [vmem:[#allocation3 + $0x14] sm:$0xff]  ;;  %v8907_v17 = vmul.f32 %v3361_v14, %v10431_v59  ;;  %v3255_v51 = vadd.f32 %v10432_v10, %v3241_v9  ;;  %v3310_v11 = vadd.f32 %v8793_v2, %v3296_v18  ;;  %v10434_v14 = vld [vmem:[#allocation39_spill] sm:$0xff] }
 0x3eb   :  { %10427 = vst [vmem:[#allocation68_spill] sm:$0xff] %v8891_v55  ;;  %v8893_v3 = vld [vmem:[#allocation3 + $0x15] sm:$0xff]  ;;  %v3229_v54 = vadd.f32 %v10430_v34, %v3215_v4  ;;  %v8922_v24 = vmul.f32 %v3375_v22, %v10434_v14  ;;  %v8925_v4 = vmul.f32 %v3375_v22, %v10400_v21  ;;  %v3256_v8 = vadd.f32 %v8717_v1, %v3242_v46 }
 0x3ec   :  { %10428 = vst [vmem:[#allocation91_spill] sm:$0xff] %v8893_v3  ;;  %v8895_v57 = vld [vmem:[#allocation3 + $0x16] sm:$0xff]  ;;  %v3269_v13 = vadd.f32 %v8737_v36, %v3255_v51  ;;  %v3324_v2 = vadd.f32 %v8825_v53, %v3310_v11  ;;  %v3465_v46 = vstv %s8877_s21  ;;  %v10442_v11 = vld [vmem:[#allocation47_spill] sm:$0xff] }
 0x3ed   :  { %10429 = vst [vmem:[#allocation26_spill] sm:$0xff] %v8895_v57  ;;  %v10436_v56 = vld [vmem:[#allocation56_spill] sm:$0xff]  ;;  %v10438_v21 = vld [vmem:[#allocation101_spill] sm:$0xff]  ;;  %v10444_v57 = vld [vmem:[#allocation115_spill] sm:$0xff] }
 0x3ee   :  { %3684 = vst.msk [vmem:[#allocation3 + $0x10] sm:$0xff] %vm68_vm4, %v8711_v48  ;;  %v10433_v48 = vld [vmem:[#allocation71_spill] sm:$0xff]  ;;  %v3438_v9 = vmul.f32 %v3437_v6, %v10436_v56  ;;  %v8941_v10 = vmul.f32 %v3437_v6, %v10438_v21  ;;  %v10440_v14 = vld [vmem:[#allocation13_spill] sm:$0xff]  ;;  %v3283_v1 = vadd.f32 %v8755_v58, %v3269_v13  ;;  %v3338_v36 = vadd.f32 %v3334_v23, %v3324_v2  ;;  %v10441_v53 = vld [vmem:[#allocation72_spill] sm:$0xff] }
 0x3ef   :  { %3685 = vst.msk [vmem:[#allocation3 + $0x18] sm:$0x3f] %vm72_vm2, %v3665_v37  ;;  %v3243_v27 = vadd.f32 %v10433_v48, %v3229_v54  ;;  %v10435_v37 = vld [vmem:[#allocation93_spill] sm:$0xff]  ;;  %v10437_v54 = vld [vmem:[#allocation110_spill] sm:$0xff]  ;;  %v8955_v21 = vmul.f32 %v3451_v39, %v10444_v57 }
 0x3f0   :  { %v8928_v34 = vmul.f32 %v3375_v22, %v10435_v37  ;;  %v8938_v59 = vmul.f32 %v3437_v6, %v10437_v54  ;;  %v10439_v22 = vld [vmem:[#allocation122_spill] sm:$0xff]  ;;  %v3270_v37 = vadd.f32 %v10440_v14, %v3256_v8  ;;  %v3297_v8 = vadd.f32 %v8772_v47, %v3283_v1  ;;  %v10449_v1 = vld [vmem:[#allocation105_spill] sm:$0xff] }
 0x3f1   :  { %v3257_v18 = vadd.f32 %v8721_v33, %v3243_v27  ;;  %v8944_v48 = vmul.f32 %v3437_v6, %v10439_v22  ;;  %v3452_v33 = vmul.f32 %v3451_v39, %v10442_v11  ;;  %v10443_v27 = vld [vmem:[#allocation34_spill] sm:$0xff]  ;;  %v3352_v58 = vadd.f32 %v3348_v0, %v3338_v36  ;;  %v10450_v55 = vld [vmem:[#allocation17_spill] sm:$0xff] }
 0x3f2   :  { %v8952_v56 = vmul.f32 %v3451_v39, %v10443_v27  ;;  %v3284_v6 = vadd.f32 %v8758_v26, %v3270_v37  ;;  %v10445_v23 = vld [vmem:[#allocation30_spill] sm:$0xff]  ;;  %v3311_v47 = vadd.f32 %v8796_v20, %v3297_v8  ;;  %v3479_v37 = vstv %s8911_s22  ;;  %v10453_v8 = vld [vmem:[#allocation73_spill] sm:$0xff] }
 0x3f3   :  { %v3271_v51 = vadd.f32 %v10441_v53, %v3257_v18  ;;  %v8960_v13 = vmul.f32 %v3451_v39, %v10445_v23  ;;  %v10446_v18 = vld [vmem:[#allocation23_spill] sm:$0xff]  ;;  %v10447_v53 = vld [vmem:[#allocation29_spill] sm:$0xff]  ;;  %v10448_v57 = vld [vmem:[#allocation98_spill] sm:$0xff]  ;;  %v3366_v0 = vadd.f32 %v3362_v31, %v3352_v58  ;;  %v8977_v36 = vmul.f32 %v3465_v46, %v10449_v1 }
 0x3f4   :  { %v3466_v14 = vmul.f32 %v3465_v46, %v10446_v18  ;;  %v8967_v11 = vmul.f32 %v3465_v46, %v10447_v53  ;;  %v8970_v3 = vmul.f32 %v3465_v46, %v10448_v57  ;;  %v3298_v26 = vadd.f32 %v8775_v12, %v3284_v6  ;;  %v10451_v31 = vld [vmem:[#allocation28_spill] sm:$0xff]  ;;  %v10452_v46 = vld [vmem:[#allocation75_spill] sm:$0xff] }
 0x3f5   :  { %v3285_v2 = vadd.f32 %v8761_v5, %v3271_v51  ;;  %v3493_v5 = vstv %s8918_s23  ;;  %v3507_v51 = vstv %s8930_s24  ;;  %v3325_v57 = vadd.f32 %v8832_v7, %v3311_v47  ;;  %s3910_s23 = sshll.u32 %s9289_s2, 4  ;;  %s4229_s24 = smov 128   ;;  %s3911_s23 = int_to_ptr.hbm [resolvable:$true] %s3910_s23 }
 0x3f6   :  { %v3312_v18 = vadd.f32 %v8809_v42, %v3298_v26  ;;  %v3380_v30 = vadd.f32 %v3376_v62, %v3366_v0  ;;  %v3480_v12 = vmul.f32 %v3479_v37, %v10450_v55  ;;  %v8993_v6 = vmul.f32 %v3479_v37, %v10452_v46  ;;  %v10454_v62 = vld [vmem:[#allocation16_spill] sm:$0xff]  ;;  %v10455_v26 = vld [vmem:[#allocation99_spill] sm:$0xff] }
 0x3f7   :  { %v3299_v39 = vadd.f32 %v8781_v43, %v3285_v2  ;;  %v8990_v43 = vmul.f32 %v3479_v37, %v10451_v31  ;;  %v8996_v58 = vmul.f32 %v3479_v37, %v10453_v8  ;;  %v3339_v7 = vadd.f32 %v8849_v44, %v3325_v57  ;;  %v10456_v0 = vld [vmem:[#allocation55_spill] sm:$0xff]  ;;  %v10459_v57 = vld [vmem:[#allocation100_spill] sm:$0xff] }
 0x3f8   :  { %v3326_v42 = vadd.f32 %v8835_v19, %v3312_v18  ;;  %v3442_v55 = vadd.f32 %v3438_v9, %v3380_v30  ;;  %v3494_v2 = vmul.f32 %v3493_v5, %v10454_v62  ;;  %v9005_v47 = vmul.f32 %v3493_v5, %v10455_v26  ;;  %v10457_v46 = vld [vmem:[#allocation111_spill] sm:$0xff]  ;;  %v10458_v9 = vld [vmem:[#allocation97_spill] sm:$0xff] }
 0x3f9   :  { %v3313_v20 = vadd.f32 %v8813_v25, %v3299_v39  ;;  %v9008_v39 = vmul.f32 %v3493_v5, %v10456_v0  ;;  %v9011_v37 = vmul.f32 %v3493_v5, %v10457_v46  ;;  %v3353_v19 = vadd.f32 %v8864_v35, %v3339_v7  ;;  %v10460_v62 = vld [vmem:[#allocation103_spill] sm:$0xff]  ;;  %v10462_v7 = vld [vmem:[#allocation121_spill] sm:$0xff] }
 0x3fa   :  { %v3340_v41 = vadd.f32 %v8852_v16, %v3326_v42  ;;  %v3456_v18 = vadd.f32 %v3452_v33, %v3442_v55  ;;  %v3521_v44 = vstv %s8962_s25  ;;  %v9022_v0 = vmul.f32 %v3507_v51, %v10460_v62  ;;  %v10461_v33 = vld [vmem:[#allocation20_spill] sm:$0xff]  ;;  %v10464_v62 = vld [vmem:[#allocation117_spill] sm:$0xff]  ;;  %s4230_s25 = smov 8  }
 0x3fb   :  { %v3327_v25 = vadd.f32 %v8838_v28, %v3313_v20  ;;  %v3508_v28 = vmul.f32 %v3507_v51, %v10458_v9  ;;  %v9019_v20 = vmul.f32 %v3507_v51, %v10459_v57  ;;  %v3367_v16 = vadd.f32 %v8888_v29, %v3353_v19  ;;  %v10465_v19 = vld [vmem:[#allocation107_spill] sm:$0xff] }
 0x3fc   :  { %v3354_v5 = vadd.f32 %v8867_v61, %v3340_v41  ;;  %v3470_v35 = vadd.f32 %v3466_v14, %v3456_v18  ;;  %v9027_v42 = vmul.f32 %v3507_v51, %v10461_v33  ;;  %v3522_v55 = vmul.f32 %v3521_v44, %v10462_v7  ;;  %v10466_v33 = vld [vmem:[#allocation76_spill] sm:$0xff] }
 0x3fd   :  { %v3341_v30 = vadd.f32 %v8855_v38, %v3327_v25  ;;  %v10463_v25 = vld [vmem:[#allocation19_spill] sm:$0xff]  ;;  %v9037_v57 = vmul.f32 %v3521_v44, %v10464_v62  ;;  %v3381_v61 = vadd.f32 %v8922_v24, %v3367_v16  ;;  %v3535_v14 = vstv %s8981_s26  ;;  %v10469_v16 = vld [vmem:[#allocation46_spill] sm:$0xff] }
 0x3fe   :  { %v9034_v9 = vmul.f32 %v3521_v44, %v10463_v25  ;;  %v3368_v41 = vadd.f32 %v8901_v45, %v3354_v5  ;;  %v3484_v29 = vadd.f32 %v3480_v12, %v3470_v35  ;;  %v9044_v18 = vmul.f32 %v3521_v44, %v10465_v19  ;;  %v10467_v12 = vld [vmem:[#allocation95_spill] sm:$0xff]  ;;  %v10468_v44 = vld [vmem:[#allocation70_spill] sm:$0xff] }
 0x3ff   :  { %v3355_v38 = vadd.f32 %v8875_v50, %v3341_v30  ;;  %v3549_v50 = vstv %s8986_s27  ;;  %v3563_v30 = vstv %s8998_s28  ;;  %v3443_v62 = vadd.f32 %v8938_v59, %v3381_v61 }
 0x400   :  { %v3382_v7 = vadd.f32 %v8925_v4, %v3368_v41  ;;  %v3498_v25 = vadd.f32 %v3494_v2, %v3484_v29  ;;  %v3536_v45 = vmul.f32 %v3535_v14, %v10466_v33  ;;  %v9058_v5 = vmul.f32 %v3535_v14, %v10468_v44 }
 0x401   :  { %v3369_v51 = vadd.f32 %v8907_v17, %v3355_v38  ;;  %v3537_v17 = vmul.f32 %v3535_v14, %v10467_v12  ;;  %v9061_v35 = vmul.f32 %v3535_v14, %v10469_v16  ;;  %v3457_v59 = vadd.f32 %v8952_v56, %v3443_v62 }
 0x402   :  { %v3444_v4 = vadd.f32 %v8941_v10, %v3382_v7  ;;  %v3512_v2 = vadd.f32 %v3508_v28, %v3498_v25  ;;  %v3550_v33 = vmul.f32 %v3549_v50, %v10437_v54  ;;  %v3551_v38 = vmul.f32 %v3549_v50, %v8869_v63 }
 0x403   :  { %v3383_v24 = vadd.f32 %v8928_v34, %v3369_v51  ;;  %v9071_v41 = vmul.f32 %v3549_v50, %v10439_v22  ;;  %v9074_v61 = vmul.f32 %v3549_v50, %v8785_v15  ;;  %v3471_v10 = vadd.f32 %v8967_v11, %v3457_v59  ;;  %v10473_v59 = vld [vmem:[#allocation100_spill] sm:$0xff] }
 0x404   :  { %v3458_v29 = vadd.f32 %v8955_v21, %v3444_v4  ;;  %v3526_v14 = vadd.f32 %v3522_v55, %v3512_v2  ;;  %v3577_v56 = vstv %s9029_s29  ;;  %v3564_v54 = vmul.f32 %v3563_v30, %v10443_v27  ;;  %v10474_v2 = vld [vmem:[#allocation91_spill] sm:$0xff] }
 0x405   :  { %v3445_v34 = vadd.f32 %v8944_v48, %v3383_v24  ;;  %v3565_v48 = vmul.f32 %v3563_v30, %v8879_v32  ;;  %v9083_v63 = vmul.f32 %v3563_v30, %v10445_v23  ;;  %v3485_v22 = vadd.f32 %v8990_v43, %v3471_v10 }
 0x406   :  { %v3472_v15 = vadd.f32 %v8970_v3, %v3458_v29  ;;  %v3540_v21 = vadd.f32 %v3536_v45, %v3526_v14  ;;  %v9088_v11 = vmul.f32 %v3563_v30, %v8787_v40  ;;  %v3578_v27 = vmul.f32 %v3577_v56, %v10447_v53  ;;  %v10470_v30 = vld [vmem:[#allocation119_spill] sm:$0xff]  ;;  %v10471_v45 = vld [vmem:[#allocation68_spill] sm:$0xff] }
 0x407   :  { %v3459_v28 = vadd.f32 %v8960_v13, %v3445_v34  ;;  %v3579_v32 = vmul.f32 %v3577_v56, %v8881_v49  ;;  %v3591_v23 = vstv %s9048_s30  ;;  %v3499_v3 = vadd.f32 %v9005_v47, %v3485_v22 }
 0x408   :  { %v3486_v55 = vadd.f32 %v8993_v6, %v3472_v15  ;;  %v3554_v25 = vadd.f32 %v3550_v33, %v3540_v21  ;;  %v9099_v43 = vmul.f32 %v3577_v56, %v10449_v1  ;;  %v9103_v51 = vmul.f32 %v3577_v56, %v8789_v60  ;;  %v10475_v33 = vld [vmem:[#allocation20_spill] sm:$0xff]  ;;  %v10477_v56 = vld [vmem:[#allocation19_spill] sm:$0xff]  ;;  %v3691_v15 = vld [vmem:[#allocation3] sm:$0xff] }
 0x409   :  { %v3473_v13 = vadd.f32 %v8977_v36, %v3459_v28  ;;  %v3605_v50 = vstv %s9053_s3  ;;  %v3619_v36 = vstv %s9063_s4  ;;  %v3513_v53 = vadd.f32 %v9019_v20, %v3499_v3  ;;  %v10478_v28 = vld [vmem:[#allocation26_spill] sm:$0xff]  ;;  %v10479_v3 = vld [vmem:[#allocation65_spill] sm:$0xff] }
 0x40a   :  { %v3500_v49 = vadd.f32 %v9008_v39, %v3486_v55  ;;  %v3568_v6 = vadd.f32 %v3564_v54, %v3554_v25  ;;  %v3592_v47 = vmul.f32 %v3591_v23, %v10451_v31  ;;  %v9117_v60 = vmul.f32 %v3591_v23, %v10453_v8  ;;  %v10472_v8 = vld [vmem:[#allocation21_spill] sm:$0xff] }
 0x40b   :  { %v3487_v40 = vadd.f32 %v8996_v58, %v3473_v13  ;;  %v3593_v58 = vmul.f32 %v3591_v23, %v8883_v52  ;;  %v9120_v7 = vmul.f32 %v3591_v23, %v10470_v30  ;;  %v3527_v20 = vadd.f32 %v9034_v9, %v3513_v53  ;;  %v9163_v23 = vld [vmem:[#allocation3 + $0x28] sm:$0xff] }
 0x40c   :  { %v3514_v39 = vadd.f32 %v9022_v0, %v3500_v49  ;;  %v3582_v31 = vadd.f32 %v3578_v27, %v3568_v6  ;;  %v3606_v62 = vmul.f32 %v3605_v50, %v10455_v26  ;;  %v3607_v24 = vmul.f32 %v3605_v50, %v10471_v45  ;;  %v9161_v27 = vld [vmem:[#allocation3 + $0x8] sm:$0xff] }
 0x40d   :  { %v3501_v1 = vadd.f32 %v9011_v37, %v3487_v40  ;;  %v9130_v52 = vmul.f32 %v3605_v50, %v10457_v46  ;;  %v9133_v12 = vmul.f32 %v3605_v50, %v10472_v8  ;;  %v3541_v16 = vadd.f32 %v3537_v17, %v3527_v20  ;;  %v3705_v40 = vld [vmem:[#allocation3 + $0x1] sm:$0xff]  ;;  %v9174_v6 = vld [vmem:[#allocation3 + $0x29] sm:$0xff] }
 0x40e   :  { %v3528_v44 = vadd.f32 %v9037_v57, %v3514_v39  ;;  %v3596_v0 = vadd.f32 %v3592_v47, %v3582_v31  ;;  %v3633_v4 = vstv %s9090_s5  ;;  %v3620_v26 = vmul.f32 %v3619_v36, %v10473_v59  ;;  %v10476_v57 = vld [vmem:[#allocation12_spill] sm:$0xff]  ;;  %v3707_v53 = vld [vmem:[#allocation3 + $0x21] sm:$0xff] }
 0x40f   :  { %v3515_v37 = vadd.f32 %v9027_v42, %v3501_v1  ;;  %v3621_v42 = vmul.f32 %v3619_v36, %v10474_v2  ;;  %v9141_v34 = vmul.f32 %v3619_v36, %v10475_v33  ;;  %v3555_v29 = vadd.f32 %v3551_v38, %v3541_v16  ;;  %v3719_v39 = vld [vmem:[#allocation3 + $0x2] sm:$0xff] }
 0x410   :  { %v3542_v46 = vadd.f32 %v9058_v5, %v3528_v44  ;;  %v3610_v10 = vadd.f32 %v3606_v62, %v3596_v0  ;;  %v9147_v17 = vmul.f32 %v3619_v36, %v10476_v57  ;;  %v9152_v54 = vmul.f32 %v3633_v4, %v10478_v28  ;;  %v9186_v31 = vld [vmem:[#allocation3 + $0x9] sm:$0xff] }
 0x411   :  { %v3529_v9 = vadd.f32 %v9044_v18, %v3515_v37  ;;  %v3634_v18 = vmul.f32 %v3633_v4, %v10477_v56  ;;  %v3695_v22 = vstv %s9107_s6  ;;  %v3569_v38 = vadd.f32 %v3565_v48, %v3555_v29  ;;  %v3721_v37 = vld [vmem:[#allocation3 + $0x22] sm:$0xff] }
 0x412   :  { %v3556_v5 = vadd.f32 %v9071_v41, %v3542_v46  ;;  %v3624_v21 = vadd.f32 %v3620_v26, %v3610_v10  ;;  %v9159_v13 = vmul.f32 %v3633_v4, %v10465_v19  ;;  %v9167_v25 = vmul.f32 %v3633_v4, %v10479_v3  ;;  %v3733_v44 = vld [vmem:[#allocation3 + $0x3] sm:$0xff] }
 0x413   :  { %v3543_v14 = vadd.f32 %v9061_v35, %v3529_v9  ;;  %v3693_v35 = vld [vmem:[#allocation3 + $0x20] sm:$0xff]  ;;  %v3709_v50 = vstv %s9112_s7  ;;  %v3723_v36 = vstv %s9122_s8  ;;  %v3583_v48 = vadd.f32 %v3579_v32, %v3569_v38  ;;  %v9198_v4 = vld [vmem:[#allocation3 + $0xa] sm:$0xff] }
 0x414   :  { %v3570_v41 = vadd.f32 %v9083_v63, %v3556_v5  ;;  %v3638_v19 = vadd.f32 %v3634_v18, %v3624_v21  ;;  %v3696_v49 = vmul.f32 %v3695_v22, %v3691_v15  ;;  %v9178_v1 = vmul.f32 %v3695_v22, %v3693_v35  ;;  %v9200_v9 = vld [vmem:[#allocation3 + $0x2a] sm:$0xff] }
 0x415   :  { %v3557_v55 = vadd.f32 %v9074_v61, %v3543_v14  ;;  %v3697_v61 = vmul.f32 %v3695_v22, %v9161_v27  ;;  %v9181_v30 = vmul.f32 %v3695_v22, %v9163_v23  ;;  %v3597_v32 = vadd.f32 %v3593_v58, %v3583_v48  ;;  %v3747_v33 = vld [vmem:[#allocation3 + $0x4] sm:$0xff]  ;;  %v9218_v38 = vld [vmem:[#allocation3 + $0xc] sm:$0xff] }
 0x416   :  { %v3584_v63 = vadd.f32 %v9099_v43, %v3570_v41  ;;  %v3700_v20 = vadd.f32 %v3696_v49, %v3638_v19  ;;  %v3710_v62 = vmul.f32 %v3709_v50, %v3705_v40  ;;  %v9189_v45 = vmul.f32 %v3709_v50, %v3707_v53  ;;  %v3761_v28 = vld [vmem:[#allocation3 + $0x5] sm:$0xff]  ;;  %v9228_v48 = vld [vmem:[#allocation3 + $0xd] sm:$0xff] }
 0x417   :  { %v3571_v47 = vadd.f32 %v9088_v11, %v3557_v55  ;;  %v9192_v8 = vmul.f32 %v3709_v50, %v9174_v6  ;;  %v3737_v16 = vstv %s9143_s9  ;;  %v3611_v58 = vadd.f32 %v3607_v24, %v3597_v32  ;;  %v3735_v24 = vld [vmem:[#allocation3 + $0x23] sm:$0xff]  ;;  %v9237_v32 = vld [vmem:[#allocation3 + $0x2d] sm:$0xff] }
 0x418   :  { %v3598_v43 = vadd.f32 %v9117_v60, %v3584_v63  ;;  %v3714_v0 = vadd.f32 %v3710_v62, %v3700_v20  ;;  %v3724_v59 = vmul.f32 %v3723_v36, %v3719_v39  ;;  %v3711_v26 = vmul.f32 %v3709_v50, %v9186_v31  ;;  %v9206_v60 = vld [vmem:[#allocation3 + $0xb] sm:$0xff] }
 0x419   :  { %v3585_v11 = vadd.f32 %v9103_v51, %v3571_v47  ;;  %v3726_v2 = vmul.f32 %v3723_v36, %v3721_v37  ;;  %v3751_v46 = vstv %s9155_s10  ;;  %v3625_v10 = vadd.f32 %v3621_v42, %v3611_v58  ;;  %v9216_v42 = vld [vmem:[#allocation3 + $0x2b] sm:$0xff] }
 0x41a   :  { %v3612_v29 = vadd.f32 %v9130_v52, %v3598_v43  ;;  %v3728_v57 = vadd.f32 %v3724_v59, %v3714_v0  ;;  %v3738_v14 = vmul.f32 %v3737_v16, %v3733_v44  ;;  %v3725_v18 = vmul.f32 %v3723_v36, %v9198_v4  ;;  %v3775_v3 = vld [vmem:[#allocation3 + $0x6] sm:$0xff] }
 0x41b   :  { %v3599_v51 = vadd.f32 %v9120_v7, %v3585_v11  ;;  %v3727_v7 = vmul.f32 %v3723_v36, %v9200_v9  ;;  %v3765_v15 = vstv %s9171_s11  ;;  %v3639_v52 = vadd.f32 %v9152_v54, %v3625_v10  ;;  %v3749_v54 = vld [vmem:[#allocation3 + $0x24] sm:$0xff]  ;;  %v9226_v36 = vld [vmem:[#allocation3 + $0x2c] sm:$0xff] }
 0x41c   :  { %v3626_v22 = vadd.f32 %v9141_v34, %v3612_v29  ;;  %v3742_v5 = vadd.f32 %v3738_v14, %v3728_v57  ;;  %v3752_v21 = vmul.f32 %v3751_v46, %v3747_v33  ;;  %v3739_v35 = vmul.f32 %v3737_v16, %v9206_v60  ;;  %v3789_v47 = vld [vmem:[#allocation3 + $0x7] sm:$0xff] }
 0x41d   :  { %v3613_v56 = vadd.f32 %v9133_v12, %v3599_v51  ;;  %v3740_v55 = vmul.f32 %v3737_v16, %v3735_v24  ;;  %v3779_v40 = vstv %s9183_s12  ;;  %v3701_v50 = vadd.f32 %v3697_v61, %v3639_v52  ;;  %v3763_v63 = vld [vmem:[#allocation3 + $0x25] sm:$0xff]  ;;  %v9252_v10 = vld [vmem:[#allocation3 + $0x2e] sm:$0xff] }
 0x41e   :  { %v3640_v34 = vadd.f32 %v9159_v13, %v3626_v22  ;;  %v3756_v41 = vadd.f32 %v3752_v21, %v3742_v5  ;;  %v3766_v19 = vmul.f32 %v3765_v15, %v3761_v28  ;;  %v3741_v49 = vmul.f32 %v3737_v16, %v9216_v42  ;;  %v3777_v58 = vld [vmem:[#allocation3 + $0x26] sm:$0xff]  ;;  %v3792_v52 = vld [vmem:[#allocation3 + $0x2f] sm:$0xff] }
 0x41f   :  { %v3627_v12 = vadd.f32 %v9147_v17, %v3613_v56  ;;  %v3753_v53 = vmul.f32 %v3751_v46, %v9218_v38  ;;  %v3793_v39 = vstv %s9195_s13  ;;  %v3715_v61 = vadd.f32 %v3711_v26, %v3701_v50  ;;  %v3791_v22 = vld [vmem:[#allocation3 + $0x27] sm:$0xff] }
 0x420   :  { %v3702_v13 = vadd.f32 %v9178_v1, %v3640_v34  ;;  %v3770_v20 = vadd.f32 %v3766_v19, %v3756_v41  ;;  %v3780_v62 = vmul.f32 %v3779_v40, %v3775_v3  ;;  %v3755_v11 = vmul.f32 %v3751_v46, %v9226_v36  ;;  %v9245_v1 = vld [vmem:[#allocation3 + $0xe] sm:$0xff] }
 0x421   :  { %v3641_v17 = vadd.f32 %v9167_v25, %v3627_v12  ;;  %v3754_v25 = vmul.f32 %v3751_v46, %v3749_v54  ;;  %v3767_v44 = vmul.f32 %v3765_v15, %v9228_v48  ;;  %v3729_v43 = vadd.f32 %v3725_v18, %v3715_v61  ;;  %v3804_v34 = vld [vmem:[#allocation3 + $0x10] sm:$0xff] }
 0x422   :  { %v3716_v16 = vadd.f32 %v9189_v45, %v3702_v13  ;;  %v3784_v0 = vadd.f32 %v3780_v62, %v3770_v20  ;;  %v3794_v59 = vmul.f32 %v3793_v39, %v3789_v47  ;;  %v3768_v26 = vmul.f32 %v3765_v15, %v3763_v63  ;;  %v3790_v45 = vld [vmem:[#allocation3 + $0xf] sm:$0xff] }
 0x423   :  { %v3703_v37 = vadd.f32 %v9181_v30, %v3641_v17  ;;  %v3769_v30 = vmul.f32 %v3765_v15, %v9237_v32  ;;  %v3807_v33 = vstv %s9212_s14  ;;  %v3743_v29 = vadd.f32 %v3739_v35, %v3729_v43 }
 0x424   :  { %v3730_v46 = vadd.f32 %v3726_v2, %v3716_v16  ;;  %v3798_v57 = vadd.f32 %v3794_v59, %v3784_v0  ;;  %v3808_v24 = vmul.f32 %v3807_v33, %v9161_v27  ;;  %v3781_v56 = vmul.f32 %v3779_v40, %v9245_v1 }
 0x425   :  { %v3717_v51 = vadd.f32 %v9192_v8, %v3703_v37  ;;  %v3782_v18 = vmul.f32 %v3779_v40, %v3777_v58  ;;  %v3821_v8 = vstv %s9223_s15  ;;  %v3757_v15 = vadd.f32 %v3753_v53, %v3743_v29  ;;  %v3846_v29 = vld [vmem:[#allocation3 + $0x13] sm:$0xff] }
 0x426   :  { %v3744_v28 = vadd.f32 %v3740_v55, %v3730_v46  ;;  %v3812_v2 = vadd.f32 %v3808_v24, %v3798_v57  ;;  %v3822_v5 = vmul.f32 %v3821_v8, %v9186_v31  ;;  %v3783_v12 = vmul.f32 %v3779_v40, %v9252_v10  ;;  %v3818_v40 = vld [vmem:[#allocation3 + $0x11] sm:$0xff] }
 0x427   :  { %v3731_v14 = vadd.f32 %v3727_v7, %v3717_v51  ;;  %v3795_v35 = vmul.f32 %v3793_v39, %v3790_v45  ;;  %v3835_v27 = vstv %s9234_s16  ;;  %v3771_v3 = vadd.f32 %v3767_v44, %v3757_v15  ;;  %v3820_v51 = vld [vmem:[#allocation3 + $0x31] sm:$0xff] }
 0x428   :  { %v3758_v7 = vadd.f32 %v3754_v25, %v3744_v28  ;;  %v3826_v50 = vadd.f32 %v3822_v5, %v3812_v2  ;;  %v3836_v55 = vmul.f32 %v3835_v27, %v9198_v4  ;;  %v3796_v41 = vmul.f32 %v3793_v39, %v3791_v22  ;;  %v3832_v4 = vld [vmem:[#allocation3 + $0x12] sm:$0xff] }
 0x429   :  { %v3745_v21 = vadd.f32 %v3741_v49, %v3731_v14  ;;  %v3797_v19 = vmul.f32 %v3793_v39, %v3792_v52  ;;  %v3849_v17 = vstv %s9242_s17  ;;  %v3785_v31 = vadd.f32 %v3781_v56, %v3771_v3  ;;  %v3806_v49 = vld [vmem:[#allocation3 + $0x30] sm:$0xff] }
 0x42a   :  { %v3772_v53 = vadd.f32 %v3768_v26, %v3758_v7  ;;  %v3840_v47 = vadd.f32 %v3836_v55, %v3826_v50  ;;  %v3850_v13 = vmul.f32 %v3849_v17, %v9206_v60  ;;  %v3809_v63 = vmul.f32 %v3807_v33, %v3804_v34  ;;  %v3834_v14 = vld [vmem:[#allocation3 + $0x32] sm:$0xff] }
 0x42b   :  { %v3759_v54 = vadd.f32 %v3755_v11, %v3745_v21  ;;  %v3810_v20 = vmul.f32 %v3807_v33, %v9163_v23  ;;  %v3863_v62 = vstv %s9250_s18  ;;  %v3799_v25 = vadd.f32 %v3795_v35, %v3785_v31  ;;  %v3860_v15 = vld [vmem:[#allocation3 + $0x14] sm:$0xff] }
 0x42c   :  { %v3786_v37 = vadd.f32 %v3782_v18, %v3772_v53  ;;  %v3854_v11 = vadd.f32 %v3850_v13, %v3840_v47  ;;  %v3864_v39 = vmul.f32 %v3863_v62, %v9218_v38  ;;  %v3811_v16 = vmul.f32 %v3807_v33, %v3806_v49  ;;  %v3862_v34 = vld [vmem:[#allocation3 + $0x34] sm:$0xff] }
 0x42d   :  { %v3773_v61 = vadd.f32 %v3769_v30, %v3759_v54  ;;  %v3823_v43 = vmul.f32 %v3821_v8, %v3818_v40  ;;  %v3877_v58 = vstv %s9257_s19  ;;  %v3813_v59 = vadd.f32 %v3809_v63, %v3799_v25  ;;  %v3890_v47 = vld [vmem:[#allocation3 + $0x36] sm:$0xff] }
 0x42e   :  { %v3800_v0 = vadd.f32 %v3796_v41, %v3786_v37  ;;  %v3868_v60 = vadd.f32 %v3864_v39, %v3854_v11  ;;  %v3878_v26 = vmul.f32 %v3877_v58, %v9228_v48  ;;  %v3824_v23 = vmul.f32 %v3821_v8, %v9174_v6  ;;  %v3848_v48 = vld [vmem:[#allocation3 + $0x33] sm:$0xff] }
 0x42f   :  { %v3787_v44 = vadd.f32 %v3783_v12, %v3773_v61  ;;  %v3837_v46 = vmul.f32 %v3835_v27, %v3832_v4  ;;  %v3891_v45 = vstv %s9262_s0  ;;  %v3827_v24 = vadd.f32 %v3823_v43, %v3813_v59  ;;  %v3874_v12 = vld [vmem:[#allocation3 + $0x15] sm:$0xff] }
 0x430   :  { %v3814_v57 = vadd.f32 %v3810_v20, %v3800_v0  ;;  %v3882_v38 = vadd.f32 %v3878_v26, %v3868_v60  ;;  %v3892_v33 = vmul.f32 %v3891_v45, %v9245_v1  ;;  %v3825_v18 = vmul.f32 %v3821_v8, %v3820_v51 }
 0x431   :  { %v3801_v30 = vadd.f32 %v3797_v19, %v3787_v44  ;;  %v3838_v28 = vmul.f32 %v3835_v27, %v9200_v9  ;;  %v3841_v52 = vadd.f32 %v3837_v46, %v3827_v24  ;;  %v3851_v2 = vmul.f32 %v3849_v17, %v3846_v29  ;;  %v3888_v9 = vld [vmem:[#allocation3 + $0x16] sm:$0xff] }
 0x432   :  { %v3828_v22 = vadd.f32 %v3824_v23, %v3814_v57  ;;  %v3896_v5 = vadd.f32 %v3892_v33, %v3882_v38  ;;  %v3839_v21 = vmul.f32 %v3835_v27, %v3834_v14  ;;  %v3852_v7 = vmul.f32 %v3849_v17, %v9216_v42  ;;  %v3876_v19 = vld [vmem:[#allocation3 + $0x35] sm:$0xff] }
 0x433   :  { %v3815_v56 = vadd.f32 %v3811_v16, %v3801_v30  ;;  %v3855_v3 = vadd.f32 %v3851_v2, %v3841_v52  ;;  %v3865_v50 = vmul.f32 %v3863_v62, %v3860_v15  ;;  %v3853_v8 = vmul.f32 %v3849_v17, %v3848_v48 }
 0x434   :  { %v3842_v35 = vadd.f32 %v3838_v28, %v3828_v22  ;;  %3900 = vst.msk [vmem:[#allocation7] sm:$0xff] %vm68_vm4, %v3896_v5  ;;  %v3866_v54 = vmul.f32 %v3863_v62, %v9226_v36  ;;  %v3879_v53 = vmul.f32 %v3877_v58, %v3874_v12  ;;  %v3867_v27 = vmul.f32 %v3863_v62, %v3862_v34 }
 0x435   :  { %v3829_v6 = vadd.f32 %v3825_v18, %v3815_v56  ;;  %v3869_v41 = vadd.f32 %v3865_v50, %v3855_v3  ;;  %v3880_v40 = vmul.f32 %v3877_v58, %v9237_v32  ;;  %v3893_v13 = vmul.f32 %v3891_v45, %v3888_v9 }
 0x436   :  { %v3856_v55 = vadd.f32 %v3852_v7, %v3842_v35  ;;  %v3881_v63 = vmul.f32 %v3877_v58, %v3876_v19  ;;  %v3894_v17 = vmul.f32 %v3891_v45, %v9252_v10  ;;  %v3895_v62 = vmul.f32 %v3891_v45, %v3890_v47 }
 0x437   :  { %v3843_v1 = vadd.f32 %v3839_v21, %v3829_v6  ;;  %v3883_v42 = vadd.f32 %v3879_v53, %v3869_v41 }
 0x438   :  { %v3870_v49 = vadd.f32 %v3866_v54, %v3856_v55 }
 0x439   :  { %v3857_v31 = vadd.f32 %v3853_v8, %v3843_v1  ;;  %v3897_v20 = vadd.f32 %v3893_v13, %v3883_v42 }
 0x43a   :  { %v3884_v36 = vadd.f32 %v3880_v40, %v3870_v49 }
 0x43b   :  { %v3871_v61 = vadd.f32 %v3867_v27, %v3857_v31  ;;  %3901 = vst.msk [vmem:[#allocation7 + $0x8] sm:$0xff] %vm68_vm4, %v3897_v20 }
 0x43c   :  { %v3898_v25 = vadd.f32 %v3894_v17, %v3884_v36 }
 0x43d   :  { %v3885_v37 = vadd.f32 %v3881_v63, %v3871_v61 }
 0x43e   :  { %3902 = vst.msk [vmem:[#allocation7 + $0x10] sm:$0xff] %vm68_vm4, %v3898_v25 }
 0x43f   :  { %v3899_v32 = vadd.f32 %v3895_v62, %v3885_v37 }
 0x441   :  { %3903 = vst.msk [vmem:[#allocation7 + $0x18] sm:$0xff] %vm68_vm4, %v3899_v32 }
 0x442   :  { %3916 = dma.vmem_to_hbm [thread:$0]  %s3909_s1, 512, %s3911_s23, [#allocation5], %s4229_s24, %s4229_s24, %s4230_s25  }
 0x443   :  { %4209 = dma.done.wait [#allocation5], 512  }
 0x444   :  { %4210 = vsyncadd [#allocation5], 4294966784 }
 0x445   :  { %3921 = vsyncpa [#allocation5], 1 }
 0x446   :  { %3922 = vsyncpa [#allocation6], 1 }

</bundles_post_ra>
